<compile_context>
chip_gen: v5e
topology: v5e:2x2
jax: 0.10.0
libtpu: 0.0.40
codegen_flags: <defaults>
</compile_context>

<pallas_src>
import jax
import jax.numpy as jnp
from jax.experimental import pallas as pl
from jax.experimental.pallas import tpu as pltpu

HIDDEN_SIZES = [1024, 512, 256, 128, 64, 32]  # linear1..linear6 output dims
LANE = 128


def _round_up(x, m):
    return (x + m - 1) // m * m


def mlp_kernel(x_ref, *refs):
    """x_ref: (TB, in_size) f32 activation tile.

    refs = (w1, b1, w2, b2, ..., w7, b7, o_ref); weights are bf16
    (in_pad_i, out_pad_i), biases are f32 (1, out_pad_i),
    o_ref is (TB, out_pad) f32.
    """
    o_ref = refs[-1]
    wb = refs[:-1]
    n_layers = len(wb) // 2

    # In-kernel downcast: f32 tile straight from HBM, bf16 only for the MXU.
    h = x_ref[...].astype(jnp.bfloat16)
    for i in range(n_layers):
        w = wb[2 * i][...]        # (in_pad_i, out_pad_i) bf16
        b = wb[2 * i + 1][...]    # (1, out_pad_i)        f32
        # MXU matmul with f32 accumulation; bias add + ReLU on the VPU in f32.
        acc = jnp.dot(h, w, preferred_element_type=jnp.float32) + b
        if i < n_layers - 1:      # no ReLU after the final (linear7) layer
            h = jnp.maximum(acc, 0.0).astype(jnp.bfloat16)
        else:
            h = acc               # keep final logits in f32
    o_ref[...] = h.astype(o_ref.dtype)


def deep_model_forward(x, params, *, batch_tile=None):
    """x: (B, C, H, W) float32; params: list of (W:(in,out) f32, b:(out,) f32)."""
    B = x.shape[0]
    in_size = 1
    for d in x.shape[1:]:
        in_size *= d
    x2 = x.reshape(B, in_size)                    # == xb.view(xb.size(0), -1), stays f32

    out_size = params[-1][1].shape[0]
    n_layers = len(params)

    # ---- Batch tile: as large as possible (amortize per-step overhead and the
    # six tiny-layer MXU drains), but keep >=4 grid steps (>=2 per TensorCore
    # under megacore) when the batch allows. Floor 256 (multiple of 128/256).
    if batch_tile is None:
        batch_tile = 1024
        while batch_tile > 256 and B < 4 * batch_tile:
            batch_tile //= 2
    tb = batch_tile if B >= batch_tile else B     # full-array block for tiny batches
    grid = (pl.cdiv(B, tb),)

    # ---- Flatten params: bf16 weights, f32 biases (1, out_pad_i).
    # Zero-pad every feature dim < 128 up to 128 so all inter-layer activations
    # are lane-dense. Padded columns stay exactly 0 (zero weight cols + zero
    # bias -> ReLU(0)=0), and padded rows of the next weight are zero, so the
    # real outputs are unchanged.
    flat = []
    padded_dims = []
    prev_pad = in_size
    for li, (w, b) in enumerate(params):
        fin, fout = w.shape
        fout_pad = _round_up(max(fout, LANE), LANE)
        w = jnp.pad(w, ((0, prev_pad - fin), (0, fout_pad - fout))).astype(jnp.bfloat16)
        b = jnp.pad(b.astype(jnp.float32), ((0, fout_pad - fout),)).reshape(1, -1)
        flat.append(w)
        flat.append(b)
        padded_dims.append((prev_pad, fout_pad))
        prev_pad = fout_pad
    out_pad = prev_pad

    # Activations tiled over batch; weights/biases constant-indexed so they
    # stay resident in VMEM across all grid steps.
    in_specs = [pl.BlockSpec((tb, in_size), lambda i: (i, 0))]
    for arr in flat:
        in_specs.append(pl.BlockSpec(arr.shape, lambda i: (0, 0)))
    out_specs = pl.BlockSpec((tb, out_pad), lambda i: (i, 0))

    # ---- VMEM limit derived from the actual footprint (not a fixed 48 MiB):
    # resident weights + double-buffered input/output tiles + f32 intermediates.
    weight_bytes = sum(int(a.size) * a.dtype.itemsize for a in flat)
    act_bytes = tb * in_size * 4                  # f32 activation tile
    out_bytes = tb * out_pad * 4                  # f32 output tile
    widest = max(d[1] for d in padded_dims)
    scratch_bytes = 3 * tb * widest * 4           # in-kernel f32 temporaries
    vmem_bytes = weight_bytes + 2 * act_bytes + 2 * out_bytes + scratch_bytes + (4 << 20)
    vmem_limit = int(max(16 << 20, min(_round_up(vmem_bytes, 1 << 20), 56 << 20)))

    rows = grid[0] * tb
    flops = 2 * rows * sum(m * n for m, n in padded_dims)
    bytes_accessed = int(x2.size) * 4 + weight_bytes + B * out_pad * 4
    cost = pl.CostEstimate(
        flops=flops, transcendentals=0, bytes_accessed=bytes_accessed
    )

    out = pl.pallas_call(
        mlp_kernel,
        out_shape=jax.ShapeDtypeStruct((B, out_pad), jnp.float32),
        grid=grid,
        in_specs=in_specs,
        out_specs=out_specs,
        compiler_params=pltpu.CompilerParams(
            dimension_semantics=("parallel",),    # megacore shard on v7x
            vmem_limit_bytes=vmem_limit,
        ),
        cost_estimate=cost,
    )(x2, *flat)

    return out[:, :out_size]


def init_params(key, in_size, out_size):
    """Deterministic PyTorch-Linear-style init: U(-1/sqrt(fan_in), 1/sqrt(fan_in))."""
    sizes = [in_size] + HIDDEN_SIZES + [out_size]
    params = []
    for i in range(len(sizes) - 1):
        fan_in, fan_out = sizes[i], sizes[i + 1]
        key, kw, kb = jax.random.split(key, 3)
        bound = 1.0 / (fan_in ** 0.5)
        w = jax.random.uniform(kw, (fan_in, fan_out), jnp.float32, -bound, bound)
        b = jax.random.uniform(kb, (fan_out,), jnp.float32, -bound, bound)
        params.append((w, b))
    return params


if __name__ == "__main__":
    key = jax.random.PRNGKey(0)
    kx, kp = jax.random.split(key)

    # Small example shapes consistent with the module: NCHW image flattened.
    B, C, H, W = 8, 4, 16, 16
    in_size = C * H * W           # 1024
    out_size = 10

    x = jax.random.normal(kx, (B, C, H, W), jnp.float32)
    params = init_params(kp, in_size, out_size)

    out = deep_model_forward(x, params)
    out = jax.block_until_ready(out)
    assert out.shape == (B, out_size)

    # Reference mirroring the kernel's dtype policy (bf16 weights/activations
    # into the matmul, f32 accumulation + bias + ReLU), matching the PyTorch
    # forward structure: 7 Linear layers, ReLU after all but the last.
    # (Zero-padding of feature dims in the kernel is exact, so no padding here.)
    h = x.reshape(B, -1).astype(jnp.bfloat16)
    for i, (w, b) in enumerate(params):
        acc = jnp.dot(h, w.astype(jnp.bfloat16),
                      preferred_element_type=jnp.float32) + b
        if i < len(params) - 1:
            h = jnp.maximum(acc, 0.0).astype(jnp.bfloat16)
        else:
            h = acc
    ref = h
    assert jnp.allclose(out, ref, atol=2e-2, rtol=2e-2), float(
        jnp.max(jnp.abs(out - ref))
    )

    print("KERNEL_OK")
</pallas_src>

<mosaic_0001>
module attributes {stable_mosaic.version = 11 : i64} {
  func.func @mlp_kernel(%arg0: i32, %arg1: memref<8x1024xf32, #tpu.memory_space<vmem>>, %arg2: memref<1024x1024xbf16, #tpu.memory_space<vmem>>, %arg3: memref<1x1024xf32, #tpu.memory_space<vmem>>, %arg4: memref<1024x512xbf16, #tpu.memory_space<vmem>>, %arg5: memref<1x512xf32, #tpu.memory_space<vmem>>, %arg6: memref<512x256xbf16, #tpu.memory_space<vmem>>, %arg7: memref<1x256xf32, #tpu.memory_space<vmem>>, %arg8: memref<256x128xbf16, #tpu.memory_space<vmem>>, %arg9: memref<1x128xf32, #tpu.memory_space<vmem>>, %arg10: memref<128x128xbf16, #tpu.memory_space<vmem>>, %arg11: memref<1x128xf32, #tpu.memory_space<vmem>>, %arg12: memref<128x128xbf16, #tpu.memory_space<vmem>>, %arg13: memref<1x128xf32, #tpu.memory_space<vmem>>, %arg14: memref<128x128xbf16, #tpu.memory_space<vmem>>, %arg15: memref<1x128xf32, #tpu.memory_space<vmem>>, %arg16: memref<8x128xf32, #tpu.memory_space<vmem>>) attributes {dimension_semantics = [#tpu.dimension_semantics<parallel>], iteration_bounds = array<i64: 1>, scalar_prefetch = 0 : i64, scratch_operands = 0 : i64, tpu.core_type = #tpu.core_type<tc>, window_params = [{transform_indices = @transform_0, window_bounds = array<i64: 8, 1024>}, {pipeline_mode = #tpu.pipeline_mode<synchronous>, transform_indices = @transform_1, window_bounds = array<i64: 1024, 1024>}, {pipeline_mode = #tpu.pipeline_mode<synchronous>, transform_indices = @transform_2, window_bounds = array<i64: 1, 1024>}, {pipeline_mode = #tpu.pipeline_mode<synchronous>, transform_indices = @transform_3, window_bounds = array<i64: 1024, 512>}, {pipeline_mode = #tpu.pipeline_mode<synchronous>, transform_indices = @transform_4, window_bounds = array<i64: 1, 512>}, {pipeline_mode = #tpu.pipeline_mode<synchronous>, transform_indices = @transform_5, window_bounds = array<i64: 512, 256>}, {pipeline_mode = #tpu.pipeline_mode<synchronous>, transform_indices = @transform_6, window_bounds = array<i64: 1, 256>}, {pipeline_mode = #tpu.pipeline_mode<synchronous>, transform_indices = @transform_7, window_bounds = array<i64: 256, 128>}, {pipeline_mode = #tpu.pipeline_mode<synchronous>, transform_indices = @transform_8, window_bounds = array<i64: 1, 128>}, {pipeline_mode = #tpu.pipeline_mode<synchronous>, transform_indices = @transform_9, window_bounds = array<i64: 128, 128>}, {pipeline_mode = #tpu.pipeline_mode<synchronous>, transform_indices = @transform_10, window_bounds = array<i64: 1, 128>}, {pipeline_mode = #tpu.pipeline_mode<synchronous>, transform_indices = @transform_11, window_bounds = array<i64: 128, 128>}, {pipeline_mode = #tpu.pipeline_mode<synchronous>, transform_indices = @transform_12, window_bounds = array<i64: 1, 128>}, {pipeline_mode = #tpu.pipeline_mode<synchronous>, transform_indices = @transform_13, window_bounds = array<i64: 128, 128>}, {pipeline_mode = #tpu.pipeline_mode<synchronous>, transform_indices = @transform_14, window_bounds = array<i64: 1, 128>}, {transform_indices = @transform_15, window_bounds = array<i64: 8, 128>}]} {
    %c0 = arith.constant 0 : index
    %c0_0 = arith.constant 0 : index
    %0 = vector.load %arg1[%c0, %c0_0] : memref<8x1024xf32, #tpu.memory_space<vmem>>, vector<8x1024xf32>
    %1 = arith.truncf %0 : vector<8x1024xf32> to vector<8x1024xbf16>
    %c0_1 = arith.constant 0 : index
    %c0_2 = arith.constant 0 : index
    %2 = vector.load %arg2[%c0_1, %c0_2] : memref<1024x1024xbf16, #tpu.memory_space<vmem>>, vector<1024x1024xbf16>
    %c0_3 = arith.constant 0 : index
    %c0_4 = arith.constant 0 : index
    %3 = vector.load %arg3[%c0_3, %c0_4] : memref<1x1024xf32, #tpu.memory_space<vmem>>, vector<1x1024xf32>
    %cst = arith.constant dense<0.000000e+00> : vector<8x1024xf32>
    %4 = tpu.matmul %1, %2, %cst {dimension_numbers = #tpu.dot_dimension_numbers<[1], [0], [0], [1], [0, 0, 1, 1], [], []>} : vector<8x1024xbf16>, vector<1024x1024xbf16>, vector<8x1024xf32> -> vector<8x1024xf32>
    %5 = vector.broadcast %3 : vector<1x1024xf32> to vector<8x1024xf32>
    %6 = arith.addf %4, %5 : vector<8x1024xf32>
    %cst_5 = arith.constant 0.000000e+00 : f32
    %7 = vector.broadcast %cst_5 : f32 to vector<8x1024xf32>
    %8 = arith.maximumf %6, %7 : vector<8x1024xf32>
    %9 = arith.truncf %8 : vector<8x1024xf32> to vector<8x1024xbf16>
    %c0_6 = arith.constant 0 : index
    %c0_7 = arith.constant 0 : index
    %10 = vector.load %arg4[%c0_6, %c0_7] : memref<1024x512xbf16, #tpu.memory_space<vmem>>, vector<1024x512xbf16>
    %c0_8 = arith.constant 0 : index
    %c0_9 = arith.constant 0 : index
    %11 = vector.load %arg5[%c0_8, %c0_9] : memref<1x512xf32, #tpu.memory_space<vmem>>, vector<1x512xf32>
    %cst_10 = arith.constant dense<0.000000e+00> : vector<8x512xf32>
    %12 = tpu.matmul %9, %10, %cst_10 {dimension_numbers = #tpu.dot_dimension_numbers<[1], [0], [0], [1], [0, 0, 1, 1], [], []>} : vector<8x1024xbf16>, vector<1024x512xbf16>, vector<8x512xf32> -> vector<8x512xf32>
    %13 = vector.broadcast %11 : vector<1x512xf32> to vector<8x512xf32>
    %14 = arith.addf %12, %13 : vector<8x512xf32>
    %cst_11 = arith.constant 0.000000e+00 : f32
    %15 = vector.broadcast %cst_11 : f32 to vector<8x512xf32>
    %16 = arith.maximumf %14, %15 : vector<8x512xf32>
    %17 = arith.truncf %16 : vector<8x512xf32> to vector<8x512xbf16>
    %c0_12 = arith.constant 0 : index
    %c0_13 = arith.constant 0 : index
    %18 = vector.load %arg6[%c0_12, %c0_13] : memref<512x256xbf16, #tpu.memory_space<vmem>>, vector<512x256xbf16>
    %c0_14 = arith.constant 0 : index
    %c0_15 = arith.constant 0 : index
    %19 = vector.load %arg7[%c0_14, %c0_15] : memref<1x256xf32, #tpu.memory_space<vmem>>, vector<1x256xf32>
    %cst_16 = arith.constant dense<0.000000e+00> : vector<8x256xf32>
    %20 = tpu.matmul %17, %18, %cst_16 {dimension_numbers = #tpu.dot_dimension_numbers<[1], [0], [0], [1], [0, 0, 1, 1], [], []>} : vector<8x512xbf16>, vector<512x256xbf16>, vector<8x256xf32> -> vector<8x256xf32>
    %21 = vector.broadcast %19 : vector<1x256xf32> to vector<8x256xf32>
    %22 = arith.addf %20, %21 : vector<8x256xf32>
    %cst_17 = arith.constant 0.000000e+00 : f32
    %23 = vector.broadcast %cst_17 : f32 to vector<8x256xf32>
    %24 = arith.maximumf %22, %23 : vector<8x256xf32>
    %25 = arith.truncf %24 : vector<8x256xf32> to vector<8x256xbf16>
    %c0_18 = arith.constant 0 : index
    %c0_19 = arith.constant 0 : index
    %26 = vector.load %arg8[%c0_18, %c0_19] : memref<256x128xbf16, #tpu.memory_space<vmem>>, vector<256x128xbf16>
    %c0_20 = arith.constant 0 : index
    %c0_21 = arith.constant 0 : index
    %27 = vector.load %arg9[%c0_20, %c0_21] : memref<1x128xf32, #tpu.memory_space<vmem>>, vector<1x128xf32>
    %cst_22 = arith.constant dense<0.000000e+00> : vector<8x128xf32>
    %28 = tpu.matmul %25, %26, %cst_22 {dimension_numbers = #tpu.dot_dimension_numbers<[1], [0], [0], [1], [0, 0, 1, 1], [], []>} : vector<8x256xbf16>, vector<256x128xbf16>, vector<8x128xf32> -> vector<8x128xf32>
    %29 = vector.broadcast %27 : vector<1x128xf32> to vector<8x128xf32>
    %30 = arith.addf %28, %29 : vector<8x128xf32>
    %cst_23 = arith.constant 0.000000e+00 : f32
    %31 = vector.broadcast %cst_23 : f32 to vector<8x128xf32>
    %32 = arith.maximumf %30, %31 : vector<8x128xf32>
    %33 = arith.truncf %32 : vector<8x128xf32> to vector<8x128xbf16>
    %c0_24 = arith.constant 0 : index
    %c0_25 = arith.constant 0 : index
    %34 = vector.load %arg10[%c0_24, %c0_25] : memref<128x128xbf16, #tpu.memory_space<vmem>>, vector<128x128xbf16>
    %c0_26 = arith.constant 0 : index
    %c0_27 = arith.constant 0 : index
    %35 = vector.load %arg11[%c0_26, %c0_27] : memref<1x128xf32, #tpu.memory_space<vmem>>, vector<1x128xf32>
    %cst_28 = arith.constant dense<0.000000e+00> : vector<8x128xf32>
    %36 = tpu.matmul %33, %34, %cst_28 {dimension_numbers = #tpu.dot_dimension_numbers<[1], [0], [0], [1], [0, 0, 1, 1], [], []>} : vector<8x128xbf16>, vector<128x128xbf16>, vector<8x128xf32> -> vector<8x128xf32>
    %37 = vector.broadcast %35 : vector<1x128xf32> to vector<8x128xf32>
    %38 = arith.addf %36, %37 : vector<8x128xf32>
    %cst_29 = arith.constant 0.000000e+00 : f32
    %39 = vector.broadcast %cst_29 : f32 to vector<8x128xf32>
    %40 = arith.maximumf %38, %39 : vector<8x128xf32>
    %41 = arith.truncf %40 : vector<8x128xf32> to vector<8x128xbf16>
    %c0_30 = arith.constant 0 : index
    %c0_31 = arith.constant 0 : index
    %42 = vector.load %arg12[%c0_30, %c0_31] : memref<128x128xbf16, #tpu.memory_space<vmem>>, vector<128x128xbf16>
    %c0_32 = arith.constant 0 : index
    %c0_33 = arith.constant 0 : index
    %43 = vector.load %arg13[%c0_32, %c0_33] : memref<1x128xf32, #tpu.memory_space<vmem>>, vector<1x128xf32>
    %cst_34 = arith.constant dense<0.000000e+00> : vector<8x128xf32>
    %44 = tpu.matmul %41, %42, %cst_34 {dimension_numbers = #tpu.dot_dimension_numbers<[1], [0], [0], [1], [0, 0, 1, 1], [], []>} : vector<8x128xbf16>, vector<128x128xbf16>, vector<8x128xf32> -> vector<8x128xf32>
    %45 = vector.broadcast %43 : vector<1x128xf32> to vector<8x128xf32>
    %46 = arith.addf %44, %45 : vector<8x128xf32>
    %cst_35 = arith.constant 0.000000e+00 : f32
    %47 = vector.broadcast %cst_35 : f32 to vector<8x128xf32>
    %48 = arith.maximumf %46, %47 : vector<8x128xf32>
    %49 = arith.truncf %48 : vector<8x128xf32> to vector<8x128xbf16>
    %c0_36 = arith.constant 0 : index
    %c0_37 = arith.constant 0 : index
    %50 = vector.load %arg14[%c0_36, %c0_37] : memref<128x128xbf16, #tpu.memory_space<vmem>>, vector<128x128xbf16>
    %c0_38 = arith.constant 0 : index
    %c0_39 = arith.constant 0 : index
    %51 = vector.load %arg15[%c0_38, %c0_39] : memref<1x128xf32, #tpu.memory_space<vmem>>, vector<1x128xf32>
    %cst_40 = arith.constant dense<0.000000e+00> : vector<8x128xf32>
    %52 = tpu.matmul %49, %50, %cst_40 {dimension_numbers = #tpu.dot_dimension_numbers<[1], [0], [0], [1], [0, 0, 1, 1], [], []>} : vector<8x128xbf16>, vector<128x128xbf16>, vector<8x128xf32> -> vector<8x128xf32>
    %53 = vector.broadcast %51 : vector<1x128xf32> to vector<8x128xf32>
    %54 = arith.addf %52, %53 : vector<8x128xf32>
    %c0_41 = arith.constant 0 : index
    %c0_42 = arith.constant 0 : index
    %55 = vector.load %arg16[%c0_41, %c0_42] : memref<8x128xf32, #tpu.memory_space<vmem>>, vector<8x128xf32>
    tpu.vector_store %arg16[%c0_41, %c0_42], %54 {strides = array<i32>} : memref<8x128xf32, #tpu.memory_space<vmem>>, vector<8x128xf32>,
    return
  }
  func.func @transform_0(%arg0: i32) -> (i32, i32) {
    %c0_i32 = arith.constant 0 : i32
    %c0_i32_0 = arith.constant 0 : i32
    return %arg0, %c0_i32 : i32, i32
  }
  func.func @transform_1(%arg0: i32) -> (i32, i32) {
    %c0_i32 = arith.constant 0 : i32
    %c0_i32_0 = arith.constant 0 : i32
    %c0_i32_1 = arith.constant 0 : i32
    return %c0_i32, %c0_i32_0 : i32, i32
  }
  func.func @transform_2(%arg0: i32) -> (i32, i32) {
    %c0_i32 = arith.constant 0 : i32
    %c0_i32_0 = arith.constant 0 : i32
    %c0_i32_1 = arith.constant 0 : i32
    return %c0_i32, %c0_i32_0 : i32, i32
  }
  func.func @transform_3(%arg0: i32) -> (i32, i32) {
    %c0_i32 = arith.constant 0 : i32
    %c0_i32_0 = arith.constant 0 : i32
    %c0_i32_1 = arith.constant 0 : i32
    return %c0_i32, %c0_i32_0 : i32, i32
  }
  func.func @transform_4(%arg0: i32) -> (i32, i32) {
    %c0_i32 = arith.constant 0 : i32
    %c0_i32_0 = arith.constant 0 : i32
    %c0_i32_1 = arith.constant 0 : i32
    return %c0_i32, %c0_i32_0 : i32, i32
  }
  func.func @transform_5(%arg0: i32) -> (i32, i32) {
    %c0_i32 = arith.constant 0 : i32
    %c0_i32_0 = arith.constant 0 : i32
    %c0_i32_1 = arith.constant 0 : i32
    return %c0_i32, %c0_i32_0 : i32, i32
  }
  func.func @transform_6(%arg0: i32) -> (i32, i32) {
    %c0_i32 = arith.constant 0 : i32
    %c0_i32_0 = arith.constant 0 : i32
    %c0_i32_1 = arith.constant 0 : i32
    return %c0_i32, %c0_i32_0 : i32, i32
  }
  func.func @transform_7(%arg0: i32) -> (i32, i32) {
    %c0_i32 = arith.constant 0 : i32
    %c0_i32_0 = arith.constant 0 : i32
    %c0_i32_1 = arith.constant 0 : i32
    return %c0_i32, %c0_i32_0 : i32, i32
  }
  func.func @transform_8(%arg0: i32) -> (i32, i32) {
    %c0_i32 = arith.constant 0 : i32
    %c0_i32_0 = arith.constant 0 : i32
    %c0_i32_1 = arith.constant 0 : i32
    return %c0_i32, %c0_i32_0 : i32, i32
  }
  func.func @transform_9(%arg0: i32) -> (i32, i32) {
    %c0_i32 = arith.constant 0 : i32
    %c0_i32_0 = arith.constant 0 : i32
    %c0_i32_1 = arith.constant 0 : i32
    return %c0_i32, %c0_i32_0 : i32, i32
  }
  func.func @transform_10(%arg0: i32) -> (i32, i32) {
    %c0_i32 = arith.constant 0 : i32
    %c0_i32_0 = arith.constant 0 : i32
    %c0_i32_1 = arith.constant 0 : i32
    return %c0_i32, %c0_i32_0 : i32, i32
  }
  func.func @transform_11(%arg0: i32) -> (i32, i32) {
    %c0_i32 = arith.constant 0 : i32
    %c0_i32_0 = arith.constant 0 : i32
    %c0_i32_1 = arith.constant 0 : i32
    return %c0_i32, %c0_i32_0 : i32, i32
  }
  func.func @transform_12(%arg0: i32) -> (i32, i32) {
    %c0_i32 = arith.constant 0 : i32
    %c0_i32_0 = arith.constant 0 : i32
    %c0_i32_1 = arith.constant 0 : i32
    return %c0_i32, %c0_i32_0 : i32, i32
  }
  func.func @transform_13(%arg0: i32) -> (i32, i32) {
    %c0_i32 = arith.constant 0 : i32
    %c0_i32_0 = arith.constant 0 : i32
    %c0_i32_1 = arith.constant 0 : i32
    return %c0_i32, %c0_i32_0 : i32, i32
  }
  func.func @transform_14(%arg0: i32) -> (i32, i32) {
    %c0_i32 = arith.constant 0 : i32
    %c0_i32_0 = arith.constant 0 : i32
    %c0_i32_1 = arith.constant 0 : i32
    return %c0_i32, %c0_i32_0 : i32, i32
  }
  func.func @transform_15(%arg0: i32) -> (i32, i32) {
    %c0_i32 = arith.constant 0 : i32
    %c0_i32_0 = arith.constant 0 : i32
    return %arg0, %c0_i32 : i32, i32
  }
}

</mosaic_0001>

<bundles_post_ra>
// kernel: tpu_custom_call.1
= control target key start
LH: loop header
LB: loop body
LE: loop exit
PB: predicated region body
PF: predicated region fallthrough
CT: control target
= control target key end

     0   :  { %20 = vsyncpa [#allocation3], 0  ;;  %s12340_s0 = inlined_call_operand.hbm [shape: f32[8,1024], index: 0, kind: input, shape index: {}]   ;;  %s12341_s1 = inlined_call_operand.hbm [shape: bf16[1024,1024], index: 1, kind: input, shape index: {}]   ;;  %s12342_s2 = inlined_call_operand.hbm [shape: f32[1,1024], index: 2, kind: input, shape index: {}]   ;;  %s12343_s3 = inlined_call_operand.hbm [shape: bf16[1024,512], index: 3, kind: input, shape index: {}]   ;;  %s12344_s4 = inlined_call_operand.hbm [shape: f32[1,512], index: 4, kind: input, shape index: {}]   ;;  %s12345_s5 = inlined_call_operand.hbm [shape: bf16[512,256], index: 5, kind: input, shape index: {}]   ;;  %s12346_s6 = inlined_call_operand.hbm [shape: f32[1,256], index: 6, kind: input, shape index: {}]   ;;  %s12347_s7 = inlined_call_operand.hbm [shape: bf16[256,128], index: 7, kind: input, shape index: {}]   ;;  %s12348_s8 = inlined_call_operand.hbm [shape: f32[1,128], index: 8, kind: input, shape index: {}]   ;;  %s12349_s9 = inlined_call_operand.hbm [shape: bf16[128,128], index: 9, kind: input, shape index: {}]   ;;  %s12350_s10 = inlined_call_operand.hbm [shape: f32[1,128], index: 10, kind: input, shape index: {}]   ;;  %s12351_s11 = inlined_call_operand.hbm [shape: bf16[128,128], index: 11, kind: input, shape index: {}]   ;;  %s12352_s12 = inlined_call_operand.hbm [shape: f32[1,128], index: 12, kind: input, shape index: {}]   ;;  %s12353_s13 = inlined_call_operand.hbm [shape: bf16[128,128], index: 13, kind: input, shape index: {}]   ;;  %s12354_s14 = inlined_call_operand.hbm [shape: f32[1,128], index: 14, kind: input, shape index: {}]   ;;  %s12355_s15 = inlined_call_operand.hbm [shape: f32[8,128], index: 15, kind: output, shape index: {}]  }
   0x1   :  { %21 = vsyncpa [#allocation6], 0 }
   0x2   :  { %22 = vsyncpa [#allocation9], 0 }
   0x3   :  { %23 = vsyncpa [#allocation12], 0 }
   0x4   :  { %24 = vsyncpa [#allocation15], 0 }
   0x5   :  { %25 = vsyncpa [#allocation18], 0 }
   0x6   :  { %26 = vsyncpa [#allocation21], 0 }
   0x7   :  { %27 = vsyncpa [#allocation24], 0  ;;  %s44_s20 = sshll.u32 %s12341_s1, 4  ;;  %s45_s20 = int_to_ptr.hbm [resolvable:$true] %s44_s20 }
   0x8   :  { %28 = vsyncpa [#allocation4], 0  ;;  %s11916_s21 = smov [#allocation5]   ;;  %s68_s25 = sshll.u32 %s12343_s3, 4  ;;  %s69_s25 = int_to_ptr.hbm [resolvable:$true] %s68_s25 }
   0x9   :  { %s46_s22 = sshll.u32 %s11916_s21, 4  ;;  %s11917_s26 = smov 512   ;;  %s47_s22 = int_to_ptr.vmem [resolvable:$true] %s46_s22 }
   0xa   :  { %s11918_s27 = smov 32   ;;  %s11919_s28 = smov [#allocation8]  }
   0xb   :  { %52 = dma.hbm_to_vmem [thread:$0]  %s45_s20, 65536, %s47_s22, [#allocation6], %s11917_s26, %s11917_s26, %s11918_s27  }
   0xc   :  { %s70_s29 = sshll.u32 %s11919_s28, 4  ;;  %s11920_s30 = smov 256   ;;  %s71_s29 = int_to_ptr.vmem [resolvable:$true] %s70_s29 }
   0xd   :  { %s11921_s16 = smov 16   ;;  %s92_s18 = sshll.u32 %s12345_s5, 4  ;;  %s93_s18 = int_to_ptr.hbm [resolvable:$true] %s92_s18 }
   0xe   :  { %76 = dma.hbm_to_vmem [thread:$0]  %s69_s25, 32768, %s71_s29, [#allocation9], %s11920_s30, %s11920_s30, %s11921_s16  }
   0xf   :  { %s11922_s19 = smov [#allocation11]   ;;  %s116_s24 = sshll.u32 %s12347_s7, 4  ;;  %s117_s24 = int_to_ptr.hbm [resolvable:$true] %s116_s24 }
  0x10   :  { %s94_s21 = sshll.u32 %s11922_s19, 4  ;;  %s11923_s20 = smov 128   ;;  %s95_s21 = int_to_ptr.vmem [resolvable:$true] %s94_s21 }
  0x11   :  { %s11924_s22 = smov 8   ;;  %s11925_s26 = smov [#allocation14]  }
  0x12   :  { %100 = dma.hbm_to_vmem [thread:$0]  %s93_s18, 8192, %s95_s21, [#allocation12], %s11923_s20, %s11923_s20, %s11924_s22  }
  0x13   :  { %s118_s27 = sshll.u32 %s11925_s26, 4  ;;  %s11926_s25 = smov 64   ;;  %s119_s27 = int_to_ptr.vmem [resolvable:$true] %s118_s27 }
  0x14   :  { %s11927_s28 = smov 4   ;;  %s140_s30 = sshll.u32 %s12349_s9, 4  ;;  %s141_s30 = int_to_ptr.hbm [resolvable:$true] %s140_s30 }
  0x15   :  { %124 = dma.hbm_to_vmem [thread:$0]  %s117_s24, 2048, %s119_s27, [#allocation15], %s11926_s25, %s11926_s25, %s11927_s28  }
  0x16   :  { %s11928_s16 = smov [#allocation17]   ;;  %s164_s19 = sshll.u32 %s12351_s11, 4  ;;  %s165_s19 = int_to_ptr.hbm [resolvable:$true] %s164_s19 }
  0x17   :  { %s142_s1 = sshll.u32 %s11928_s16, 4  ;;  %s11929_s18 = smov [#allocation20]   ;;  %s143_s1 = int_to_ptr.vmem [resolvable:$true] %s142_s1 }
  0x18   :  { %148 = dma.hbm_to_vmem [thread:$0]  %s141_s30, 1024, %s143_s1, [#allocation18], %s11926_s25, %s11926_s25, %s11927_s28  }
  0x19   :  { %s166_s21 = sshll.u32 %s11929_s18, 4  ;;  %s188_s24 = sshll.u32 %s12353_s13, 4  ;;  %s167_s21 = int_to_ptr.vmem [resolvable:$true] %s166_s21  ;;  %s189_s24 = int_to_ptr.hbm [resolvable:$true] %s188_s24 }
  0x1a   :  { %172 = dma.hbm_to_vmem [thread:$0]  %s165_s19, 1024, %s167_s21, [#allocation21], %s11926_s25, %s11926_s25, %s11927_s28  }
  0x1b   :  { %s34_s22 = sshll.u32 %s12340_s0, 4  ;;  %s11930_s26 = smov [#allocation23]   ;;  %s35_s22 = int_to_ptr.hbm [resolvable:$true] %s34_s22 }
  0x1c   :  { %s190_s27 = sshll.u32 %s11930_s26, 4  ;;  %s11931_s11 = smov [#allocation2]   ;;  %s191_s27 = int_to_ptr.vmem [resolvable:$true] %s190_s27 }
  0x1d   :  { %196 = dma.hbm_to_vmem [thread:$0]  %s189_s24, 1024, %s191_s27, [#allocation24], %s11926_s25, %s11926_s25, %s11927_s28  }
  0x1e   :  { %s36_s29 = sshll.u32 %s11931_s11, 4  ;;  %s58_s16 = sshll.u32 %s12342_s2, 4  ;;  %s37_s29 = int_to_ptr.vmem [resolvable:$true] %s36_s29  ;;  %s59_s16 = int_to_ptr.hbm [resolvable:$true] %s58_s16 }
  0x1f   :  { %39 = dma.hbm_to_vmem [thread:$0]  %s35_s22, 1024, %s37_s29, [#allocation3]  }
  0x20   :  { %s82_s17 = sshll.u32 %s12344_s4, 4  ;;  %s11932_s7 = smov [#allocation7]   ;;  %s83_s17 = int_to_ptr.hbm [resolvable:$true] %s82_s17 }
  0x21   :  { %s60_s0 = sshll.u32 %s11932_s7, 4  ;;  %s11933_s19 = smov [#allocation10]   ;;  %s61_s0 = int_to_ptr.vmem [resolvable:$true] %s60_s0 }
  0x22   :  { %63 = dma.hbm_to_vmem [thread:$0]  %s59_s16, 128, %s61_s0, [#allocation6]  }
  0x23   :  { %s84_s25 = sshll.u32 %s11933_s19, 4  ;;  %s106_s21 = sshll.u32 %s12346_s6, 4  ;;  %s85_s25 = int_to_ptr.vmem [resolvable:$true] %s84_s25  ;;  %s107_s21 = int_to_ptr.hbm [resolvable:$true] %s106_s21 }
  0x24   :  { %87 = dma.hbm_to_vmem [thread:$0]  %s83_s17, 64, %s85_s25, [#allocation9]  }
  0x25   :  { %s130_s3 = sshll.u32 %s12348_s8, 4  ;;  %s11934_s24 = smov [#allocation13]   ;;  %s131_s3 = int_to_ptr.hbm [resolvable:$true] %s130_s3 }
  0x26   :  { %s108_s4 = sshll.u32 %s11934_s24, 4  ;;  %s11935_s9 = smov [#allocation16]   ;;  %s109_s4 = int_to_ptr.vmem [resolvable:$true] %s108_s4 }
  0x27   :  { %111 = dma.hbm_to_vmem [thread:$0]  %s107_s21, 32, %s109_s4, [#allocation12]  }
  0x28   :  { %s132_s20 = sshll.u32 %s11935_s9, 4  ;;  %s154_s27 = sshll.u32 %s12350_s10, 4  ;;  %s133_s20 = int_to_ptr.vmem [resolvable:$true] %s132_s20  ;;  %s155_s27 = int_to_ptr.hbm [resolvable:$true] %s154_s27 }
  0x29   :  { %135 = dma.hbm_to_vmem [thread:$0]  %s131_s3, 16, %s133_s20, [#allocation15]  }
  0x2a   :  { %s178_s29 = sshll.u32 %s12352_s12, 4  ;;  %s11936_s5 = smov [#allocation19]   ;;  %s179_s29 = int_to_ptr.hbm [resolvable:$true] %s178_s29 }
  0x2b   :  { %s156_s8 = sshll.u32 %s11936_s5, 4  ;;  %s11937_s30 = smov [#allocation22]   ;;  %s157_s8 = int_to_ptr.vmem [resolvable:$true] %s156_s8 }
  0x2c   :  { %159 = dma.hbm_to_vmem [thread:$0]  %s155_s27, 16, %s157_s8, [#allocation18]  }
  0x2d   :  { %s180_s16 = sshll.u32 %s11937_s30, 4  ;;  %s202_s17 = sshll.u32 %s12354_s14, 4  ;;  %s181_s16 = int_to_ptr.vmem [resolvable:$true] %s180_s16  ;;  %s203_s17 = int_to_ptr.hbm [resolvable:$true] %s202_s17 }
  0x2e   :  { %183 = dma.hbm_to_vmem [thread:$0]  %s179_s29, 16, %s181_s16, [#allocation21]  }
  0x2f   :  { %s11938_s10 = smov [#allocation25]  }
  0x30   :  { %s204_s7 = sshll.u32 %s11938_s10, 4  ;;  %s205_s7 = int_to_ptr.vmem [resolvable:$true] %s204_s7 }
  0x31   :  { %207 = dma.hbm_to_vmem [thread:$0]  %s203_s17, 16, %s205_s7, [#allocation24]  }
  0x32   :  { %11898 = dma.done.wait [#allocation3], 1024  }
  0x33   :  { %11899 = vsyncadd [#allocation3], 4294966272 }
  0x34   :  { %11900 = dma.done.wait [#allocation6], 65664  }
  0x35   :  { %11901 = vsyncadd [#allocation6], 4294901632 }
  0x36   :  { %11902 = dma.done.wait [#allocation9], 32832  }
  0x37   :  { %11903 = vsyncadd [#allocation9], 4294934464 }
  0x38   :  { %11904 = dma.done.wait [#allocation12], 8224  }
  0x39   :  { %11905 = vsyncadd [#allocation12], 4294959072 }
  0x3a   :  { %11906 = dma.done.wait [#allocation15], 2064  }
  0x3b   :  { %11907 = vsyncadd [#allocation15], 4294965232 }
  0x3c   :  { %11908 = dma.done.wait [#allocation18], 1040  }
  0x3d   :  { %11909 = vsyncadd [#allocation18], 4294966256 }
  0x3e   :  { %11910 = dma.done.wait [#allocation21], 1040  }
  0x3f   :  { %11911 = vsyncadd [#allocation21], 4294966256 }
  0x40   :  { %11912 = dma.done.wait [#allocation24], 1040  }
  0x41   :  { %11913 = vsyncadd [#allocation24], 4294966256  ;;  %v7348_v0 = vld [vmem:[#allocation5 + $0x1c0] sm:$0xf]  ;;  %s11939_s12 = smov [#allocation26]   ;;  %s7105_s25 = sshll.u32 %s12355_s15, 4  ;;  %s7106_s25 = int_to_ptr.hbm [resolvable:$true] %s7105_s25 }
  0x42   :  { %v10670_v1 = vld [vmem:[#allocation5 + $0x1dc] sm:$0xf0]  ;;  %s7103_s14 = sshll.u32 %s11939_s12, 4  ;;  %s7104_s14 = int_to_ptr.vmem [resolvable:$true] %s7103_s14 }
  0x43   :  { %v7604_v2 = vld [vmem:[#allocation5 + $0x3c0] sm:$0xf]  ;;  %v7349_v3 = vor.u32 %v10670_v1, %v7348_v0 }
  0x44   :  { %v10734_v4 = vld [vmem:[#allocation5 + $0x3dc] sm:$0xf0] }
  0x45   :  { %v7860_v5 = vld [vmem:[#allocation5 + $0x5c0] sm:$0xf]  ;;  %v7605_v7 = vor.u32 %v10734_v4, %v7604_v2  ;;  %3374 = vmatpush.bf16.msra.mxu0 %v7349_v3 }
  0x46   :  { %v10798_v6 = vld [vmem:[#allocation5 + $0x5dc] sm:$0xf0] }
  0x47   :  { %v7861_v8 = vor.u32 %v10798_v6, %v7860_v5  ;;  %v8116_v9 = vld [vmem:[#allocation5 + $0x7c0] sm:$0xf]  ;;  %3387 = vmatpush.bf16.msra.mxu1 %v7605_v7 }
  0x48   :  { %v10862_v10 = vld [vmem:[#allocation5 + $0x7dc] sm:$0xf0] }
  0x49   :  { %v7316_v11 = vld [vmem:[#allocation5 + $0x180] sm:$0xf]  ;;  %v8117_v12 = vor.u32 %v10862_v10, %v8116_v9  ;;  %3400 = vmatpush.bf16.msra.mxu2 %v7861_v8 }
  0x4a   :  { %v10662_v13 = vld [vmem:[#allocation5 + $0x19c] sm:$0xf0] }
  0x4b   :  { %v7572_v14 = vld [vmem:[#allocation5 + $0x380] sm:$0xf]  ;;  %v7317_v16 = vor.u32 %v10662_v13, %v7316_v11  ;;  %3413 = vmatpush.bf16.msra.mxu3 %v8117_v12 }
  0x4c   :  { %v10726_v15 = vld [vmem:[#allocation5 + $0x39c] sm:$0xf0] }
  0x4d   :  { %v7573_v17 = vor.u32 %v10726_v15, %v7572_v14  ;;  %v7828_v18 = vld [vmem:[#allocation5 + $0x580] sm:$0xf]  ;;  %3375 = vmatpush.bf16.msra.mxu0 %v7317_v16 }
  0x4e   :  { %v10790_v19 = vld [vmem:[#allocation5 + $0x59c] sm:$0xf0] }
  0x4f   :  { %v8084_v20 = vld [vmem:[#allocation5 + $0x780] sm:$0xf]  ;;  %v7829_v21 = vor.u32 %v10790_v19, %v7828_v18  ;;  %3388 = vmatpush.bf16.msra.mxu1 %v7573_v17 }
  0x50   :  { %v10854_v22 = vld [vmem:[#allocation5 + $0x79c] sm:$0xf0] }
  0x51   :  { %v7284_v23 = vld [vmem:[#allocation5 + $0x140] sm:$0xf]  ;;  %v8085_v25 = vor.u32 %v10854_v22, %v8084_v20  ;;  %3401 = vmatpush.bf16.msra.mxu2 %v7829_v21 }
  0x52   :  { %v10654_v24 = vld [vmem:[#allocation5 + $0x15c] sm:$0xf0] }
  0x53   :  { %v7540_v26 = vld [vmem:[#allocation5 + $0x340] sm:$0xf]  ;;  %v7285_v29 = vor.u32 %v10654_v24, %v7284_v23  ;;  %3414 = vmatpush.bf16.msra.mxu3 %v8085_v25 }
  0x54   :  { %v10718_v27 = vld [vmem:[#allocation5 + $0x35c] sm:$0xf0] }
  0x55   :  { %v7796_v28 = vld [vmem:[#allocation5 + $0x540] sm:$0xf]  ;;  %v7541_v33 = vor.u32 %v10718_v27, %v7540_v26  ;;  %3376 = vmatpush.bf16.msra.mxu0 %v7285_v29 }
  0x56   :  { %v10782_v30 = vld [vmem:[#allocation5 + $0x55c] sm:$0xf0] }
  0x57   :  { %v8052_v31 = vld [vmem:[#allocation5 + $0x740] sm:$0xf]  ;;  %v7797_v34 = vor.u32 %v10782_v30, %v7796_v28  ;;  %3389 = vmatpush.bf16.msra.mxu1 %v7541_v33 }
  0x58   :  { %v10846_v32 = vld [vmem:[#allocation5 + $0x75c] sm:$0xf0] }
  0x59   :  { %v7252_v35 = vld [vmem:[#allocation5 + $0x100] sm:$0xf]  ;;  %v8053_v38 = vor.u32 %v10846_v32, %v8052_v31  ;;  %3402 = vmatpush.bf16.msra.mxu2 %v7797_v34 }
  0x5a   :  { %v10646_v36 = vld [vmem:[#allocation5 + $0x11c] sm:$0xf0] }
  0x5b   :  { %v7508_v37 = vld [vmem:[#allocation5 + $0x300] sm:$0xf]  ;;  %v7253_v44 = vor.u32 %v10646_v36, %v7252_v35  ;;  %3415 = vmatpush.bf16.msra.mxu3 %v8053_v38 }
  0x5c   :  { %v10710_v39 = vld [vmem:[#allocation5 + $0x31c] sm:$0xf0] }
  0x5d   :  { %v7764_v40 = vld [vmem:[#allocation5 + $0x500] sm:$0xf]  ;;  %v7509_v45 = vor.u32 %v10710_v39, %v7508_v37  ;;  %3377 = vmatpush.bf16.msra.mxu0 %v7253_v44 }
  0x5e   :  { %v10774_v41 = vld [vmem:[#allocation5 + $0x51c] sm:$0xf0] }
  0x5f   :  { %v8020_v42 = vld [vmem:[#allocation5 + $0x700] sm:$0xf]  ;;  %v7765_v46 = vor.u32 %v10774_v41, %v7764_v40  ;;  %3390 = vmatpush.bf16.msra.mxu1 %v7509_v45 }
  0x60   :  { %v10838_v43 = vld [vmem:[#allocation5 + $0x71c] sm:$0xf0] }
  0x61   :  { %v7220_v47 = vld [vmem:[#allocation5 + $0xc0] sm:$0xf]  ;;  %v8021_v50 = vor.u32 %v10838_v43, %v8020_v42  ;;  %3403 = vmatpush.bf16.msra.mxu2 %v7765_v46 }
  0x62   :  { %v10638_v48 = vld [vmem:[#allocation5 + $0xdc] sm:$0xf0] }
  0x63   :  { %v7476_v49 = vld [vmem:[#allocation5 + $0x2c0] sm:$0xf]  ;;  %v7221_v56 = vor.u32 %v10638_v48, %v7220_v47  ;;  %3416 = vmatpush.bf16.msra.mxu3 %v8021_v50 }
  0x64   :  { %v10702_v51 = vld [vmem:[#allocation5 + $0x2dc] sm:$0xf0] }
  0x65   :  { %v7732_v52 = vld [vmem:[#allocation5 + $0x4c0] sm:$0xf]  ;;  %v7477_v57 = vor.u32 %v10702_v51, %v7476_v49  ;;  %3378 = vmatpush.bf16.msra.mxu0 %v7221_v56 }
  0x66   :  { %v10766_v53 = vld [vmem:[#allocation5 + $0x4dc] sm:$0xf0] }
  0x67   :  { %v7988_v54 = vld [vmem:[#allocation5 + $0x6c0] sm:$0xf]  ;;  %v7733_v58 = vor.u32 %v10766_v53, %v7732_v52  ;;  %3391 = vmatpush.bf16.msra.mxu1 %v7477_v57 }
  0x68   :  { %v10830_v55 = vld [vmem:[#allocation5 + $0x6dc] sm:$0xf0] }
  0x69   :  { %v7188_v59 = vld [vmem:[#allocation5 + $0x80] sm:$0xf]  ;;  %v7989_v62 = vor.u32 %v10830_v55, %v7988_v54  ;;  %3404 = vmatpush.bf16.msra.mxu2 %v7733_v58 }
  0x6a   :  { %v10630_v60 = vld [vmem:[#allocation5 + $0x9c] sm:$0xf0] }
  0x6b   :  { %v7444_v61 = vld [vmem:[#allocation5 + $0x280] sm:$0xf]  ;;  %v7189_v4 = vor.u32 %v10630_v60, %v7188_v59  ;;  %3417 = vmatpush.bf16.msra.mxu3 %v7989_v62 }
  0x6c   :  { %v10694_v63 = vld [vmem:[#allocation5 + $0x29c] sm:$0xf0] }
  0x6d   :  { %v7700_v0 = vld [vmem:[#allocation5 + $0x480] sm:$0xf]  ;;  %v7445_v5 = vor.u32 %v10694_v63, %v7444_v61  ;;  %3379 = vmatpush.bf16.msra.mxu0 %v7189_v4 }
  0x6e   :  { %v10758_v1 = vld [vmem:[#allocation5 + $0x49c] sm:$0xf0] }
  0x6f   :  { %v7956_v2 = vld [vmem:[#allocation5 + $0x680] sm:$0xf]  ;;  %v7701_v6 = vor.u32 %v10758_v1, %v7700_v0  ;;  %3392 = vmatpush.bf16.msra.mxu1 %v7445_v5 }
  0x70   :  { %v10822_v3 = vld [vmem:[#allocation5 + $0x69c] sm:$0xf0] }
  0x71   :  { %v7156_v7 = vld [vmem:[#allocation5 + $0x40] sm:$0xf]  ;;  %v7957_v10 = vor.u32 %v10822_v3, %v7956_v2  ;;  %3405 = vmatpush.bf16.msra.mxu2 %v7701_v6  ;;  %v270_v3 = vld [vmem:[#allocation2 + $0x10] sm:$0xff] }
  0x72   :  { %v10622_v8 = vld [vmem:[#allocation5 + $0x5c] sm:$0xf0] }
  0x73   :  { %v7412_v9 = vld [vmem:[#allocation5 + $0x240] sm:$0xf]  ;;  %v7157_v16 = vor.u32 %v10622_v8, %v7156_v7  ;;  %3418 = vmatpush.bf16.msra.mxu3 %v7957_v10  ;;  %v12065_v8 = vpack.c.bf16 %v270_v3, %v270_v3  ;;  %v271_v10 = vld [vmem:[#allocation2 + $0x18] sm:$0xff] }
  0x74   :  { %v10686_v11 = vld [vmem:[#allocation5 + $0x25c] sm:$0xf0] }
  0x75   :  { %v7668_v12 = vld [vmem:[#allocation5 + $0x440] sm:$0xf]  ;;  %v7413_v19 = vor.u32 %v10686_v11, %v7412_v9  ;;  %3380 = vmatpush.bf16.msra.mxu0 %v7157_v16 }
  0x76   :  { %v10750_v13 = vld [vmem:[#allocation5 + $0x45c] sm:$0xf0] }
  0x77   :  { %v7924_v14 = vld [vmem:[#allocation5 + $0x640] sm:$0xf]  ;;  %v7669_v20 = vor.u32 %v10750_v13, %v7668_v12  ;;  %3393 = vmatpush.bf16.msra.mxu1 %v7413_v19  ;;  %v269_v19 = vld [vmem:[#allocation2 + $0x8] sm:$0xff] }
  0x78   :  { %v10814_v15 = vld [vmem:[#allocation5 + $0x65c] sm:$0xf0] }
  0x79   :  { %v7124_v17 = vld [vmem:[#allocation5] sm:$0xf]  ;;  %v7925_v24 = vor.u32 %v10814_v15, %v7924_v14  ;;  %3406 = vmatpush.bf16.msra.mxu2 %v7669_v20  ;;  %v12069_v15 = vpack.c.bf16 %v271_v10, %v271_v10  ;;  %v7606_v10 = vld [vmem:[#allocation5 + $0x3e0] sm:$0xf0] }
  0x7a   :  { %v10614_v18 = vld [vmem:[#allocation5 + $0x1c] sm:$0xf0] }
  0x7b   :  { %v7380_v21 = vld [vmem:[#allocation5 + $0x200] sm:$0xf]  ;;  %v7125_v31 = vor.u32 %v10614_v18, %v7124_v17  ;;  %3419 = vmatpush.bf16.msra.mxu3 %v7925_v24 }
  0x7c   :  { %v10678_v22 = vld [vmem:[#allocation5 + $0x21c] sm:$0xf0] }
  0x7d   :  { %v7636_v23 = vld [vmem:[#allocation5 + $0x400] sm:$0xf]  ;;  %v7381_v35 = vor.u32 %v10678_v22, %v7380_v21  ;;  %3381 = vmatpush.bf16.msra.mxu0 %v7125_v31 }
  0x7e   :  { %v10742_v25 = vld [vmem:[#allocation5 + $0x41c] sm:$0xf0] }
  0x7f   :  { %v7892_v26 = vld [vmem:[#allocation5 + $0x600] sm:$0xf]  ;;  %v7637_v36 = vor.u32 %v10742_v25, %v7636_v23  ;;  %3394 = vmatpush.bf16.msra.mxu1 %v7381_v35  ;;  %v12074_v25 = vpack.c.bf16 %v269_v19, %v269_v19 }
  0x80   :  { %v10806_v27 = vld [vmem:[#allocation5 + $0x61c] sm:$0xf0] }
  0x81   :  { %v8372_v28 = vld [vmem:[#allocation5 + $0x9c0] sm:$0xf]  ;;  %v7893_v39 = vor.u32 %v10806_v27, %v7892_v26  ;;  %3407 = vmatpush.bf16.msra.mxu2 %v7637_v36 }
  0x82   :  { %v10926_v29 = vld [vmem:[#allocation5 + $0x9dc] sm:$0xf0]  ;;  %3395 = vmatmul.bf16.vlgmr.msra.gmra.mxu1 %v12074_v25 }
  0x83   :  { %v8628_v30 = vld [vmem:[#allocation5 + $0xbc0] sm:$0xf]  ;;  %v8373_v40 = vor.u32 %v10926_v29, %v8372_v28  ;;  %3420 = vmatpush.bf16.msra.mxu3 %v7893_v39 }
  0x84   :  { %v10990_v32 = vld [vmem:[#allocation5 + $0xbdc] sm:$0xf0]  ;;  %3408 = vmatmul.bf16.vlgmr.msra.gmra.mxu2 %v12065_v8 }
  0x85   :  { %v8884_v33 = vld [vmem:[#allocation5 + $0xdc0] sm:$0xf]  ;;  %v8629_v41 = vor.u32 %v10990_v32, %v8628_v30  ;;  %3426 = vmatpush.bf16.msrb.mxu0 %v8373_v40 }
  0x86   :  { %v11054_v34 = vld [vmem:[#allocation5 + $0xddc] sm:$0xf0]  ;;  %3421 = vmatmul.bf16.vlgmr.msra.gmra.mxu3 %v12069_v15 }
  0x87   :  { %v9140_v37 = vld [vmem:[#allocation5 + $0xfc0] sm:$0xf]  ;;  %v8885_v42 = vor.u32 %v11054_v34, %v8884_v33  ;;  %3439 = vmatpush.bf16.msrb.mxu1 %v8629_v41 }
  0x88   :  { %v11118_v38 = vld [vmem:[#allocation5 + $0xfdc] sm:$0xf0] }
  0x89   :  { %v8340_v43 = vld [vmem:[#allocation5 + $0x980] sm:$0xf]  ;;  %v9141_v46 = vor.u32 %v11118_v38, %v9140_v37  ;;  %3452 = vmatpush.bf16.msrb.mxu2 %v8885_v42 }
  0x8a   :  { %v10918_v44 = vld [vmem:[#allocation5 + $0x99c] sm:$0xf0] }
  0x8b   :  { %v8596_v45 = vld [vmem:[#allocation5 + $0xb80] sm:$0xf]  ;;  %v8341_v52 = vor.u32 %v10918_v44, %v8340_v43  ;;  %3465 = vmatpush.bf16.msrb.mxu3 %v9141_v46 }
  0x8c   :  { %v10982_v47 = vld [vmem:[#allocation5 + $0xb9c] sm:$0xf0] }
  0x8d   :  { %v8852_v48 = vld [vmem:[#allocation5 + $0xd80] sm:$0xf]  ;;  %v8597_v54 = vor.u32 %v10982_v47, %v8596_v45  ;;  %3427 = vmatpush.bf16.msrb.mxu0 %v8341_v52 }
  0x8e   :  { %v11046_v49 = vld [vmem:[#allocation5 + $0xd9c] sm:$0xf0] }
  0x8f   :  { %v9108_v50 = vld [vmem:[#allocation5 + $0xf80] sm:$0xf]  ;;  %v8853_v55 = vor.u32 %v11046_v49, %v8852_v48  ;;  %3440 = vmatpush.bf16.msrb.mxu1 %v8597_v54 }
  0x90   :  { %v11110_v51 = vld [vmem:[#allocation5 + $0xf9c] sm:$0xf0] }
  0x91   :  { %v8308_v53 = vld [vmem:[#allocation5 + $0x940] sm:$0xf]  ;;  %v9109_v59 = vor.u32 %v11110_v51, %v9108_v50  ;;  %3453 = vmatpush.bf16.msrb.mxu2 %v8853_v55 }
  0x92   :  { %v10910_v56 = vld [vmem:[#allocation5 + $0x95c] sm:$0xf0] }
  0x93   :  { %v8564_v57 = vld [vmem:[#allocation5 + $0xb40] sm:$0xf]  ;;  %v8309_v0 = vor.u32 %v10910_v56, %v8308_v53  ;;  %3466 = vmatpush.bf16.msrb.mxu3 %v9109_v59 }
  0x94   :  { %v10974_v58 = vld [vmem:[#allocation5 + $0xb5c] sm:$0xf0] }
  0x95   :  { %v8820_v60 = vld [vmem:[#allocation5 + $0xd40] sm:$0xf]  ;;  %v8565_v1 = vor.u32 %v10974_v58, %v8564_v57  ;;  %3428 = vmatpush.bf16.msrb.mxu0 %v8309_v0 }
  0x96   :  { %v11038_v61 = vld [vmem:[#allocation5 + $0xd5c] sm:$0xf0] }
  0x97   :  { %v9076_v62 = vld [vmem:[#allocation5 + $0xf40] sm:$0xf]  ;;  %v8821_v5 = vor.u32 %v11038_v61, %v8820_v60  ;;  %3441 = vmatpush.bf16.msrb.mxu1 %v8565_v1 }
  0x98   :  { %v11102_v63 = vld [vmem:[#allocation5 + $0xf5c] sm:$0xf0] }
  0x99   :  { %v8276_v2 = vld [vmem:[#allocation5 + $0x900] sm:$0xf]  ;;  %v9077_v11 = vor.u32 %v11102_v63, %v9076_v62  ;;  %3454 = vmatpush.bf16.msrb.mxu2 %v8821_v5  ;;  %v7350_v5 = vld [vmem:[#allocation5 + $0x1e0] sm:$0xf0] }
  0x9a   :  { %v268_v4 = vld [vmem:[#allocation2] sm:$0xff] }
  0x9b   :  { %v10902_v6 = vld [vmem:[#allocation5 + $0x91c] sm:$0xf0]  ;;  %v12067_v9 = vpack.c.bf16 %v268_v4, %v268_v4  ;;  %3467 = vmatpush.bf16.msrb.mxu3 %v9077_v11  ;;  %v10666_v4 = vld [vmem:[#allocation5 + $0x1c4] sm:$0xf] }
  0x9c   :  { %v8532_v7 = vld [vmem:[#allocation5 + $0xb00] sm:$0xf]  ;;  %v8277_v18 = vor.u32 %v10902_v6, %v8276_v2  ;;  %v10730_v6 = vld [vmem:[#allocation5 + $0x3c4] sm:$0xf] }
  0x9d   :  { %v10966_v12 = vld [vmem:[#allocation5 + $0xb1c] sm:$0xf0]  ;;  %3382 = vmatmul.bf16.vlgmr.msra.gmra.mxu0 %v12067_v9  ;;  %v10794_v11 = vld [vmem:[#allocation5 + $0x5c4] sm:$0xf] }
  0x9e   :  { %v8788_v13 = vld [vmem:[#allocation5 + $0xd00] sm:$0xf]  ;;  %v8533_v20 = vor.u32 %v10966_v12, %v8532_v7  ;;  %3429 = vmatpush.bf16.msrb.mxu0 %v8277_v18  ;;  %v7862_v12 = vld [vmem:[#allocation5 + $0x5e0] sm:$0xf0]  ;;  %v274_v18 = vld [vmem:[#allocation2 + $0x30] sm:$0xff] }
  0x9f   :  { %v11030_v14 = vld [vmem:[#allocation5 + $0xd1c] sm:$0xf0] }
  0xa0   :  { %v9044_v16 = vld [vmem:[#allocation5 + $0xf00] sm:$0xf]  ;;  %v8789_v21 = vor.u32 %v11030_v14, %v8788_v13  ;;  %3442 = vmatpush.bf16.msrb.mxu1 %v8533_v20  ;;  %v7353_v20 = vor.u32 %v10666_v4, %v7350_v5  ;;  %v7222_v4 = vld [vmem:[#allocation5 + $0xe0] sm:$0xf0] }
  0xa1   :  { %v11094_v17 = vld [vmem:[#allocation5 + $0xf1c] sm:$0xf0]  ;;  %v10698_v5 = vld [vmem:[#allocation5 + $0x2c4] sm:$0xf] }
  0xa2   :  { %v8244_v22 = vld [vmem:[#allocation5 + $0x8c0] sm:$0xf]  ;;  %v9045_v26 = vor.u32 %v11094_v17, %v9044_v16  ;;  %3455 = vmatpush.bf16.msrb.mxu2 %v8789_v21  ;;  %v10858_v16 = vld [vmem:[#allocation5 + $0x7c4] sm:$0xf] }
  0xa3   :  { %v10894_v23 = vld [vmem:[#allocation5 + $0x8dc] sm:$0xf0]  ;;  %v8118_v17 = vld [vmem:[#allocation5 + $0x7e0] sm:$0xf0] }
  0xa4   :  { %v8500_v24 = vld [vmem:[#allocation5 + $0xac0] sm:$0xf]  ;;  %v8245_v32 = vor.u32 %v10894_v23, %v8244_v22  ;;  %3468 = vmatpush.bf16.msrb.mxu3 %v9045_v26  ;;  %v10658_v21 = vld [vmem:[#allocation5 + $0x184] sm:$0xf]  ;;  %v275_v23 = vld [vmem:[#allocation2 + $0x38] sm:$0xff]  ;;  %v7865_v26 = vor.u32 %v10794_v11, %v7862_v12 }
  0xa5   :  { %v10958_v27 = vld [vmem:[#allocation5 + $0xadc] sm:$0xf0]  ;;  %v7734_v11 = vld [vmem:[#allocation5 + $0x4e0] sm:$0xf0] }
  0xa6   :  { %v8756_v28 = vld [vmem:[#allocation5 + $0xcc0] sm:$0xf]  ;;  %v8501_v33 = vor.u32 %v10958_v27, %v8500_v24  ;;  %3430 = vmatpush.bf16.msrb.mxu0 %v8245_v32  ;;  %v7609_v24 = vor.u32 %v10730_v6, %v7606_v10  ;;  %v7318_v27 = vld [vmem:[#allocation5 + $0x1a0] sm:$0xf0] }
  0xa7   :  { %v11022_v29 = vld [vmem:[#allocation5 + $0xcdc] sm:$0xf0]  ;;  %v10786_v32 = vld [vmem:[#allocation5 + $0x584] sm:$0xf] }
  0xa8   :  { %v9012_v30 = vld [vmem:[#allocation5 + $0xec0] sm:$0xf]  ;;  %v8757_v34 = vor.u32 %v11022_v29, %v8756_v28  ;;  %3443 = vmatpush.bf16.msrb.mxu1 %v8501_v33  ;;  %v10722_v28 = vld [vmem:[#allocation5 + $0x384] sm:$0xf]  ;;  %v273_v29 = vld [vmem:[#allocation2 + $0x28] sm:$0xff] }
  0xa9   :  { %v11086_v31 = vld [vmem:[#allocation5 + $0xedc] sm:$0xf0]  ;;  %v7830_v33 = vld [vmem:[#allocation5 + $0x5a0] sm:$0xf0] }
  0xaa   :  { %v8212_v35 = vld [vmem:[#allocation5 + $0x880] sm:$0xf]  ;;  %v9013_v38 = vor.u32 %v11086_v31, %v9012_v30  ;;  %3456 = vmatpush.bf16.msrb.mxu2 %v8757_v34  ;;  %v8121_v30 = vor.u32 %v10858_v16, %v8118_v17  ;;  %v7574_v31 = vld [vmem:[#allocation5 + $0x3a0] sm:$0xf0]  ;;  %v12077_v34 = vpack.c.bf16 %v274_v18, %v274_v18 }
  0xab   :  { %v10886_v36 = vld [vmem:[#allocation5 + $0x89c] sm:$0xf0]  ;;  %v10762_v10 = vld [vmem:[#allocation5 + $0x4c4] sm:$0xf] }
  0xac   :  { %v8468_v37 = vld [vmem:[#allocation5 + $0xa80] sm:$0xf]  ;;  %v8213_v44 = vor.u32 %v10886_v36, %v8212_v35  ;;  %3469 = vmatpush.bf16.msrb.mxu3 %v9013_v38  ;;  %v10850_v35 = vld [vmem:[#allocation5 + $0x784] sm:$0xf]  ;;  %v12081_v38 = vpack.c.bf16 %v275_v23, %v275_v23  ;;  %v7737_v17 = vor.u32 %v10762_v10, %v7734_v11 }
  0xad   :  { %v10950_v39 = vld [vmem:[#allocation5 + $0xa9c] sm:$0xf0]  ;;  %v8086_v36 = vld [vmem:[#allocation5 + $0x7a0] sm:$0xf0] }
  0xae   :  { %v8724_v40 = vld [vmem:[#allocation5 + $0xc80] sm:$0xf]  ;;  %v8469_v45 = vor.u32 %v10950_v39, %v8468_v37  ;;  %3431 = vmatpush.bf16.msrb.mxu0 %v8213_v44  ;;  %v7321_v39 = vor.u32 %v10658_v21, %v7318_v27  ;;  %v7286_v44 = vld [vmem:[#allocation5 + $0x160] sm:$0xf0] }
  0xaf   :  { %v11014_v41 = vld [vmem:[#allocation5 + $0xc9c] sm:$0xf0]  ;;  %v10826_v12 = vld [vmem:[#allocation5 + $0x6c4] sm:$0xf] }
  0xb0   :  { %v8980_v42 = vld [vmem:[#allocation5 + $0xe80] sm:$0xf]  ;;  %v8725_v46 = vor.u32 %v11014_v41, %v8724_v40  ;;  %3444 = vmatpush.bf16.msrb.mxu1 %v8469_v45  ;;  %v12083_v40 = vpack.c.bf16 %v273_v29, %v273_v29  ;;  %v7577_v41 = vor.u32 %v10722_v28, %v7574_v31  ;;  %v10714_v45 = vld [vmem:[#allocation5 + $0x344] sm:$0xf] }
  0xb1   :  { %v11078_v43 = vld [vmem:[#allocation5 + $0xe9c] sm:$0xf0]  ;;  %v10626_v18 = vld [vmem:[#allocation5 + $0x84] sm:$0xf] }
  0xb2   :  { %v8180_v47 = vld [vmem:[#allocation5 + $0x840] sm:$0xf]  ;;  %v8981_v50 = vor.u32 %v11078_v43, %v8980_v42  ;;  %3457 = vmatpush.bf16.msrb.mxu2 %v8725_v46  ;;  %v7833_v42 = vor.u32 %v10786_v32, %v7830_v33  ;;  %v10650_v43 = vld [vmem:[#allocation5 + $0x144] sm:$0xf]  ;;  %v8089_v46 = vor.u32 %v10850_v35, %v8086_v36 }
  0xb3   :  { %v10878_v48 = vld [vmem:[#allocation5 + $0x85c] sm:$0xf0]  ;;  %v10754_v23 = vld [vmem:[#allocation5 + $0x484] sm:$0xf] }
  0xb4   :  { %v8436_v49 = vld [vmem:[#allocation5 + $0xa40] sm:$0xf]  ;;  %v8181_v56 = vor.u32 %v10878_v48, %v8180_v47  ;;  %3470 = vmatpush.bf16.msrb.mxu3 %v8981_v50  ;;  %v7542_v47 = vld [vmem:[#allocation5 + $0x360] sm:$0xf0] }
  0xb5   :  { %v10942_v51 = vld [vmem:[#allocation5 + $0xa5c] sm:$0xf0]  ;;  %v10778_v48 = vld [vmem:[#allocation5 + $0x544] sm:$0xf] }
  0xb6   :  { %v8692_v52 = vld [vmem:[#allocation5 + $0xc40] sm:$0xf]  ;;  %v8437_v59 = vor.u32 %v10942_v51, %v8436_v49  ;;  %3432 = vmatpush.bf16.msrb.mxu0 %v8181_v56  ;;  %v7798_v49 = vld [vmem:[#allocation5 + $0x560] sm:$0xf0] }
  0xb7   :  { %v11006_v53 = vld [vmem:[#allocation5 + $0xc5c] sm:$0xf0]  ;;  %v10842_v50 = vld [vmem:[#allocation5 + $0x744] sm:$0xf] }
  0xb8   :  { %v8948_v54 = vld [vmem:[#allocation5 + $0xe40] sm:$0xf]  ;;  %v8693_v60 = vor.u32 %v11006_v53, %v8692_v52  ;;  %3445 = vmatpush.bf16.msrb.mxu1 %v8437_v59  ;;  %v8054_v51 = vld [vmem:[#allocation5 + $0x760] sm:$0xf0]  ;;  %v7289_v52 = vor.u32 %v10650_v43, %v7286_v44  ;;  %v7545_v53 = vor.u32 %v10714_v45, %v7542_v47 }
  0xb9   :  { %v11070_v55 = vld [vmem:[#allocation5 + $0xe5c] sm:$0xf0]  ;;  %v7254_v56 = vld [vmem:[#allocation5 + $0x120] sm:$0xf0] }
  0xba   :  { %v8148_v57 = vld [vmem:[#allocation5 + $0x800] sm:$0xf]  ;;  %v8949_v0 = vor.u32 %v11070_v55, %v8948_v54  ;;  %3458 = vmatpush.bf16.msrb.mxu2 %v8693_v60  ;;  %v7801_v54 = vor.u32 %v10778_v48, %v7798_v49  ;;  %v10642_v55 = vld [vmem:[#allocation5 + $0x104] sm:$0xf] }
  0xbb   :  { %v10870_v58 = vld [vmem:[#allocation5 + $0x81c] sm:$0xf0]  ;;  %v7510_v59 = vld [vmem:[#allocation5 + $0x320] sm:$0xf0] }
  0xbc   :  { %v8404_v61 = vld [vmem:[#allocation5 + $0xa00] sm:$0xf]  ;;  %v8149_v7 = vor.u32 %v10870_v58, %v8148_v57  ;;  %3471 = vmatpush.bf16.msrb.mxu3 %v8949_v0  ;;  %v10706_v57 = vld [vmem:[#allocation5 + $0x304] sm:$0xf]  ;;  %v8057_v58 = vor.u32 %v10842_v50, %v8054_v51  ;;  %v7257_v0 = vor.u32 %v10642_v55, %v7254_v56 }
  0xbd   :  { %v10934_v62 = vld [vmem:[#allocation5 + $0xa1c] sm:$0xf0]  ;;  %v10770_v60 = vld [vmem:[#allocation5 + $0x504] sm:$0xf] }
  0xbe   :  { %v8660_v63 = vld [vmem:[#allocation5 + $0xc00] sm:$0xf]  ;;  %v8405_v13 = vor.u32 %v10934_v62, %v8404_v61  ;;  %3433 = vmatpush.bf16.msrb.mxu0 %v8149_v7  ;;  %v7766_v61 = vld [vmem:[#allocation5 + $0x520] sm:$0xf0] }
  0xbf   :  { %v10998_v1 = vld [vmem:[#allocation5 + $0xc1c] sm:$0xf0]  ;;  %v10834_v62 = vld [vmem:[#allocation5 + $0x704] sm:$0xf] }
  0xc0   :  { %v8916_v2 = vld [vmem:[#allocation5 + $0xe00] sm:$0xf]  ;;  %v8661_v14 = vor.u32 %v10998_v1, %v8660_v63  ;;  %3446 = vmatpush.bf16.msrb.mxu1 %v8405_v13  ;;  %v8022_v63 = vld [vmem:[#allocation5 + $0x720] sm:$0xf0]  ;;  %v7513_v1 = vor.u32 %v10706_v57, %v7510_v59 }
  0xc1   :  { %v11062_v3 = vld [vmem:[#allocation5 + $0xe1c] sm:$0xf0]  ;;  %v8025_v6 = vor.u32 %v10834_v62, %v8022_v63  ;;  %v7478_v7 = vld [vmem:[#allocation5 + $0x2e0] sm:$0xf0] }
  0xc2   :  { %v8917_v19 = vor.u32 %v11062_v3, %v8916_v2  ;;  %v272_v22 = vld [vmem:[#allocation2 + $0x20] sm:$0xff]  ;;  %3459 = vmatpush.bf16.msrb.mxu2 %v8661_v14  ;;  %3478 = vmatpush.bf16.msra.mxu0 %v7353_v20  ;;  %v7769_v2 = vor.u32 %v10770_v60, %v7766_v61  ;;  %v7481_v16 = vor.u32 %v10698_v5, %v7478_v7 }
  0xc3   :  { %v12079_v37 = vpack.c.bf16 %v272_v22, %v272_v22  ;;  %3447 = vmatmul.bf16.vlgmr.msrb.gmra.mxu1 %v12083_v40  ;;  %v10634_v3 = vld [vmem:[#allocation5 + $0xc4] sm:$0xf] }
  0xc4   :  { %3472 = vmatpush.bf16.msrb.mxu3 %v8917_v19  ;;  %3491 = vmatpush.bf16.msra.mxu1 %v7609_v24  ;;  %v7990_v13 = vld [vmem:[#allocation5 + $0x6e0] sm:$0xf0]  ;;  %v7225_v14 = vor.u32 %v10634_v3, %v7222_v4 }
  0xc5   :  { %3460 = vmatmul.bf16.vlgmr.msrb.gmra.mxu2 %v12077_v34  ;;  %3434 = vmatmul.bf16.vlgmr.msrb.gmra.mxu0 %v12079_v37  ;;  %v7190_v19 = vld [vmem:[#allocation5 + $0xa0] sm:$0xf0]  ;;  %v7993_v21 = vor.u32 %v10826_v12, %v7990_v13 }
  0xc6   :  { %3504 = vmatpush.bf16.msra.mxu2 %v7865_v26  ;;  %3479 = vmatpush.bf16.msra.mxu0 %v7321_v39  ;;  %v10690_v20 = vld [vmem:[#allocation5 + $0x284] sm:$0xf]  ;;  %v7193_v28 = vor.u32 %v10626_v18, %v7190_v19 }
  0xc7   :  { %3473 = vmatmul.bf16.vlgmr.msrb.gmra.mxu3 %v12081_v38  ;;  %v7446_v22 = vld [vmem:[#allocation5 + $0x2a0] sm:$0xf0] }
  0xc8   :  { %3517 = vmatpush.bf16.msra.mxu3 %v8121_v30  ;;  %3492 = vmatpush.bf16.msra.mxu1 %v7577_v41  ;;  %v7702_v24 = vld [vmem:[#allocation5 + $0x4a0] sm:$0xf0]  ;;  %v7449_v31 = vor.u32 %v10690_v20, %v7446_v22 }
  0xc9   :  { %v10818_v26 = vld [vmem:[#allocation5 + $0x684] sm:$0xf]  ;;  %v7705_v32 = vor.u32 %v10754_v23, %v7702_v24 }
  0xca   :  { %3505 = vmatpush.bf16.msra.mxu2 %v7833_v42  ;;  %3480 = vmatpush.bf16.msra.mxu0 %v7289_v52  ;;  %v7958_v27 = vld [vmem:[#allocation5 + $0x6a0] sm:$0xf0] }
  0xcb   :  { %v10618_v29 = vld [vmem:[#allocation5 + $0x44] sm:$0xf]  ;;  %v7961_v39 = vor.u32 %v10818_v26, %v7958_v27 }
  0xcc   :  { %3518 = vmatpush.bf16.msra.mxu3 %v8089_v46  ;;  %3493 = vmatpush.bf16.msra.mxu1 %v7545_v53  ;;  %v7158_v30 = vld [vmem:[#allocation5 + $0x60] sm:$0xf0] }
  0xcd   :  { %v10682_v33 = vld [vmem:[#allocation5 + $0x244] sm:$0xf]  ;;  %v7161_v46 = vor.u32 %v10618_v29, %v7158_v30 }
  0xce   :  { %3506 = vmatpush.bf16.msra.mxu2 %v7801_v54  ;;  %3481 = vmatpush.bf16.msra.mxu0 %v7257_v0  ;;  %v7414_v35 = vld [vmem:[#allocation5 + $0x260] sm:$0xf0] }
  0xcf   :  { %v10746_v36 = vld [vmem:[#allocation5 + $0x444] sm:$0xf]  ;;  %v7417_v49 = vor.u32 %v10682_v33, %v7414_v35 }
  0xd0   :  { %3519 = vmatpush.bf16.msra.mxu3 %v8057_v58  ;;  %3494 = vmatpush.bf16.msra.mxu1 %v7513_v1  ;;  %v7670_v41 = vld [vmem:[#allocation5 + $0x460] sm:$0xf0] }
  0xd1   :  { %v10810_v42 = vld [vmem:[#allocation5 + $0x644] sm:$0xf]  ;;  %v7673_v50 = vor.u32 %v10746_v36, %v7670_v41 }
  0xd2   :  { %3507 = vmatpush.bf16.msra.mxu2 %v7769_v2  ;;  %3482 = vmatpush.bf16.msra.mxu0 %v7225_v14  ;;  %v7926_v43 = vld [vmem:[#allocation5 + $0x660] sm:$0xf0] }
  0xd3   :  { %v10610_v44 = vld [vmem:[#allocation5 + $0x4] sm:$0xf]  ;;  %v7929_v54 = vor.u32 %v10810_v42, %v7926_v43 }
  0xd4   :  { %3520 = vmatpush.bf16.msra.mxu3 %v8025_v6  ;;  %3495 = vmatpush.bf16.msra.mxu1 %v7481_v16  ;;  %v7126_v45 = vld [vmem:[#allocation5 + $0x20] sm:$0xf0] }
  0xd5   :  { %v10674_v47 = vld [vmem:[#allocation5 + $0x204] sm:$0xf]  ;;  %v7129_v59 = vor.u32 %v10610_v44, %v7126_v45 }
  0xd6   :  { %3508 = vmatpush.bf16.msra.mxu2 %v7737_v17  ;;  %3483 = vmatpush.bf16.msra.mxu0 %v7193_v28  ;;  %v7382_v48 = vld [vmem:[#allocation5 + $0x220] sm:$0xf0] }
  0xd7   :  { %v10738_v51 = vld [vmem:[#allocation5 + $0x404] sm:$0xf]  ;;  %v7385_v63 = vor.u32 %v10674_v47, %v7382_v48 }
  0xd8   :  { %3521 = vmatpush.bf16.msra.mxu3 %v7993_v21  ;;  %3496 = vmatpush.bf16.msra.mxu1 %v7449_v31  ;;  %v7638_v52 = vld [vmem:[#allocation5 + $0x420] sm:$0xf0] }
  0xd9   :  { %v10802_v53 = vld [vmem:[#allocation5 + $0x604] sm:$0xf]  ;;  %v7641_v0 = vor.u32 %v10738_v51, %v7638_v52 }
  0xda   :  { %3509 = vmatpush.bf16.msra.mxu2 %v7705_v32  ;;  %v7894_v55 = vld [vmem:[#allocation5 + $0x620] sm:$0xf0]  ;;  %3484 = vmatpush.bf16.msra.mxu0 %v7161_v46 }
  0xdb   :  { %v10922_v56 = vld [vmem:[#allocation5 + $0x9c4] sm:$0xf]  ;;  %v7897_v3 = vor.u32 %v10802_v53, %v7894_v55 }
  0xdc   :  { %3522 = vmatpush.bf16.msra.mxu3 %v7961_v39  ;;  %v8374_v57 = vld [vmem:[#allocation5 + $0x9e0] sm:$0xf0]  ;;  %3497 = vmatpush.bf16.msra.mxu1 %v7417_v49 }
  0xdd   :  { %v10986_v58 = vld [vmem:[#allocation5 + $0xbc4] sm:$0xf]  ;;  %v8377_v4 = vor.u32 %v10922_v56, %v8374_v57 }
  0xde   :  { %v8630_v60 = vld [vmem:[#allocation5 + $0xbe0] sm:$0xf0]  ;;  %3510 = vmatpush.bf16.msra.mxu2 %v7673_v50  ;;  %3485 = vmatpush.bf16.msra.mxu0 %v7129_v59 }
  0xdf   :  { %v11050_v61 = vld [vmem:[#allocation5 + $0xdc4] sm:$0xf]  ;;  %v8633_v5 = vor.u32 %v10986_v58, %v8630_v60 }
  0xe0   :  { %v8886_v62 = vld [vmem:[#allocation5 + $0xde0] sm:$0xf0]  ;;  %3523 = vmatpush.bf16.msra.mxu3 %v7929_v54  ;;  %3498 = vmatpush.bf16.msra.mxu1 %v7385_v63 }
  0xe1   :  { %v11114_v1 = vld [vmem:[#allocation5 + $0xfc4] sm:$0xf]  ;;  %v8889_v6 = vor.u32 %v11050_v61, %v8886_v62  ;;  %3486 = vmatmul.bf16.vlgmr.msra.gmra.mxu0 %v12067_v9 }
  0xe2   :  { %v9142_v2 = vld [vmem:[#allocation5 + $0xfe0] sm:$0xf0]  ;;  %3511 = vmatpush.bf16.msra.mxu2 %v7641_v0  ;;  %3530 = vmatpush.bf16.msrb.mxu0 %v8377_v4 }
  0xe3   :  { %v10914_v7 = vld [vmem:[#allocation5 + $0x984] sm:$0xf]  ;;  %v9145_v12 = vor.u32 %v11114_v1, %v9142_v2  ;;  %3499 = vmatmul.bf16.vlgmr.msra.gmra.mxu1 %v12074_v25 }
  0xe4   :  { %v8342_v10 = vld [vmem:[#allocation5 + $0x9a0] sm:$0xf0]  ;;  %3524 = vmatpush.bf16.msra.mxu3 %v7897_v3  ;;  %3543 = vmatpush.bf16.msrb.mxu1 %v8633_v5 }
  0xe5   :  { %v10978_v11 = vld [vmem:[#allocation5 + $0xb84] sm:$0xf]  ;;  %v8345_v19 = vor.u32 %v10914_v7, %v8342_v10  ;;  %3512 = vmatmul.bf16.vlgmr.msra.gmra.mxu2 %v12065_v8 }
  0xe6   :  { %v8598_v13 = vld [vmem:[#allocation5 + $0xba0] sm:$0xf0]  ;;  %3556 = vmatpush.bf16.msrb.mxu2 %v8889_v6 }
  0xe7   :  { %v11042_v14 = vld [vmem:[#allocation5 + $0xd84] sm:$0xf]  ;;  %v8601_v20 = vor.u32 %v10978_v11, %v8598_v13  ;;  %3525 = vmatmul.bf16.vlgmr.msra.gmra.mxu3 %v12069_v15  ;;  %3531 = vmatpush.bf16.msrb.mxu0 %v8345_v19 }
  0xe8   :  { %v8854_v16 = vld [vmem:[#allocation5 + $0xda0] sm:$0xf0]  ;;  %3569 = vmatpush.bf16.msrb.mxu3 %v9145_v12 }
  0xe9   :  { %v11106_v17 = vld [vmem:[#allocation5 + $0xf84] sm:$0xf]  ;;  %v8857_v21 = vor.u32 %v11042_v14, %v8854_v16  ;;  %3544 = vmatpush.bf16.msrb.mxu1 %v8601_v20 }
  0xea   :  { %v9110_v18 = vld [vmem:[#allocation5 + $0xfa0] sm:$0xf0] }
  0xeb   :  { %v10906_v22 = vld [vmem:[#allocation5 + $0x944] sm:$0xf]  ;;  %v9113_v26 = vor.u32 %v11106_v17, %v9110_v18  ;;  %3557 = vmatpush.bf16.msrb.mxu2 %v8857_v21 }
  0xec   :  { %v8310_v23 = vld [vmem:[#allocation5 + $0x960] sm:$0xf0] }
  0xed   :  { %v10970_v24 = vld [vmem:[#allocation5 + $0xb44] sm:$0xf]  ;;  %v8313_v32 = vor.u32 %v10906_v22, %v8310_v23  ;;  %3570 = vmatpush.bf16.msrb.mxu3 %v9113_v26 }
  0xee   :  { %v8566_v27 = vld [vmem:[#allocation5 + $0xb60] sm:$0xf0] }
  0xef   :  { %v11034_v28 = vld [vmem:[#allocation5 + $0xd44] sm:$0xf]  ;;  %v8569_v33 = vor.u32 %v10970_v24, %v8566_v27  ;;  %3532 = vmatpush.bf16.msrb.mxu0 %v8313_v32 }
  0xf0   :  { %v8822_v29 = vld [vmem:[#allocation5 + $0xd60] sm:$0xf0] }
  0xf1   :  { %v11098_v30 = vld [vmem:[#allocation5 + $0xf44] sm:$0xf]  ;;  %v8825_v35 = vor.u32 %v11034_v28, %v8822_v29  ;;  %3545 = vmatpush.bf16.msrb.mxu1 %v8569_v33 }
  0xf2   :  { %v9078_v31 = vld [vmem:[#allocation5 + $0xf60] sm:$0xf0] }
  0xf3   :  { %v10898_v36 = vld [vmem:[#allocation5 + $0x904] sm:$0xf]  ;;  %v9081_v42 = vor.u32 %v11098_v30, %v9078_v31  ;;  %3558 = vmatpush.bf16.msrb.mxu2 %v8825_v35 }
  0xf4   :  { %v8278_v39 = vld [vmem:[#allocation5 + $0x920] sm:$0xf0] }
  0xf5   :  { %v10962_v41 = vld [vmem:[#allocation5 + $0xb04] sm:$0xf]  ;;  %v8281_v48 = vor.u32 %v10898_v36, %v8278_v39  ;;  %3571 = vmatpush.bf16.msrb.mxu3 %v9081_v42  ;;  %v7356_v39 = vld [vmem:[#allocation5 + $0x1c8] sm:$0xf] }
  0xf6   :  { %v8534_v43 = vld [vmem:[#allocation5 + $0xb20] sm:$0xf0]  ;;  %v7612_v42 = vld [vmem:[#allocation5 + $0x3c8] sm:$0xf] }
  0xf7   :  { %v11026_v44 = vld [vmem:[#allocation5 + $0xd04] sm:$0xf]  ;;  %v8537_v49 = vor.u32 %v10962_v41, %v8534_v43  ;;  %3533 = vmatpush.bf16.msrb.mxu0 %v8281_v48  ;;  %v10671_v41 = vld [vmem:[#allocation5 + $0x1e4] sm:$0xf0] }
  0xf8   :  { %v8790_v45 = vld [vmem:[#allocation5 + $0xd20] sm:$0xf0] }
  0xf9   :  { %v11090_v46 = vld [vmem:[#allocation5 + $0xf04] sm:$0xf]  ;;  %v8793_v50 = vor.u32 %v11026_v44, %v8790_v45  ;;  %3546 = vmatpush.bf16.msrb.mxu1 %v8537_v49  ;;  %v10735_v44 = vld [vmem:[#allocation5 + $0x3e4] sm:$0xf0] }
  0xfa   :  { %v9046_v47 = vld [vmem:[#allocation5 + $0xf20] sm:$0xf0]  ;;  %v7868_v45 = vld [vmem:[#allocation5 + $0x5c8] sm:$0xf] }
  0xfb   :  { %v10890_v51 = vld [vmem:[#allocation5 + $0x8c4] sm:$0xf]  ;;  %v9049_v54 = vor.u32 %v11090_v46, %v9046_v47  ;;  %3559 = vmatpush.bf16.msrb.mxu2 %v8793_v50  ;;  %v10799_v46 = vld [vmem:[#allocation5 + $0x5e4] sm:$0xf0] }
  0xfc   :  { %v8246_v52 = vld [vmem:[#allocation5 + $0x8e0] sm:$0xf0]  ;;  %v8124_v49 = vld [vmem:[#allocation5 + $0x7c8] sm:$0xf] }
  0xfd   :  { %v10954_v53 = vld [vmem:[#allocation5 + $0xac4] sm:$0xf]  ;;  %v8249_v60 = vor.u32 %v10890_v51, %v8246_v52  ;;  %3572 = vmatpush.bf16.msrb.mxu3 %v9049_v54  ;;  %v10863_v50 = vld [vmem:[#allocation5 + $0x7e4] sm:$0xf0]  ;;  %v7357_v52 = vor.u32 %v10671_v41, %v7356_v39  ;;  %v7869_v54 = vor.u32 %v10799_v46, %v7868_v45 }
  0xfe   :  { %v8502_v55 = vld [vmem:[#allocation5 + $0xae0] sm:$0xf0]  ;;  %v7740_v39 = vld [vmem:[#allocation5 + $0x4c8] sm:$0xf] }
  0xff   :  { %v11018_v56 = vld [vmem:[#allocation5 + $0xcc4] sm:$0xf]  ;;  %v8505_v61 = vor.u32 %v10954_v53, %v8502_v55  ;;  %3534 = vmatpush.bf16.msrb.mxu0 %v8249_v60  ;;  %v7613_v53 = vor.u32 %v10735_v44, %v7612_v42  ;;  %v7324_v55 = vld [vmem:[#allocation5 + $0x188] sm:$0xf] }
 0x100   :  { %v8758_v57 = vld [vmem:[#allocation5 + $0xce0] sm:$0xf0]  ;;  %v7836_v60 = vld [vmem:[#allocation5 + $0x588] sm:$0xf] }
 0x101   :  { %v11082_v58 = vld [vmem:[#allocation5 + $0xec4] sm:$0xf]  ;;  %v8761_v62 = vor.u32 %v11018_v56, %v8758_v57  ;;  %3547 = vmatpush.bf16.msrb.mxu1 %v8505_v61  ;;  %v10663_v56 = vld [vmem:[#allocation5 + $0x1a4] sm:$0xf0] }
 0x102   :  { %v9014_v59 = vld [vmem:[#allocation5 + $0xee0] sm:$0xf0]  ;;  %v7580_v57 = vld [vmem:[#allocation5 + $0x388] sm:$0xf] }
 0x103   :  { %v10882_v63 = vld [vmem:[#allocation5 + $0x884] sm:$0xf]  ;;  %v9017_v2 = vor.u32 %v11082_v58, %v9014_v59  ;;  %3560 = vmatpush.bf16.msrb.mxu2 %v8761_v62  ;;  %v8125_v58 = vor.u32 %v10863_v50, %v8124_v49  ;;  %v10727_v59 = vld [vmem:[#allocation5 + $0x3a4] sm:$0xf0] }
 0x104   :  { %v8214_v0 = vld [vmem:[#allocation5 + $0x8a0] sm:$0xf0]  ;;  %v10791_v61 = vld [vmem:[#allocation5 + $0x5a4] sm:$0xf0] }
 0x105   :  { %v10946_v1 = vld [vmem:[#allocation5 + $0xa84] sm:$0xf]  ;;  %v8217_v10 = vor.u32 %v10882_v63, %v8214_v0  ;;  %3573 = vmatpush.bf16.msrb.mxu3 %v9017_v2  ;;  %v8092_v62 = vld [vmem:[#allocation5 + $0x788] sm:$0xf]  ;;  %v7325_v0 = vor.u32 %v10663_v56, %v7324_v55  ;;  %v7837_v2 = vor.u32 %v10791_v61, %v7836_v60 }
 0x106   :  { %v8470_v3 = vld [vmem:[#allocation5 + $0xaa0] sm:$0xf0]  ;;  %v10855_v63 = vld [vmem:[#allocation5 + $0x7a4] sm:$0xf0] }
 0x107   :  { %v11010_v4 = vld [vmem:[#allocation5 + $0xc84] sm:$0xf]  ;;  %v8473_v11 = vor.u32 %v10946_v1, %v8470_v3  ;;  %3535 = vmatpush.bf16.msrb.mxu0 %v8217_v10  ;;  %v7581_v1 = vor.u32 %v10727_v59, %v7580_v57  ;;  %v7292_v3 = vld [vmem:[#allocation5 + $0x148] sm:$0xf] }
 0x108   :  { %v8726_v5 = vld [vmem:[#allocation5 + $0xca0] sm:$0xf0]  ;;  %v7804_v10 = vld [vmem:[#allocation5 + $0x548] sm:$0xf] }
 0x109   :  { %v11074_v6 = vld [vmem:[#allocation5 + $0xe84] sm:$0xf]  ;;  %v8729_v12 = vor.u32 %v11010_v4, %v8726_v5  ;;  %3548 = vmatpush.bf16.msrb.mxu1 %v8473_v11  ;;  %v10655_v4 = vld [vmem:[#allocation5 + $0x164] sm:$0xf0] }
 0x10a   :  { %v8982_v7 = vld [vmem:[#allocation5 + $0xea0] sm:$0xf0]  ;;  %v7548_v5 = vld [vmem:[#allocation5 + $0x348] sm:$0xf] }
 0x10b   :  { %v10874_v13 = vld [vmem:[#allocation5 + $0x844] sm:$0xf]  ;;  %v8985_v17 = vor.u32 %v11074_v6, %v8982_v7  ;;  %3561 = vmatpush.bf16.msrb.mxu2 %v8729_v12  ;;  %v8093_v6 = vor.u32 %v10855_v63, %v8092_v62  ;;  %v10719_v7 = vld [vmem:[#allocation5 + $0x364] sm:$0xf0] }
 0x10c   :  { %v8182_v14 = vld [vmem:[#allocation5 + $0x860] sm:$0xf0]  ;;  %v10783_v11 = vld [vmem:[#allocation5 + $0x564] sm:$0xf0] }
 0x10d   :  { %v10938_v16 = vld [vmem:[#allocation5 + $0xa44] sm:$0xf]  ;;  %v8185_v23 = vor.u32 %v10874_v13, %v8182_v14  ;;  %3574 = vmatpush.bf16.msrb.mxu3 %v8985_v17  ;;  %v8060_v12 = vld [vmem:[#allocation5 + $0x748] sm:$0xf]  ;;  %v7293_v14 = vor.u32 %v10655_v4, %v7292_v3  ;;  %v7805_v17 = vor.u32 %v10783_v11, %v7804_v10 }
 0x10e   :  { %v8438_v18 = vld [vmem:[#allocation5 + $0xa60] sm:$0xf0]  ;;  %v10847_v13 = vld [vmem:[#allocation5 + $0x764] sm:$0xf0] }
 0x10f   :  { %v11002_v19 = vld [vmem:[#allocation5 + $0xc44] sm:$0xf]  ;;  %v8441_v27 = vor.u32 %v10938_v16, %v8438_v18  ;;  %3536 = vmatpush.bf16.msrb.mxu0 %v8185_v23  ;;  %v7549_v16 = vor.u32 %v10719_v7, %v7548_v5  ;;  %v7260_v18 = vld [vmem:[#allocation5 + $0x108] sm:$0xf] }
 0x110   :  { %v8694_v20 = vld [vmem:[#allocation5 + $0xc60] sm:$0xf0]  ;;  %v7772_v23 = vld [vmem:[#allocation5 + $0x508] sm:$0xf] }
 0x111   :  { %v11066_v21 = vld [vmem:[#allocation5 + $0xe44] sm:$0xf]  ;;  %v8697_v28 = vor.u32 %v11002_v19, %v8694_v20  ;;  %3549 = vmatpush.bf16.msrb.mxu1 %v8441_v27  ;;  %v10647_v19 = vld [vmem:[#allocation5 + $0x124] sm:$0xf0] }
 0x112   :  { %v8950_v22 = vld [vmem:[#allocation5 + $0xe60] sm:$0xf0]  ;;  %v7516_v20 = vld [vmem:[#allocation5 + $0x308] sm:$0xf] }
 0x113   :  { %v10866_v24 = vld [vmem:[#allocation5 + $0x804] sm:$0xf]  ;;  %v8953_v32 = vor.u32 %v11066_v21, %v8950_v22  ;;  %3562 = vmatpush.bf16.msrb.mxu2 %v8697_v28  ;;  %v8061_v21 = vor.u32 %v10847_v13, %v8060_v12  ;;  %v10711_v22 = vld [vmem:[#allocation5 + $0x324] sm:$0xf0]  ;;  %v7261_v28 = vor.u32 %v10647_v19, %v7260_v18 }
 0x114   :  { %v8150_v26 = vld [vmem:[#allocation5 + $0x820] sm:$0xf0]  ;;  %v10839_v27 = vld [vmem:[#allocation5 + $0x724] sm:$0xf0] }
 0x115   :  { %v10930_v29 = vld [vmem:[#allocation5 + $0xa04] sm:$0xf]  ;;  %v8153_v43 = vor.u32 %v10866_v24, %v8150_v26  ;;  %3575 = vmatpush.bf16.msrb.mxu3 %v8953_v32  ;;  %v10775_v24 = vld [vmem:[#allocation5 + $0x524] sm:$0xf0] }
 0x116   :  { %v8406_v30 = vld [vmem:[#allocation5 + $0xa20] sm:$0xf0]  ;;  %v8028_v26 = vld [vmem:[#allocation5 + $0x708] sm:$0xf] }
 0x117   :  { %v10994_v31 = vld [vmem:[#allocation5 + $0xc04] sm:$0xf]  ;;  %v8409_v47 = vor.u32 %v10930_v29, %v8406_v30  ;;  %3537 = vmatpush.bf16.msrb.mxu0 %v8153_v43  ;;  %v7517_v29 = vor.u32 %v10711_v22, %v7516_v20  ;;  %v7773_v30 = vor.u32 %v10775_v24, %v7772_v23  ;;  %v10639_v32 = vld [vmem:[#allocation5 + $0xe4] sm:$0xf0] }
 0x118   :  { %v8662_v33 = vld [vmem:[#allocation5 + $0xc20] sm:$0xf0]  ;;  %v10767_v41 = vld [vmem:[#allocation5 + $0x4e4] sm:$0xf0] }
 0x119   :  { %v11058_v35 = vld [vmem:[#allocation5 + $0xe04] sm:$0xf]  ;;  %v8665_v48 = vor.u32 %v10994_v31, %v8662_v33  ;;  %3550 = vmatpush.bf16.msrb.mxu1 %v8409_v47  ;;  %v7228_v31 = vld [vmem:[#allocation5 + $0xc8] sm:$0xf]  ;;  %v7741_v46 = vor.u32 %v10767_v41, %v7740_v39 }
 0x11a   :  { %v8918_v36 = vld [vmem:[#allocation5 + $0xe20] sm:$0xf0]  ;;  %3538 = vmatmul.bf16.vlgmr.msrb.gmra.mxu0 %v12079_v37  ;;  %v7484_v33 = vld [vmem:[#allocation5 + $0x2c8] sm:$0xf]  ;;  %v7229_v44 = vor.u32 %v10639_v32, %v7228_v31 }
 0x11b   :  { %v8921_v51 = vor.u32 %v11058_v35, %v8918_v36  ;;  %3563 = vmatpush.bf16.msrb.mxu2 %v8665_v48  ;;  %3582 = vmatpush.bf16.msra.mxu0 %v7357_v52  ;;  %v8029_v35 = vor.u32 %v10839_v27, %v8028_v26  ;;  %v10703_v36 = vld [vmem:[#allocation5 + $0x2e4] sm:$0xf0] }
 0x11c   :  { %3551 = vmatmul.bf16.vlgmr.msrb.gmra.mxu1 %v12083_v40  ;;  %v7996_v42 = vld [vmem:[#allocation5 + $0x6c8] sm:$0xf]  ;;  %v7485_v45 = vor.u32 %v10703_v36, %v7484_v33 }
 0x11d   :  { %3576 = vmatpush.bf16.msrb.mxu3 %v8921_v51  ;;  %3595 = vmatpush.bf16.msra.mxu1 %v7613_v53  ;;  %v10831_v43 = vld [vmem:[#allocation5 + $0x6e4] sm:$0xf0] }
 0x11e   :  { %3564 = vmatmul.bf16.vlgmr.msrb.gmra.mxu2 %v12077_v34  ;;  %v7196_v47 = vld [vmem:[#allocation5 + $0x88] sm:$0xf]  ;;  %v7997_v50 = vor.u32 %v10831_v43, %v7996_v42 }
 0x11f   :  { %3608 = vmatpush.bf16.msra.mxu2 %v7869_v54  ;;  %3583 = vmatpush.bf16.msra.mxu0 %v7325_v0  ;;  %v10631_v48 = vld [vmem:[#allocation5 + $0xa4] sm:$0xf0] }
 0x120   :  { %3577 = vmatmul.bf16.vlgmr.msrb.gmra.mxu3 %v12081_v38  ;;  %v7452_v49 = vld [vmem:[#allocation5 + $0x288] sm:$0xf]  ;;  %v7197_v56 = vor.u32 %v10631_v48, %v7196_v47 }
 0x121   :  { %3621 = vmatpush.bf16.msra.mxu3 %v8125_v58  ;;  %3596 = vmatpush.bf16.msra.mxu1 %v7581_v1  ;;  %v10695_v51 = vld [vmem:[#allocation5 + $0x2a4] sm:$0xf0] }
 0x122   :  { %v7708_v52 = vld [vmem:[#allocation5 + $0x488] sm:$0xf]  ;;  %v7453_v57 = vor.u32 %v10695_v51, %v7452_v49 }
 0x123   :  { %3609 = vmatpush.bf16.msra.mxu2 %v7837_v2  ;;  %3584 = vmatpush.bf16.msra.mxu0 %v7293_v14  ;;  %v10759_v53 = vld [vmem:[#allocation5 + $0x4a4] sm:$0xf0] }
 0x124   :  { %v7964_v54 = vld [vmem:[#allocation5 + $0x688] sm:$0xf]  ;;  %v7709_v58 = vor.u32 %v10759_v53, %v7708_v52 }
 0x125   :  { %3622 = vmatpush.bf16.msra.mxu3 %v8093_v6  ;;  %3597 = vmatpush.bf16.msra.mxu1 %v7549_v16  ;;  %v10823_v55 = vld [vmem:[#allocation5 + $0x6a4] sm:$0xf0] }
 0x126   :  { %v7164_v59 = vld [vmem:[#allocation5 + $0x48] sm:$0xf]  ;;  %v7965_v62 = vor.u32 %v10823_v55, %v7964_v54 }
 0x127   :  { %3610 = vmatpush.bf16.msra.mxu2 %v7805_v17  ;;  %3585 = vmatpush.bf16.msra.mxu0 %v7261_v28  ;;  %v10623_v60 = vld [vmem:[#allocation5 + $0x64] sm:$0xf0] }
 0x128   :  { %v7420_v61 = vld [vmem:[#allocation5 + $0x248] sm:$0xf]  ;;  %v7165_v4 = vor.u32 %v10623_v60, %v7164_v59 }
 0x129   :  { %3623 = vmatpush.bf16.msra.mxu3 %v8061_v21  ;;  %3598 = vmatpush.bf16.msra.mxu1 %v7517_v29  ;;  %v10687_v63 = vld [vmem:[#allocation5 + $0x264] sm:$0xf0] }
 0x12a   :  { %v7676_v0 = vld [vmem:[#allocation5 + $0x448] sm:$0xf]  ;;  %v7421_v7 = vor.u32 %v10687_v63, %v7420_v61 }
 0x12b   :  { %3611 = vmatpush.bf16.msra.mxu2 %v7773_v30  ;;  %3586 = vmatpush.bf16.msra.mxu0 %v7229_v44  ;;  %v10751_v1 = vld [vmem:[#allocation5 + $0x464] sm:$0xf0] }
 0x12c   :  { %v7932_v2 = vld [vmem:[#allocation5 + $0x648] sm:$0xf]  ;;  %v7677_v10 = vor.u32 %v10751_v1, %v7676_v0 }
 0x12d   :  { %3624 = vmatpush.bf16.msra.mxu3 %v8029_v35  ;;  %3599 = vmatpush.bf16.msra.mxu1 %v7485_v45  ;;  %v10815_v3 = vld [vmem:[#allocation5 + $0x664] sm:$0xf0] }
 0x12e   :  { %v7132_v5 = vld [vmem:[#allocation5 + $0x8] sm:$0xf]  ;;  %v7933_v14 = vor.u32 %v10815_v3, %v7932_v2 }
 0x12f   :  { %3612 = vmatpush.bf16.msra.mxu2 %v7741_v46  ;;  %3587 = vmatpush.bf16.msra.mxu0 %v7197_v56  ;;  %v10615_v6 = vld [vmem:[#allocation5 + $0x24] sm:$0xf0] }
 0x130   :  { %v7388_v11 = vld [vmem:[#allocation5 + $0x208] sm:$0xf]  ;;  %v7133_v22 = vor.u32 %v10615_v6, %v7132_v5  ;;  %v12101_v6 = vld [vmem:[#allocation7] sm:$0xff] }
 0x131   :  { %3625 = vmatpush.bf16.msra.mxu3 %v7997_v50  ;;  %3600 = vmatpush.bf16.msra.mxu1 %v7453_v57  ;;  %v10679_v12 = vld [vmem:[#allocation5 + $0x224] sm:$0xf0] }
 0x132   :  { %v7644_v13 = vld [vmem:[#allocation5 + $0x408] sm:$0xf]  ;;  %v7389_v27 = vor.u32 %v10679_v12, %v7388_v11 }
 0x133   :  { %3613 = vmatpush.bf16.msra.mxu2 %v7709_v58  ;;  %v10743_v16 = vld [vmem:[#allocation5 + $0x424] sm:$0xf0]  ;;  %3588 = vmatpush.bf16.msra.mxu0 %v7165_v4 }
 0x134   :  { %v7900_v17 = vld [vmem:[#allocation5 + $0x608] sm:$0xf]  ;;  %v7645_v28 = vor.u32 %v10743_v16, %v7644_v13 }
 0x135   :  { %3626 = vmatpush.bf16.msra.mxu3 %v7965_v62  ;;  %v10807_v18 = vld [vmem:[#allocation5 + $0x624] sm:$0xf0]  ;;  %3601 = vmatpush.bf16.msra.mxu1 %v7421_v7 }
 0x136   :  { %v8380_v19 = vld [vmem:[#allocation5 + $0x9c8] sm:$0xf]  ;;  %v7901_v31 = vor.u32 %v10807_v18, %v7900_v17  ;;  %v798_v18 = vperm.slane %v12101_v6, 0 }
 0x137   :  { %v10927_v20 = vld [vmem:[#allocation5 + $0x9e4] sm:$0xf0]  ;;  %3614 = vmatpush.bf16.msra.mxu2 %v7677_v10  ;;  %3589 = vmatpush.bf16.msra.mxu0 %v7133_v22 }
 0x138   :  { %v8636_v21 = vld [vmem:[#allocation5 + $0xbc8] sm:$0xf]  ;;  %v8381_v32 = vor.u32 %v10927_v20, %v8380_v19 }
 0x139   :  { %v10991_v23 = vld [vmem:[#allocation5 + $0xbe4] sm:$0xf0]  ;;  %3627 = vmatpush.bf16.msra.mxu3 %v7933_v14  ;;  %3602 = vmatpush.bf16.msra.mxu1 %v7389_v27  ;;  %v3383_v27 = vpop.f32.mrf.mxu0 }
 0x13a   :  { %v8892_v24 = vld [vmem:[#allocation5 + $0xdc8] sm:$0xf]  ;;  %v8637_v33 = vor.u32 %v10991_v23, %v8636_v21  ;;  %3590 = vmatmul.bf16.vlgmr.msra.gmra.mxu0 %v12067_v9 }
 0x13b   :  { %v11055_v26 = vld [vmem:[#allocation5 + $0xde4] sm:$0xf0]  ;;  %3615 = vmatpush.bf16.msra.mxu2 %v7645_v28  ;;  %3634 = vmatpush.bf16.msrb.mxu0 %v8381_v32 }
 0x13c   :  { %v9148_v29 = vld [vmem:[#allocation5 + $0xfc8] sm:$0xf]  ;;  %v8893_v35 = vor.u32 %v11055_v26, %v8892_v24  ;;  %3603 = vmatmul.bf16.vlgmr.msra.gmra.mxu1 %v12074_v25 }
 0x13d   :  { %v11119_v30 = vld [vmem:[#allocation5 + $0xfe4] sm:$0xf0]  ;;  %3628 = vmatpush.bf16.msra.mxu3 %v7901_v31  ;;  %3647 = vmatpush.bf16.msrb.mxu1 %v8637_v33  ;;  %v3384_v33 = vadd.f32 %v3383_v27, %v798_v18  ;;  %v8126_v27 = vld [vmem:[#allocation5 + $0x7e8] sm:$0xf0] }
 0x13e   :  { %v8348_v36 = vld [vmem:[#allocation5 + $0x988] sm:$0xf]  ;;  %v9149_v42 = vor.u32 %v11119_v30, %v9148_v29  ;;  %3616 = vmatmul.bf16.vlgmr.msra.gmra.mxu2 %v12065_v8 }
 0x13f   :  { %v10919_v39 = vld [vmem:[#allocation5 + $0x9a4] sm:$0xf0]  ;;  %3660 = vmatpush.bf16.msrb.mxu2 %v8893_v35 }
 0x140   :  { %v8604_v41 = vld [vmem:[#allocation5 + $0xb88] sm:$0xf]  ;;  %v8349_v48 = vor.u32 %v10919_v39, %v8348_v36  ;;  %3629 = vmatmul.bf16.vlgmr.msra.gmra.mxu3 %v12069_v15 }
 0x141   :  { %v10983_v43 = vld [vmem:[#allocation5 + $0xba4] sm:$0xf0]  ;;  %3673 = vmatpush.bf16.msrb.mxu3 %v9149_v42 }
 0x142   :  { %v8860_v44 = vld [vmem:[#allocation5 + $0xd88] sm:$0xf]  ;;  %v8605_v49 = vor.u32 %v10983_v43, %v8604_v41  ;;  %3635 = vmatpush.bf16.msrb.mxu0 %v8349_v48 }
 0x143   :  { %v11047_v45 = vld [vmem:[#allocation5 + $0xda4] sm:$0xf0] }
 0x144   :  { %v9116_v46 = vld [vmem:[#allocation5 + $0xf88] sm:$0xf]  ;;  %v8861_v50 = vor.u32 %v11047_v45, %v8860_v44  ;;  %3648 = vmatpush.bf16.msrb.mxu1 %v8605_v49  ;;  %v3396_v45 = vpop.f32.mrf.mxu1 }
 0x145   :  { %v11111_v47 = vld [vmem:[#allocation5 + $0xfa4] sm:$0xf0] }
 0x146   :  { %v8316_v51 = vld [vmem:[#allocation5 + $0x948] sm:$0xf]  ;;  %v9117_v54 = vor.u32 %v11111_v47, %v9116_v46  ;;  %3661 = vmatpush.bf16.msrb.mxu2 %v8861_v50 }
 0x147   :  { %v10911_v52 = vld [vmem:[#allocation5 + $0x964] sm:$0xf0] }
 0x148   :  { %v8572_v53 = vld [vmem:[#allocation5 + $0xb48] sm:$0xf]  ;;  %v8317_v60 = vor.u32 %v10911_v52, %v8316_v51  ;;  %3674 = vmatpush.bf16.msrb.mxu3 %v9117_v54  ;;  %v3397_v51 = vadd.f32 %v3396_v45, %v3384_v33  ;;  %v10659_v33 = vld [vmem:[#allocation5 + $0x18c] sm:$0xf] }
 0x149   :  { %v10975_v55 = vld [vmem:[#allocation5 + $0xb64] sm:$0xf0]  ;;  %v10851_v45 = vld [vmem:[#allocation5 + $0x78c] sm:$0xf] }
 0x14a   :  { %v8828_v56 = vld [vmem:[#allocation5 + $0xd48] sm:$0xf]  ;;  %v8573_v62 = vor.u32 %v10975_v55, %v8572_v53  ;;  %3636 = vmatpush.bf16.msrb.mxu0 %v8317_v60  ;;  %v3422_v60 = vpop.f32.mrf.mxu3 }
 0x14b   :  { %v11039_v57 = vld [vmem:[#allocation5 + $0xd64] sm:$0xf0] }
 0x14c   :  { %v9084_v58 = vld [vmem:[#allocation5 + $0xf48] sm:$0xf]  ;;  %v8829_v63 = vor.u32 %v11039_v57, %v8828_v56  ;;  %3649 = vmatpush.bf16.msrb.mxu1 %v8573_v62  ;;  %v3409_v56 = vpop.f32.mrf.mxu2 }
 0x14d   :  { %v11103_v59 = vld [vmem:[#allocation5 + $0xf64] sm:$0xf0] }
 0x14e   :  { %v8284_v61 = vld [vmem:[#allocation5 + $0x908] sm:$0xf]  ;;  %v9085_v3 = vor.u32 %v11103_v59, %v9084_v58  ;;  %3662 = vmatpush.bf16.msrb.mxu2 %v8829_v63  ;;  %v3410_v59 = vadd.f32 %v3409_v56, %v3397_v51  ;;  %v7294_v51 = vld [vmem:[#allocation5 + $0x168] sm:$0xf0] }
 0x14f   :  { %v10903_v0 = vld [vmem:[#allocation5 + $0x924] sm:$0xf0]  ;;  %v7806_v56 = vld [vmem:[#allocation5 + $0x568] sm:$0xf0] }
 0x150   :  { %v8540_v1 = vld [vmem:[#allocation5 + $0xb08] sm:$0xf]  ;;  %v8285_v11 = vor.u32 %v10903_v0, %v8284_v61  ;;  %3675 = vmatpush.bf16.msrb.mxu3 %v9085_v3  ;;  %v3385_v0 = vpop.f32.mrf.mxu0 }
 0x151   :  { %v10967_v2 = vld [vmem:[#allocation5 + $0xb24] sm:$0xf0]  ;;  %v10707_v0 = vld [vmem:[#allocation5 + $0x30c] sm:$0xf] }
 0x152   :  { %v8796_v4 = vld [vmem:[#allocation5 + $0xd08] sm:$0xf]  ;;  %v8541_v13 = vor.u32 %v10967_v2, %v8540_v1  ;;  %3637 = vmatpush.bf16.msrb.mxu0 %v8285_v11 }
 0x153   :  { %v11031_v5 = vld [vmem:[#allocation5 + $0xd24] sm:$0xf0] }
 0x154   :  { %v9052_v7 = vld [vmem:[#allocation5 + $0xf08] sm:$0xf]  ;;  %v8797_v14 = vor.u32 %v11031_v5, %v8796_v4  ;;  %3650 = vmatpush.bf16.msrb.mxu1 %v8541_v13 }
 0x155   :  { %v11095_v10 = vld [vmem:[#allocation5 + $0xf24] sm:$0xf0] }
 0x156   :  { %v8252_v12 = vld [vmem:[#allocation5 + $0x8c8] sm:$0xf]  ;;  %v9053_v19 = vor.u32 %v11095_v10, %v9052_v7  ;;  %3663 = vmatpush.bf16.msrb.mxu2 %v8797_v14  ;;  %v12104_v7 = vadd.f32 %v3422_v60, %v3410_v59  ;;  %v10667_v14 = vld [vmem:[#allocation5 + $0x1cc] sm:$0xf] }
 0x157   :  { %v10895_v16 = vld [vmem:[#allocation5 + $0x8e4] sm:$0xf0] }
 0x158   :  { %v8508_v17 = vld [vmem:[#allocation5 + $0xac8] sm:$0xf]  ;;  %v8253_v26 = vor.u32 %v10895_v16, %v8252_v12  ;;  %3676 = vmatpush.bf16.msrb.mxu3 %v9053_v19  ;;  %v7358_v16 = vld [vmem:[#allocation5 + $0x1e8] sm:$0xf0] }
 0x159   :  { %v10959_v20 = vld [vmem:[#allocation5 + $0xae4] sm:$0xf0]  ;;  %v7614_v19 = vld [vmem:[#allocation5 + $0x3e8] sm:$0xf0] }
 0x15a   :  { %v8764_v21 = vld [vmem:[#allocation5 + $0xcc8] sm:$0xf]  ;;  %v8509_v28 = vor.u32 %v10959_v20, %v8508_v17  ;;  %3638 = vmatpush.bf16.msrb.mxu0 %v8253_v26  ;;  %v10731_v17 = vld [vmem:[#allocation5 + $0x3cc] sm:$0xf] }
 0x15b   :  { %v11023_v22 = vld [vmem:[#allocation5 + $0xce4] sm:$0xf0]  ;;  %v10795_v20 = vld [vmem:[#allocation5 + $0x5cc] sm:$0xf] }
 0x15c   :  { %v9020_v23 = vld [vmem:[#allocation5 + $0xec8] sm:$0xf]  ;;  %v8765_v29 = vor.u32 %v11023_v22, %v8764_v21  ;;  %3651 = vmatpush.bf16.msrb.mxu1 %v8509_v28  ;;  %v7870_v21 = vld [vmem:[#allocation5 + $0x5e8] sm:$0xf0]  ;;  %v3398_v22 = vpop.f32.mrf.mxu1 }
 0x15d   :  { %v11087_v24 = vld [vmem:[#allocation5 + $0xee4] sm:$0xf0]  ;;  %v10859_v26 = vld [vmem:[#allocation5 + $0x7cc] sm:$0xf] }
 0x15e   :  { %v8220_v30 = vld [vmem:[#allocation5 + $0x888] sm:$0xf]  ;;  %v9021_v35 = vor.u32 %v11087_v24, %v9020_v23  ;;  %3664 = vmatpush.bf16.msrb.mxu2 %v8765_v29  ;;  %v7361_v29 = vor.u32 %v10667_v14, %v7358_v16  ;;  %v10635_v16 = vld [vmem:[#allocation5 + $0xcc] sm:$0xf] }
 0x15f   :  { %v10887_v31 = vld [vmem:[#allocation5 + $0x8a4] sm:$0xf0]  ;;  %v7486_v22 = vld [vmem:[#allocation5 + $0x2e8] sm:$0xf0] }
 0x160   :  { %v8476_v32 = vld [vmem:[#allocation5 + $0xa88] sm:$0xf]  ;;  %v8221_v44 = vor.u32 %v10887_v31, %v8220_v30  ;;  %3677 = vmatpush.bf16.msrb.mxu3 %v9021_v35  ;;  %v3411_v30 = vpop.f32.mrf.mxu2  ;;  %v7617_v31 = vor.u32 %v10731_v17, %v7614_v19  ;;  %v7326_v35 = vld [vmem:[#allocation5 + $0x1a8] sm:$0xf0] }
 0x161   :  { %v10951_v36 = vld [vmem:[#allocation5 + $0xaa4] sm:$0xf0]  ;;  %v7230_v17 = vld [vmem:[#allocation5 + $0xe8] sm:$0xf0] }
 0x162   :  { %v8732_v39 = vld [vmem:[#allocation5 + $0xc88] sm:$0xf]  ;;  %v8477_v46 = vor.u32 %v10951_v36, %v8476_v32  ;;  %3639 = vmatpush.bf16.msrb.mxu0 %v8221_v44  ;;  %v7873_v32 = vor.u32 %v10795_v20, %v7870_v21  ;;  %v10723_v36 = vld [vmem:[#allocation5 + $0x38c] sm:$0xf] }
 0x163   :  { %v11015_v41 = vld [vmem:[#allocation5 + $0xca4] sm:$0xf0]  ;;  %v7838_v44 = vld [vmem:[#allocation5 + $0x5a8] sm:$0xf0] }
 0x164   :  { %v8988_v42 = vld [vmem:[#allocation5 + $0xe88] sm:$0xf]  ;;  %v8733_v47 = vor.u32 %v11015_v41, %v8732_v39  ;;  %3652 = vmatpush.bf16.msrb.mxu1 %v8477_v46  ;;  %v3424_v39 = vpop.f32.mrf.mxu3  ;;  %v8129_v41 = vor.u32 %v10859_v26, %v8126_v27  ;;  %v8094_v46 = vld [vmem:[#allocation5 + $0x7a8] sm:$0xf0]  ;;  %v3448_v20 = vpop.f32.mrf.mxu1 }
 0x165   :  { %v11079_v43 = vld [vmem:[#allocation5 + $0xea4] sm:$0xf0]  ;;  %v10827_v26 = vld [vmem:[#allocation5 + $0x6cc] sm:$0xf] }
 0x166   :  { %v8188_v48 = vld [vmem:[#allocation5 + $0x848] sm:$0xf]  ;;  %v8989_v52 = vor.u32 %v11079_v43, %v8988_v42  ;;  %3665 = vmatpush.bf16.msrb.mxu2 %v8733_v47  ;;  %v7582_v42 = vld [vmem:[#allocation5 + $0x3a8] sm:$0xf0]  ;;  %v7329_v47 = vor.u32 %v10659_v33, %v7326_v35 }
 0x167   :  { %v10879_v49 = vld [vmem:[#allocation5 + $0x864] sm:$0xf0]  ;;  %v10787_v43 = vld [vmem:[#allocation5 + $0x58c] sm:$0xf] }
 0x168   :  { %v8444_v50 = vld [vmem:[#allocation5 + $0xa48] sm:$0xf]  ;;  %v8189_v61 = vor.u32 %v10879_v49, %v8188_v48  ;;  %3678 = vmatpush.bf16.msrb.mxu3 %v8989_v52  ;;  %v7585_v48 = vor.u32 %v10723_v36, %v7582_v42  ;;  %v7841_v49 = vor.u32 %v10787_v43, %v7838_v44  ;;  %v10715_v52 = vld [vmem:[#allocation5 + $0x34c] sm:$0xf]  ;;  %v3461_v36 = vpop.f32.mrf.mxu2 }
 0x169   :  { %v10943_v53 = vld [vmem:[#allocation5 + $0xa64] sm:$0xf0]  ;;  %v7998_v27 = vld [vmem:[#allocation5 + $0x6e8] sm:$0xf0] }
 0x16a   :  { %v8700_v54 = vld [vmem:[#allocation5 + $0xc48] sm:$0xf]  ;;  %v8445_v1 = vor.u32 %v10943_v53, %v8444_v50  ;;  %3640 = vmatpush.bf16.msrb.mxu0 %v8189_v61  ;;  %v10651_v50 = vld [vmem:[#allocation5 + $0x14c] sm:$0xf]  ;;  %v8097_v53 = vor.u32 %v10851_v45, %v8094_v46 }
 0x16b   :  { %v11007_v55 = vld [vmem:[#allocation5 + $0xc64] sm:$0xf0]  ;;  %v7297_v59 = vor.u32 %v10651_v50, %v7294_v51  ;;  %v7198_v33 = vld [vmem:[#allocation5 + $0xa8] sm:$0xf0] }
 0x16c   :  { %v8956_v57 = vld [vmem:[#allocation5 + $0xe48] sm:$0xf]  ;;  %v8701_v2 = vor.u32 %v11007_v55, %v8700_v54  ;;  %3653 = vmatpush.bf16.msrb.mxu1 %v8445_v1  ;;  %v7550_v54 = vld [vmem:[#allocation5 + $0x368] sm:$0xf0]  ;;  %v3474_v44 = vpop.f32.mrf.mxu3 }
 0x16d   :  { %v11071_v58 = vld [vmem:[#allocation5 + $0xe64] sm:$0xf0]  ;;  %v10779_v55 = vld [vmem:[#allocation5 + $0x54c] sm:$0xf]  ;;  %v7553_v60 = vor.u32 %v10715_v52, %v7550_v54 }
 0x16e   :  { %v8156_v62 = vld [vmem:[#allocation5 + $0x808] sm:$0xf]  ;;  %v8957_v10 = vor.u32 %v11071_v58, %v8956_v57  ;;  %3666 = vmatpush.bf16.msrb.mxu2 %v8701_v2  ;;  %v10843_v57 = vld [vmem:[#allocation5 + $0x74c] sm:$0xf]  ;;  %v7809_v61 = vor.u32 %v10779_v55, %v7806_v56  ;;  %v3450_v55 = vpop.f32.mrf.mxu1 }
 0x16f   :  { %v10871_v63 = vld [vmem:[#allocation5 + $0x824] sm:$0xf0]  ;;  %v8062_v58 = vld [vmem:[#allocation5 + $0x768] sm:$0xf0] }
 0x170   :  { %v8412_v3 = vld [vmem:[#allocation5 + $0xa08] sm:$0xf]  ;;  %v8157_v18 = vor.u32 %v10871_v63, %v8156_v62  ;;  %3679 = vmatpush.bf16.msrb.mxu3 %v8957_v10  ;;  %v10643_v62 = vld [vmem:[#allocation5 + $0x10c] sm:$0xf]  ;;  %v8065_v1 = vor.u32 %v10843_v57, %v8062_v58 }
 0x171   :  { %v10935_v4 = vld [vmem:[#allocation5 + $0xa24] sm:$0xf0]  ;;  %v7262_v63 = vld [vmem:[#allocation5 + $0x128] sm:$0xf0] }
 0x172   :  { %v8668_v5 = vld [vmem:[#allocation5 + $0xc08] sm:$0xf]  ;;  %v8413_v23 = vor.u32 %v10935_v4, %v8412_v3  ;;  %3641 = vmatpush.bf16.msrb.mxu0 %v8157_v18  ;;  %v7518_v2 = vld [vmem:[#allocation5 + $0x328] sm:$0xf0] }
 0x173   :  { %v10999_v11 = vld [vmem:[#allocation5 + $0xc24] sm:$0xf0]  ;;  %v10771_v3 = vld [vmem:[#allocation5 + $0x50c] sm:$0xf] }
 0x174   :  { %v8924_v12 = vld [vmem:[#allocation5 + $0xe08] sm:$0xf]  ;;  %v8669_v24 = vor.u32 %v10999_v11, %v8668_v5  ;;  %3654 = vmatpush.bf16.msrb.mxu1 %v8413_v23  ;;  %v7774_v4 = vld [vmem:[#allocation5 + $0x528] sm:$0xf0]  ;;  %v7265_v11 = vor.u32 %v10643_v62, %v7262_v63 }
 0x175   :  { %v11063_v13 = vld [vmem:[#allocation5 + $0xe24] sm:$0xf0]  ;;  %3642 = vmatmul.bf16.vlgmr.msrb.gmra.mxu0 %v12079_v37  ;;  %v10835_v5 = vld [vmem:[#allocation5 + $0x70c] sm:$0xf]  ;;  %v7777_v14 = vor.u32 %v10771_v3, %v7774_v4 }
 0x176   :  { %v8925_v28 = vor.u32 %v11063_v13, %v8924_v12  ;;  %3667 = vmatpush.bf16.msrb.mxu2 %v8669_v24  ;;  %3686 = vmatpush.bf16.msra.mxu0 %v7361_v29  ;;  %v8030_v10 = vld [vmem:[#allocation5 + $0x728] sm:$0xf0]  ;;  %v3435_v12 = vpop.f32.mrf.mxu0  ;;  %v7521_v13 = vor.u32 %v10707_v0, %v7518_v2  ;;  %v7233_v29 = vor.u32 %v10635_v16, %v7230_v17  ;;  %v3476_v16 = vpop.f32.mrf.mxu3 }
 0x177   :  { %3655 = vmatmul.bf16.vlgmr.msrb.gmra.mxu1 %v12083_v40  ;;  %v10699_v18 = vld [vmem:[#allocation5 + $0x2cc] sm:$0xf]  ;;  %v3436_v19 = vadd.f32 %v3435_v12, %v12104_v7  ;;  %v8033_v21 = vor.u32 %v10835_v5, %v8030_v10  ;;  %v8001_v7 = vor.u32 %v10827_v26, %v7998_v27  ;;  %v3463_v10 = vpop.f32.mrf.mxu2 }
 0x178   :  { %3680 = vmatpush.bf16.msrb.mxu3 %v8925_v28  ;;  %3699 = vmatpush.bf16.msra.mxu1 %v7617_v31  ;;  %v10763_v23 = vld [vmem:[#allocation5 + $0x4cc] sm:$0xf]  ;;  %v7489_v30 = vor.u32 %v10699_v18, %v7486_v22 }
 0x179   :  { %3668 = vmatmul.bf16.vlgmr.msrb.gmra.mxu2 %v12077_v34  ;;  %v7742_v24 = vld [vmem:[#allocation5 + $0x4e8] sm:$0xf0]  ;;  %v3449_v28 = vadd.f32 %v3448_v20, %v3436_v19 }
 0x17a   :  { %3712 = vmatpush.bf16.msra.mxu2 %v7873_v32  ;;  %3687 = vmatpush.bf16.msra.mxu0 %v7329_v47  ;;  %v7745_v31 = vor.u32 %v10763_v23, %v7742_v24  ;;  %v10627_v32 = vld [vmem:[#allocation5 + $0x8c] sm:$0xf] }
 0x17b   :  { %3681 = vmatmul.bf16.vlgmr.msrb.gmra.mxu3 %v12081_v38  ;;  %v10691_v35 = vld [vmem:[#allocation5 + $0x28c] sm:$0xf]  ;;  %v3462_v43 = vadd.f32 %v3461_v36, %v3449_v28  ;;  %v7201_v47 = vor.u32 %v10627_v32, %v7198_v33 }
 0x17c   :  { %3725 = vmatpush.bf16.msra.mxu3 %v8129_v41  ;;  %3700 = vmatpush.bf16.msra.mxu1 %v7585_v48  ;;  %v7454_v39 = vld [vmem:[#allocation5 + $0x2a8] sm:$0xf0] }
 0x17d   :  { %v10755_v41 = vld [vmem:[#allocation5 + $0x48c] sm:$0xf]  ;;  %v12111_v48 = vadd.f32 %v3474_v44, %v3462_v43  ;;  %v7457_v50 = vor.u32 %v10691_v35, %v7454_v39 }
 0x17e   :  { %3713 = vmatpush.bf16.msra.mxu2 %v7841_v49  ;;  %3688 = vmatpush.bf16.msra.mxu0 %v7297_v59  ;;  %v7710_v42 = vld [vmem:[#allocation5 + $0x4a8] sm:$0xf0]  ;;  %v3437_v49 = vpop.f32.mrf.mxu0 }
 0x17f   :  { %v10819_v45 = vld [vmem:[#allocation5 + $0x68c] sm:$0xf]  ;;  %v7713_v51 = vor.u32 %v10755_v41, %v7710_v42 }
 0x180   :  { %3726 = vmatpush.bf16.msra.mxu3 %v8097_v53  ;;  %3701 = vmatpush.bf16.msra.mxu1 %v7553_v60  ;;  %v7966_v46 = vld [vmem:[#allocation5 + $0x6a8] sm:$0xf0] }
 0x181   :  { %v10619_v52 = vld [vmem:[#allocation5 + $0x4c] sm:$0xf]  ;;  %v7969_v56 = vor.u32 %v10819_v45, %v7966_v46 }
 0x182   :  { %3714 = vmatpush.bf16.msra.mxu2 %v7809_v61  ;;  %3689 = vmatpush.bf16.msra.mxu0 %v7265_v11  ;;  %v7166_v53 = vld [vmem:[#allocation5 + $0x68] sm:$0xf0] }
 0x183   :  { %v10683_v54 = vld [vmem:[#allocation5 + $0x24c] sm:$0xf]  ;;  %v7169_v62 = vor.u32 %v10619_v52, %v7166_v53 }
 0x184   :  { %3727 = vmatpush.bf16.msra.mxu3 %v8065_v1  ;;  %3702 = vmatpush.bf16.msra.mxu1 %v7521_v13  ;;  %v7422_v57 = vld [vmem:[#allocation5 + $0x268] sm:$0xf0] }
 0x185   :  { %v10747_v58 = vld [vmem:[#allocation5 + $0x44c] sm:$0xf]  ;;  %v7425_v1 = vor.u32 %v10683_v54, %v7422_v57 }
 0x186   :  { %3715 = vmatpush.bf16.msra.mxu2 %v7777_v14  ;;  %3690 = vmatpush.bf16.msra.mxu0 %v7233_v29  ;;  %v7678_v59 = vld [vmem:[#allocation5 + $0x468] sm:$0xf0] }
 0x187   :  { %v10811_v60 = vld [vmem:[#allocation5 + $0x64c] sm:$0xf]  ;;  %v7681_v2 = vor.u32 %v10747_v58, %v7678_v59 }
 0x188   :  { %3728 = vmatpush.bf16.msra.mxu3 %v8033_v21  ;;  %3703 = vmatpush.bf16.msra.mxu1 %v7489_v30  ;;  %v7934_v61 = vld [vmem:[#allocation5 + $0x668] sm:$0xf0] }
 0x189   :  { %v10611_v63 = vld [vmem:[#allocation5 + $0xc] sm:$0xf]  ;;  %v7937_v11 = vor.u32 %v10811_v60, %v7934_v61 }
 0x18a   :  { %3716 = vmatpush.bf16.msra.mxu2 %v7745_v31  ;;  %3691 = vmatpush.bf16.msra.mxu0 %v7201_v47  ;;  %v7134_v0 = vld [vmem:[#allocation5 + $0x28] sm:$0xf0] }
 0x18b   :  { %v10675_v3 = vld [vmem:[#allocation5 + $0x20c] sm:$0xf]  ;;  %v7137_v20 = vor.u32 %v10611_v63, %v7134_v0  ;;  %v799_v0 = vperm.slane %v12101_v6, 1 }
 0x18c   :  { %3729 = vmatpush.bf16.msra.mxu3 %v8001_v7  ;;  %3704 = vmatpush.bf16.msra.mxu1 %v7457_v50  ;;  %v7390_v4 = vld [vmem:[#allocation5 + $0x228] sm:$0xf0] }
 0x18d   :  { %v10739_v5 = vld [vmem:[#allocation5 + $0x40c] sm:$0xf]  ;;  %v7393_v24 = vor.u32 %v10675_v3, %v7390_v4 }
 0x18e   :  { %3717 = vmatpush.bf16.msra.mxu2 %v7713_v51  ;;  %v7646_v12 = vld [vmem:[#allocation5 + $0x428] sm:$0xf0]  ;;  %3692 = vmatpush.bf16.msra.mxu0 %v7169_v62 }
 0x18f   :  { %v10803_v13 = vld [vmem:[#allocation5 + $0x60c] sm:$0xf]  ;;  %v7649_v26 = vor.u32 %v10739_v5, %v7646_v12  ;;  %v3487_v12 = vpop.f32.mrf.mxu0 }
 0x190   :  { %3730 = vmatpush.bf16.msra.mxu3 %v7969_v56  ;;  %v7902_v14 = vld [vmem:[#allocation5 + $0x628] sm:$0xf0]  ;;  %3705 = vmatpush.bf16.msra.mxu1 %v7425_v1 }
 0x191   :  { %v10923_v17 = vld [vmem:[#allocation5 + $0x9cc] sm:$0xf]  ;;  %v7905_v29 = vor.u32 %v10803_v13, %v7902_v14 }
 0x192   :  { %v8382_v18 = vld [vmem:[#allocation5 + $0x9e8] sm:$0xf0]  ;;  %3718 = vmatpush.bf16.msra.mxu2 %v7681_v2  ;;  %3693 = vmatpush.bf16.msra.mxu0 %v7137_v20  ;;  %v3500_v20 = vpop.f32.mrf.mxu1 }
 0x193   :  { %v10987_v19 = vld [vmem:[#allocation5 + $0xbcc] sm:$0xf]  ;;  %v8385_v30 = vor.u32 %v10923_v17, %v8382_v18 }
 0x194   :  { %v8638_v21 = vld [vmem:[#allocation5 + $0xbe8] sm:$0xf0]  ;;  %3731 = vmatpush.bf16.msra.mxu3 %v7937_v11  ;;  %3706 = vmatpush.bf16.msra.mxu1 %v7393_v24 }
 0x195   :  { %v11051_v22 = vld [vmem:[#allocation5 + $0xdcc] sm:$0xf]  ;;  %v8641_v31 = vor.u32 %v10987_v19, %v8638_v21  ;;  %3694 = vmatmul.bf16.vlgmr.msra.gmra.mxu0 %v12067_v9  ;;  %v3488_v19 = vadd.f32 %v3487_v12, %v799_v0 }
 0x196   :  { %v8894_v23 = vld [vmem:[#allocation5 + $0xde8] sm:$0xf0]  ;;  %3719 = vmatpush.bf16.msra.mxu2 %v7649_v26  ;;  %3738 = vmatpush.bf16.msrb.mxu0 %v8385_v30 }
 0x197   :  { %v11115_v27 = vld [vmem:[#allocation5 + $0xfcc] sm:$0xf]  ;;  %v8897_v32 = vor.u32 %v11051_v22, %v8894_v23  ;;  %3707 = vmatmul.bf16.vlgmr.msra.gmra.mxu1 %v12074_v25 }
 0x198   :  { %v9150_v28 = vld [vmem:[#allocation5 + $0xfe8] sm:$0xf0]  ;;  %3732 = vmatpush.bf16.msra.mxu3 %v7905_v29  ;;  %3751 = vmatpush.bf16.msrb.mxu1 %v8641_v31 }
 0x199   :  { %v10915_v33 = vld [vmem:[#allocation5 + $0x98c] sm:$0xf]  ;;  %v9153_v7 = vor.u32 %v11115_v27, %v9150_v28  ;;  %3720 = vmatmul.bf16.vlgmr.msra.gmra.mxu2 %v12065_v8  ;;  %v3501_v27 = vadd.f32 %v3500_v20, %v3488_v19  ;;  %v7620_v19 = vld [vmem:[#allocation5 + $0x3d0] sm:$0xf] }
 0x19a   :  { %v8350_v35 = vld [vmem:[#allocation5 + $0x9a8] sm:$0xf0]  ;;  %3764 = vmatpush.bf16.msrb.mxu2 %v8897_v32 }
 0x19b   :  { %v10979_v36 = vld [vmem:[#allocation5 + $0xb8c] sm:$0xf]  ;;  %v8353_v45 = vor.u32 %v10915_v33, %v8350_v35  ;;  %3733 = vmatmul.bf16.vlgmr.msra.gmra.mxu3 %v12069_v15  ;;  %v3513_v35 = vpop.f32.mrf.mxu2 }
 0x19c   :  { %v8606_v39 = vld [vmem:[#allocation5 + $0xba8] sm:$0xf0]  ;;  %3777 = vmatpush.bf16.msrb.mxu3 %v9153_v7 }
 0x19d   :  { %v11043_v41 = vld [vmem:[#allocation5 + $0xd8c] sm:$0xf]  ;;  %v8609_v46 = vor.u32 %v10979_v36, %v8606_v39  ;;  %3739 = vmatpush.bf16.msrb.mxu0 %v8353_v45 }
 0x19e   :  { %v8862_v42 = vld [vmem:[#allocation5 + $0xda8] sm:$0xf0] }
 0x19f   :  { %v11107_v43 = vld [vmem:[#allocation5 + $0xf8c] sm:$0xf]  ;;  %v8865_v47 = vor.u32 %v11043_v41, %v8862_v42  ;;  %3752 = vmatpush.bf16.msrb.mxu1 %v8609_v46  ;;  %v3514_v42 = vadd.f32 %v3513_v35, %v3501_v27  ;;  %v10864_v27 = vld [vmem:[#allocation5 + $0x7ec] sm:$0xf0] }
 0x1a0   :  { %v9118_v44 = vld [vmem:[#allocation5 + $0xfa8] sm:$0xf0]  ;;  %v7588_v35 = vld [vmem:[#allocation5 + $0x390] sm:$0xf] }
 0x1a1   :  { %v10907_v49 = vld [vmem:[#allocation5 + $0x94c] sm:$0xf]  ;;  %v9121_v52 = vor.u32 %v11107_v43, %v9118_v44  ;;  %3765 = vmatpush.bf16.msrb.mxu2 %v8865_v47  ;;  %v3526_v43 = vpop.f32.mrf.mxu3 }
 0x1a2   :  { %v8318_v50 = vld [vmem:[#allocation5 + $0x968] sm:$0xf0]  ;;  %v12118_v47 = vadd.f32 %v3526_v43, %v3514_v42  ;;  %v8100_v42 = vld [vmem:[#allocation5 + $0x790] sm:$0xf] }
 0x1a3   :  { %v10971_v51 = vld [vmem:[#allocation5 + $0xb4c] sm:$0xf]  ;;  %v8321_v58 = vor.u32 %v10907_v49, %v8318_v50  ;;  %3778 = vmatpush.bf16.msrb.mxu3 %v9121_v52  ;;  %v3489_v49 = vpop.f32.mrf.mxu0  ;;  %v10856_v43 = vld [vmem:[#allocation5 + $0x7ac] sm:$0xf0] }
 0x1a4   :  { %v8574_v53 = vld [vmem:[#allocation5 + $0xb68] sm:$0xf0]  ;;  %v7300_v49 = vld [vmem:[#allocation5 + $0x150] sm:$0xf] }
 0x1a5   :  { %v11035_v54 = vld [vmem:[#allocation5 + $0xd4c] sm:$0xf]  ;;  %v8577_v60 = vor.u32 %v10971_v51, %v8574_v53  ;;  %3740 = vmatpush.bf16.msrb.mxu0 %v8321_v58 }
 0x1a6   :  { %v8830_v55 = vld [vmem:[#allocation5 + $0xd68] sm:$0xf0] }
 0x1a7   :  { %v11099_v56 = vld [vmem:[#allocation5 + $0xf4c] sm:$0xf]  ;;  %v8833_v61 = vor.u32 %v11035_v54, %v8830_v55  ;;  %3753 = vmatpush.bf16.msrb.mxu1 %v8577_v60  ;;  %v3502_v55 = vpop.f32.mrf.mxu1 }
 0x1a8   :  { %v9086_v57 = vld [vmem:[#allocation5 + $0xf68] sm:$0xf0]  ;;  %v10784_v55 = vld [vmem:[#allocation5 + $0x56c] sm:$0xf0] }
 0x1a9   :  { %v10899_v59 = vld [vmem:[#allocation5 + $0x90c] sm:$0xf]  ;;  %v9089_v1 = vor.u32 %v11099_v56, %v9086_v57  ;;  %3766 = vmatpush.bf16.msrb.mxu2 %v8833_v61 }
 0x1aa   :  { %v8286_v62 = vld [vmem:[#allocation5 + $0x928] sm:$0xf0] }
 0x1ab   :  { %v10963_v63 = vld [vmem:[#allocation5 + $0xb0c] sm:$0xf]  ;;  %v8289_v11 = vor.u32 %v10899_v59, %v8286_v62  ;;  %3779 = vmatpush.bf16.msrb.mxu3 %v9089_v1 }
 0x1ac   :  { %v8542_v2 = vld [vmem:[#allocation5 + $0xb28] sm:$0xf0] }
 0x1ad   :  { %v11027_v3 = vld [vmem:[#allocation5 + $0xd0c] sm:$0xf]  ;;  %v8545_v13 = vor.u32 %v10963_v63, %v8542_v2  ;;  %3741 = vmatpush.bf16.msrb.mxu0 %v8289_v11 }
 0x1ae   :  { %v8798_v4 = vld [vmem:[#allocation5 + $0xd28] sm:$0xf0] }
 0x1af   :  { %v11091_v5 = vld [vmem:[#allocation5 + $0xf0c] sm:$0xf]  ;;  %v8801_v14 = vor.u32 %v11027_v3, %v8798_v4  ;;  %3754 = vmatpush.bf16.msrb.mxu1 %v8545_v13 }
 0x1b0   :  { %v9054_v10 = vld [vmem:[#allocation5 + $0xf28] sm:$0xf0] }
 0x1b1   :  { %v10891_v16 = vld [vmem:[#allocation5 + $0x8cc] sm:$0xf]  ;;  %v9057_v6 = vor.u32 %v11091_v5, %v9054_v10  ;;  %3767 = vmatpush.bf16.msrb.mxu2 %v8801_v14  ;;  %v3515_v10 = vpop.f32.mrf.mxu2 }
 0x1b2   :  { %v8254_v17 = vld [vmem:[#allocation5 + $0x8e8] sm:$0xf0] }
 0x1b3   :  { %v10955_v18 = vld [vmem:[#allocation5 + $0xacc] sm:$0xf]  ;;  %v8257_v28 = vor.u32 %v10891_v16, %v8254_v17  ;;  %3780 = vmatpush.bf16.msrb.mxu3 %v9057_v6  ;;  %v3528_v16 = vpop.f32.mrf.mxu3  ;;  %v7364_v17 = vld [vmem:[#allocation5 + $0x1d0] sm:$0xf] }
 0x1b4   :  { %v8510_v21 = vld [vmem:[#allocation5 + $0xae8] sm:$0xf0]  ;;  %v10736_v6 = vld [vmem:[#allocation5 + $0x3ec] sm:$0xf0] }
 0x1b5   :  { %v11019_v22 = vld [vmem:[#allocation5 + $0xccc] sm:$0xf]  ;;  %v8513_v29 = vor.u32 %v10955_v18, %v8510_v21  ;;  %3742 = vmatpush.bf16.msrb.mxu0 %v8257_v28  ;;  %v10672_v18 = vld [vmem:[#allocation5 + $0x1ec] sm:$0xf0] }
 0x1b6   :  { %v8766_v23 = vld [vmem:[#allocation5 + $0xce8] sm:$0xf0]  ;;  %v7876_v21 = vld [vmem:[#allocation5 + $0x5d0] sm:$0xf] }
 0x1b7   :  { %v11083_v24 = vld [vmem:[#allocation5 + $0xecc] sm:$0xf]  ;;  %v8769_v30 = vor.u32 %v11019_v22, %v8766_v23  ;;  %3755 = vmatpush.bf16.msrb.mxu1 %v8513_v29  ;;  %v10800_v22 = vld [vmem:[#allocation5 + $0x5ec] sm:$0xf0]  ;;  %v7365_v29 = vor.u32 %v10672_v18, %v7364_v17 }
 0x1b8   :  { %v9022_v26 = vld [vmem:[#allocation5 + $0xee8] sm:$0xf0]  ;;  %v10640_v16 = vld [vmem:[#allocation5 + $0xec] sm:$0xf0] }
 0x1b9   :  { %v10883_v31 = vld [vmem:[#allocation5 + $0x88c] sm:$0xf]  ;;  %v9025_v36 = vor.u32 %v11083_v24, %v9022_v26  ;;  %3768 = vmatpush.bf16.msrb.mxu2 %v8769_v30  ;;  %v8132_v26 = vld [vmem:[#allocation5 + $0x7d0] sm:$0xf]  ;;  %v7621_v30 = vor.u32 %v10736_v6, %v7620_v19  ;;  %v3552_v19 = vpop.f32.mrf.mxu1 }
 0x1ba   :  { %v8222_v32 = vld [vmem:[#allocation5 + $0x8a8] sm:$0xf0]  ;;  %v7492_v17 = vld [vmem:[#allocation5 + $0x2d0] sm:$0xf] }
 0x1bb   :  { %v10947_v33 = vld [vmem:[#allocation5 + $0xa8c] sm:$0xf]  ;;  %v8225_v46 = vor.u32 %v10883_v31, %v8222_v32  ;;  %3781 = vmatpush.bf16.msrb.mxu3 %v9025_v36  ;;  %v7877_v31 = vor.u32 %v10800_v22, %v7876_v21  ;;  %v7332_v32 = vld [vmem:[#allocation5 + $0x190] sm:$0xf]  ;;  %v8133_v36 = vor.u32 %v10864_v27, %v8132_v26 }
 0x1bc   :  { %v8478_v7 = vld [vmem:[#allocation5 + $0xaa8] sm:$0xf0]  ;;  %v10704_v6 = vld [vmem:[#allocation5 + $0x2ec] sm:$0xf0] }
 0x1bd   :  { %v11011_v39 = vld [vmem:[#allocation5 + $0xc8c] sm:$0xf]  ;;  %v8481_v50 = vor.u32 %v10947_v33, %v8478_v7  ;;  %3743 = vmatpush.bf16.msrb.mxu0 %v8225_v46  ;;  %v10664_v33 = vld [vmem:[#allocation5 + $0x1ac] sm:$0xf0] }
 0x1be   :  { %v8734_v41 = vld [vmem:[#allocation5 + $0xca8] sm:$0xf0]  ;;  %v10728_v7 = vld [vmem:[#allocation5 + $0x3ac] sm:$0xf0] }
 0x1bf   :  { %v11075_v44 = vld [vmem:[#allocation5 + $0xe8c] sm:$0xf]  ;;  %v8737_v51 = vor.u32 %v11011_v39, %v8734_v41  ;;  %3756 = vmatpush.bf16.msrb.mxu1 %v8481_v50  ;;  %v7844_v39 = vld [vmem:[#allocation5 + $0x590] sm:$0xf] }
 0x1c0   :  { %v8990_v45 = vld [vmem:[#allocation5 + $0xea8] sm:$0xf0]  ;;  %v10792_v41 = vld [vmem:[#allocation5 + $0x5ac] sm:$0xf0] }
 0x1c1   :  { %v10875_v52 = vld [vmem:[#allocation5 + $0x84c] sm:$0xf]  ;;  %v8993_v56 = vor.u32 %v11075_v44, %v8990_v45  ;;  %3769 = vmatpush.bf16.msrb.mxu2 %v8737_v51  ;;  %v7333_v44 = vor.u32 %v10664_v33, %v7332_v32  ;;  %v7589_v45 = vor.u32 %v10728_v7, %v7588_v35  ;;  %v7845_v46 = vor.u32 %v10792_v41, %v7844_v39  ;;  %v10656_v50 = vld [vmem:[#allocation5 + $0x16c] sm:$0xf0]  ;;  %v3565_v33 = vpop.f32.mrf.mxu2  ;;  %v3578_v41 = vpop.f32.mrf.mxu3 }
 0x1c2   :  { %v8190_v53 = vld [vmem:[#allocation5 + $0x868] sm:$0xf0]  ;;  %v7556_v51 = vld [vmem:[#allocation5 + $0x350] sm:$0xf] }
 0x1c3   :  { %v10939_v54 = vld [vmem:[#allocation5 + $0xa4c] sm:$0xf]  ;;  %v8193_v62 = vor.u32 %v10875_v52, %v8190_v53  ;;  %3782 = vmatpush.bf16.msrb.mxu3 %v8993_v56  ;;  %v8101_v52 = vor.u32 %v10856_v43, %v8100_v42  ;;  %v10720_v53 = vld [vmem:[#allocation5 + $0x36c] sm:$0xf0] }
 0x1c4   :  { %v8446_v57 = vld [vmem:[#allocation5 + $0xa68] sm:$0xf0]  ;;  %v8068_v56 = vld [vmem:[#allocation5 + $0x750] sm:$0xf] }
 0x1c5   :  { %v11003_v58 = vld [vmem:[#allocation5 + $0xc4c] sm:$0xf]  ;;  %v8449_v1 = vor.u32 %v10939_v54, %v8446_v57  ;;  %3744 = vmatpush.bf16.msrb.mxu0 %v8193_v62  ;;  %v7812_v54 = vld [vmem:[#allocation5 + $0x550] sm:$0xf] }
 0x1c6   :  { %v8702_v59 = vld [vmem:[#allocation5 + $0xc68] sm:$0xf0]  ;;  %v10848_v57 = vld [vmem:[#allocation5 + $0x76c] sm:$0xf0] }
 0x1c7   :  { %v11067_v60 = vld [vmem:[#allocation5 + $0xe4c] sm:$0xf]  ;;  %v8705_v2 = vor.u32 %v11003_v58, %v8702_v59  ;;  %3757 = vmatpush.bf16.msrb.mxu1 %v8449_v1  ;;  %v7301_v58 = vor.u32 %v10656_v50, %v7300_v49  ;;  %v7557_v59 = vor.u32 %v10720_v53, %v7556_v51  ;;  %v10648_v62 = vld [vmem:[#allocation5 + $0x12c] sm:$0xf0] }
 0x1c8   :  { %v8958_v61 = vld [vmem:[#allocation5 + $0xe68] sm:$0xf0]  ;;  %v10712_v1 = vld [vmem:[#allocation5 + $0x32c] sm:$0xf0] }
 0x1c9   :  { %v10867_v63 = vld [vmem:[#allocation5 + $0x80c] sm:$0xf]  ;;  %v8961_v11 = vor.u32 %v11067_v60, %v8958_v61  ;;  %3770 = vmatpush.bf16.msrb.mxu2 %v8705_v2  ;;  %v7813_v60 = vor.u32 %v10784_v55, %v7812_v54  ;;  %v7268_v61 = vld [vmem:[#allocation5 + $0x110] sm:$0xf]  ;;  %v3554_v54 = vpop.f32.mrf.mxu1 }
 0x1ca   :  { %v8158_v0 = vld [vmem:[#allocation5 + $0x828] sm:$0xf0]  ;;  %v7780_v2 = vld [vmem:[#allocation5 + $0x510] sm:$0xf]  ;;  %v7269_v10 = vor.u32 %v10648_v62, %v7268_v61 }
 0x1cb   :  { %v10931_v3 = vld [vmem:[#allocation5 + $0xa0c] sm:$0xf]  ;;  %v8161_v20 = vor.u32 %v10867_v63, %v8158_v0  ;;  %3783 = vmatpush.bf16.msrb.mxu3 %v8961_v11  ;;  %v7524_v63 = vld [vmem:[#allocation5 + $0x310] sm:$0xf]  ;;  %v8069_v0 = vor.u32 %v10848_v57, %v8068_v56  ;;  %v3539_v11 = vpop.f32.mrf.mxu0 }
 0x1cc   :  { %v8414_v4 = vld [vmem:[#allocation5 + $0xa28] sm:$0xf0]  ;;  %v3540_v18 = vadd.f32 %v3539_v11, %v12118_v47  ;;  %v7748_v21 = vld [vmem:[#allocation5 + $0x4d0] sm:$0xf] }
 0x1cd   :  { %v10995_v5 = vld [vmem:[#allocation5 + $0xc0c] sm:$0xf]  ;;  %v8417_v23 = vor.u32 %v10931_v3, %v8414_v4  ;;  %3745 = vmatpush.bf16.msrb.mxu0 %v8161_v20  ;;  %v10776_v3 = vld [vmem:[#allocation5 + $0x52c] sm:$0xf0] }
 0x1ce   :  { %v8670_v12 = vld [vmem:[#allocation5 + $0xc28] sm:$0xf0]  ;;  %v8036_v4 = vld [vmem:[#allocation5 + $0x710] sm:$0xf]  ;;  %v3553_v26 = vadd.f32 %v3552_v19, %v3540_v18 }
 0x1cf   :  { %v11059_v13 = vld [vmem:[#allocation5 + $0xe0c] sm:$0xf]  ;;  %v8673_v24 = vor.u32 %v10995_v5, %v8670_v12  ;;  %3758 = vmatpush.bf16.msrb.mxu1 %v8417_v23  ;;  %v10840_v5 = vld [vmem:[#allocation5 + $0x72c] sm:$0xf0]  ;;  %v7525_v12 = vor.u32 %v10712_v1, %v7524_v63 }
 0x1d0   :  { %v8926_v14 = vld [vmem:[#allocation5 + $0xe28] sm:$0xf0]  ;;  %3746 = vmatmul.bf16.vlgmr.msrb.gmra.mxu0 %v12079_v37  ;;  %v8037_v20 = vor.u32 %v10840_v5, %v8036_v4  ;;  %v10768_v22 = vld [vmem:[#allocation5 + $0x4ec] sm:$0xf0]  ;;  %v3566_v39 = vadd.f32 %v3565_v33, %v3553_v26  ;;  %v3567_v5 = vpop.f32.mrf.mxu2 }
 0x1d1   :  { %v8929_v28 = vor.u32 %v11059_v13, %v8926_v14  ;;  %3771 = vmatpush.bf16.msrb.mxu2 %v8673_v24  ;;  %3790 = vmatpush.bf16.msra.mxu0 %v7365_v29  ;;  %v7781_v13 = vor.u32 %v10776_v3, %v7780_v2  ;;  %v7236_v14 = vld [vmem:[#allocation5 + $0xd0] sm:$0xf]  ;;  %v7749_v29 = vor.u32 %v10768_v22, %v7748_v21 }
 0x1d2   :  { %3759 = vmatmul.bf16.vlgmr.msrb.gmra.mxu1 %v12083_v40  ;;  %v8004_v23 = vld [vmem:[#allocation5 + $0x6d0] sm:$0xf]  ;;  %v7237_v27 = vor.u32 %v10640_v16, %v7236_v14  ;;  %v3580_v14 = vpop.f32.mrf.mxu3 }
 0x1d3   :  { %3784 = vmatpush.bf16.msrb.mxu3 %v8929_v28  ;;  %3803 = vmatpush.bf16.msra.mxu1 %v7621_v30  ;;  %v10832_v24 = vld [vmem:[#allocation5 + $0x6ec] sm:$0xf0]  ;;  %v7493_v28 = vor.u32 %v10704_v6, %v7492_v17 }
 0x1d4   :  { %3772 = vmatmul.bf16.vlgmr.msrb.gmra.mxu2 %v12077_v34  ;;  %v7204_v30 = vld [vmem:[#allocation5 + $0x90] sm:$0xf]  ;;  %v8005_v47 = vor.u32 %v10832_v24, %v8004_v23 }
 0x1d5   :  { %3816 = vmatpush.bf16.msra.mxu2 %v7877_v31  ;;  %3791 = vmatpush.bf16.msra.mxu0 %v7333_v44  ;;  %v10632_v31 = vld [vmem:[#allocation5 + $0xac] sm:$0xf0] }
 0x1d6   :  { %3785 = vmatmul.bf16.vlgmr.msrb.gmra.mxu3 %v12081_v38  ;;  %v7460_v32 = vld [vmem:[#allocation5 + $0x290] sm:$0xf]  ;;  %v7205_v44 = vor.u32 %v10632_v31, %v7204_v30 }
 0x1d7   :  { %3829 = vmatpush.bf16.msra.mxu3 %v8133_v36  ;;  %3804 = vmatpush.bf16.msra.mxu1 %v7589_v45  ;;  %v10696_v35 = vld [vmem:[#allocation5 + $0x2ac] sm:$0xf0]  ;;  %v12125_v45 = vadd.f32 %v3578_v41, %v3566_v39 }
 0x1d8   :  { %v7716_v36 = vld [vmem:[#allocation5 + $0x490] sm:$0xf]  ;;  %v7461_v49 = vor.u32 %v10696_v35, %v7460_v32 }
 0x1d9   :  { %3817 = vmatpush.bf16.msra.mxu2 %v7845_v46  ;;  %3792 = vmatpush.bf16.msra.mxu0 %v7301_v58  ;;  %v10760_v7 = vld [vmem:[#allocation5 + $0x4ac] sm:$0xf0]  ;;  %v3541_v46 = vpop.f32.mrf.mxu0 }
 0x1da   :  { %v7972_v42 = vld [vmem:[#allocation5 + $0x690] sm:$0xf]  ;;  %v7717_v50 = vor.u32 %v10760_v7, %v7716_v36 }
 0x1db   :  { %3830 = vmatpush.bf16.msra.mxu3 %v8101_v52  ;;  %3805 = vmatpush.bf16.msra.mxu1 %v7557_v59  ;;  %v10824_v43 = vld [vmem:[#allocation5 + $0x6ac] sm:$0xf0] }
 0x1dc   :  { %v7172_v51 = vld [vmem:[#allocation5 + $0x50] sm:$0xf]  ;;  %v7973_v55 = vor.u32 %v10824_v43, %v7972_v42 }
 0x1dd   :  { %3818 = vmatpush.bf16.msra.mxu2 %v7813_v60  ;;  %3793 = vmatpush.bf16.msra.mxu0 %v7269_v10  ;;  %v10624_v52 = vld [vmem:[#allocation5 + $0x6c] sm:$0xf0] }
 0x1de   :  { %v7428_v53 = vld [vmem:[#allocation5 + $0x250] sm:$0xf]  ;;  %v7173_v61 = vor.u32 %v10624_v52, %v7172_v51 }
 0x1df   :  { %3831 = vmatpush.bf16.msra.mxu3 %v8069_v0  ;;  %3806 = vmatpush.bf16.msra.mxu1 %v7525_v12  ;;  %v10688_v56 = vld [vmem:[#allocation5 + $0x26c] sm:$0xf0] }
 0x1e0   :  { %v7684_v57 = vld [vmem:[#allocation5 + $0x450] sm:$0xf]  ;;  %v7429_v0 = vor.u32 %v10688_v56, %v7428_v53 }
 0x1e1   :  { %3819 = vmatpush.bf16.msra.mxu2 %v7781_v13  ;;  %3794 = vmatpush.bf16.msra.mxu0 %v7237_v27  ;;  %v10752_v58 = vld [vmem:[#allocation5 + $0x46c] sm:$0xf0] }
 0x1e2   :  { %v7940_v59 = vld [vmem:[#allocation5 + $0x650] sm:$0xf]  ;;  %v7685_v1 = vor.u32 %v10752_v58, %v7684_v57 }
 0x1e3   :  { %3832 = vmatpush.bf16.msra.mxu3 %v8037_v20  ;;  %3807 = vmatpush.bf16.msra.mxu1 %v7493_v28  ;;  %v10816_v60 = vld [vmem:[#allocation5 + $0x66c] sm:$0xf0] }
 0x1e4   :  { %v7140_v62 = vld [vmem:[#allocation5 + $0x10] sm:$0xf]  ;;  %v7941_v10 = vor.u32 %v10816_v60, %v7940_v59 }
 0x1e5   :  { %3820 = vmatpush.bf16.msra.mxu2 %v7749_v29  ;;  %3795 = vmatpush.bf16.msra.mxu0 %v7205_v44  ;;  %v10616_v63 = vld [vmem:[#allocation5 + $0x2c] sm:$0xf0] }
 0x1e6   :  { %v7396_v2 = vld [vmem:[#allocation5 + $0x210] sm:$0xf]  ;;  %v7141_v19 = vor.u32 %v10616_v63, %v7140_v62  ;;  %v12131_v63 = vld [vmem:[#allocation7] sm:$0xff] }
 0x1e7   :  { %3833 = vmatpush.bf16.msra.mxu3 %v8005_v47  ;;  %3808 = vmatpush.bf16.msra.mxu1 %v7461_v49  ;;  %v10680_v3 = vld [vmem:[#allocation5 + $0x22c] sm:$0xf0] }
 0x1e8   :  { %v7652_v4 = vld [vmem:[#allocation5 + $0x410] sm:$0xf]  ;;  %v7397_v22 = vor.u32 %v10680_v3, %v7396_v2 }
 0x1e9   :  { %3821 = vmatpush.bf16.msra.mxu2 %v7717_v50  ;;  %v10744_v11 = vld [vmem:[#allocation5 + $0x42c] sm:$0xf0]  ;;  %3796 = vmatpush.bf16.msra.mxu0 %v7173_v61 }
 0x1ea   :  { %v7908_v12 = vld [vmem:[#allocation5 + $0x610] sm:$0xf]  ;;  %v7653_v23 = vor.u32 %v10744_v11, %v7652_v4 }
 0x1eb   :  { %3834 = vmatpush.bf16.msra.mxu3 %v7973_v55  ;;  %v10808_v13 = vld [vmem:[#allocation5 + $0x62c] sm:$0xf0]  ;;  %3809 = vmatpush.bf16.msra.mxu1 %v7429_v0  ;;  %v800_v0 = vperm.slane %v12131_v63, 2 }
 0x1ec   :  { %v8388_v16 = vld [vmem:[#allocation5 + $0x9d0] sm:$0xf]  ;;  %v7909_v27 = vor.u32 %v10808_v13, %v7908_v12  ;;  %v3591_v12 = vpop.f32.mrf.mxu0 }
 0x1ed   :  { %v10928_v17 = vld [vmem:[#allocation5 + $0x9ec] sm:$0xf0]  ;;  %3822 = vmatpush.bf16.msra.mxu2 %v7685_v1  ;;  %3797 = vmatpush.bf16.msra.mxu0 %v7141_v19  ;;  %v3592_v19 = vadd.f32 %v3591_v12, %v800_v0 }
 0x1ee   :  { %v8644_v18 = vld [vmem:[#allocation5 + $0xbd0] sm:$0xf]  ;;  %v8389_v28 = vor.u32 %v10928_v17, %v8388_v16 }
 0x1ef   :  { %v10992_v20 = vld [vmem:[#allocation5 + $0xbec] sm:$0xf0]  ;;  %3835 = vmatpush.bf16.msra.mxu3 %v7941_v10  ;;  %3810 = vmatpush.bf16.msra.mxu1 %v7397_v22 }
 0x1f0   :  { %v8900_v6 = vld [vmem:[#allocation5 + $0xdd0] sm:$0xf]  ;;  %v8645_v29 = vor.u32 %v10992_v20, %v8644_v18  ;;  %3798 = vmatmul.bf16.vlgmr.msra.gmra.mxu0 %v12067_v9  ;;  %v3604_v20 = vpop.f32.mrf.mxu1 }
 0x1f1   :  { %v11056_v21 = vld [vmem:[#allocation5 + $0xdec] sm:$0xf0]  ;;  %3823 = vmatpush.bf16.msra.mxu2 %v7653_v23  ;;  %3842 = vmatpush.bf16.msrb.mxu0 %v8389_v28 }
 0x1f2   :  { %v9156_v24 = vld [vmem:[#allocation5 + $0xfd0] sm:$0xf]  ;;  %v8901_v30 = vor.u32 %v11056_v21, %v8900_v6  ;;  %3811 = vmatmul.bf16.vlgmr.msra.gmra.mxu1 %v12074_v25 }
 0x1f3   :  { %v11120_v26 = vld [vmem:[#allocation5 + $0xfec] sm:$0xf0]  ;;  %3836 = vmatpush.bf16.msra.mxu3 %v7909_v27  ;;  %3855 = vmatpush.bf16.msrb.mxu1 %v8645_v29  ;;  %v3605_v27 = vadd.f32 %v3604_v20, %v3592_v19  ;;  %v10668_v19 = vld [vmem:[#allocation5 + $0x1d4] sm:$0xf] }
 0x1f4   :  { %v8356_v31 = vld [vmem:[#allocation5 + $0x990] sm:$0xf]  ;;  %v9157_v47 = vor.u32 %v11120_v26, %v9156_v24  ;;  %3824 = vmatmul.bf16.vlgmr.msra.gmra.mxu2 %v12065_v8  ;;  %v7366_v20 = vld [vmem:[#allocation5 + $0x1f0] sm:$0xf0] }
 0x1f5   :  { %v10920_v32 = vld [vmem:[#allocation5 + $0x9ac] sm:$0xf0]  ;;  %3868 = vmatpush.bf16.msrb.mxu2 %v8901_v30 }
 0x1f6   :  { %v8612_v33 = vld [vmem:[#allocation5 + $0xb90] sm:$0xf]  ;;  %v8357_v42 = vor.u32 %v10920_v32, %v8356_v31  ;;  %3837 = vmatmul.bf16.vlgmr.msra.gmra.mxu3 %v12069_v15 }
 0x1f7   :  { %v10984_v35 = vld [vmem:[#allocation5 + $0xbac] sm:$0xf0]  ;;  %3881 = vmatpush.bf16.msrb.mxu3 %v9157_v47  ;;  %v3617_v47 = vpop.f32.mrf.mxu2 }
 0x1f8   :  { %v8868_v36 = vld [vmem:[#allocation5 + $0xd90] sm:$0xf]  ;;  %v8613_v43 = vor.u32 %v10984_v35, %v8612_v33  ;;  %3843 = vmatpush.bf16.msrb.mxu0 %v8357_v42  ;;  %v3630_v42 = vpop.f32.mrf.mxu3 }
 0x1f9   :  { %v11048_v7 = vld [vmem:[#allocation5 + $0xdac] sm:$0xf0] }
 0x1fa   :  { %v9124_v39 = vld [vmem:[#allocation5 + $0xf90] sm:$0xf]  ;;  %v8869_v44 = vor.u32 %v11048_v7, %v8868_v36  ;;  %3856 = vmatpush.bf16.msrb.mxu1 %v8613_v43 }
 0x1fb   :  { %v11112_v41 = vld [vmem:[#allocation5 + $0xfac] sm:$0xf0] }
 0x1fc   :  { %v8324_v46 = vld [vmem:[#allocation5 + $0x950] sm:$0xf]  ;;  %v9125_v51 = vor.u32 %v11112_v41, %v9124_v39  ;;  %3869 = vmatpush.bf16.msrb.mxu2 %v8869_v44  ;;  %v3618_v41 = vadd.f32 %v3617_v47, %v3605_v27  ;;  %v10660_v47 = vld [vmem:[#allocation5 + $0x194] sm:$0xf] }
 0x1fd   :  { %v10912_v49 = vld [vmem:[#allocation5 + $0x96c] sm:$0xf0] }
 0x1fe   :  { %v8580_v50 = vld [vmem:[#allocation5 + $0xb50] sm:$0xf]  ;;  %v8325_v57 = vor.u32 %v10912_v49, %v8324_v46  ;;  %3882 = vmatpush.bf16.msrb.mxu3 %v9125_v51  ;;  %v12134_v49 = vadd.f32 %v3630_v42, %v3618_v41  ;;  %v10788_v41 = vld [vmem:[#allocation5 + $0x594] sm:$0xf] }
 0x1ff   :  { %v10976_v52 = vld [vmem:[#allocation5 + $0xb6c] sm:$0xf0]  ;;  %v3619_v12 = vpop.f32.mrf.mxu2  ;;  %v7846_v42 = vld [vmem:[#allocation5 + $0x5b0] sm:$0xf0] }
 0x200   :  { %v8836_v53 = vld [vmem:[#allocation5 + $0xd50] sm:$0xf]  ;;  %v8581_v59 = vor.u32 %v10976_v52, %v8580_v50  ;;  %3844 = vmatpush.bf16.msrb.mxu0 %v8325_v57  ;;  %v3593_v50 = vpop.f32.mrf.mxu0  ;;  %v10836_v12 = vld [vmem:[#allocation5 + $0x714] sm:$0xf] }
 0x201   :  { %v11040_v54 = vld [vmem:[#allocation5 + $0xd6c] sm:$0xf0] }
 0x202   :  { %v9092_v55 = vld [vmem:[#allocation5 + $0xf50] sm:$0xf]  ;;  %v8837_v60 = vor.u32 %v11040_v54, %v8836_v53  ;;  %3857 = vmatpush.bf16.msrb.mxu1 %v8581_v59 }
 0x203   :  { %v11104_v56 = vld [vmem:[#allocation5 + $0xf6c] sm:$0xf0] }
 0x204   :  { %v8292_v58 = vld [vmem:[#allocation5 + $0x910] sm:$0xf]  ;;  %v9093_v1 = vor.u32 %v11104_v56, %v9092_v55  ;;  %3870 = vmatpush.bf16.msrb.mxu2 %v8837_v60  ;;  %v3606_v56 = vpop.f32.mrf.mxu1 }
 0x205   :  { %v10904_v61 = vld [vmem:[#allocation5 + $0x92c] sm:$0xf0]  ;;  %v7558_v56 = vld [vmem:[#allocation5 + $0x370] sm:$0xf0] }
 0x206   :  { %v8548_v62 = vld [vmem:[#allocation5 + $0xb10] sm:$0xf]  ;;  %v8293_v11 = vor.u32 %v10904_v61, %v8292_v58  ;;  %3883 = vmatpush.bf16.msrb.mxu3 %v9093_v1 }
 0x207   :  { %v10968_v2 = vld [vmem:[#allocation5 + $0xb2c] sm:$0xf0] }
 0x208   :  { %v8804_v3 = vld [vmem:[#allocation5 + $0xd10] sm:$0xf]  ;;  %v8549_v13 = vor.u32 %v10968_v2, %v8548_v62  ;;  %3845 = vmatpush.bf16.msrb.mxu0 %v8293_v11 }
 0x209   :  { %v11032_v4 = vld [vmem:[#allocation5 + $0xd2c] sm:$0xf0] }
 0x20a   :  { %v9060_v5 = vld [vmem:[#allocation5 + $0xf10] sm:$0xf]  ;;  %v8805_v14 = vor.u32 %v11032_v4, %v8804_v3  ;;  %3858 = vmatpush.bf16.msrb.mxu1 %v8549_v13 }
 0x20b   :  { %v11096_v10 = vld [vmem:[#allocation5 + $0xf2c] sm:$0xf0] }
 0x20c   :  { %v8260_v16 = vld [vmem:[#allocation5 + $0x8d0] sm:$0xf]  ;;  %v9061_v6 = vor.u32 %v11096_v10, %v9060_v5  ;;  %3871 = vmatpush.bf16.msrb.mxu2 %v8805_v14 }
 0x20d   :  { %v10896_v17 = vld [vmem:[#allocation5 + $0x8ec] sm:$0xf0] }
 0x20e   :  { %v8516_v18 = vld [vmem:[#allocation5 + $0xad0] sm:$0xf]  ;;  %v8261_v28 = vor.u32 %v10896_v17, %v8260_v16  ;;  %3884 = vmatpush.bf16.msrb.mxu3 %v9061_v6  ;;  %v10732_v6 = vld [vmem:[#allocation5 + $0x3d4] sm:$0xf] }
 0x20f   :  { %v10960_v21 = vld [vmem:[#allocation5 + $0xaec] sm:$0xf0] }
 0x210   :  { %v8772_v22 = vld [vmem:[#allocation5 + $0xcd0] sm:$0xf]  ;;  %v8517_v29 = vor.u32 %v10960_v21, %v8516_v18  ;;  %3846 = vmatpush.bf16.msrb.mxu0 %v8261_v28  ;;  %v3632_v18 = vpop.f32.mrf.mxu3  ;;  %v10860_v28 = vld [vmem:[#allocation5 + $0x7d4] sm:$0xf] }
 0x211   :  { %v11024_v23 = vld [vmem:[#allocation5 + $0xcec] sm:$0xf0] }
 0x212   :  { %v9028_v24 = vld [vmem:[#allocation5 + $0xed0] sm:$0xf]  ;;  %v8773_v30 = vor.u32 %v11024_v23, %v8772_v22  ;;  %3859 = vmatpush.bf16.msrb.mxu1 %v8517_v29  ;;  %v7622_v22 = vld [vmem:[#allocation5 + $0x3f0] sm:$0xf0] }
 0x213   :  { %v11088_v26 = vld [vmem:[#allocation5 + $0xeec] sm:$0xf0]  ;;  %v10796_v23 = vld [vmem:[#allocation5 + $0x5d4] sm:$0xf] }
 0x214   :  { %v8228_v31 = vld [vmem:[#allocation5 + $0x890] sm:$0xf]  ;;  %v9029_v35 = vor.u32 %v11088_v26, %v9028_v24  ;;  %3872 = vmatpush.bf16.msrb.mxu2 %v8773_v30  ;;  %v7878_v24 = vld [vmem:[#allocation5 + $0x5f0] sm:$0xf0] }
 0x215   :  { %v10888_v32 = vld [vmem:[#allocation5 + $0x8ac] sm:$0xf0]  ;;  %v8134_v29 = vld [vmem:[#allocation5 + $0x7f0] sm:$0xf0] }
 0x216   :  { %v8484_v33 = vld [vmem:[#allocation5 + $0xa90] sm:$0xf]  ;;  %v8229_v46 = vor.u32 %v10888_v32, %v8228_v31  ;;  %3885 = vmatpush.bf16.msrb.mxu3 %v9029_v35  ;;  %v7369_v31 = vor.u32 %v10668_v19, %v7366_v20  ;;  %v7625_v32 = vor.u32 %v10732_v6, %v7622_v22  ;;  %v7334_v35 = vld [vmem:[#allocation5 + $0x1b0] sm:$0xf0]  ;;  %v3656_v22 = vpop.f32.mrf.mxu1 }
 0x217   :  { %v10952_v36 = vld [vmem:[#allocation5 + $0xaac] sm:$0xf0]  ;;  %v10636_v19 = vld [vmem:[#allocation5 + $0xd4] sm:$0xf] }
 0x218   :  { %v8740_v7 = vld [vmem:[#allocation5 + $0xc90] sm:$0xf]  ;;  %v8485_v51 = vor.u32 %v10952_v36, %v8484_v33  ;;  %3847 = vmatpush.bf16.msrb.mxu0 %v8229_v46  ;;  %v7881_v33 = vor.u32 %v10796_v23, %v7878_v24  ;;  %v10724_v36 = vld [vmem:[#allocation5 + $0x394] sm:$0xf]  ;;  %v7337_v46 = vor.u32 %v10660_v47, %v7334_v35 }
 0x219   :  { %v11016_v39 = vld [vmem:[#allocation5 + $0xcac] sm:$0xf0]  ;;  %v7238_v20 = vld [vmem:[#allocation5 + $0xf0] sm:$0xf0] }
 0x21a   :  { %v8996_v43 = vld [vmem:[#allocation5 + $0xe90] sm:$0xf]  ;;  %v8741_v52 = vor.u32 %v11016_v39, %v8740_v7  ;;  %3860 = vmatpush.bf16.msrb.mxu1 %v8485_v51  ;;  %v8137_v7 = vor.u32 %v10860_v28, %v8134_v29  ;;  %v7590_v39 = vld [vmem:[#allocation5 + $0x3b0] sm:$0xf0]  ;;  %v7849_v51 = vor.u32 %v10788_v41, %v7846_v42 }
 0x21b   :  { %v11080_v44 = vld [vmem:[#allocation5 + $0xeac] sm:$0xf0]  ;;  %v7593_v50 = vor.u32 %v10724_v36, %v7590_v39  ;;  %v10700_v6 = vld [vmem:[#allocation5 + $0x2d4] sm:$0xf] }
 0x21c   :  { %v8196_v53 = vld [vmem:[#allocation5 + $0x850] sm:$0xf]  ;;  %v8997_v57 = vor.u32 %v11080_v44, %v8996_v43  ;;  %3873 = vmatpush.bf16.msrb.mxu2 %v8741_v52  ;;  %v10852_v43 = vld [vmem:[#allocation5 + $0x794] sm:$0xf] }
 0x21d   :  { %v10880_v54 = vld [vmem:[#allocation5 + $0x86c] sm:$0xf0]  ;;  %v8102_v44 = vld [vmem:[#allocation5 + $0x7b0] sm:$0xf0] }
 0x21e   :  { %v8452_v55 = vld [vmem:[#allocation5 + $0xa50] sm:$0xf]  ;;  %v8197_v0 = vor.u32 %v10880_v54, %v8196_v53  ;;  %3886 = vmatpush.bf16.msrb.mxu3 %v8997_v57  ;;  %v10652_v52 = vld [vmem:[#allocation5 + $0x154] sm:$0xf] }
 0x21f   :  { %v10944_v58 = vld [vmem:[#allocation5 + $0xa6c] sm:$0xf0]  ;;  %v7302_v53 = vld [vmem:[#allocation5 + $0x170] sm:$0xf0] }
 0x220   :  { %v8708_v59 = vld [vmem:[#allocation5 + $0xc50] sm:$0xf]  ;;  %v8453_v3 = vor.u32 %v10944_v58, %v8452_v55  ;;  %3848 = vmatpush.bf16.msrb.mxu0 %v8197_v0  ;;  %v10716_v54 = vld [vmem:[#allocation5 + $0x354] sm:$0xf]  ;;  %v8105_v55 = vor.u32 %v10852_v43, %v8102_v44  ;;  %v3682_v44 = vpop.f32.mrf.mxu3 }
 0x221   :  { %v11008_v60 = vld [vmem:[#allocation5 + $0xc6c] sm:$0xf0]  ;;  %v10780_v57 = vld [vmem:[#allocation5 + $0x554] sm:$0xf] }
 0x222   :  { %v8964_v61 = vld [vmem:[#allocation5 + $0xe50] sm:$0xf]  ;;  %v8709_v4 = vor.u32 %v11008_v60, %v8708_v59  ;;  %3861 = vmatpush.bf16.msrb.mxu1 %v8453_v3  ;;  %v7814_v58 = vld [vmem:[#allocation5 + $0x570] sm:$0xf0] }
 0x223   :  { %v11072_v62 = vld [vmem:[#allocation5 + $0xe6c] sm:$0xf0]  ;;  %v10844_v59 = vld [vmem:[#allocation5 + $0x754] sm:$0xf]  ;;  %v7817_v0 = vor.u32 %v10780_v57, %v7814_v58 }
 0x224   :  { %v8164_v1 = vld [vmem:[#allocation5 + $0x810] sm:$0xf]  ;;  %v8965_v13 = vor.u32 %v11072_v62, %v8964_v61  ;;  %3874 = vmatpush.bf16.msrb.mxu2 %v8709_v4  ;;  %v8070_v60 = vld [vmem:[#allocation5 + $0x770] sm:$0xf0]  ;;  %v7305_v61 = vor.u32 %v10652_v52, %v7302_v53  ;;  %v7561_v62 = vor.u32 %v10716_v54, %v7558_v56 }
 0x225   :  { %v10872_v2 = vld [vmem:[#allocation5 + $0x82c] sm:$0xf0]  ;;  %v10708_v3 = vld [vmem:[#allocation5 + $0x314] sm:$0xf]  ;;  %v8073_v4 = vor.u32 %v10844_v59, %v8070_v60  ;;  %v3658_v59 = vpop.f32.mrf.mxu1 }
 0x226   :  { %v8420_v5 = vld [vmem:[#allocation5 + $0xa10] sm:$0xf]  ;;  %v8165_v21 = vor.u32 %v10872_v2, %v8164_v1  ;;  %3887 = vmatpush.bf16.msrb.mxu3 %v8965_v13  ;;  %v10644_v1 = vld [vmem:[#allocation5 + $0x114] sm:$0xf] }
 0x227   :  { %v10936_v10 = vld [vmem:[#allocation5 + $0xa2c] sm:$0xf0]  ;;  %v7270_v2 = vld [vmem:[#allocation5 + $0x130] sm:$0xf0] }
 0x228   :  { %v8676_v11 = vld [vmem:[#allocation5 + $0xc10] sm:$0xf]  ;;  %v8421_v26 = vor.u32 %v10936_v10, %v8420_v5  ;;  %3849 = vmatpush.bf16.msrb.mxu0 %v8165_v21  ;;  %v7526_v5 = vld [vmem:[#allocation5 + $0x330] sm:$0xf0] }
 0x229   :  { %v11000_v14 = vld [vmem:[#allocation5 + $0xc2c] sm:$0xf0]  ;;  %v10772_v10 = vld [vmem:[#allocation5 + $0x514] sm:$0xf] }
 0x22a   :  { %v8932_v16 = vld [vmem:[#allocation5 + $0xe10] sm:$0xf]  ;;  %v8677_v27 = vor.u32 %v11000_v14, %v8676_v11  ;;  %3862 = vmatpush.bf16.msrb.mxu1 %v8421_v26  ;;  %v7782_v11 = vld [vmem:[#allocation5 + $0x530] sm:$0xf0]  ;;  %v7273_v14 = vor.u32 %v10644_v1, %v7270_v2 }
 0x22b   :  { %v11064_v17 = vld [vmem:[#allocation5 + $0xe2c] sm:$0xf0]  ;;  %3850 = vmatmul.bf16.vlgmr.msrb.gmra.mxu0 %v12079_v37  ;;  %v8038_v13 = vld [vmem:[#allocation5 + $0x730] sm:$0xf0]  ;;  %v7785_v18 = vor.u32 %v10772_v10, %v7782_v11 }
 0x22c   :  { %v8933_v30 = vor.u32 %v11064_v17, %v8932_v16  ;;  %3875 = vmatpush.bf16.msrb.mxu2 %v8677_v27  ;;  %3894 = vmatpush.bf16.msra.mxu0 %v7369_v31  ;;  %v3643_v16 = vpop.f32.mrf.mxu0  ;;  %v7529_v17 = vor.u32 %v10708_v3, %v7526_v5  ;;  %v8041_v23 = vor.u32 %v10836_v12, %v8038_v13  ;;  %v7494_v24 = vld [vmem:[#allocation5 + $0x2f0] sm:$0xf0] }
 0x22d   :  { %3863 = vmatmul.bf16.vlgmr.msrb.gmra.mxu1 %v12083_v40  ;;  %v3644_v21 = vadd.f32 %v3643_v16, %v12134_v49  ;;  %v10764_v26 = vld [vmem:[#allocation5 + $0x4d4] sm:$0xf]  ;;  %v7241_v31 = vor.u32 %v10636_v19, %v7238_v20 }
 0x22e   :  { %3888 = vmatpush.bf16.msrb.mxu3 %v8933_v30  ;;  %3907 = vmatpush.bf16.msra.mxu1 %v7625_v32  ;;  %v7750_v27 = vld [vmem:[#allocation5 + $0x4f0] sm:$0xf0]  ;;  %v7497_v32 = vor.u32 %v10700_v6, %v7494_v24  ;;  %v3684_v6 = vpop.f32.mrf.mxu3 }
 0x22f   :  { %3876 = vmatmul.bf16.vlgmr.msrb.gmra.mxu2 %v12077_v34  ;;  %v10828_v28 = vld [vmem:[#allocation5 + $0x6d4] sm:$0xf]  ;;  %v3657_v30 = vadd.f32 %v3656_v22, %v3644_v21 }
 0x230   :  { %3920 = vmatpush.bf16.msra.mxu2 %v7881_v33  ;;  %3895 = vmatpush.bf16.msra.mxu0 %v7337_v46  ;;  %v8006_v29 = vld [vmem:[#allocation5 + $0x6f0] sm:$0xf0]  ;;  %v7753_v33 = vor.u32 %v10764_v26, %v7750_v27 }
 0x231   :  { %3889 = vmatmul.bf16.vlgmr.msrb.gmra.mxu3 %v12081_v38  ;;  %v10628_v47 = vld [vmem:[#allocation5 + $0x94] sm:$0xf]  ;;  %v8009_v49 = vor.u32 %v10828_v28, %v8006_v29 }
 0x232   :  { %3933 = vmatpush.bf16.msra.mxu3 %v8137_v7  ;;  %3908 = vmatpush.bf16.msra.mxu1 %v7593_v50  ;;  %v7206_v35 = vld [vmem:[#allocation5 + $0xb0] sm:$0xf0]  ;;  %v3669_v7 = vpop.f32.mrf.mxu2 }
 0x233   :  { %v10692_v36 = vld [vmem:[#allocation5 + $0x294] sm:$0xf]  ;;  %v3670_v43 = vadd.f32 %v3669_v7, %v3657_v30 }
 0x234   :  { %3921 = vmatpush.bf16.msra.mxu2 %v7849_v51  ;;  %3896 = vmatpush.bf16.msra.mxu0 %v7305_v61  ;;  %v7462_v39 = vld [vmem:[#allocation5 + $0x2b0] sm:$0xf0]  ;;  %v7209_v51 = vor.u32 %v10628_v47, %v7206_v35  ;;  %v3645_v53 = vpop.f32.mrf.mxu0 }
 0x235   :  { %v10756_v41 = vld [vmem:[#allocation5 + $0x494] sm:$0xf]  ;;  %v12141_v52 = vadd.f32 %v3682_v44, %v3670_v43  ;;  %v7465_v54 = vor.u32 %v10692_v36, %v7462_v39 }
 0x236   :  { %3934 = vmatpush.bf16.msra.mxu3 %v8105_v55  ;;  %3909 = vmatpush.bf16.msra.mxu1 %v7561_v62  ;;  %v7718_v42 = vld [vmem:[#allocation5 + $0x4b0] sm:$0xf0] }
 0x237   :  { %v10820_v46 = vld [vmem:[#allocation5 + $0x694] sm:$0xf]  ;;  %v7721_v55 = vor.u32 %v10756_v41, %v7718_v42 }
 0x238   :  { %3922 = vmatpush.bf16.msra.mxu2 %v7817_v0  ;;  %3897 = vmatpush.bf16.msra.mxu0 %v7273_v14  ;;  %v7974_v50 = vld [vmem:[#allocation5 + $0x6b0] sm:$0xf0] }
 0x239   :  { %v10620_v56 = vld [vmem:[#allocation5 + $0x54] sm:$0xf]  ;;  %v7977_v60 = vor.u32 %v10820_v46, %v7974_v50 }
 0x23a   :  { %3935 = vmatpush.bf16.msra.mxu3 %v8073_v4  ;;  %3910 = vmatpush.bf16.msra.mxu1 %v7529_v17  ;;  %v7174_v57 = vld [vmem:[#allocation5 + $0x70] sm:$0xf0]  ;;  %v3671_v16 = vpop.f32.mrf.mxu2 }
 0x23b   :  { %v10684_v58 = vld [vmem:[#allocation5 + $0x254] sm:$0xf]  ;;  %v7177_v3 = vor.u32 %v10620_v56, %v7174_v57 }
 0x23c   :  { %3923 = vmatpush.bf16.msra.mxu2 %v7785_v18  ;;  %3898 = vmatpush.bf16.msra.mxu0 %v7241_v31  ;;  %v7430_v61 = vld [vmem:[#allocation5 + $0x270] sm:$0xf0] }
 0x23d   :  { %v10748_v62 = vld [vmem:[#allocation5 + $0x454] sm:$0xf]  ;;  %v7433_v10 = vor.u32 %v10684_v58, %v7430_v61 }
 0x23e   :  { %3936 = vmatpush.bf16.msra.mxu3 %v8041_v23  ;;  %3911 = vmatpush.bf16.msra.mxu1 %v7497_v32  ;;  %v7686_v0 = vld [vmem:[#allocation5 + $0x470] sm:$0xf0] }
 0x23f   :  { %v10812_v1 = vld [vmem:[#allocation5 + $0x654] sm:$0xf]  ;;  %v7689_v11 = vor.u32 %v10748_v62, %v7686_v0 }
 0x240   :  { %3924 = vmatpush.bf16.msra.mxu2 %v7753_v33  ;;  %v7942_v2 = vld [vmem:[#allocation5 + $0x670] sm:$0xf0]  ;;  %3899 = vmatpush.bf16.msra.mxu0 %v7209_v51 }
 0x241   :  { %v10612_v4 = vld [vmem:[#allocation5 + $0x14] sm:$0xf]  ;;  %v7945_v17 = vor.u32 %v10812_v1, %v7942_v2 }
 0x242   :  { %3937 = vmatpush.bf16.msra.mxu3 %v8009_v49  ;;  %v7142_v5 = vld [vmem:[#allocation5 + $0x30] sm:$0xf0]  ;;  %3912 = vmatpush.bf16.msra.mxu1 %v7465_v54 }
 0x243   :  { %v10676_v12 = vld [vmem:[#allocation5 + $0x214] sm:$0xf]  ;;  %v7145_v24 = vor.u32 %v10612_v4, %v7142_v5 }
 0x244   :  { %3925 = vmatpush.bf16.msra.mxu2 %v7721_v55  ;;  %v7398_v13 = vld [vmem:[#allocation5 + $0x230] sm:$0xf0]  ;;  %3900 = vmatpush.bf16.msra.mxu0 %v7177_v3 }
 0x245   :  { %v10740_v14 = vld [vmem:[#allocation5 + $0x414] sm:$0xf]  ;;  %v7401_v29 = vor.u32 %v10676_v12, %v7398_v13 }
 0x246   :  { %3938 = vmatpush.bf16.msra.mxu3 %v7977_v60  ;;  %v7654_v18 = vld [vmem:[#allocation5 + $0x430] sm:$0xf0]  ;;  %3913 = vmatpush.bf16.msra.mxu1 %v7433_v10 }
 0x247   :  { %v10804_v19 = vld [vmem:[#allocation5 + $0x614] sm:$0xf]  ;;  %v7657_v30 = vor.u32 %v10740_v14, %v7654_v18 }
 0x248   :  { %v7910_v20 = vld [vmem:[#allocation5 + $0x630] sm:$0xf0]  ;;  %3926 = vmatpush.bf16.msra.mxu2 %v7689_v11  ;;  %3901 = vmatpush.bf16.msra.mxu0 %v7145_v24  ;;  %v801_v11 = vperm.slane %v12131_v63, 3 }
 0x249   :  { %v10924_v21 = vld [vmem:[#allocation5 + $0x9d4] sm:$0xf]  ;;  %v7913_v33 = vor.u32 %v10804_v19, %v7910_v20  ;;  %v3695_v20 = vpop.f32.mrf.mxu0 }
 0x24a   :  { %v8390_v22 = vld [vmem:[#allocation5 + $0x9f0] sm:$0xf0]  ;;  %3939 = vmatpush.bf16.msra.mxu3 %v7945_v17  ;;  %3914 = vmatpush.bf16.msra.mxu1 %v7401_v29 }
 0x24b   :  { %v10988_v23 = vld [vmem:[#allocation5 + $0xbd4] sm:$0xf]  ;;  %v8393_v47 = vor.u32 %v10924_v21, %v8390_v22  ;;  %3902 = vmatmul.bf16.vlgmr.msra.gmra.mxu0 %v12067_v9 }
 0x24c   :  { %v8646_v26 = vld [vmem:[#allocation5 + $0xbf0] sm:$0xf0]  ;;  %3927 = vmatpush.bf16.msra.mxu2 %v7657_v30 }
 0x24d   :  { %v11052_v27 = vld [vmem:[#allocation5 + $0xdd4] sm:$0xf]  ;;  %v8649_v35 = vor.u32 %v10988_v23, %v8646_v26  ;;  %3946 = vmatpush.bf16.msrb.mxu0 %v8393_v47  ;;  %3915 = vmatmul.bf16.vlgmr.msra.gmra.mxu1 %v12074_v25  ;;  %v3696_v26 = vadd.f32 %v3695_v20, %v801_v11 }
 0x24e   :  { %v8902_v28 = vld [vmem:[#allocation5 + $0xdf0] sm:$0xf0]  ;;  %3940 = vmatpush.bf16.msra.mxu3 %v7913_v33 }
 0x24f   :  { %v11116_v31 = vld [vmem:[#allocation5 + $0xfd4] sm:$0xf]  ;;  %v8905_v36 = vor.u32 %v11052_v27, %v8902_v28  ;;  %3959 = vmatpush.bf16.msrb.mxu1 %v8649_v35  ;;  %3928 = vmatmul.bf16.vlgmr.msra.gmra.mxu2 %v12065_v8  ;;  %v3708_v27 = vpop.f32.mrf.mxu1 }
 0x250   :  { %v9158_v32 = vld [vmem:[#allocation5 + $0xff0] sm:$0xf0]  ;;  %v3709_v33 = vadd.f32 %v3708_v27, %v3696_v26  ;;  %v7372_v26 = vld [vmem:[#allocation5 + $0x1d8] sm:$0xf] }
 0x251   :  { %v10916_v7 = vld [vmem:[#allocation5 + $0x994] sm:$0xf]  ;;  %v9161_v41 = vor.u32 %v11116_v31, %v9158_v32  ;;  %3972 = vmatpush.bf16.msrb.mxu2 %v8905_v36  ;;  %3941 = vmatmul.bf16.vlgmr.msra.gmra.mxu3 %v12069_v15  ;;  %v10673_v27 = vld [vmem:[#allocation5 + $0x1f4] sm:$0xf0] }
 0x252   :  { %v8358_v49 = vld [vmem:[#allocation5 + $0x9b0] sm:$0xf0] }
 0x253   :  { %v10980_v39 = vld [vmem:[#allocation5 + $0xb94] sm:$0xf]  ;;  %v8361_v51 = vor.u32 %v10916_v7, %v8358_v49  ;;  %3985 = vmatpush.bf16.msrb.mxu3 %v9161_v41  ;;  %v3721_v41 = vpop.f32.mrf.mxu2 }
 0x254   :  { %v8614_v42 = vld [vmem:[#allocation5 + $0xbb0] sm:$0xf0] }
 0x255   :  { %v11044_v43 = vld [vmem:[#allocation5 + $0xd94] sm:$0xf]  ;;  %v8617_v53 = vor.u32 %v10980_v39, %v8614_v42  ;;  %3947 = vmatpush.bf16.msrb.mxu0 %v8361_v51  ;;  %v3734_v51 = vpop.f32.mrf.mxu3 }
 0x256   :  { %v8870_v44 = vld [vmem:[#allocation5 + $0xdb0] sm:$0xf0] }
 0x257   :  { %v11108_v46 = vld [vmem:[#allocation5 + $0xf94] sm:$0xf]  ;;  %v8873_v54 = vor.u32 %v11044_v43, %v8870_v44  ;;  %3960 = vmatpush.bf16.msrb.mxu1 %v8617_v53 }
 0x258   :  { %v9126_v50 = vld [vmem:[#allocation5 + $0xfb0] sm:$0xf0] }
 0x259   :  { %v10908_v55 = vld [vmem:[#allocation5 + $0x954] sm:$0xf]  ;;  %v9129_v58 = vor.u32 %v11108_v46, %v9126_v50  ;;  %3973 = vmatpush.bf16.msrb.mxu2 %v8873_v54  ;;  %v3722_v50 = vadd.f32 %v3721_v41, %v3709_v33  ;;  %v7340_v41 = vld [vmem:[#allocation5 + $0x198] sm:$0xf] }
 0x25a   :  { %v8326_v56 = vld [vmem:[#allocation5 + $0x970] sm:$0xf0] }
 0x25b   :  { %v10972_v57 = vld [vmem:[#allocation5 + $0xb54] sm:$0xf]  ;;  %v8329_v1 = vor.u32 %v10908_v55, %v8326_v56  ;;  %3986 = vmatpush.bf16.msrb.mxu3 %v9129_v58  ;;  %v12148_v56 = vadd.f32 %v3734_v51, %v3722_v50  ;;  %v3723_v20 = vpop.f32.mrf.mxu2  ;;  %v7852_v50 = vld [vmem:[#allocation5 + $0x598] sm:$0xf] }
 0x25c   :  { %v8582_v59 = vld [vmem:[#allocation5 + $0xb70] sm:$0xf0]  ;;  %v10793_v51 = vld [vmem:[#allocation5 + $0x5b4] sm:$0xf0] }
 0x25d   :  { %v11036_v60 = vld [vmem:[#allocation5 + $0xd54] sm:$0xf]  ;;  %v8585_v3 = vor.u32 %v10972_v57, %v8582_v59  ;;  %3948 = vmatpush.bf16.msrb.mxu0 %v8329_v1  ;;  %v3697_v57 = vpop.f32.mrf.mxu0  ;;  %v8044_v20 = vld [vmem:[#allocation5 + $0x718] sm:$0xf] }
 0x25e   :  { %v8838_v61 = vld [vmem:[#allocation5 + $0xd70] sm:$0xf0] }
 0x25f   :  { %v11100_v62 = vld [vmem:[#allocation5 + $0xf54] sm:$0xf]  ;;  %v8841_v4 = vor.u32 %v11036_v60, %v8838_v61  ;;  %3961 = vmatpush.bf16.msrb.mxu1 %v8585_v3 }
 0x260   :  { %v9094_v0 = vld [vmem:[#allocation5 + $0xf70] sm:$0xf0] }
 0x261   :  { %v10900_v2 = vld [vmem:[#allocation5 + $0x914] sm:$0xf]  ;;  %v9097_v12 = vor.u32 %v11100_v62, %v9094_v0  ;;  %3974 = vmatpush.bf16.msrb.mxu2 %v8841_v4  ;;  %v3710_v0 = vpop.f32.mrf.mxu1 }
 0x262   :  { %v8294_v5 = vld [vmem:[#allocation5 + $0x930] sm:$0xf0]  ;;  %v10721_v0 = vld [vmem:[#allocation5 + $0x374] sm:$0xf0] }
 0x263   :  { %v10964_v10 = vld [vmem:[#allocation5 + $0xb14] sm:$0xf]  ;;  %v8297_v19 = vor.u32 %v10900_v2, %v8294_v5  ;;  %3987 = vmatpush.bf16.msrb.mxu3 %v9097_v12 }
 0x264   :  { %v8550_v13 = vld [vmem:[#allocation5 + $0xb30] sm:$0xf0] }
 0x265   :  { %v11028_v14 = vld [vmem:[#allocation5 + $0xd14] sm:$0xf]  ;;  %v8553_v6 = vor.u32 %v10964_v10, %v8550_v13  ;;  %3949 = vmatpush.bf16.msrb.mxu0 %v8297_v19 }
 0x266   :  { %v8806_v16 = vld [vmem:[#allocation5 + $0xd30] sm:$0xf0] }
 0x267   :  { %v11092_v17 = vld [vmem:[#allocation5 + $0xf14] sm:$0xf]  ;;  %v8809_v21 = vor.u32 %v11028_v14, %v8806_v16  ;;  %3962 = vmatpush.bf16.msrb.mxu1 %v8553_v6 }
 0x268   :  { %v9062_v18 = vld [vmem:[#allocation5 + $0xf30] sm:$0xf0] }
 0x269   :  { %v10892_v22 = vld [vmem:[#allocation5 + $0x8d4] sm:$0xf]  ;;  %v9065_v63 = vor.u32 %v11092_v17, %v9062_v18  ;;  %3975 = vmatpush.bf16.msrb.mxu2 %v8809_v21 }
 0x26a   :  { %v8262_v23 = vld [vmem:[#allocation5 + $0x8f0] sm:$0xf0] }
 0x26b   :  { %v10956_v24 = vld [vmem:[#allocation5 + $0xad4] sm:$0xf]  ;;  %v8265_v47 = vor.u32 %v10892_v22, %v8262_v23  ;;  %3988 = vmatpush.bf16.msrb.mxu3 %v9065_v63  ;;  %v7628_v63 = vld [vmem:[#allocation5 + $0x3d8] sm:$0xf] }
 0x26c   :  { %v8518_v28 = vld [vmem:[#allocation5 + $0xaf0] sm:$0xf0] }
 0x26d   :  { %v11020_v29 = vld [vmem:[#allocation5 + $0xcd4] sm:$0xf]  ;;  %v8521_v35 = vor.u32 %v10956_v24, %v8518_v28  ;;  %3950 = vmatpush.bf16.msrb.mxu0 %v8265_v47  ;;  %v3736_v24 = vpop.f32.mrf.mxu3  ;;  %v8140_v47 = vld [vmem:[#allocation5 + $0x7d8] sm:$0xf] }
 0x26e   :  { %v8774_v30 = vld [vmem:[#allocation5 + $0xcf0] sm:$0xf0] }
 0x26f   :  { %v11084_v31 = vld [vmem:[#allocation5 + $0xed4] sm:$0xf]  ;;  %v8777_v36 = vor.u32 %v11020_v29, %v8774_v30  ;;  %3963 = vmatpush.bf16.msrb.mxu1 %v8521_v35  ;;  %v10737_v29 = vld [vmem:[#allocation5 + $0x3f4] sm:$0xf0] }
 0x270   :  { %v9030_v32 = vld [vmem:[#allocation5 + $0xef0] sm:$0xf0]  ;;  %v7884_v30 = vld [vmem:[#allocation5 + $0x5d8] sm:$0xf] }
 0x271   :  { %v10884_v7 = vld [vmem:[#allocation5 + $0x894] sm:$0xf]  ;;  %v9033_v42 = vor.u32 %v11084_v31, %v9030_v32  ;;  %3976 = vmatpush.bf16.msrb.mxu2 %v8777_v36  ;;  %v10801_v31 = vld [vmem:[#allocation5 + $0x5f4] sm:$0xf0] }
 0x272   :  { %v8230_v49 = vld [vmem:[#allocation5 + $0x8b0] sm:$0xf0]  ;;  %v10865_v35 = vld [vmem:[#allocation5 + $0x7f4] sm:$0xf0] }
 0x273   :  { %v10948_v39 = vld [vmem:[#allocation5 + $0xa94] sm:$0xf]  ;;  %v8233_v55 = vor.u32 %v10884_v7, %v8230_v49  ;;  %3989 = vmatpush.bf16.msrb.mxu3 %v9033_v42  ;;  %v7373_v7 = vor.u32 %v10673_v27, %v7372_v26  ;;  %v7629_v49 = vor.u32 %v10737_v29, %v7628_v63  ;;  %v10665_v42 = vld [vmem:[#allocation5 + $0x1b4] sm:$0xf0]  ;;  %v3760_v29 = vpop.f32.mrf.mxu1 }
 0x274   :  { %v8486_v43 = vld [vmem:[#allocation5 + $0xab0] sm:$0xf0]  ;;  %v7244_v26 = vld [vmem:[#allocation5 + $0xd8] sm:$0xf] }
 0x275   :  { %v11012_v44 = vld [vmem:[#allocation5 + $0xc94] sm:$0xf]  ;;  %v8489_v58 = vor.u32 %v10948_v39, %v8486_v43  ;;  %3951 = vmatpush.bf16.msrb.mxu0 %v8233_v55  ;;  %v7885_v39 = vor.u32 %v10801_v31, %v7884_v30  ;;  %v7596_v43 = vld [vmem:[#allocation5 + $0x398] sm:$0xf]  ;;  %v7341_v55 = vor.u32 %v10665_v42, %v7340_v41 }
 0x276   :  { %v8742_v46 = vld [vmem:[#allocation5 + $0xcb0] sm:$0xf0]  ;;  %v10641_v27 = vld [vmem:[#allocation5 + $0xf4] sm:$0xf0] }
 0x277   :  { %v11076_v53 = vld [vmem:[#allocation5 + $0xe94] sm:$0xf]  ;;  %v8745_v59 = vor.u32 %v11012_v44, %v8742_v46  ;;  %3964 = vmatpush.bf16.msrb.mxu1 %v8489_v58  ;;  %v8141_v44 = vor.u32 %v10865_v35, %v8140_v47  ;;  %v10729_v46 = vld [vmem:[#allocation5 + $0x3b4] sm:$0xf0]  ;;  %v7853_v58 = vor.u32 %v10793_v51, %v7852_v50 }
 0x278   :  { %v8998_v54 = vld [vmem:[#allocation5 + $0xeb0] sm:$0xf0]  ;;  %v7597_v57 = vor.u32 %v10729_v46, %v7596_v43  ;;  %v7500_v63 = vld [vmem:[#allocation5 + $0x2d8] sm:$0xf] }
 0x279   :  { %v10876_v60 = vld [vmem:[#allocation5 + $0x854] sm:$0xf]  ;;  %v9001_v1 = vor.u32 %v11076_v53, %v8998_v54  ;;  %3977 = vmatpush.bf16.msrb.mxu2 %v8745_v59  ;;  %v8108_v53 = vld [vmem:[#allocation5 + $0x798] sm:$0xf] }
 0x27a   :  { %v8198_v61 = vld [vmem:[#allocation5 + $0x870] sm:$0xf0]  ;;  %v10857_v54 = vld [vmem:[#allocation5 + $0x7b4] sm:$0xf0] }
 0x27b   :  { %v10940_v62 = vld [vmem:[#allocation5 + $0xa54] sm:$0xf]  ;;  %v8201_v11 = vor.u32 %v10876_v60, %v8198_v61  ;;  %3990 = vmatpush.bf16.msrb.mxu3 %v9001_v1  ;;  %v7308_v59 = vld [vmem:[#allocation5 + $0x158] sm:$0xf] }
 0x27c   :  { %v8454_v2 = vld [vmem:[#allocation5 + $0xa70] sm:$0xf0]  ;;  %v10657_v60 = vld [vmem:[#allocation5 + $0x174] sm:$0xf0] }
 0x27d   :  { %v11004_v3 = vld [vmem:[#allocation5 + $0xc54] sm:$0xf]  ;;  %v8457_v14 = vor.u32 %v10940_v62, %v8454_v2  ;;  %3952 = vmatpush.bf16.msrb.mxu0 %v8201_v11  ;;  %v7564_v61 = vld [vmem:[#allocation5 + $0x358] sm:$0xf]  ;;  %v8109_v62 = vor.u32 %v10857_v54, %v8108_v53  ;;  %v3786_v54 = vpop.f32.mrf.mxu3 }
 0x27e   :  { %v8710_v4 = vld [vmem:[#allocation5 + $0xc70] sm:$0xf0]  ;;  %v7820_v1 = vld [vmem:[#allocation5 + $0x558] sm:$0xf] }
 0x27f   :  { %v11068_v5 = vld [vmem:[#allocation5 + $0xe54] sm:$0xf]  ;;  %v8713_v16 = vor.u32 %v11004_v3, %v8710_v4  ;;  %3965 = vmatpush.bf16.msrb.mxu1 %v8457_v14  ;;  %v10785_v2 = vld [vmem:[#allocation5 + $0x574] sm:$0xf0] }
 0x280   :  { %v8966_v10 = vld [vmem:[#allocation5 + $0xe70] sm:$0xf0]  ;;  %v8076_v3 = vld [vmem:[#allocation5 + $0x758] sm:$0xf]  ;;  %v7821_v11 = vor.u32 %v10785_v2, %v7820_v1 }
 0x281   :  { %v10868_v12 = vld [vmem:[#allocation5 + $0x814] sm:$0xf]  ;;  %v8969_v6 = vor.u32 %v11068_v5, %v8966_v10  ;;  %3978 = vmatpush.bf16.msrb.mxu2 %v8713_v16  ;;  %v10849_v4 = vld [vmem:[#allocation5 + $0x774] sm:$0xf0]  ;;  %v7309_v5 = vor.u32 %v10657_v60, %v7308_v59  ;;  %v7565_v10 = vor.u32 %v10721_v0, %v7564_v61 }
 0x282   :  { %v8166_v13 = vld [vmem:[#allocation5 + $0x830] sm:$0xf0]  ;;  %v7532_v14 = vld [vmem:[#allocation5 + $0x318] sm:$0xf]  ;;  %v8077_v16 = vor.u32 %v10849_v4, %v8076_v3  ;;  %v3762_v3 = vpop.f32.mrf.mxu1 }
 0x283   :  { %v10932_v17 = vld [vmem:[#allocation5 + $0xa14] sm:$0xf]  ;;  %v8169_v28 = vor.u32 %v10868_v12, %v8166_v13  ;;  %3991 = vmatpush.bf16.msrb.mxu3 %v8969_v6  ;;  %v7276_v12 = vld [vmem:[#allocation5 + $0x118] sm:$0xf] }
 0x284   :  { %v8422_v18 = vld [vmem:[#allocation5 + $0xa30] sm:$0xf0]  ;;  %v10649_v13 = vld [vmem:[#allocation5 + $0x134] sm:$0xf0] }
 0x285   :  { %v10996_v19 = vld [vmem:[#allocation5 + $0xc14] sm:$0xf]  ;;  %v8425_v32 = vor.u32 %v10932_v17, %v8422_v18  ;;  %3953 = vmatpush.bf16.msrb.mxu0 %v8169_v28  ;;  %v10713_v17 = vld [vmem:[#allocation5 + $0x334] sm:$0xf0] }
 0x286   :  { %v8678_v21 = vld [vmem:[#allocation5 + $0xc30] sm:$0xf0]  ;;  %v7788_v18 = vld [vmem:[#allocation5 + $0x518] sm:$0xf] }
 0x287   :  { %v11060_v22 = vld [vmem:[#allocation5 + $0xe14] sm:$0xf]  ;;  %v8681_v33 = vor.u32 %v10996_v19, %v8678_v21  ;;  %3966 = vmatpush.bf16.msrb.mxu1 %v8425_v32  ;;  %v10777_v19 = vld [vmem:[#allocation5 + $0x534] sm:$0xf0]  ;;  %v7277_v21 = vor.u32 %v10649_v13, %v7276_v12 }
 0x288   :  { %v8934_v23 = vld [vmem:[#allocation5 + $0xe30] sm:$0xf0]  ;;  %3954 = vmatmul.bf16.vlgmr.msrb.gmra.mxu0 %v12079_v37  ;;  %v10841_v6 = vld [vmem:[#allocation5 + $0x734] sm:$0xf0]  ;;  %v7789_v24 = vor.u32 %v10777_v19, %v7788_v18 }
 0x289   :  { %v8937_v36 = vor.u32 %v11060_v22, %v8934_v23  ;;  %3979 = vmatpush.bf16.msrb.mxu2 %v8681_v33  ;;  %3998 = vmatpush.bf16.msra.mxu0 %v7373_v7  ;;  %v3747_v22 = vpop.f32.mrf.mxu0  ;;  %v7533_v23 = vor.u32 %v10713_v17, %v7532_v14  ;;  %v8045_v30 = vor.u32 %v10841_v6, %v8044_v20  ;;  %v10705_v31 = vld [vmem:[#allocation5 + $0x2f4] sm:$0xf0] }
 0x28a   :  { %3967 = vmatmul.bf16.vlgmr.msrb.gmra.mxu1 %v12083_v40  ;;  %v3748_v28 = vadd.f32 %v3747_v22, %v12148_v56  ;;  %v7756_v32 = vld [vmem:[#allocation5 + $0x4d8] sm:$0xf]  ;;  %v7245_v7 = vor.u32 %v10641_v27, %v7244_v26 }
 0x28b   :  { %3992 = vmatpush.bf16.msrb.mxu3 %v8937_v36  ;;  %4011 = vmatpush.bf16.msra.mxu1 %v7629_v49  ;;  %v10769_v33 = vld [vmem:[#allocation5 + $0x4f4] sm:$0xf0]  ;;  %v7501_v49 = vor.u32 %v10705_v31, %v7500_v63  ;;  %v3788_v63 = vpop.f32.mrf.mxu3 }
 0x28c   :  { %3980 = vmatmul.bf16.vlgmr.msrb.gmra.mxu2 %v12077_v34  ;;  %v8012_v47 = vld [vmem:[#allocation5 + $0x6d8] sm:$0xf]  ;;  %v3761_v36 = vadd.f32 %v3760_v29, %v3748_v28 }
 0x28d   :  { %4024 = vmatpush.bf16.msra.mxu2 %v7885_v39  ;;  %3999 = vmatpush.bf16.msra.mxu0 %v7341_v55  ;;  %v10833_v35 = vld [vmem:[#allocation5 + $0x6f4] sm:$0xf0]  ;;  %v7757_v39 = vor.u32 %v10769_v33, %v7756_v32 }
 0x28e   :  { %3993 = vmatmul.bf16.vlgmr.msrb.gmra.mxu3 %v12081_v38  ;;  %v7212_v41 = vld [vmem:[#allocation5 + $0x98] sm:$0xf]  ;;  %v8013_v56 = vor.u32 %v10833_v35, %v8012_v47 }
 0x28f   :  { %4037 = vmatpush.bf16.msra.mxu3 %v8141_v44  ;;  %4012 = vmatpush.bf16.msra.mxu1 %v7597_v57  ;;  %v10633_v42 = vld [vmem:[#allocation5 + $0xb4] sm:$0xf0]  ;;  %v3773_v44 = vpop.f32.mrf.mxu2 }
 0x290   :  { %v7468_v43 = vld [vmem:[#allocation5 + $0x298] sm:$0xf]  ;;  %v3774_v53 = vadd.f32 %v3773_v44, %v3761_v36 }
 0x291   :  { %4025 = vmatpush.bf16.msra.mxu2 %v7853_v58  ;;  %4000 = vmatpush.bf16.msra.mxu0 %v7309_v5  ;;  %v10697_v46 = vld [vmem:[#allocation5 + $0x2b4] sm:$0xf0]  ;;  %v7213_v58 = vor.u32 %v10633_v42, %v7212_v41  ;;  %v3749_v60 = vpop.f32.mrf.mxu0 }
 0x292   :  { %v7724_v50 = vld [vmem:[#allocation5 + $0x498] sm:$0xf]  ;;  %v12155_v59 = vadd.f32 %v3786_v54, %v3774_v53  ;;  %v7469_v61 = vor.u32 %v10697_v46, %v7468_v43 }
 0x293   :  { %4038 = vmatpush.bf16.msra.mxu3 %v8109_v62  ;;  %4013 = vmatpush.bf16.msra.mxu1 %v7565_v10  ;;  %v10761_v51 = vld [vmem:[#allocation5 + $0x4b4] sm:$0xf0] }
 0x294   :  { %v7980_v55 = vld [vmem:[#allocation5 + $0x698] sm:$0xf]  ;;  %v7725_v62 = vor.u32 %v10761_v51, %v7724_v50 }
 0x295   :  { %4026 = vmatpush.bf16.msra.mxu2 %v7821_v11  ;;  %4001 = vmatpush.bf16.msra.mxu0 %v7277_v21  ;;  %v10825_v57 = vld [vmem:[#allocation5 + $0x6b4] sm:$0xf0] }
 0x296   :  { %v7180_v0 = vld [vmem:[#allocation5 + $0x58] sm:$0xf]  ;;  %v7981_v4 = vor.u32 %v10825_v57, %v7980_v55 }
 0x297   :  { %4039 = vmatpush.bf16.msra.mxu3 %v8077_v16  ;;  %4014 = vmatpush.bf16.msra.mxu1 %v7533_v23  ;;  %v10625_v1 = vld [vmem:[#allocation5 + $0x74] sm:$0xf0]  ;;  %v3775_v22 = vpop.f32.mrf.mxu2 }
 0x298   :  { %v7436_v2 = vld [vmem:[#allocation5 + $0x258] sm:$0xf]  ;;  %v7181_v14 = vor.u32 %v10625_v1, %v7180_v0 }
 0x299   :  { %4027 = vmatpush.bf16.msra.mxu2 %v7789_v24  ;;  %4002 = vmatpush.bf16.msra.mxu0 %v7245_v7  ;;  %v10689_v5 = vld [vmem:[#allocation5 + $0x274] sm:$0xf0]  ;;  %v3799_v63 = vpop.f32.mrf.mxu0 }
 0x29a   :  { %v7692_v10 = vld [vmem:[#allocation5 + $0x458] sm:$0xf]  ;;  %v7437_v18 = vor.u32 %v10689_v5, %v7436_v2 }
 0x29b   :  { %4040 = vmatpush.bf16.msra.mxu3 %v8045_v30  ;;  %4015 = vmatpush.bf16.msra.mxu1 %v7501_v49  ;;  %v10753_v11 = vld [vmem:[#allocation5 + $0x474] sm:$0xf0] }
 0x29c   :  { %v7948_v12 = vld [vmem:[#allocation5 + $0x658] sm:$0xf]  ;;  %v7693_v19 = vor.u32 %v10753_v11, %v7692_v10 }
 0x29d   :  { %4028 = vmatpush.bf16.msra.mxu2 %v7757_v39  ;;  %v10817_v13 = vld [vmem:[#allocation5 + $0x674] sm:$0xf0]  ;;  %4003 = vmatpush.bf16.msra.mxu0 %v7213_v58 }
 0x29e   :  { %v7148_v16 = vld [vmem:[#allocation5 + $0x18] sm:$0xf]  ;;  %v7949_v23 = vor.u32 %v10817_v13, %v7948_v12 }
 0x29f   :  { %4041 = vmatpush.bf16.msra.mxu3 %v8013_v56  ;;  %v10617_v17 = vld [vmem:[#allocation5 + $0x34] sm:$0xf0]  ;;  %4016 = vmatpush.bf16.msra.mxu1 %v7469_v61 }
 0x2a0   :  { %v7404_v20 = vld [vmem:[#allocation5 + $0x218] sm:$0xf]  ;;  %v7149_v31 = vor.u32 %v10617_v17, %v7148_v16 }
 0x2a1   :  { %4029 = vmatpush.bf16.msra.mxu2 %v7725_v62  ;;  %v10681_v6 = vld [vmem:[#allocation5 + $0x234] sm:$0xf0]  ;;  %4004 = vmatpush.bf16.msra.mxu0 %v7181_v14 }
 0x2a2   :  { %v7660_v21 = vld [vmem:[#allocation5 + $0x418] sm:$0xf]  ;;  %v7405_v35 = vor.u32 %v10681_v6, %v7404_v20 }
 0x2a3   :  { %4042 = vmatpush.bf16.msra.mxu3 %v7981_v4  ;;  %v10745_v24 = vld [vmem:[#allocation5 + $0x434] sm:$0xf0]  ;;  %4017 = vmatpush.bf16.msra.mxu1 %v7437_v18 }
 0x2a4   :  { %v7916_v26 = vld [vmem:[#allocation5 + $0x618] sm:$0xf]  ;;  %v7661_v36 = vor.u32 %v10745_v24, %v7660_v21 }
 0x2a5   :  { %v10809_v27 = vld [vmem:[#allocation5 + $0x634] sm:$0xf0]  ;;  %4030 = vmatpush.bf16.msra.mxu2 %v7693_v19  ;;  %4005 = vmatpush.bf16.msra.mxu0 %v7149_v31  ;;  %v12161_v19 = vld [vmem:[#allocation7] sm:$0xff] }
 0x2a6   :  { %v8396_v28 = vld [vmem:[#allocation5 + $0x9d8] sm:$0xf]  ;;  %v7917_v39 = vor.u32 %v10809_v27, %v7916_v26  ;;  %v802_v20 = vperm.slane %v12161_v19, 4 }
 0x2a7   :  { %v10929_v29 = vld [vmem:[#allocation5 + $0x9f4] sm:$0xf0]  ;;  %4043 = vmatpush.bf16.msra.mxu3 %v7949_v23  ;;  %4018 = vmatpush.bf16.msra.mxu1 %v7405_v35 }
 0x2a8   :  { %v8652_v30 = vld [vmem:[#allocation5 + $0xbd8] sm:$0xf]  ;;  %v8397_v41 = vor.u32 %v10929_v29, %v8396_v28  ;;  %4006 = vmatmul.bf16.vlgmr.msra.gmra.mxu0 %v12067_v9 }
 0x2a9   :  { %v10993_v32 = vld [vmem:[#allocation5 + $0xbf4] sm:$0xf0]  ;;  %4031 = vmatpush.bf16.msra.mxu2 %v7661_v36 }
 0x2aa   :  { %v8908_v33 = vld [vmem:[#allocation5 + $0xdd8] sm:$0xf]  ;;  %v8653_v42 = vor.u32 %v10993_v32, %v8652_v30  ;;  %4050 = vmatpush.bf16.msrb.mxu0 %v8397_v41  ;;  %4019 = vmatmul.bf16.vlgmr.msra.gmra.mxu1 %v12074_v25 }
 0x2ab   :  { %v11057_v47 = vld [vmem:[#allocation5 + $0xdf4] sm:$0xf0]  ;;  %4044 = vmatpush.bf16.msra.mxu3 %v7917_v39 }
 0x2ac   :  { %v9164_v7 = vld [vmem:[#allocation5 + $0xfd8] sm:$0xf]  ;;  %v8909_v43 = vor.u32 %v11057_v47, %v8908_v33  ;;  %4063 = vmatpush.bf16.msrb.mxu1 %v8653_v42  ;;  %4032 = vmatmul.bf16.vlgmr.msra.gmra.mxu2 %v12065_v8  ;;  %v3800_v33 = vadd.f32 %v3799_v63, %v802_v20  ;;  %v3812_v47 = vpop.f32.mrf.mxu1 }
 0x2ad   :  { %v11121_v49 = vld [vmem:[#allocation5 + $0xff4] sm:$0xf0] }
 0x2ae   :  { %v8364_v44 = vld [vmem:[#allocation5 + $0x998] sm:$0xf]  ;;  %v9165_v50 = vor.u32 %v11121_v49, %v9164_v7  ;;  %4076 = vmatpush.bf16.msrb.mxu2 %v8909_v43  ;;  %4045 = vmatmul.bf16.vlgmr.msra.gmra.mxu3 %v12069_v15  ;;  %v3813_v42 = vadd.f32 %v3812_v47, %v3800_v33 }
 0x2af   :  { %v10921_v56 = vld [vmem:[#allocation5 + $0x9b4] sm:$0xf0] }
 0x2b0   :  { %v8620_v46 = vld [vmem:[#allocation5 + $0xb98] sm:$0xf]  ;;  %v8365_v58 = vor.u32 %v10921_v56, %v8364_v44  ;;  %4089 = vmatpush.bf16.msrb.mxu3 %v9165_v50 }
 0x2b1   :  { %v10985_v51 = vld [vmem:[#allocation5 + $0xbb4] sm:$0xf0] }
 0x2b2   :  { %v8876_v53 = vld [vmem:[#allocation5 + $0xd98] sm:$0xf]  ;;  %v8621_v60 = vor.u32 %v10985_v51, %v8620_v46  ;;  %4051 = vmatpush.bf16.msrb.mxu0 %v8365_v58 }
 0x2b3   :  { %v11049_v54 = vld [vmem:[#allocation5 + $0xdb4] sm:$0xf0] }
 0x2b4   :  { %v9132_v55 = vld [vmem:[#allocation5 + $0xf98] sm:$0xf]  ;;  %v8877_v61 = vor.u32 %v11049_v54, %v8876_v53  ;;  %4064 = vmatpush.bf16.msrb.mxu1 %v8621_v60  ;;  %v3825_v53 = vpop.f32.mrf.mxu2 }
 0x2b5   :  { %v11113_v57 = vld [vmem:[#allocation5 + $0xfb4] sm:$0xf0]  ;;  %v3826_v60 = vadd.f32 %v3825_v53, %v3813_v42  ;;  %v7886_v42 = vld [vmem:[#allocation5 + $0x5f8] sm:$0xf0] }
 0x2b6   :  { %v8332_v62 = vld [vmem:[#allocation5 + $0x958] sm:$0xf]  ;;  %v9133_v2 = vor.u32 %v11113_v57, %v9132_v55  ;;  %4077 = vmatpush.bf16.msrb.mxu2 %v8877_v61  ;;  %v3838_v61 = vpop.f32.mrf.mxu3 }
 0x2b7   :  { %v10913_v0 = vld [vmem:[#allocation5 + $0x974] sm:$0xf0] }
 0x2b8   :  { %v8588_v1 = vld [vmem:[#allocation5 + $0xb58] sm:$0xf]  ;;  %v8333_v12 = vor.u32 %v10913_v0, %v8332_v62  ;;  %4090 = vmatpush.bf16.msrb.mxu3 %v9133_v2  ;;  %v12164_v2 = vadd.f32 %v3838_v61, %v3826_v60  ;;  %v7598_v61 = vld [vmem:[#allocation5 + $0x3b8] sm:$0xf0] }
 0x2b9   :  { %v10977_v3 = vld [vmem:[#allocation5 + $0xb74] sm:$0xf0] }
 0x2ba   :  { %v8844_v4 = vld [vmem:[#allocation5 + $0xd58] sm:$0xf]  ;;  %v8589_v14 = vor.u32 %v10977_v3, %v8588_v1  ;;  %4052 = vmatpush.bf16.msrb.mxu0 %v8333_v12  ;;  %v3801_v3 = vpop.f32.mrf.mxu0 }
 0x2bb   :  { %v11041_v5 = vld [vmem:[#allocation5 + $0xd74] sm:$0xf0]  ;;  %v8110_v3 = vld [vmem:[#allocation5 + $0x7b8] sm:$0xf0] }
 0x2bc   :  { %v9100_v10 = vld [vmem:[#allocation5 + $0xf58] sm:$0xf]  ;;  %v8845_v16 = vor.u32 %v11041_v5, %v8844_v4  ;;  %4065 = vmatpush.bf16.msrb.mxu1 %v8589_v14 }
 0x2bd   :  { %v11105_v11 = vld [vmem:[#allocation5 + $0xf74] sm:$0xf0] }
 0x2be   :  { %v8300_v13 = vld [vmem:[#allocation5 + $0x918] sm:$0xf]  ;;  %v9101_v6 = vor.u32 %v11105_v11, %v9100_v10  ;;  %4078 = vmatpush.bf16.msrb.mxu2 %v8845_v16  ;;  %v3840_v47 = vpop.f32.mrf.mxu3 }
 0x2bf   :  { %v10905_v17 = vld [vmem:[#allocation5 + $0x934] sm:$0xf0] }
 0x2c0   :  { %v8556_v18 = vld [vmem:[#allocation5 + $0xb18] sm:$0xf]  ;;  %v8301_v27 = vor.u32 %v10905_v17, %v8300_v13  ;;  %4091 = vmatpush.bf16.msrb.mxu3 %v9101_v6  ;;  %v3814_v13 = vpop.f32.mrf.mxu1 }
 0x2c1   :  { %v10969_v21 = vld [vmem:[#allocation5 + $0xb34] sm:$0xf0]  ;;  %v10717_v13 = vld [vmem:[#allocation5 + $0x35c] sm:$0xf] }
 0x2c2   :  { %v8812_v22 = vld [vmem:[#allocation5 + $0xd18] sm:$0xf]  ;;  %v8557_v28 = vor.u32 %v10969_v21, %v8556_v18  ;;  %4053 = vmatpush.bf16.msrb.mxu0 %v8301_v27  ;;  %v3851_v47 = vpop.f32.mrf.mxu0 }
 0x2c3   :  { %v11033_v23 = vld [vmem:[#allocation5 + $0xd34] sm:$0xf0] }
 0x2c4   :  { %v9068_v24 = vld [vmem:[#allocation5 + $0xf18] sm:$0xf]  ;;  %v8813_v29 = vor.u32 %v11033_v23, %v8812_v22  ;;  %4066 = vmatpush.bf16.msrb.mxu1 %v8557_v28 }
 0x2c5   :  { %v11097_v26 = vld [vmem:[#allocation5 + $0xf34] sm:$0xf0] }
 0x2c6   :  { %v8268_v30 = vld [vmem:[#allocation5 + $0x8d8] sm:$0xf]  ;;  %v9069_v35 = vor.u32 %v11097_v26, %v9068_v24  ;;  %4079 = vmatpush.bf16.msrb.mxu2 %v8813_v29  ;;  %v3827_v29 = vpop.f32.mrf.mxu2 }
 0x2c7   :  { %v10897_v31 = vld [vmem:[#allocation5 + $0x8f4] sm:$0xf0]  ;;  %v10773_v29 = vld [vmem:[#allocation5 + $0x51c] sm:$0xf] }
 0x2c8   :  { %v8524_v32 = vld [vmem:[#allocation5 + $0xad8] sm:$0xf]  ;;  %v8269_v43 = vor.u32 %v10897_v31, %v8268_v30  ;;  %4092 = vmatpush.bf16.msrb.mxu3 %v9069_v35  ;;  %v10669_v35 = vld [vmem:[#allocation5 + $0x1dc] sm:$0xf] }
 0x2c9   :  { %v10961_v36 = vld [vmem:[#allocation5 + $0xaf4] sm:$0xf0] }
 0x2ca   :  { %v8780_v7 = vld [vmem:[#allocation5 + $0xcd8] sm:$0xf]  ;;  %v8525_v44 = vor.u32 %v10961_v36, %v8524_v32  ;;  %4054 = vmatpush.bf16.msrb.mxu0 %v8269_v43  ;;  %v7374_v36 = vld [vmem:[#allocation5 + $0x1f8] sm:$0xf0] }
 0x2cb   :  { %v11025_v49 = vld [vmem:[#allocation5 + $0xcf4] sm:$0xf0] }
 0x2cc   :  { %v9036_v39 = vld [vmem:[#allocation5 + $0xed8] sm:$0xf]  ;;  %v8781_v56 = vor.u32 %v11025_v49, %v8780_v7  ;;  %4067 = vmatpush.bf16.msrb.mxu1 %v8525_v44  ;;  %v10733_v7 = vld [vmem:[#allocation5 + $0x3dc] sm:$0xf] }
 0x2cd   :  { %v11089_v41 = vld [vmem:[#allocation5 + $0xef4] sm:$0xf0] }
 0x2ce   :  { %v8236_v46 = vld [vmem:[#allocation5 + $0x898] sm:$0xf]  ;;  %v9037_v54 = vor.u32 %v11089_v41, %v9036_v39  ;;  %4080 = vmatpush.bf16.msrb.mxu2 %v8781_v56  ;;  %v7630_v39 = vld [vmem:[#allocation5 + $0x3f8] sm:$0xf0] }
 0x2cf   :  { %v10889_v50 = vld [vmem:[#allocation5 + $0x8b4] sm:$0xf0]  ;;  %v10797_v41 = vld [vmem:[#allocation5 + $0x5dc] sm:$0xf]  ;;  %v7633_v53 = vor.u32 %v10733_v7, %v7630_v39 }
 0x2d0   :  { %v8492_v51 = vld [vmem:[#allocation5 + $0xa98] sm:$0xf]  ;;  %v8237_v1 = vor.u32 %v10889_v50, %v8236_v46  ;;  %4093 = vmatpush.bf16.msrb.mxu3 %v9037_v54  ;;  %v10861_v56 = vld [vmem:[#allocation5 + $0x7dc] sm:$0xf]  ;;  %v7889_v54 = vor.u32 %v10797_v41, %v7886_v42  ;;  %v3852_v41 = vadd.f32 %v3851_v47, %v12164_v2  ;;  %v3864_v42 = vpop.f32.mrf.mxu1 }
 0x2d1   :  { %v10953_v55 = vld [vmem:[#allocation5 + $0xab4] sm:$0xf0]  ;;  %v8142_v46 = vld [vmem:[#allocation5 + $0x7f8] sm:$0xf0] }
 0x2d2   :  { %v8748_v57 = vld [vmem:[#allocation5 + $0xc98] sm:$0xf]  ;;  %v8493_v4 = vor.u32 %v10953_v55, %v8492_v51  ;;  %4055 = vmatpush.bf16.msrb.mxu0 %v8237_v1  ;;  %v7377_v51 = vor.u32 %v10669_v35, %v7374_v36  ;;  %v10661_v55 = vld [vmem:[#allocation5 + $0x19c] sm:$0xf]  ;;  %v8145_v60 = vor.u32 %v10861_v56, %v8142_v46 }
 0x2d3   :  { %v11017_v58 = vld [vmem:[#allocation5 + $0xcb4] sm:$0xf0]  ;;  %v10853_v1 = vld [vmem:[#allocation5 + $0x79c] sm:$0xf] }
 0x2d4   :  { %v9004_v62 = vld [vmem:[#allocation5 + $0xe98] sm:$0xf]  ;;  %v8749_v5 = vor.u32 %v11017_v58, %v8748_v57  ;;  %4068 = vmatpush.bf16.msrb.mxu1 %v8493_v4  ;;  %v7342_v57 = vld [vmem:[#allocation5 + $0x1b8] sm:$0xf0] }
 0x2d5   :  { %v11081_v0 = vld [vmem:[#allocation5 + $0xeb4] sm:$0xf0]  ;;  %v10725_v58 = vld [vmem:[#allocation5 + $0x39c] sm:$0xf]  ;;  %v7345_v4 = vor.u32 %v10661_v55, %v7342_v57 }
 0x2d6   :  { %v8204_v10 = vld [vmem:[#allocation5 + $0x858] sm:$0xf]  ;;  %v9005_v14 = vor.u32 %v11081_v0, %v9004_v62  ;;  %4081 = vmatpush.bf16.msrb.mxu2 %v8749_v5  ;;  %v10789_v62 = vld [vmem:[#allocation5 + $0x59c] sm:$0xf]  ;;  %v7601_v5 = vor.u32 %v10725_v58, %v7598_v61 }
 0x2d7   :  { %v10881_v11 = vld [vmem:[#allocation5 + $0x874] sm:$0xf0]  ;;  %v7854_v0 = vld [vmem:[#allocation5 + $0x5b8] sm:$0xf0] }
 0x2d8   :  { %v8460_v12 = vld [vmem:[#allocation5 + $0xa58] sm:$0xf]  ;;  %v8205_v21 = vor.u32 %v10881_v11, %v8204_v10  ;;  %4094 = vmatpush.bf16.msrb.mxu3 %v9005_v14  ;;  %v7857_v10 = vor.u32 %v10789_v62, %v7854_v0  ;;  %v10653_v11 = vld [vmem:[#allocation5 + $0x15c] sm:$0xf]  ;;  %v8113_v14 = vor.u32 %v10853_v1, %v8110_v3  ;;  %v3877_v62 = vpop.f32.mrf.mxu2 }
 0x2d9   :  { %v10945_v16 = vld [vmem:[#allocation5 + $0xa74] sm:$0xf0]  ;;  %v10637_v7 = vld [vmem:[#allocation5 + $0xdc] sm:$0xf] }
 0x2da   :  { %v8716_v17 = vld [vmem:[#allocation5 + $0xc58] sm:$0xf]  ;;  %v8461_v24 = vor.u32 %v10945_v16, %v8460_v12  ;;  %4056 = vmatpush.bf16.msrb.mxu0 %v8205_v21  ;;  %v7310_v12 = vld [vmem:[#allocation5 + $0x178] sm:$0xf0] }
 0x2db   :  { %v11009_v18 = vld [vmem:[#allocation5 + $0xc74] sm:$0xf0]  ;;  %v7566_v16 = vld [vmem:[#allocation5 + $0x378] sm:$0xf0]  ;;  %v7313_v21 = vor.u32 %v10653_v11, %v7310_v12 }
 0x2dc   :  { %v8972_v20 = vld [vmem:[#allocation5 + $0xe58] sm:$0xf]  ;;  %v8717_v26 = vor.u32 %v11009_v18, %v8716_v17  ;;  %4069 = vmatpush.bf16.msrb.mxu1 %v8461_v24  ;;  %v10781_v17 = vld [vmem:[#allocation5 + $0x55c] sm:$0xf] }
 0x2dd   :  { %v11073_v6 = vld [vmem:[#allocation5 + $0xe74] sm:$0xf0]  ;;  %v7822_v18 = vld [vmem:[#allocation5 + $0x578] sm:$0xf0] }
 0x2de   :  { %v8172_v22 = vld [vmem:[#allocation5 + $0x818] sm:$0xf]  ;;  %v8973_v30 = vor.u32 %v11073_v6, %v8972_v20  ;;  %4082 = vmatpush.bf16.msrb.mxu2 %v8717_v26  ;;  %v10845_v20 = vld [vmem:[#allocation5 + $0x75c] sm:$0xf] }
 0x2df   :  { %v10873_v23 = vld [vmem:[#allocation5 + $0x834] sm:$0xf0]  ;;  %v8078_v6 = vld [vmem:[#allocation5 + $0x778] sm:$0xf0] }
 0x2e0   :  { %v8428_v27 = vld [vmem:[#allocation5 + $0xa18] sm:$0xf]  ;;  %v8173_v49 = vor.u32 %v10873_v23, %v8172_v22  ;;  %4095 = vmatpush.bf16.msrb.mxu3 %v8973_v30  ;;  %v7569_v22 = vor.u32 %v10717_v13, %v7566_v16  ;;  %v7825_v23 = vor.u32 %v10781_v17, %v7822_v18  ;;  %v10645_v24 = vld [vmem:[#allocation5 + $0x11c] sm:$0xf] }
 0x2e1   :  { %v10937_v63 = vld [vmem:[#allocation5 + $0xa34] sm:$0xf0]  ;;  %v7278_v26 = vld [vmem:[#allocation5 + $0x138] sm:$0xf0] }
 0x2e2   :  { %v8684_v28 = vld [vmem:[#allocation5 + $0xc18] sm:$0xf]  ;;  %v8429_v43 = vor.u32 %v10937_v63, %v8428_v27  ;;  %4057 = vmatpush.bf16.msrb.mxu0 %v8173_v49  ;;  %v10709_v27 = vld [vmem:[#allocation5 + $0x31c] sm:$0xf]  ;;  %v8081_v63 = vor.u32 %v10845_v20, %v8078_v6 }
 0x2e3   :  { %v11001_v31 = vld [vmem:[#allocation5 + $0xc34] sm:$0xf0]  ;;  %v7790_v30 = vld [vmem:[#allocation5 + $0x538] sm:$0xf0] }
 0x2e4   :  { %v8940_v32 = vld [vmem:[#allocation5 + $0xe18] sm:$0xf]  ;;  %v8685_v44 = vor.u32 %v11001_v31, %v8684_v28  ;;  %4070 = vmatpush.bf16.msrb.mxu1 %v8429_v43  ;;  %v7534_v28 = vld [vmem:[#allocation5 + $0x338] sm:$0xf0]  ;;  %v7793_v36 = vor.u32 %v10773_v29, %v7790_v30 }
 0x2e5   :  { %v11065_v33 = vld [vmem:[#allocation5 + $0xe34] sm:$0xf0]  ;;  %4058 = vmatmul.bf16.vlgmr.msrb.gmra.mxu0 %v12079_v37  ;;  %v10837_v31 = vld [vmem:[#allocation5 + $0x71c] sm:$0xf]  ;;  %v7537_v35 = vor.u32 %v10709_v27, %v7534_v28 }
 0x2e6   :  { %v8941_v50 = vor.u32 %v11065_v33, %v8940_v32  ;;  %4083 = vmatpush.bf16.msrb.mxu2 %v8685_v44  ;;  %4102 = vmatpush.bf16.msra.mxu0 %v7377_v51  ;;  %v8046_v32 = vld [vmem:[#allocation5 + $0x738] sm:$0xf0]  ;;  %v7281_v33 = vor.u32 %v10645_v24, %v7278_v26 }
 0x2e7   :  { %4071 = vmatmul.bf16.vlgmr.msrb.gmra.mxu1 %v12083_v40  ;;  %v7246_v49 = vld [vmem:[#allocation5 + $0xf8] sm:$0xf0]  ;;  %v8049_v43 = vor.u32 %v10837_v31, %v8046_v32 }
 0x2e8   :  { %4096 = vmatpush.bf16.msrb.mxu3 %v8941_v50  ;;  %4115 = vmatpush.bf16.msra.mxu1 %v7633_v53  ;;  %v10701_v39 = vld [vmem:[#allocation5 + $0x2dc] sm:$0xf]  ;;  %v3865_v53 = vadd.f32 %v3864_v42, %v3852_v41 }
 0x2e9   :  { %4084 = vmatmul.bf16.vlgmr.msrb.gmra.mxu2 %v12077_v34  ;;  %v7502_v44 = vld [vmem:[#allocation5 + $0x2f8] sm:$0xf0] }
 0x2ea   :  { %4128 = vmatpush.bf16.msra.mxu2 %v7889_v54  ;;  %4103 = vmatpush.bf16.msra.mxu0 %v7345_v4  ;;  %v10765_v56 = vld [vmem:[#allocation5 + $0x4dc] sm:$0xf]  ;;  %v7249_v54 = vor.u32 %v10637_v7, %v7246_v49  ;;  %v7505_v55 = vor.u32 %v10701_v39, %v7502_v44  ;;  %v3878_v4 = vadd.f32 %v3877_v62, %v3865_v53 }
 0x2eb   :  { %4097 = vmatmul.bf16.vlgmr.msrb.gmra.mxu3 %v12081_v38  ;;  %v7758_v46 = vld [vmem:[#allocation5 + $0x4f8] sm:$0xf0] }
 0x2ec   :  { %4141 = vmatpush.bf16.msra.mxu3 %v8145_v60  ;;  %4116 = vmatpush.bf16.msra.mxu1 %v7601_v5  ;;  %v10829_v50 = vld [vmem:[#allocation5 + $0x6dc] sm:$0xf]  ;;  %v7761_v57 = vor.u32 %v10765_v56, %v7758_v46  ;;  %v3890_v5 = vpop.f32.mrf.mxu3 }
 0x2ed   :  { %v8014_v51 = vld [vmem:[#allocation5 + $0x6f8] sm:$0xf0]  ;;  %v12171_v13 = vadd.f32 %v3890_v5, %v3878_v4 }
 0x2ee   :  { %4129 = vmatpush.bf16.msra.mxu2 %v7857_v10  ;;  %4104 = vmatpush.bf16.msra.mxu0 %v7313_v21  ;;  %v10629_v58 = vld [vmem:[#allocation5 + $0x9c] sm:$0xf]  ;;  %v8017_v2 = vor.u32 %v10829_v50, %v8014_v51  ;;  %v3866_v21 = vpop.f32.mrf.mxu1 }
 0x2ef   :  { %v7214_v60 = vld [vmem:[#allocation5 + $0xb8] sm:$0xf0] }
 0x2f0   :  { %4142 = vmatpush.bf16.msra.mxu3 %v8113_v14  ;;  %4117 = vmatpush.bf16.msra.mxu1 %v7569_v22  ;;  %v10693_v61 = vld [vmem:[#allocation5 + $0x29c] sm:$0xf]  ;;  %v7217_v12 = vor.u32 %v10629_v58, %v7214_v60  ;;  %v3853_v14 = vpop.f32.mrf.mxu0 }
 0x2f1   :  { %v7470_v0 = vld [vmem:[#allocation5 + $0x2b8] sm:$0xf0] }
 0x2f2   :  { %4130 = vmatpush.bf16.msra.mxu2 %v7825_v23  ;;  %4105 = vmatpush.bf16.msra.mxu0 %v7281_v33  ;;  %v10757_v1 = vld [vmem:[#allocation5 + $0x49c] sm:$0xf]  ;;  %v7473_v16 = vor.u32 %v10693_v61, %v7470_v0 }
 0x2f3   :  { %v7726_v3 = vld [vmem:[#allocation5 + $0x4b8] sm:$0xf0] }
 0x2f4   :  { %4143 = vmatpush.bf16.msra.mxu3 %v8081_v63  ;;  %4118 = vmatpush.bf16.msra.mxu1 %v7537_v35  ;;  %v10821_v10 = vld [vmem:[#allocation5 + $0x69c] sm:$0xf]  ;;  %v7729_v17 = vor.u32 %v10757_v1, %v7726_v3  ;;  %v3892_v42 = vpop.f32.mrf.mxu3 }
 0x2f5   :  { %v7982_v11 = vld [vmem:[#allocation5 + $0x6b8] sm:$0xf0] }
 0x2f6   :  { %4131 = vmatpush.bf16.msra.mxu2 %v7793_v36  ;;  %4106 = vmatpush.bf16.msra.mxu0 %v7249_v54  ;;  %v10621_v18 = vld [vmem:[#allocation5 + $0x5c] sm:$0xf]  ;;  %v7985_v22 = vor.u32 %v10821_v10, %v7982_v11  ;;  %v3879_v36 = vpop.f32.mrf.mxu2 }
 0x2f7   :  { %v7182_v20 = vld [vmem:[#allocation5 + $0x78] sm:$0xf0] }
 0x2f8   :  { %4144 = vmatpush.bf16.msra.mxu3 %v8049_v43  ;;  %4119 = vmatpush.bf16.msra.mxu1 %v7505_v55  ;;  %v10685_v6 = vld [vmem:[#allocation5 + $0x25c] sm:$0xf]  ;;  %v7185_v28 = vor.u32 %v10621_v18, %v7182_v20 }
 0x2f9   :  { %v7438_v23 = vld [vmem:[#allocation5 + $0x278] sm:$0xf0] }
 0x2fa   :  { %4132 = vmatpush.bf16.msra.mxu2 %v7761_v57  ;;  %v10749_v24 = vld [vmem:[#allocation5 + $0x45c] sm:$0xf]  ;;  %4107 = vmatpush.bf16.msra.mxu0 %v7217_v12  ;;  %v7441_v31 = vor.u32 %v10685_v6, %v7438_v23 }
 0x2fb   :  { %v7694_v26 = vld [vmem:[#allocation5 + $0x478] sm:$0xf0] }
 0x2fc   :  { %4145 = vmatpush.bf16.msra.mxu3 %v8017_v2  ;;  %v10813_v27 = vld [vmem:[#allocation5 + $0x65c] sm:$0xf]  ;;  %4120 = vmatpush.bf16.msra.mxu1 %v7473_v16  ;;  %v7697_v32 = vor.u32 %v10749_v24, %v7694_v26 }
 0x2fd   :  { %v7950_v63 = vld [vmem:[#allocation5 + $0x678] sm:$0xf0] }
 0x2fe   :  { %v10613_v29 = vld [vmem:[#allocation5 + $0x1c] sm:$0xf]  ;;  %4133 = vmatpush.bf16.msra.mxu2 %v7729_v17  ;;  %v7953_v7 = vor.u32 %v10813_v27, %v7950_v63  ;;  %4108 = vmatpush.bf16.msra.mxu0 %v7185_v28 }
 0x2ff   :  { %v7150_v30 = vld [vmem:[#allocation5 + $0x38] sm:$0xf0] }
 0x300   :  { %v10677_v33 = vld [vmem:[#allocation5 + $0x21c] sm:$0xf]  ;;  %4146 = vmatpush.bf16.msra.mxu3 %v7985_v22  ;;  %v7153_v46 = vor.u32 %v10613_v29, %v7150_v30  ;;  %4121 = vmatpush.bf16.msra.mxu1 %v7441_v31 }
 0x301   :  { %v7406_v47 = vld [vmem:[#allocation5 + $0x238] sm:$0xf0] }
 0x302   :  { %v10741_v35 = vld [vmem:[#allocation5 + $0x41c] sm:$0xf]  ;;  %4134 = vmatpush.bf16.msra.mxu2 %v7697_v32  ;;  %v7409_v54 = vor.u32 %v10677_v33, %v7406_v47  ;;  %4109 = vmatpush.bf16.msra.mxu0 %v7153_v46 }
 0x303   :  { %v7662_v49 = vld [vmem:[#allocation5 + $0x438] sm:$0xf0] }
 0x304   :  { %v10805_v39 = vld [vmem:[#allocation5 + $0x61c] sm:$0xf]  ;;  %v7665_v55 = vor.u32 %v10741_v35, %v7662_v49  ;;  %4147 = vmatpush.bf16.msra.mxu3 %v7953_v7  ;;  %4122 = vmatpush.bf16.msra.mxu1 %v7409_v54  ;;  %v12177_v49 = vpop.f32.mrf.mxu0 }
 0x305   :  { %v7918_v41 = vld [vmem:[#allocation5 + $0x638] sm:$0xf0]  ;;  %4110 = vmatmul.bf16.vlgmr.msra.gmra.mxu0 %v12067_v9 }
 0x306   :  { %v10925_v43 = vld [vmem:[#allocation5 + $0x9dc] sm:$0xf]  ;;  %v7921_v60 = vor.u32 %v10805_v39, %v7918_v41  ;;  %4135 = vmatpush.bf16.msra.mxu2 %v7665_v55 }
 0x307   :  { %v8398_v44 = vld [vmem:[#allocation5 + $0x9f8] sm:$0xf0]  ;;  %4123 = vmatmul.bf16.vlgmr.msra.gmra.mxu1 %v12074_v25 }
 0x308   :  { %v10989_v56 = vld [vmem:[#allocation5 + $0xbdc] sm:$0xf]  ;;  %v8401_v61 = vor.u32 %v10925_v43, %v8398_v44  ;;  %4148 = vmatpush.bf16.msra.mxu3 %v7921_v60  ;;  %v12179_v44 = vpop.f32.mrf.mxu1 }
 0x309   :  { %v8654_v50 = vld [vmem:[#allocation5 + $0xbf8] sm:$0xf0]  ;;  %4136 = vmatmul.bf16.vlgmr.msra.gmra.mxu2 %v12065_v8 }
 0x30a   :  { %v11053_v51 = vld [vmem:[#allocation5 + $0xddc] sm:$0xf]  ;;  %v8657_v62 = vor.u32 %v10989_v56, %v8654_v50  ;;  %4154 = vmatpush.bf16.msrb.mxu0 %v8401_v61 }
 0x30b   :  { %v8910_v53 = vld [vmem:[#allocation5 + $0xdf8] sm:$0xf0]  ;;  %4149 = vmatmul.bf16.vlgmr.msra.gmra.mxu3 %v12069_v15 }
 0x30c   :  { %v11117_v57 = vld [vmem:[#allocation5 + $0xfdc] sm:$0xf]  ;;  %v8913_v2 = vor.u32 %v11053_v51, %v8910_v53  ;;  %4167 = vmatpush.bf16.msrb.mxu1 %v8657_v62 }
 0x30d   :  { %v9166_v58 = vld [vmem:[#allocation5 + $0xff8] sm:$0xf0] }
 0x30e   :  { %v10917_v0 = vld [vmem:[#allocation5 + $0x99c] sm:$0xf]  ;;  %v9169_v4 = vor.u32 %v11117_v57, %v9166_v58  ;;  %4180 = vmatpush.bf16.msrb.mxu2 %v8913_v2  ;;  %v12181_v2 = vpop.f32.mrf.mxu2 }
 0x30f   :  { %v8366_v1 = vld [vmem:[#allocation5 + $0x9b8] sm:$0xf0] }
 0x310   :  { %v10981_v3 = vld [vmem:[#allocation5 + $0xb9c] sm:$0xf]  ;;  %v8369_v16 = vor.u32 %v10917_v0, %v8366_v1  ;;  %4193 = vmatpush.bf16.msrb.mxu3 %v9169_v4 }
 0x311   :  { %v8622_v5 = vld [vmem:[#allocation5 + $0xbb8] sm:$0xf0] }
 0x312   :  { %v11045_v10 = vld [vmem:[#allocation5 + $0xd9c] sm:$0xf]  ;;  %v8625_v17 = vor.u32 %v10981_v3, %v8622_v5  ;;  %4155 = vmatpush.bf16.msrb.mxu0 %v8369_v16  ;;  %v12183_v5 = vpop.f32.mrf.mxu3 }
 0x313   :  { %v8878_v11 = vld [vmem:[#allocation5 + $0xdb8] sm:$0xf0] }
 0x314   :  { %v11109_v12 = vld [vmem:[#allocation5 + $0xf9c] sm:$0xf]  ;;  %v8881_v18 = vor.u32 %v11045_v10, %v8878_v11  ;;  %4168 = vmatpush.bf16.msrb.mxu1 %v8625_v17 }
 0x315   :  { %v9134_v14 = vld [vmem:[#allocation5 + $0xfb8] sm:$0xf0] }
 0x316   :  { %v10909_v20 = vld [vmem:[#allocation5 + $0x95c] sm:$0xf]  ;;  %v9137_v22 = vor.u32 %v11109_v12, %v9134_v14  ;;  %4181 = vmatpush.bf16.msrb.mxu2 %v8881_v18  ;;  %v3905_v14 = vpop.f32.mrf.mxu0 }
 0x317   :  { %v8334_v6 = vld [vmem:[#allocation5 + $0x978] sm:$0xf0]  ;;  %v11244_v14 = vld [vmem:[#allocation8 + $0x3cc] sm:$0xf0] }
 0x318   :  { %v10973_v21 = vld [vmem:[#allocation5 + $0xb5c] sm:$0xf]  ;;  %v8337_v28 = vor.u32 %v10909_v20, %v8334_v6  ;;  %4194 = vmatpush.bf16.msrb.mxu3 %v9137_v22 }
 0x319   :  { %v8590_v23 = vld [vmem:[#allocation5 + $0xb78] sm:$0xf0] }
 0x31a   :  { %v11037_v24 = vld [vmem:[#allocation5 + $0xd5c] sm:$0xf]  ;;  %v8593_v29 = vor.u32 %v10973_v21, %v8590_v23  ;;  %4156 = vmatpush.bf16.msrb.mxu0 %v8337_v28  ;;  %v3918_v21 = vpop.f32.mrf.mxu1 }
 0x31b   :  { %v8846_v26 = vld [vmem:[#allocation5 + $0xd78] sm:$0xf0]  ;;  %v9380_v21 = vld [vmem:[#allocation8 + $0x1a0] sm:$0xf] }
 0x31c   :  { %v11101_v27 = vld [vmem:[#allocation5 + $0xf5c] sm:$0xf]  ;;  %v8849_v30 = vor.u32 %v11037_v24, %v8846_v26  ;;  %4169 = vmatpush.bf16.msrb.mxu1 %v8593_v29 }
 0x31d   :  { %v9102_v63 = vld [vmem:[#allocation5 + $0xf78] sm:$0xf0] }
 0x31e   :  { %v10901_v31 = vld [vmem:[#allocation5 + $0x91c] sm:$0xf]  ;;  %v9105_v33 = vor.u32 %v11101_v27, %v9102_v63  ;;  %4182 = vmatpush.bf16.msrb.mxu2 %v8849_v30 }
 0x31f   :  { %v8302_v32 = vld [vmem:[#allocation5 + $0x938] sm:$0xf0] }
 0x320   :  { %v10965_v8 = vld [vmem:[#allocation5 + $0xb1c] sm:$0xf]  ;;  %v8305_v15 = vor.u32 %v10901_v31, %v8302_v32  ;;  %4195 = vmatpush.bf16.msrb.mxu3 %v9105_v33 }
 0x321   :  { %v8558_v47 = vld [vmem:[#allocation5 + $0xb38] sm:$0xf0] }
 0x322   :  { %v11029_v35 = vld [vmem:[#allocation5 + $0xd1c] sm:$0xf]  ;;  %v8561_v25 = vor.u32 %v10965_v8, %v8558_v47  ;;  %4157 = vmatpush.bf16.msrb.mxu0 %v8305_v15 }
 0x323   :  { %v8814_v36 = vld [vmem:[#allocation5 + $0xd38] sm:$0xf0] }
 0x324   :  { %v11093_v7 = vld [vmem:[#allocation5 + $0xf1c] sm:$0xf]  ;;  %v8817_v39 = vor.u32 %v11029_v35, %v8814_v36  ;;  %4170 = vmatpush.bf16.msrb.mxu1 %v8561_v25  ;;  %v3931_v35 = vpop.f32.mrf.mxu2  ;;  %v3944_v25 = vpop.f32.mrf.mxu3 }
 0x325   :  { %v9070_v9 = vld [vmem:[#allocation5 + $0xf38] sm:$0xf0]  ;;  %v9620_v35 = vld [vmem:[#allocation8 + $0x380] sm:$0xf]  ;;  %v11136_v25 = vld [vmem:[#allocation8 + $0x6c] sm:$0xf0] }
 0x326   :  { %v10893_v41 = vld [vmem:[#allocation5 + $0x8dc] sm:$0xf]  ;;  %v9073_v56 = vor.u32 %v11093_v7, %v9070_v9  ;;  %4183 = vmatpush.bf16.msrb.mxu2 %v8817_v39  ;;  %v9284_v39 = vld [vmem:[#allocation8 + $0xe0] sm:$0xf] }
 0x327   :  { %v8270_v42 = vld [vmem:[#allocation5 + $0x8f8] sm:$0xf0] }
 0x328   :  { %v10957_v43 = vld [vmem:[#allocation5 + $0xadc] sm:$0xf]  ;;  %v8273_v55 = vor.u32 %v10893_v41, %v8270_v42  ;;  %4196 = vmatpush.bf16.msrb.mxu3 %v9073_v56  ;;  %v11152_v41 = vld [vmem:[#allocation8 + $0xec] sm:$0xf0]  ;;  %v9412_v42 = vld [vmem:[#allocation8 + $0x1e0] sm:$0xf] }
 0x329   :  { %v8526_v46 = vld [vmem:[#allocation5 + $0xaf8] sm:$0xf0]  ;;  %v11184_v56 = vld [vmem:[#allocation8 + $0x1ec] sm:$0xf0] }
 0x32a   :  { %v11021_v50 = vld [vmem:[#allocation5 + $0xcdc] sm:$0xf]  ;;  %v8529_v57 = vor.u32 %v10957_v43, %v8526_v46  ;;  %4158 = vmatpush.bf16.msrb.mxu0 %v8273_v55  ;;  %v9540_v46 = vld [vmem:[#allocation8 + $0x2e0] sm:$0xf]  ;;  %v11248_v55 = vld [vmem:[#allocation8 + $0x3ec] sm:$0xf0] }
 0x32b   :  { %v8782_v51 = vld [vmem:[#allocation5 + $0xcf8] sm:$0xf0] }
 0x32c   :  { %v11085_v53 = vld [vmem:[#allocation5 + $0xedc] sm:$0xf]  ;;  %v8785_v58 = vor.u32 %v11021_v50, %v8782_v51  ;;  %4171 = vmatpush.bf16.msrb.mxu1 %v8529_v57  ;;  %v11216_v50 = vld [vmem:[#allocation8 + $0x2ec] sm:$0xf0] }
 0x32d   :  { %v9038_v54 = vld [vmem:[#allocation5 + $0xef8] sm:$0xf0] }
 0x32e   :  { %v10885_v60 = vld [vmem:[#allocation5 + $0x89c] sm:$0xf]  ;;  %v9041_v0 = vor.u32 %v11085_v53, %v9038_v54  ;;  %4184 = vmatpush.bf16.msrb.mxu2 %v8785_v58  ;;  %v9668_v54 = vld [vmem:[#allocation8 + $0x3e0] sm:$0xf]  ;;  %v9285_v58 = vor.u32 %v11152_v41, %v9284_v39  ;;  %v12191_v41 = vpop.f32.mrf.mxu1 }
 0x32f   :  { %v8238_v61 = vld [vmem:[#allocation5 + $0x8b8] sm:$0xf0]  ;;  %v9348_v39 = vld [vmem:[#allocation8 + $0x160] sm:$0xf] }
 0x330   :  { %v10949_v62 = vld [vmem:[#allocation5 + $0xa9c] sm:$0xf]  ;;  %v8241_v12 = vor.u32 %v10885_v60, %v8238_v61  ;;  %4197 = vmatpush.bf16.msrb.mxu3 %v9041_v0  ;;  %v9413_v60 = vor.u32 %v11184_v56, %v9412_v42  ;;  %v9541_v61 = vor.u32 %v11216_v50, %v9540_v46  ;;  %v11148_v0 = vld [vmem:[#allocation8 + $0xcc] sm:$0xf0]  ;;  %v9476_v56 = vld [vmem:[#allocation8 + $0x260] sm:$0xf] }
 0x331   :  { %v8494_v1 = vld [vmem:[#allocation5 + $0xab8] sm:$0xf0]  ;;  %v11200_v46 = vld [vmem:[#allocation8 + $0x26c] sm:$0xf0]  ;;  %v9604_v50 = vld [vmem:[#allocation8 + $0x360] sm:$0xf] }
 0x332   :  { %v11013_v3 = vld [vmem:[#allocation5 + $0xc9c] sm:$0xf]  ;;  %v8497_v16 = vor.u32 %v10949_v62, %v8494_v1  ;;  %4159 = vmatpush.bf16.msrb.mxu0 %v8241_v12  ;;  %v9268_v62 = vld [vmem:[#allocation8 + $0xc0] sm:$0xf] }
 0x333   :  { %v8750_v4 = vld [vmem:[#allocation5 + $0xcb8] sm:$0xf0]  ;;  %v9396_v1 = vld [vmem:[#allocation8 + $0x1c0] sm:$0xf] }
 0x334   :  { %v11077_v10 = vld [vmem:[#allocation5 + $0xe9c] sm:$0xf]  ;;  %v8753_v17 = vor.u32 %v11013_v3, %v8750_v4  ;;  %4172 = vmatpush.bf16.msrb.mxu1 %v8497_v16  ;;  %v9669_v3 = vor.u32 %v11248_v55, %v9668_v54  ;;  %v11180_v4 = vld [vmem:[#allocation8 + $0x1cc] sm:$0xf0]  ;;  %v9652_v12 = vld [vmem:[#allocation8 + $0x3c0] sm:$0xf]  ;;  %v9269_v16 = vor.u32 %v11148_v0, %v9268_v62  ;;  %v9477_v55 = vor.u32 %v11200_v46, %v9476_v56 }
 0x335   :  { %v9006_v11 = vld [vmem:[#allocation5 + $0xeb8] sm:$0xf0]  ;;  %v11164_v0 = vld [vmem:[#allocation8 + $0x14c] sm:$0xf0]  ;;  %v10052_v56 = vld [vmem:[#allocation8 + $0x6e0] sm:$0xf] }
 0x336   :  { %v10877_v18 = vld [vmem:[#allocation5 + $0x85c] sm:$0xf]  ;;  %v9009_v22 = vor.u32 %v11077_v10, %v9006_v11  ;;  %4185 = vmatpush.bf16.msrb.mxu2 %v8753_v17  ;;  %v9524_v10 = vld [vmem:[#allocation8 + $0x2c0] sm:$0xf]  ;;  %v11212_v11 = vld [vmem:[#allocation8 + $0x2cc] sm:$0xf0]  ;;  %v9397_v17 = vor.u32 %v11180_v4, %v9396_v1  ;;  %v12195_v4 = vpop.f32.mrf.mxu3 }
 0x337   :  { %v8206_v20 = vld [vmem:[#allocation5 + $0x878] sm:$0xf0]  ;;  %v9460_v1 = vld [vmem:[#allocation8 + $0x240] sm:$0xf]  ;;  %v11344_v46 = vld [vmem:[#allocation8 + $0x6ec] sm:$0xf0] }
 0x338   :  { %v10941_v6 = vld [vmem:[#allocation5 + $0xa5c] sm:$0xf]  ;;  %v8209_v28 = vor.u32 %v10877_v18, %v8206_v20  ;;  %4198 = vmatpush.bf16.msrb.mxu3 %v9009_v22  ;;  %v9525_v18 = vor.u32 %v11212_v11, %v9524_v10  ;;  %v9252_v20 = vld [vmem:[#allocation8 + $0xa0] sm:$0xf]  ;;  %v9653_v22 = vor.u32 %v11244_v14, %v9652_v12  ;;  %v11228_v11 = vld [vmem:[#allocation8 + $0x34c] sm:$0xf0] }
 0x339   :  { %v8462_v23 = vld [vmem:[#allocation5 + $0xa78] sm:$0xf0]  ;;  %v9588_v10 = vld [vmem:[#allocation8 + $0x340] sm:$0xf] }
 0x33a   :  { %v11005_v24 = vld [vmem:[#allocation5 + $0xc5c] sm:$0xf]  ;;  %v8465_v31 = vor.u32 %v10941_v6, %v8462_v23  ;;  %4160 = vmatpush.bf16.msrb.mxu0 %v8209_v28  ;;  %v11144_v6 = vld [vmem:[#allocation8 + $0xac] sm:$0xf0] }
 0x33b   :  { %v8718_v26 = vld [vmem:[#allocation5 + $0xc78] sm:$0xf0]  ;;  %v11176_v23 = vld [vmem:[#allocation8 + $0x1ac] sm:$0xf0]  ;;  %v9253_v28 = vor.u32 %v11144_v6, %v9252_v20  ;;  %v9316_v6 = vld [vmem:[#allocation8 + $0x120] sm:$0xf] }
 0x33c   :  { %v11069_v27 = vld [vmem:[#allocation5 + $0xe5c] sm:$0xf]  ;;  %v8721_v32 = vor.u32 %v11005_v24, %v8718_v26  ;;  %4173 = vmatpush.bf16.msrb.mxu1 %v8465_v31  ;;  %v9508_v24 = vld [vmem:[#allocation8 + $0x2a0] sm:$0xf]  ;;  %v11208_v26 = vld [vmem:[#allocation8 + $0x2ac] sm:$0xf0] }
 0x33d   :  { %v8974_v63 = vld [vmem:[#allocation5 + $0xe78] sm:$0xf0]  ;;  %v9236_v31 = vld [vmem:[#allocation8 + $0x80] sm:$0xf]  ;;  %v11128_v20 = vld [vmem:[#allocation8 + $0x2c] sm:$0xf0] }
 0x33e   :  { %v10869_v29 = vld [vmem:[#allocation5 + $0x81c] sm:$0xf]  ;;  %v8977_v36 = vor.u32 %v11069_v27, %v8974_v63  ;;  %4186 = vmatpush.bf16.msrb.mxu2 %v8721_v32  ;;  %v9636_v27 = vld [vmem:[#allocation8 + $0x3a0] sm:$0xf]  ;;  %v11240_v63 = vld [vmem:[#allocation8 + $0x3ac] sm:$0xf0] }
 0x33f   :  { %v8174_v30 = vld [vmem:[#allocation5 + $0x838] sm:$0xf0]  ;;  %v9364_v32 = vld [vmem:[#allocation8 + $0x180] sm:$0xf] }
 0x340   :  { %v10933_v8 = vld [vmem:[#allocation5 + $0xa1c] sm:$0xf]  ;;  %v8177_v43 = vor.u32 %v10869_v29, %v8174_v30  ;;  %4199 = vmatpush.bf16.msrb.mxu3 %v8977_v36  ;;  %v9381_v29 = vor.u32 %v11176_v23, %v9380_v21  ;;  %v9509_v30 = vor.u32 %v11208_v26, %v9508_v24  ;;  %v3970_v21 = vpop.f32.mrf.mxu1  ;;  %v11160_v23 = vld [vmem:[#allocation8 + $0x12c] sm:$0xf0]  ;;  %v9444_v24 = vld [vmem:[#allocation8 + $0x220] sm:$0xf] }
 0x341   :  { %v8430_v33 = vld [vmem:[#allocation5 + $0xa38] sm:$0xf0]  ;;  %v11192_v26 = vld [vmem:[#allocation8 + $0x22c] sm:$0xf0]  ;;  %v9892_v21 = vld [vmem:[#allocation8 + $0x5a0] sm:$0xf] }
 0x342   :  { %v10997_v47 = vld [vmem:[#allocation5 + $0xc1c] sm:$0xf]  ;;  %v8433_v51 = vor.u32 %v10933_v8, %v8430_v33  ;;  %4161 = vmatpush.bf16.msrb.mxu0 %v8177_v43  ;;  %v9637_v8 = vor.u32 %v11240_v63, %v9636_v27  ;;  %v11172_v33 = vld [vmem:[#allocation8 + $0x18c] sm:$0xf0]  ;;  %v803_v27 = vperm.slane %v12161_v19, 5  ;;  %v3996_v19 = vpop.f32.mrf.mxu3 }
 0x343   :  { %v8686_v7 = vld [vmem:[#allocation5 + $0xc38] sm:$0xf0]  ;;  %v11168_v43 = vld [vmem:[#allocation8 + $0x16c] sm:$0xf0]  ;;  %v9572_v63 = vld [vmem:[#allocation8 + $0x320] sm:$0xf] }
 0x344   :  { %v11061_v9 = vld [vmem:[#allocation5 + $0xe1c] sm:$0xf]  ;;  %v8689_v53 = vor.u32 %v10997_v47, %v8686_v7  ;;  %4174 = vmatpush.bf16.msrb.mxu1 %v8433_v51  ;;  %v9492_v47 = vld [vmem:[#allocation8 + $0x280] sm:$0xf]  ;;  %v12189_v7 = vpop.f32.mrf.mxu0  ;;  %v11232_v51 = vld [vmem:[#allocation8 + $0x36c] sm:$0xf0]  ;;  %v9349_v54 = vor.u32 %v11168_v43, %v9348_v39 }
 0x345   :  { %v8942_v15 = vld [vmem:[#allocation5 + $0xe38] sm:$0xf0]  ;;  %4162 = vmatmul.bf16.vlgmr.msrb.gmra.mxu0 %v12079_v37  ;;  %v11140_v37 = vld [vmem:[#allocation8 + $0x8c] sm:$0xf0]  ;;  %v9605_v62 = vor.u32 %v11232_v51, %v9604_v50  ;;  %v9924_v39 = vld [vmem:[#allocation8 + $0x5e0] sm:$0xf] }
 0x346   :  { %v8945_v57 = vor.u32 %v11061_v9, %v8942_v15  ;;  %4187 = vmatpush.bf16.msrb.mxu2 %v8689_v53  ;;  %5768 = vmatpush.bf16.msra.mxu0 %v9285_v58  ;;  %v9237_v36 = vor.u32 %v11140_v37, %v9236_v31  ;;  %v9220_v15 = vld [vmem:[#allocation8 + $0x60] sm:$0xf]  ;;  %v11132_v58 = vld [vmem:[#allocation8 + $0x4c] sm:$0xf0]  ;;  %v9317_v37 = vor.u32 %v11160_v23, %v9316_v6  ;;  %v4206_v50 = vmax.f32 %v12111_v48, 0.0 }
 0x347   :  { %4175 = vmatmul.bf16.vlgmr.msrb.gmra.mxu1 %v12083_v40  ;;  %v11204_v40 = vld [vmem:[#allocation8 + $0x28c] sm:$0xf0]  ;;  %v9221_v53 = vor.u32 %v11136_v25, %v9220_v15  ;;  %v9796_v15 = vld [vmem:[#allocation8 + $0x4e0] sm:$0xf]  ;;  %v4207_v51 = vmax.f32 %v12125_v45, 0.0 }
 0x348   :  { %4200 = vmatpush.bf16.msrb.mxu3 %v8945_v57  ;;  %5781 = vmatpush.bf16.msra.mxu1 %v9413_v60  ;;  %v9493_v9 = vor.u32 %v11204_v40, %v9492_v47  ;;  %v9204_v57 = vld [vmem:[#allocation8 + $0x40] sm:$0xf]  ;;  %v11124_v31 = vld [vmem:[#allocation8 + $0xc] sm:$0xf0] }
 0x349   :  { %4188 = vmatmul.bf16.vlgmr.msrb.gmra.mxu2 %v12077_v34  ;;  %v11236_v34 = vld [vmem:[#allocation8 + $0x38c] sm:$0xf0]  ;;  %v9332_v60 = vld [vmem:[#allocation8 + $0x140] sm:$0xf]  ;;  %v9205_v12 = vor.u32 %v11132_v58, %v9204_v57 }
 0x34a   :  { %5794 = vmatpush.bf16.msra.mxu2 %v9541_v61  ;;  %5769 = vmatpush.bf16.msra.mxu0 %v9269_v16  ;;  %v9621_v42 = vor.u32 %v11236_v34, %v9620_v35  ;;  %v12193_v61 = vpop.f32.mrf.mxu2  ;;  %v9333_v16 = vor.u32 %v11164_v0, %v9332_v60  ;;  %v9428_v47 = vld [vmem:[#allocation8 + $0x200] sm:$0xf]  ;;  %v11188_v34 = vld [vmem:[#allocation8 + $0x20c] sm:$0xf0]  ;;  %v10053_v0 = vor.u32 %v11344_v46, %v10052_v56 }
 0x34b   :  { %4201 = vmatmul.bf16.vlgmr.msrb.gmra.mxu3 %v12081_v38  ;;  %v9365_v38 = vor.u32 %v11172_v33, %v9364_v32  ;;  %v9445_v32 = vor.u32 %v11192_v26, %v9444_v24  ;;  %v11156_v33 = vld [vmem:[#allocation8 + $0x10c] sm:$0xf0]  ;;  %v9908_v48 = vld [vmem:[#allocation8 + $0x5c0] sm:$0xf] }
 0x34c   :  { %5807 = vmatpush.bf16.msra.mxu3 %v9669_v3  ;;  %5782 = vmatpush.bf16.msra.mxu1 %v9397_v17  ;;  %v11196_v3 = vld [vmem:[#allocation8 + $0x24c] sm:$0xf0]  ;;  %v3957_v14 = vpop.f32.mrf.mxu0  ;;  %v10020_v23 = vld [vmem:[#allocation8 + $0x6a0] sm:$0xf] }
 0x34d   :  { %v9461_v17 = vor.u32 %v11196_v3, %v9460_v1  ;;  %v11280_v25 = vld [vmem:[#allocation8 + $0x4ec] sm:$0xf0]  ;;  %v9780_v1 = vld [vmem:[#allocation8 + $0x4c0] sm:$0xf]  ;;  %v12206_v14 = vpack.c.bf16 %v4207_v51, %v4207_v51 }
 0x34e   :  { %5795 = vmatpush.bf16.msra.mxu2 %v9525_v18  ;;  %5770 = vmatpush.bf16.msra.mxu0 %v9253_v28  ;;  %v9188_v18 = vld [vmem:[#allocation8 + $0x20] sm:$0xf]  ;;  %v11224_v28 = vld [vmem:[#allocation8 + $0x32c] sm:$0xf0]  ;;  %v9797_v58 = vor.u32 %v11280_v25, %v9796_v15 }
 0x34f   :  { %v9573_v35 = vor.u32 %v11224_v28, %v9572_v63  ;;  %v11312_v43 = vld [vmem:[#allocation8 + $0x5ec] sm:$0xf0]  ;;  %v9748_v28 = vld [vmem:[#allocation8 + $0x480] sm:$0xf] }
 0x350   :  { %5808 = vmatpush.bf16.msra.mxu3 %v9653_v22  ;;  %5783 = vmatpush.bf16.msra.mxu1 %v9381_v29  ;;  %v9589_v22 = vor.u32 %v11228_v11, %v9588_v10  ;;  %v9189_v29 = vor.u32 %v11128_v20, %v9188_v18  ;;  %v11276_v3 = vld [vmem:[#allocation8 + $0x4cc] sm:$0xf0]  ;;  %v10036_v10 = vld [vmem:[#allocation8 + $0x6c0] sm:$0xf] }
 0x351   :  { %v11308_v45 = vld [vmem:[#allocation8 + $0x5cc] sm:$0xf0]  ;;  %v9764_v20 = vld [vmem:[#allocation8 + $0x4a0] sm:$0xf] }
 0x352   :  { %5796 = vmatpush.bf16.msra.mxu2 %v9509_v30  ;;  %5771 = vmatpush.bf16.msra.mxu0 %v9237_v36  ;;  %v9172_v30 = vld [vmem:[#allocation8] sm:$0xf]  ;;  %v3983_v40 = vpop.f32.mrf.mxu2  ;;  %v11340_v11 = vld [vmem:[#allocation8 + $0x6cc] sm:$0xf0] }
 0x353   :  { %v9556_v36 = vld [vmem:[#allocation8 + $0x300] sm:$0xf]  ;;  %v10037_v18 = vor.u32 %v11340_v11, %v10036_v10  ;;  %v11272_v6 = vld [vmem:[#allocation8 + $0x4ac] sm:$0xf0]  ;;  %v12229_v11 = vld [vmem:[#allocation7] sm:$0xff] }
 0x354   :  { %5809 = vmatpush.bf16.msra.mxu3 %v9637_v8  ;;  %5784 = vmatpush.bf16.msra.mxu1 %v9365_v38  ;;  %v9300_v8 = vld [vmem:[#allocation8 + $0x100] sm:$0xf]  ;;  %v11220_v38 = vld [vmem:[#allocation8 + $0x30c] sm:$0xf0] }
 0x355   :  { %v9557_v57 = vor.u32 %v11220_v38, %v9556_v36  ;;  %v11336_v24 = vld [vmem:[#allocation8 + $0x6ac] sm:$0xf0]  ;;  %v9860_v36 = vld [vmem:[#allocation8 + $0x560] sm:$0xf]  ;;  %v12221_v38 = vpop.f32.mrf.mxu1 }
 0x356   :  { %5797 = vmatpush.bf16.msra.mxu2 %v9493_v9  ;;  %5772 = vmatpush.bf16.msra.mxu0 %v9221_v53  ;;  %v3904_v9 = vadd.f32 %v12177_v49, %v803_v27  ;;  %v9301_v53 = vor.u32 %v11156_v33, %v9300_v8  ;;  %v4209_v49 = vmax.f32 %v12155_v59, 0.0  ;;  %v10021_v63 = vor.u32 %v11336_v24, %v10020_v23  ;;  %v12218_v33 = vpop.f32.mrf.mxu0  ;;  %v11296_v19 = vld [vmem:[#allocation8 + $0x56c] sm:$0xf0]  ;;  %v9844_v46 = vld [vmem:[#allocation8 + $0x540] sm:$0xf] }
 0x357   :  { %v11328_v15 = vld [vmem:[#allocation8 + $0x66c] sm:$0xf0]  ;;  %v9940_v23 = vld [vmem:[#allocation8 + $0x600] sm:$0xf] }
 0x358   :  { %5810 = vmatpush.bf16.msra.mxu3 %v9621_v42  ;;  %5785 = vmatpush.bf16.msra.mxu1 %v9349_v54  ;;  %v9173_v42 = vor.u32 %v11124_v31, %v9172_v30  ;;  %v9429_v54 = vor.u32 %v11188_v34, %v9428_v47  ;;  %v3917_v60 = vadd.f32 %v12179_v44, %v3904_v9  ;;  %v9876_v30 = vld [vmem:[#allocation8 + $0x580] sm:$0xf]  ;;  %v11300_v31 = vld [vmem:[#allocation8 + $0x58c] sm:$0xf0] }
 0x359   :  { %v12210_v59 = vpack.c.bf16 %v4209_v49, %v4209_v49  ;;  %v9781_v44 = vor.u32 %v11276_v3, %v9780_v1  ;;  %v9877_v40 = vor.u32 %v11300_v31, %v9876_v30  ;;  %v11264_v34 = vld [vmem:[#allocation8 + $0x46c] sm:$0xf0]  ;;  %v9988_v9 = vld [vmem:[#allocation8 + $0x660] sm:$0xf]  ;;  %v9286_v30 = vld [vmem:[#allocation8 + $0xf0] sm:$0xf0] }
 0x35a   :  { %5798 = vmatpush.bf16.msra.mxu2 %v9477_v55  ;;  %5773 = vmatpush.bf16.msra.mxu0 %v9205_v12  ;;  %v4208_v55 = vmax.f32 %v12141_v52, 0.0  ;;  %v12204_v12 = vpack.c.bf16 %v4206_v50, %v4206_v50  ;;  %v11260_v56 = vld [vmem:[#allocation8 + $0x44c] sm:$0xf0]  ;;  %v12224_v50 = vpop.f32.mrf.mxu2  ;;  %v9828_v1 = vld [vmem:[#allocation8 + $0x520] sm:$0xf] }
 0x35b   :  { %v11292_v51 = vld [vmem:[#allocation8 + $0x54c] sm:$0xf0]  ;;  %v11182_v31 = vld [vmem:[#allocation8 + $0x1e4] sm:$0xf] }
 0x35c   :  { %5811 = vmatpush.bf16.msra.mxu3 %v9605_v62  ;;  %5786 = vmatpush.bf16.msra.mxu1 %v9333_v16  ;;  %v9925_v62 = vor.u32 %v11312_v43, %v9924_v39  ;;  %v12208_v52 = vpack.c.bf16 %v4208_v55, %v4208_v55  ;;  %v3930_v16 = vadd.f32 %v12181_v2, %v3917_v60  ;;  %v9716_v43 = vld [vmem:[#allocation8 + $0x440] sm:$0xf]  ;;  %v12226_v55 = vpop.f32.mrf.mxu3  ;;  %v11320_v10 = vld [vmem:[#allocation8 + $0x62c] sm:$0xf0] }
 0x35d   :  { %v9765_v2 = vor.u32 %v11272_v6, %v9764_v20  ;;  %v9717_v49 = vor.u32 %v11260_v56, %v9716_v43  ;;  %v4022_v3 = vpop.f32.mrf.mxu1  ;;  %v11316_v24 = vld [vmem:[#allocation8 + $0x60c] sm:$0xf0]  ;;  %v11210_v56 = vld [vmem:[#allocation8 + $0x2c4] sm:$0xf] }
 0x35e   :  { %5799 = vmatpush.bf16.msra.mxu2 %v9461_v17  ;;  %5774 = vmatpush.bf16.msra.mxu0 %v9189_v29  ;;  %v9909_v17 = vor.u32 %v11308_v45, %v9908_v48  ;;  %v3943_v26 = vadd.f32 %v12183_v5, %v3930_v16  ;;  %v11268_v29 = vld [vmem:[#allocation8 + $0x48c] sm:$0xf0]  ;;  %v9956_v45 = vld [vmem:[#allocation8 + $0x620] sm:$0xf]  ;;  %v11206_v3 = vld [vmem:[#allocation8 + $0x2a4] sm:$0xf] }
 0x35f   :  { %v9749_v8 = vor.u32 %v11268_v29, %v9748_v28  ;;  %v11288_v48 = vld [vmem:[#allocation8 + $0x52c] sm:$0xf0] }
 0x360   :  { %5812 = vmatpush.bf16.msra.mxu3 %v9589_v22  ;;  %5787 = vmatpush.bf16.msra.mxu1 %v9317_v37  ;;  %v11304_v22 = vld [vmem:[#allocation8 + $0x5ac] sm:$0xf0]  ;;  %v10004_v37 = vld [vmem:[#allocation8 + $0x680] sm:$0xf]  ;;  %v3956_v47 = vadd.f32 %v12189_v7, %v3943_v26  ;;  %v9989_v7 = vor.u32 %v11328_v15, %v9988_v9  ;;  %v9829_v6 = vor.u32 %v11288_v48, %v9828_v1  ;;  %v11150_v26 = vld [vmem:[#allocation8 + $0xe4] sm:$0xf] }
 0x361   :  { %v9893_v27 = vor.u32 %v11304_v22, %v9892_v21  ;;  %v9957_v21 = vor.u32 %v11320_v10, %v9956_v45  ;;  %v11284_v22 = vld [vmem:[#allocation8 + $0x50c] sm:$0xf0]  ;;  %v11146_v9 = vld [vmem:[#allocation8 + $0xc4] sm:$0xf]  ;;  %v9270_v15 = vld [vmem:[#allocation8 + $0xd0] sm:$0xf0] }
 0x362   :  { %5800 = vmatpush.bf16.msra.mxu2 %v9445_v32  ;;  %5775 = vmatpush.bf16.msra.mxu0 %v9173_v42  ;;  %v11332_v32 = vld [vmem:[#allocation8 + $0x68c] sm:$0xf0]  ;;  %v3969_v39 = vadd.f32 %v12191_v41, %v3956_v47  ;;  %v9861_v42 = vor.u32 %v11296_v19, %v9860_v36  ;;  %v9845_v41 = vor.u32 %v11292_v51, %v9844_v46  ;;  %v9542_v47 = vld [vmem:[#allocation8 + $0x2f0] sm:$0xf0] }
 0x363   :  { %v10005_v5 = vor.u32 %v11332_v32, %v10004_v37  ;;  %v11376_v28 = vld [vmem:[#allocation8 + $0x7ec] sm:$0xf0]  ;;  %v9414_v37 = vld [vmem:[#allocation8 + $0x1f0] sm:$0xf0]  ;;  %v9289_v36 = vor.u32 %v11150_v26, %v9286_v30 }
 0x364   :  { %5813 = vmatpush.bf16.msra.mxu3 %v9573_v35  ;;  %5788 = vmatpush.bf16.msra.mxu1 %v9301_v53  ;;  %v9732_v35 = vld [vmem:[#allocation8 + $0x460] sm:$0xf]  ;;  %v9417_v19 = vor.u32 %v11182_v31, %v9414_v37  ;;  %v11372_v43 = vld [vmem:[#allocation8 + $0x7cc] sm:$0xf0]  ;;  %v9510_v48 = vld [vmem:[#allocation8 + $0x2b0] sm:$0xf0] }
 0x365   :  { %5776 = vmatmul.bf16.vlgmr.msra.gmra.mxu0 %v12204_v12  ;;  %v9733_v25 = vor.u32 %v11264_v34, %v9732_v35  ;;  %v9972_v53 = vld [vmem:[#allocation8 + $0x640] sm:$0xf]  ;;  %v9941_v34 = vor.u32 %v11316_v24, %v9940_v23  ;;  %v11368_v1 = vld [vmem:[#allocation8 + $0x7ac] sm:$0xf0]  ;;  %v9494_v23 = vld [vmem:[#allocation8 + $0x290] sm:$0xf0]  ;;  %v4072_v31 = vpop.f32.mrf.mxu1 }
 0x366   :  { %5801 = vmatpush.bf16.msra.mxu2 %v9429_v54  ;;  %5820 = vmatpush.bf16.msrb.mxu0 %v9797_v58  ;;  %v11324_v54 = vld [vmem:[#allocation8 + $0x64c] sm:$0xf0]  ;;  %v3982_v58 = vadd.f32 %v12193_v61, %v3969_v39  ;;  %v9812_v61 = vld [vmem:[#allocation8 + $0x500] sm:$0xf]  ;;  %v9222_v37 = vld [vmem:[#allocation8 + $0x70] sm:$0xf0] }
 0x367   :  { %5789 = vmatmul.bf16.vlgmr.msra.gmra.mxu1 %v12206_v14  ;;  %v9973_v60 = vor.u32 %v11324_v54, %v9972_v53  ;;  %v9813_v35 = vor.u32 %v11284_v22, %v9812_v61  ;;  %v9273_v54 = vor.u32 %v11146_v9, %v9270_v15  ;;  %v9513_v61 = vor.u32 %v11206_v3, %v9510_v48  ;;  %v11202_v22 = vld [vmem:[#allocation8 + $0x284] sm:$0xf]  ;;  %v11356_v9 = vld [vmem:[#allocation8 + $0x74c] sm:$0xf0]  ;;  %v9318_v3 = vld [vmem:[#allocation8 + $0x130] sm:$0xf0] }
 0x368   :  { %5814 = vmatpush.bf16.msra.mxu3 %v9557_v57  ;;  %5833 = vmatpush.bf16.msrb.mxu1 %v9925_v62  ;;  %v4009_v57 = vpop.f32.mrf.mxu0  ;;  %v9700_v62 = vld [vmem:[#allocation8 + $0x420] sm:$0xf]  ;;  %v3995_v20 = vadd.f32 %v12195_v4, %v3982_v58  ;;  %v11174_v58 = vld [vmem:[#allocation8 + $0x1a4] sm:$0xf]  ;;  %v9497_v30 = vor.u32 %v11202_v22, %v9494_v23 }
 0x369   :  { %5802 = vmatmul.bf16.vlgmr.msra.gmra.mxu2 %v12208_v52  ;;  %v11142_v57 = vld [vmem:[#allocation8 + $0xa4] sm:$0xf]  ;;  %v10068_v23 = vld [vmem:[#allocation8 + $0x700] sm:$0xf] }
 0x36a   :  { %5846 = vmatpush.bf16.msrb.mxu2 %v10053_v0  ;;  %5821 = vmatpush.bf16.msrb.mxu0 %v9781_v44  ;;  %v11256_v0 = vld [vmem:[#allocation8 + $0x42c] sm:$0xf0]  ;;  %v804_v44 = vperm.slane %v12229_v11, 6  ;;  %v11186_v22 = vld [vmem:[#allocation8 + $0x204] sm:$0xf] }
 0x36b   :  { %5815 = vmatmul.bf16.vlgmr.msra.gmra.mxu3 %v12210_v59  ;;  %v9701_v16 = vor.u32 %v11256_v0, %v9700_v62  ;;  %v9382_v62 = vld [vmem:[#allocation8 + $0x1b0] sm:$0xf0]  ;;  %v10148_v0 = vld [vmem:[#allocation8 + $0x7a0] sm:$0xf] }
 0x36c   :  { %5834 = vmatpush.bf16.msrb.mxu1 %v9909_v17  ;;  %v9684_v17 = vld [vmem:[#allocation8 + $0x400] sm:$0xf]  ;;  %v4008_v29 = vadd.f32 %v12218_v33, %v804_v44  ;;  %v11178_v33 = vld [vmem:[#allocation8 + $0x1c4] sm:$0xf]  ;;  %v10149_v45 = vor.u32 %v11368_v1, %v10148_v0  ;;  %v9385_v44 = vor.u32 %v11174_v58, %v9382_v62  ;;  %v9190_v0 = vld [vmem:[#allocation8 + $0x30] sm:$0xf0] }
 0x36d   :  { %v11158_v1 = vld [vmem:[#allocation8 + $0x124] sm:$0xf]  ;;  %v4074_v48 = vpop.f32.mrf.mxu1 }
 0x36e   :  { %5847 = vmatpush.bf16.msrb.mxu2 %v10037_v18  ;;  %5822 = vmatpush.bf16.msrb.mxu0 %v9765_v2  ;;  %v11252_v18 = vld [vmem:[#allocation8 + $0x40c] sm:$0xf0]  ;;  %v4035_v2 = vpop.f32.mrf.mxu2  ;;  %v11266_v48 = vld [vmem:[#allocation8 + $0x484] sm:$0xf] }
 0x36f   :  { %v9685_v4 = vor.u32 %v11252_v18, %v9684_v17  ;;  %v10132_v17 = vld [vmem:[#allocation8 + $0x780] sm:$0xf]  ;;  %v11364_v18 = vld [vmem:[#allocation8 + $0x78c] sm:$0xf0] }
 0x370   :  { %5835 = vmatpush.bf16.msrb.mxu1 %v9893_v27  ;;  %v4048_v27 = vpop.f32.mrf.mxu3  ;;  %v10133_v24 = vor.u32 %v11364_v18, %v10132_v17  ;;  %v11122_v17 = vld [vmem:[#allocation8 + $0x4] sm:$0xf]  ;;  %v9174_v18 = vld [vmem:[#allocation8 + $0x10] sm:$0xf0] }
 0x371   :  { %v4059_v27 = vpop.f32.mrf.mxu0 }
 0x372   :  { %5848 = vmatpush.bf16.msrb.mxu2 %v10021_v63  ;;  %5823 = vmatpush.bf16.msrb.mxu0 %v9749_v8  ;;  %v10180_v63 = vld [vmem:[#allocation8 + $0x7e0] sm:$0xf]  ;;  %v11214_v8 = vld [vmem:[#allocation8 + $0x2e4] sm:$0xf] }
 0x373   :  { %v10181_v32 = vor.u32 %v11376_v28, %v10180_v63  ;;  %v9545_v39 = vor.u32 %v11214_v8, %v9542_v47  ;;  %v11134_v63 = vld [vmem:[#allocation8 + $0x64] sm:$0xf]  ;;  %v10116_v28 = vld [vmem:[#allocation8 + $0x760] sm:$0xf]  ;;  %v9478_v47 = vld [vmem:[#allocation8 + $0x270] sm:$0xf0] }
 0x374   :  { %5836 = vmatpush.bf16.msrb.mxu1 %v9877_v40  ;;  %v4210_v40 = vmax.f32 %v12171_v13, 0.0  ;;  %v9526_v13 = vld [vmem:[#allocation8 + $0x2d0] sm:$0xf0]  ;;  %v11198_v8 = vld [vmem:[#allocation8 + $0x264] sm:$0xf] }
 0x375   :  { %5859 = vmatpush.bf16.msrb.mxu3 %v10181_v32  ;;  %v11166_v32 = vld [vmem:[#allocation8 + $0x164] sm:$0xf]  ;;  %v9481_v15 = vor.u32 %v11198_v8, %v9478_v47  ;;  %v10054_v8 = vld [vmem:[#allocation8 + $0x6f0] sm:$0xf0] }
 0x376   :  { %5849 = vmatpush.bf16.msrb.mxu2 %v10005_v5  ;;  %5824 = vmatpush.bf16.msrb.mxu0 %v9733_v25  ;;  %v4211_v5 = vmax.f32 %v3995_v20, 0.0  ;;  %v4021_v25 = vadd.f32 %v12221_v38, %v4008_v29  ;;  %v12236_v51 = vpack.c.bf16 %v4210_v40, %v4210_v40  ;;  %v9254_v38 = vld [vmem:[#allocation8 + $0xb0] sm:$0xf0]  ;;  %v11360_v29 = vld [vmem:[#allocation8 + $0x76c] sm:$0xf0] }
 0x377   :  { %v9257_v10 = vor.u32 %v11142_v57, %v9254_v38  ;;  %v9238_v20 = vld [vmem:[#allocation8 + $0x90] sm:$0xf0]  ;;  %v10117_v40 = vor.u32 %v11360_v29, %v10116_v28  ;;  %v11126_v38 = vld [vmem:[#allocation8 + $0x24] sm:$0xf] }
 0x378   :  { %5837 = vmatpush.bf16.msrb.mxu1 %v9861_v42  ;;  %v9398_v42 = vld [vmem:[#allocation8 + $0x1d0] sm:$0xf0]  ;;  %v12238_v53 = vpack.c.bf16 %v4211_v5, %v4211_v5  ;;  %v11278_v29 = vld [vmem:[#allocation8 + $0x4e4] sm:$0xf] }
 0x379   :  { %v4061_v58 = vpop.f32.mrf.mxu0  ;;  %v9670_v28 = vld [vmem:[#allocation8 + $0x3f0] sm:$0xf0] }
 0x37a   :  { %5850 = vmatpush.bf16.msrb.mxu2 %v9989_v7  ;;  %5825 = vmatpush.bf16.msrb.mxu0 %v9717_v49  ;;  %v10164_v7 = vld [vmem:[#allocation8 + $0x7c0] sm:$0xf]  ;;  %v9401_v49 = vor.u32 %v11178_v33, %v9398_v42  ;;  %v4085_v33 = vpop.f32.mrf.mxu2  ;;  %v9334_v42 = vld [vmem:[#allocation8 + $0x150] sm:$0xf0] }
 0x37b   :  { %v10165_v46 = vor.u32 %v11372_v43, %v10164_v7  ;;  %v4098_v43 = vpop.f32.mrf.mxu3  ;;  %v9894_v58 = vld [vmem:[#allocation8 + $0x5b0] sm:$0xf0] }
 0x37c   :  { %5838 = vmatpush.bf16.msrb.mxu1 %v9845_v41  ;;  %v4034_v41 = vadd.f32 %v12224_v50, %v4021_v25  ;;  %v9206_v25 = vld [vmem:[#allocation8 + $0x50] sm:$0xf0] }
 0x37d   :  { %5860 = vmatpush.bf16.msrb.mxu3 %v10165_v46 }
 0x37e   :  { %5851 = vmatpush.bf16.msrb.mxu2 %v9973_v60  ;;  %5826 = vmatpush.bf16.msrb.mxu0 %v9701_v16  ;;  %v9529_v60 = vor.u32 %v11210_v56, %v9526_v13  ;;  %v11138_v16 = vld [vmem:[#allocation8 + $0x84] sm:$0xf]  ;;  %v4047_v50 = vadd.f32 %v12226_v55, %v4034_v41  ;;  %v9462_v13 = vld [vmem:[#allocation8 + $0x250] sm:$0xf0]  ;;  %v10084_v41 = vld [vmem:[#allocation8 + $0x720] sm:$0xf] }
 0x37f   :  { %v9241_v2 = vor.u32 %v11138_v16, %v9238_v20  ;;  %v11194_v56 = vld [vmem:[#allocation8 + $0x244] sm:$0xf] }
 0x380   :  { %5839 = vmatpush.bf16.msrb.mxu1 %v9829_v6  ;;  %v11170_v6 = vld [vmem:[#allocation8 + $0x184] sm:$0xf]  ;;  %v4060_v55 = vadd.f32 %v4059_v27, %v4047_v50  ;;  %v9465_v62 = vor.u32 %v11194_v56, %v9462_v13 }
 0x381   :  { %5861 = vmatpush.bf16.msrb.mxu3 %v10149_v45  ;;  %v11154_v50 = vld [vmem:[#allocation8 + $0x104] sm:$0xf] }
 0x382   :  { %5852 = vmatpush.bf16.msrb.mxu2 %v9957_v21  ;;  %5827 = vmatpush.bf16.msrb.mxu0 %v9685_v4  ;;  %v9366_v21 = vld [vmem:[#allocation8 + $0x190] sm:$0xf0]  ;;  %v4073_v5 = vadd.f32 %v4072_v31, %v4060_v55  ;;  %v4087_v27 = vpop.f32.mrf.mxu2  ;;  %v11310_v55 = vld [vmem:[#allocation8 + $0x5e4] sm:$0xf] }
 0x383   :  { %v9369_v26 = vor.u32 %v11170_v6, %v9366_v21  ;;  %v9350_v4 = vld [vmem:[#allocation8 + $0x170] sm:$0xf0]  ;;  %v9193_v6 = vor.u32 %v11126_v38, %v9190_v0  ;;  %v9321_v21 = vor.u32 %v11158_v1, %v9318_v3  ;;  %v4100_v31 = vpop.f32.mrf.mxu3  ;;  %v11302_v38 = vld [vmem:[#allocation8 + $0x5a4] sm:$0xf] }
 0x384   :  { %5840 = vmatpush.bf16.msrb.mxu1 %v9813_v35  ;;  %v9225_v35 = vor.u32 %v11134_v63, %v9222_v37  ;;  %v4086_v7 = vadd.f32 %v4085_v33, %v4073_v5  ;;  %v11246_v63 = vld [vmem:[#allocation8 + $0x3e4] sm:$0xf]  ;;  %v9638_v0 = vld [vmem:[#allocation8 + $0x3b0] sm:$0xf0] }
 0x385   :  { %5828 = vmatmul.bf16.vlgmr.msrb.gmra.mxu0 %v12236_v51  ;;  %5862 = vmatpush.bf16.msrb.mxu3 %v10133_v24  ;;  %v11348_v24 = vld [vmem:[#allocation8 + $0x70c] sm:$0xf0]  ;;  %v9673_v47 = vor.u32 %v11246_v63, %v9670_v28  ;;  %v11306_v33 = vld [vmem:[#allocation8 + $0x5c4] sm:$0xf]  ;;  %v9862_v63 = vld [vmem:[#allocation8 + $0x570] sm:$0xf0] }
 0x386   :  { %5853 = vmatpush.bf16.msrb.mxu2 %v9941_v34  ;;  %5872 = vmatpush.bf16.msra.mxu0 %v9289_v36  ;;  %v9353_v34 = vor.u32 %v11166_v32, %v9350_v4  ;;  %v11130_v36 = vld [vmem:[#allocation8 + $0x44] sm:$0xf]  ;;  %v10069_v37 = vor.u32 %v11348_v24, %v10068_v23  ;;  %v9926_v32 = vld [vmem:[#allocation8 + $0x5f0] sm:$0xf0] }
 0x387   :  { %5841 = vmatmul.bf16.vlgmr.msrb.gmra.mxu1 %v12238_v53  ;;  %v11342_v4 = vld [vmem:[#allocation8 + $0x6e4] sm:$0xf]  ;;  %v9734_v24 = vld [vmem:[#allocation8 + $0x470] sm:$0xf0] }
 0x388   :  { %5885 = vmatpush.bf16.msra.mxu1 %v9417_v19  ;;  %v10100_v19 = vld [vmem:[#allocation8 + $0x740] sm:$0xf]  ;;  %v11262_v23 = vld [vmem:[#allocation8 + $0x464] sm:$0xf] }
 0x389   :  { %5863 = vmatpush.bf16.msrb.mxu3 %v10117_v40  ;;  %v10101_v46 = vor.u32 %v11356_v9, %v10100_v19  ;;  %v9177_v40 = vor.u32 %v11122_v17, %v9174_v18  ;;  %v9782_v19 = vld [vmem:[#allocation8 + $0x4d0] sm:$0xf0]  ;;  %v9929_v9 = vor.u32 %v11310_v55, %v9926_v32  ;;  %v11234_v17 = vld [vmem:[#allocation8 + $0x384] sm:$0xf]  ;;  %v12252_v55 = vpop.f32.mrf.mxu1 }
 0x38a   :  { %5898 = vmatpush.bf16.msra.mxu2 %v9545_v39  ;;  %5873 = vmatpush.bf16.msra.mxu0 %v9273_v54  ;;  %v11162_v39 = vld [vmem:[#allocation8 + $0x144] sm:$0xf]  ;;  %v4099_v54 = vadd.f32 %v4098_v43, %v4086_v7  ;;  %v10038_v43 = vld [vmem:[#allocation8 + $0x6d0] sm:$0xf0] }
 0x38b   :  { %v9337_v57 = vor.u32 %v11162_v39, %v9334_v42  ;;  %v9654_v39 = vld [vmem:[#allocation8 + $0x3d0] sm:$0xf0]  ;;  %v11338_v7 = vld [vmem:[#allocation8 + $0x6c4] sm:$0xf] }
 0x38c   :  { %5886 = vmatpush.bf16.msra.mxu1 %v9401_v49  ;;  %v9209_v49 = vor.u32 %v11130_v36, %v9206_v25  ;;  %v4212_v45 = vmax.f32 %v4099_v54, 0.0  ;;  %v11274_v36 = vld [vmem:[#allocation8 + $0x4c4] sm:$0xf]  ;;  %v9910_v42 = vld [vmem:[#allocation8 + $0x5d0] sm:$0xf0] }
 0x38d   :  { %5864 = vmatpush.bf16.msrb.mxu3 %v10101_v46  ;;  %v11242_v25 = vld [vmem:[#allocation8 + $0x3c4] sm:$0xf]  ;;  %v9785_v13 = vor.u32 %v11274_v36, %v9782_v19  ;;  %v9766_v54 = vld [vmem:[#allocation8 + $0x4b0] sm:$0xf0] }
 0x38e   :  { %5899 = vmatpush.bf16.msra.mxu2 %v9529_v60  ;;  %5874 = vmatpush.bf16.msra.mxu0 %v9257_v10  ;;  %v11352_v60 = vld [vmem:[#allocation8 + $0x72c] sm:$0xf0]  ;;  %v11190_v10 = vld [vmem:[#allocation8 + $0x224] sm:$0xf]  ;;  %v12244_v20 = vpack.c.bf16 %v4212_v45, %v4212_v45  ;;  %v9657_v56 = vor.u32 %v11242_v25, %v9654_v39  ;;  %v9750_v45 = vld [vmem:[#allocation8 + $0x490] sm:$0xf0]  ;;  %v12256_v25 = vpop.f32.mrf.mxu3 }
 0x38f   :  { %v10085_v16 = vor.u32 %v11352_v60, %v10084_v41  ;;  %v11270_v46 = vld [vmem:[#allocation8 + $0x4a4] sm:$0xf]  ;;  %v10022_v60 = vld [vmem:[#allocation8 + $0x6b0] sm:$0xf0] }
 0x390   :  { %5887 = vmatpush.bf16.msra.mxu1 %v9385_v44  ;;  %v9446_v44 = vld [vmem:[#allocation8 + $0x230] sm:$0xf0]  ;;  %5854 = vmatmul.bf16.vlgmr.msrb.gmra.mxu2 %v12244_v20  ;;  %v11334_v41 = vld [vmem:[#allocation8 + $0x6a4] sm:$0xf]  ;;  %v9769_v3 = vor.u32 %v11270_v46, %v9766_v54 }
 0x391   :  { %5865 = vmatpush.bf16.msrb.mxu3 %v10085_v16  ;;  %v11298_v16 = vld [vmem:[#allocation8 + $0x584] sm:$0xf]  ;;  %v9622_v18 = vld [vmem:[#allocation8 + $0x390] sm:$0xf0] }
 0x392   :  { %5900 = vmatpush.bf16.msra.mxu2 %v9513_v61  ;;  %5875 = vmatpush.bf16.msra.mxu0 %v9241_v2  ;;  %v9302_v61 = vld [vmem:[#allocation8 + $0x110] sm:$0xf0]  ;;  %v9449_v2 = vor.u32 %v11190_v10, %v9446_v44  ;;  %v9897_v10 = vor.u32 %v11302_v38, %v9894_v58  ;;  %v10025_v44 = vor.u32 %v11334_v41, %v10022_v60  ;;  %v11294_v27 = vld [vmem:[#allocation8 + $0x564] sm:$0xf]  ;;  %v4126_v58 = vpop.f32.mrf.mxu1 }
 0x393   :  { %v9305_v5 = vor.u32 %v11154_v50, %v9302_v61  ;;  %v9878_v50 = vld [vmem:[#allocation8 + $0x590] sm:$0xf0]  ;;  %v11330_v61 = vld [vmem:[#allocation8 + $0x684] sm:$0xf]  ;;  %v11173_v58 = vld [vmem:[#allocation8 + $0x194] sm:$0xf0] }
 0x394   :  { %5888 = vmatpush.bf16.msra.mxu1 %v9369_v26  ;;  %v9430_v26 = vld [vmem:[#allocation8 + $0x210] sm:$0xf0]  ;;  %v11326_v28 = vld [vmem:[#allocation8 + $0x664] sm:$0xf] }
 0x395   :  { %5866 = vmatpush.bf16.msrb.mxu3 %v10069_v37  ;;  %v11230_v31 = vld [vmem:[#allocation8 + $0x364] sm:$0xf]  ;;  %v9606_v37 = vld [vmem:[#allocation8 + $0x370] sm:$0xf0] }
 0x396   :  { %5901 = vmatpush.bf16.msra.mxu2 %v9497_v30  ;;  %5876 = vmatpush.bf16.msra.mxu0 %v9225_v35  ;;  %v9798_v30 = vld [vmem:[#allocation8 + $0x4f0] sm:$0xf0]  ;;  %v9433_v35 = vor.u32 %v11186_v22, %v9430_v26  ;;  %v9753_v22 = vor.u32 %v11266_v48, %v9750_v45  ;;  %v9609_v32 = vor.u32 %v11230_v31, %v9606_v37  ;;  %v11286_v46 = vld [vmem:[#allocation8 + $0x524] sm:$0xf] }
 0x397   :  { %v9590_v36 = vld [vmem:[#allocation8 + $0x350] sm:$0xf0]  ;;  %v11222_v41 = vld [vmem:[#allocation8 + $0x324] sm:$0xf] }
 0x398   :  { %5889 = vmatpush.bf16.msra.mxu1 %v9353_v34  ;;  %v9801_v34 = vor.u32 %v11278_v29, %v9798_v30  ;;  %v12249_v29 = vpop.f32.mrf.mxu0  ;;  %v9990_v30 = vld [vmem:[#allocation8 + $0x670] sm:$0xf0]  ;;  %v11282_v45 = vld [vmem:[#allocation8 + $0x504] sm:$0xf] }
 0x399   :  { %5911 = vmatpush.bf16.msra.mxu3 %v9673_v47  ;;  %v9718_v47 = vld [vmem:[#allocation8 + $0x450] sm:$0xf0] }
 0x39a   :  { %5902 = vmatpush.bf16.msra.mxu2 %v9481_v15  ;;  %5877 = vmatpush.bf16.msra.mxu0 %v9209_v49  ;;  %v10057_v15 = vor.u32 %v11342_v4, %v10054_v8  ;;  %v9913_v49 = vor.u32 %v11306_v33, %v9910_v42  ;;  %v9737_v4 = vor.u32 %v11262_v23, %v9734_v24  ;;  %v11258_v8 = vld [vmem:[#allocation8 + $0x444] sm:$0xf]  ;;  %v9846_v19 = vld [vmem:[#allocation8 + $0x550] sm:$0xf0]  ;;  %v12254_v33 = vpop.f32.mrf.mxu2  ;;  %v11185_v23 = vld [vmem:[#allocation8 + $0x1f4] sm:$0xf0]  ;;  %v4152_v24 = vpop.f32.mrf.mxu3 }
 0x39b   :  { %v9721_v42 = vor.u32 %v11258_v8, %v9718_v47  ;;  %v9830_v54 = vld [vmem:[#allocation8 + $0x530] sm:$0xf0]  ;;  %v11149_v47 = vld [vmem:[#allocation8 + $0xd4] sm:$0xf0] }
 0x39c   :  { %5890 = vmatpush.bf16.msra.mxu1 %v9337_v57  ;;  %v10041_v57 = vor.u32 %v11338_v7, %v10038_v43  ;;  %v11254_v7 = vld [vmem:[#allocation8 + $0x424] sm:$0xf]  ;;  %v9702_v43 = vld [vmem:[#allocation8 + $0x430] sm:$0xf0] }
 0x39d   :  { %5912 = vmatpush.bf16.msra.mxu3 %v9657_v56  ;;  %v9958_v38 = vld [vmem:[#allocation8 + $0x630] sm:$0xf0] }
 0x39e   :  { %5903 = vmatpush.bf16.msra.mxu2 %v9465_v62  ;;  %5878 = vmatpush.bf16.msra.mxu0 %v9193_v6  ;;  %v11238_v62 = vld [vmem:[#allocation8 + $0x3a4] sm:$0xf]  ;;  %v10006_v6 = vld [vmem:[#allocation8 + $0x690] sm:$0xf0] }
 0x39f   :  { %v9641_v1 = vor.u32 %v11238_v62, %v9638_v0  ;;  %v10009_v26 = vor.u32 %v11330_v61, %v10006_v6  ;;  %v9574_v60 = vld [vmem:[#allocation8 + $0x330] sm:$0xf0]  ;;  %v805_v62 = vperm.slane %v12229_v11, 7  ;;  %v11218_v6 = vld [vmem:[#allocation8 + $0x304] sm:$0xf] }
 0x3a0   :  { %5891 = vmatpush.bf16.msra.mxu1 %v9321_v21  ;;  %v9625_v21 = vor.u32 %v11234_v17, %v9622_v18  ;;  %v9577_v0 = vor.u32 %v11222_v41, %v9574_v60  ;;  %v9686_v48 = vld [vmem:[#allocation8 + $0x410] sm:$0xf0]  ;;  %v11314_v17 = vld [vmem:[#allocation8 + $0x604] sm:$0xf]  ;;  %v9420_v11 = vld [vmem:[#allocation8 + $0x1e8] sm:$0xf] }
 0x3a1   :  { %5913 = vmatpush.bf16.msra.mxu3 %v9641_v1  ;;  %v9705_v1 = vor.u32 %v11254_v7, %v9702_v43  ;;  %v9942_v18 = vld [vmem:[#allocation8 + $0x610] sm:$0xf0]  ;;  %v4112_v31 = vadd.f32 %v12249_v29, %v805_v62  ;;  %v9260_v29 = vld [vmem:[#allocation8 + $0xa8] sm:$0xf]  ;;  %v11177_v7 = vld [vmem:[#allocation8 + $0x1b4] sm:$0xf0] }
 0x3a2   :  { %5904 = vmatpush.bf16.msra.mxu2 %v9449_v2  ;;  %5879 = vmatpush.bf16.msra.mxu0 %v9177_v40  ;;  %v9881_v2 = vor.u32 %v11298_v16, %v9878_v50  ;;  %v9865_v40 = vor.u32 %v11294_v27, %v9862_v63  ;;  %v9814_v16 = vld [vmem:[#allocation8 + $0x510] sm:$0xf0]  ;;  %v9292_v50 = vld [vmem:[#allocation8 + $0xe8] sm:$0xf]  ;;  %v4139_v61 = vpop.f32.mrf.mxu2  ;;  %v11217_v63 = vld [vmem:[#allocation8 + $0x2f4] sm:$0xf0] }
 0x3a3   :  { %v9548_v27 = vld [vmem:[#allocation8 + $0x2e8] sm:$0xf]  ;;  %v11205_v60 = vld [vmem:[#allocation8 + $0x294] sm:$0xf0] }
 0x3a4   :  { %5892 = vmatpush.bf16.msra.mxu1 %v9305_v5  ;;  %v9993_v5 = vor.u32 %v11326_v28, %v9990_v30  ;;  %v9817_v28 = vor.u32 %v11282_v45, %v9814_v16  ;;  %v9945_v30 = vor.u32 %v11314_v17, %v9942_v18  ;;  %v9549_v8 = vor.u32 %v11217_v63, %v9548_v27  ;;  %v9516_v43 = vld [vmem:[#allocation8 + $0x2a8] sm:$0xf]  ;;  %v11169_v16 = vld [vmem:[#allocation8 + $0x174] sm:$0xf0] }
 0x3a5   :  { %5880 = vmatmul.bf16.vlgmr.msra.gmra.mxu0 %v12204_v12  ;;  %5914 = vmatpush.bf16.msra.mxu3 %v9625_v21  ;;  %v9558_v21 = vld [vmem:[#allocation8 + $0x310] sm:$0xf0]  ;;  %v9500_v41 = vld [vmem:[#allocation8 + $0x288] sm:$0xf] }
 0x3a6   :  { %5905 = vmatpush.bf16.msra.mxu2 %v9433_v35  ;;  %5924 = vmatpush.bf16.msrb.mxu0 %v9801_v34  ;;  %v11290_v35 = vld [vmem:[#allocation8 + $0x544] sm:$0xf]  ;;  %v9501_v45 = vor.u32 %v11205_v60, %v9500_v41  ;;  %v9484_v18 = vld [vmem:[#allocation8 + $0x268] sm:$0xf]  ;;  %v11313_v60 = vld [vmem:[#allocation8 + $0x5f4] sm:$0xf0] }
 0x3a7   :  { %5893 = vmatmul.bf16.vlgmr.msra.gmra.mxu1 %v12206_v14  ;;  %v11226_v34 = vld [vmem:[#allocation8 + $0x344] sm:$0xf]  ;;  %v9849_v56 = vor.u32 %v11290_v35, %v9846_v19  ;;  %v9532_v35 = vld [vmem:[#allocation8 + $0x2c8] sm:$0xf] }
 0x3a8   :  { %5937 = vmatpush.bf16.msrb.mxu1 %v9929_v9  ;;  %v11322_v9 = vld [vmem:[#allocation8 + $0x644] sm:$0xf]  ;;  %v9593_v39 = vor.u32 %v11226_v34, %v9590_v36  ;;  %v11213_v34 = vld [vmem:[#allocation8 + $0x2d4] sm:$0xf0]  ;;  %v4125_v36 = vadd.f32 %v12252_v55, %v4112_v31 }
 0x3a9   :  { %5906 = vmatmul.bf16.vlgmr.msra.gmra.mxu2 %v12208_v52  ;;  %5915 = vmatpush.bf16.msra.mxu3 %v9609_v32  ;;  %v9421_v32 = vor.u32 %v11185_v23, %v9420_v11  ;;  %v9340_v11 = vld [vmem:[#allocation8 + $0x148] sm:$0xf]  ;;  %v11165_v23 = vld [vmem:[#allocation8 + $0x154] sm:$0xf0] }
 0x3aa   :  { %5950 = vmatpush.bf16.msrb.mxu2 %v10057_v15  ;;  %5925 = vmatpush.bf16.msrb.mxu0 %v9785_v13  ;;  %v9974_v15 = vld [vmem:[#allocation8 + $0x650] sm:$0xf0]  ;;  %v4138_v55 = vadd.f32 %v12254_v33, %v4125_v36  ;;  %v9228_v33 = vld [vmem:[#allocation8 + $0x68] sm:$0xf]  ;;  %v11193_v36 = vld [vmem:[#allocation8 + $0x234] sm:$0xf0] }
 0x3ab   :  { %v9977_v13 = vor.u32 %v11322_v9, %v9974_v15  ;;  %v9533_v15 = vor.u32 %v11213_v34, %v9532_v35  ;;  %v9452_v34 = vld [vmem:[#allocation8 + $0x228] sm:$0xf] }
 0x3ac   :  { %5938 = vmatpush.bf16.msrb.mxu1 %v9913_v49  ;;  %v11318_v49 = vld [vmem:[#allocation8 + $0x624] sm:$0xf]  ;;  %v4151_v62 = vadd.f32 %v12256_v25, %v4138_v55  ;;  %v9212_v25 = vld [vmem:[#allocation8 + $0x48] sm:$0xf]  ;;  %v11157_v55 = vld [vmem:[#allocation8 + $0x114] sm:$0xf0] }
 0x3ad   :  { %5916 = vmatpush.bf16.msra.mxu3 %v9593_v39  ;;  %v11145_v39 = vld [vmem:[#allocation8 + $0xb4] sm:$0xf0] }
 0x3ae   :  { %5951 = vmatpush.bf16.msrb.mxu2 %v10041_v57  ;;  %5926 = vmatpush.bf16.msrb.mxu0 %v9769_v3  ;;  %v4113_v57 = vpop.f32.mrf.mxu0  ;;  %v11250_v3 = vld [vmem:[#allocation8 + $0x404] sm:$0xf] }
 0x3af   :  { %v11141_v57 = vld [vmem:[#allocation8 + $0x94] sm:$0xf0] }
 0x3b0   :  { %5939 = vmatpush.bf16.msrb.mxu1 %v9897_v10  ;;  %v9833_v10 = vor.u32 %v11286_v46, %v9830_v54  ;;  %v9244_v54 = vld [vmem:[#allocation8 + $0x88] sm:$0xf] }
 0x3b1   :  { %5917 = vmatpush.bf16.msra.mxu3 %v9577_v0 }
 0x3b2   :  { %5952 = vmatpush.bf16.msrb.mxu2 %v10025_v44  ;;  %5927 = vmatpush.bf16.msrb.mxu0 %v9753_v22  ;;  %v9961_v44 = vor.u32 %v11318_v49, %v9958_v38  ;;  %v11153_v22 = vld [vmem:[#allocation8 + $0xf4] sm:$0xf0]  ;;  %v9372_v38 = vld [vmem:[#allocation8 + $0x188] sm:$0xf] }
 0x3b3   :  { %v9293_v37 = vor.u32 %v11153_v22, %v9292_v50  ;;  %v11201_v50 = vld [vmem:[#allocation8 + $0x274] sm:$0xf0] }
 0x3b4   :  { %5940 = vmatpush.bf16.msrb.mxu1 %v9881_v2  ;;  %v9561_v2 = vor.u32 %v11218_v6, %v9558_v21  ;;  %v9485_v21 = vor.u32 %v11201_v50, %v9484_v18  ;;  %v11133_v22 = vld [vmem:[#allocation8 + $0x54] sm:$0xf0]  ;;  %v9788_v18 = vld [vmem:[#allocation8 + $0x4c8] sm:$0xf] }
 0x3b5   :  { %v9213_v31 = vor.u32 %v11133_v22, %v9212_v25  ;;  %v11277_v50 = vld [vmem:[#allocation8 + $0x4d4] sm:$0xf0] }
 0x3b6   :  { %5953 = vmatpush.bf16.msrb.mxu2 %v10009_v26  ;;  %5928 = vmatpush.bf16.msrb.mxu0 %v9737_v4  ;;  %v9689_v26 = vor.u32 %v11250_v3, %v9686_v48  ;;  %v9276_v4 = vld [vmem:[#allocation8 + $0xc8] sm:$0xf]  ;;  %v9373_v3 = vor.u32 %v11173_v58, %v9372_v38  ;;  %v11281_v38 = vld [vmem:[#allocation8 + $0x4f4] sm:$0xf0] }
 0x3b7   :  { %5918 = vmatpush.bf16.msra.mxu3 %v9561_v2  ;;  %v9277_v19 = vor.u32 %v11149_v47, %v9276_v4  ;;  %v9468_v2 = vld [vmem:[#allocation8 + $0x248] sm:$0xf]  ;;  %v11129_v47 = vld [vmem:[#allocation8 + $0x34] sm:$0xf0] }
 0x3b8   :  { %5941 = vmatpush.bf16.msrb.mxu1 %v9865_v40  ;;  %v9404_v40 = vld [vmem:[#allocation8 + $0x1c8] sm:$0xf]  ;;  %v11309_v25 = vld [vmem:[#allocation8 + $0x5d4] sm:$0xf0] }
 0x3b9   :  { %v9932_v58 = vld [vmem:[#allocation8 + $0x5e8] sm:$0xf]  ;;  %v11341_v22 = vld [vmem:[#allocation8 + $0x6d4] sm:$0xf0] }
 0x3ba   :  { %5954 = vmatpush.bf16.msrb.mxu2 %v9993_v5  ;;  %5929 = vmatpush.bf16.msrb.mxu0 %v9721_v42  ;;  %v11181_v5 = vld [vmem:[#allocation8 + $0x1d4] sm:$0xf0]  ;;  %v9388_v42 = vld [vmem:[#allocation8 + $0x1a8] sm:$0xf] }
 0x3bb   :  { %v9405_v9 = vor.u32 %v11181_v5, %v9404_v40  ;;  %v9389_v46 = vor.u32 %v11177_v7, %v9388_v42  ;;  %v9324_v40 = vld [vmem:[#allocation8 + $0x128] sm:$0xf]  ;;  %v11161_v5 = vld [vmem:[#allocation8 + $0x134] sm:$0xf0] }
 0x3bc   :  { %5942 = vmatpush.bf16.msrb.mxu1 %v9849_v56  ;;  %v11209_v56 = vld [vmem:[#allocation8 + $0x2b4] sm:$0xf0]  ;;  %v9325_v42 = vor.u32 %v11161_v5, %v9324_v40  ;;  %v9756_v5 = vld [vmem:[#allocation8 + $0x488] sm:$0xf] }
 0x3bd   :  { %v9517_v49 = vor.u32 %v11209_v56, %v9516_v43  ;;  %v11125_v7 = vld [vmem:[#allocation8 + $0x14] sm:$0xf0]  ;;  %v9308_v43 = vld [vmem:[#allocation8 + $0x108] sm:$0xf]  ;;  %v9453_v56 = vor.u32 %v11193_v36, %v9452_v34 }
 0x3be   :  { %5955 = vmatpush.bf16.msrb.mxu2 %v9977_v13  ;;  %5930 = vmatpush.bf16.msrb.mxu0 %v9705_v1  ;;  %v9261_v13 = vor.u32 %v11145_v39, %v9260_v29  ;;  %v9245_v1 = vor.u32 %v11141_v57, %v9244_v54  ;;  %v9180_v29 = vld [vmem:[#allocation8 + $0x8] sm:$0xf] }
 0x3bf   :  { %v9804_v57 = vld [vmem:[#allocation8 + $0x4e8] sm:$0xf] }
 0x3c0   :  { %5943 = vmatpush.bf16.msrb.mxu1 %v9833_v10  ;;  %v11137_v10 = vld [vmem:[#allocation8 + $0x74] sm:$0xf0] }
 0x3c1   :  { %v9229_v61 = vor.u32 %v11137_v10, %v9228_v33  ;;  %v9309_v33 = vor.u32 %v11157_v55, %v9308_v43  ;;  %v10118_v43 = vld [vmem:[#allocation8 + $0x770] sm:$0xf0] }
 0x3c2   :  { %5956 = vmatpush.bf16.msrb.mxu2 %v9961_v44  ;;  %5931 = vmatpush.bf16.msrb.mxu0 %v9689_v26  ;;  %v4163_v0 = vpop.f32.mrf.mxu0  ;;  %v9356_v44 = vld [vmem:[#allocation8 + $0x168] sm:$0xf]  ;;  %v11197_v26 = vld [vmem:[#allocation8 + $0x254] sm:$0xf0] }
 0x3c3   :  { %v4164_v17 = vadd.f32 %v4163_v0, %v4151_v62  ;;  %v9357_v6 = vor.u32 %v11169_v16, %v9356_v44  ;;  %v10060_v62 = vld [vmem:[#allocation8 + $0x6e8] sm:$0xf]  ;;  %v11345_v0 = vld [vmem:[#allocation8 + $0x6f4] sm:$0xf0]  ;;  %v9805_v44 = vor.u32 %v11281_v38, %v9804_v57  ;;  %v9933_v16 = vor.u32 %v11313_v60, %v9932_v58 }
 0x3c4   :  { %5944 = vmatpush.bf16.msrb.mxu1 %v9817_v28  ;;  %v4176_v48 = vpop.f32.mrf.mxu1  ;;  %v9740_v57 = vld [vmem:[#allocation8 + $0x468] sm:$0xf]  ;;  %v11265_v38 = vld [vmem:[#allocation8 + $0x474] sm:$0xf0] }
 0x3c5   :  { %5932 = vmatmul.bf16.vlgmr.msrb.gmra.mxu0 %v12236_v51  ;;  %v4177_v24 = vadd.f32 %v4176_v48, %v4164_v17  ;;  %v11370_v48 = vld [vmem:[#allocation8 + $0x7c4] sm:$0xf]  ;;  %v10061_v17 = vor.u32 %v11345_v0, %v10060_v62  ;;  %v9868_v58 = vld [vmem:[#allocation8 + $0x568] sm:$0xf]  ;;  %v11297_v62 = vld [vmem:[#allocation8 + $0x574] sm:$0xf0] }
 0x3c6   :  { %5957 = vmatpush.bf16.msrb.mxu2 %v9945_v30  ;;  %5976 = vmatpush.bf16.msra.mxu0 %v9293_v37  ;;  %v9341_v37 = vor.u32 %v11165_v23, %v9340_v11  ;;  %v11366_v11 = vld [vmem:[#allocation8 + $0x7a4] sm:$0xf]  ;;  %v10150_v23 = vld [vmem:[#allocation8 + $0x7b0] sm:$0xf0]  ;;  %v9996_v0 = vld [vmem:[#allocation8 + $0x668] sm:$0xf] }
 0x3c7   :  { %5945 = vmatmul.bf16.vlgmr.msrb.gmra.mxu1 %v12238_v53 }
 0x3c8   :  { %5989 = vmatpush.bf16.msra.mxu1 %v9421_v32  ;;  %v9196_v32 = vld [vmem:[#allocation8 + $0x28] sm:$0xf] }
 0x3c9   :  { %5958 = vmatmul.bf16.vlgmr.msrb.gmra.mxu2 %v12244_v20  ;;  %v9197_v39 = vor.u32 %v11129_v47, %v9196_v32  ;;  %v11337_v32 = vld [vmem:[#allocation8 + $0x6b4] sm:$0xf0]  ;;  %v10134_v47 = vld [vmem:[#allocation8 + $0x790] sm:$0xf0] }
 0x3ca   :  { %6002 = vmatpush.bf16.msra.mxu2 %v9549_v8  ;;  %5977 = vmatpush.bf16.msra.mxu0 %v9277_v19  ;;  %v4165_v30 = vpop.f32.mrf.mxu0  ;;  %v9469_v8 = vor.u32 %v11197_v26, %v9468_v2  ;;  %v11374_v19 = vld [vmem:[#allocation8 + $0x7e4] sm:$0xf]  ;;  %v9772_v2 = vld [vmem:[#allocation8 + $0x4a8] sm:$0xf] }
 0x3cb   :  { %v11305_v30 = vld [vmem:[#allocation8 + $0x5b4] sm:$0xf0] }
 0x3cc   :  { %5990 = vmatpush.bf16.msra.mxu1 %v9405_v9  ;;  %v4189_v27 = vpop.f32.mrf.mxu2  ;;  %v4178_v4 = vpop.f32.mrf.mxu1  ;;  %v10182_v9 = vld [vmem:[#allocation8 + $0x7f0] sm:$0xf0] }
 0x3cd   :  { %v4190_v63 = vadd.f32 %v4189_v27, %v4177_v24  ;;  %v9789_v24 = vor.u32 %v11277_v50, %v9788_v18  ;;  %v12270_v4 = vld [vmem:[#allocation10] sm:$0xf]  ;;  %v9852_v18 = vld [vmem:[#allocation8 + $0x548] sm:$0xf] }
 0x3ce   :  { %6003 = vmatpush.bf16.msra.mxu2 %v9533_v15  ;;  %5978 = vmatpush.bf16.msra.mxu0 %v9261_v13  ;;  %v4202_v28 = vpop.f32.mrf.mxu3  ;;  %v9436_v13 = vld [vmem:[#allocation8 + $0x208] sm:$0xf]  ;;  %v4480_v36 = vperm.slane %v12270_v4, 0 }
 0x3cf   :  { %v4203_v35 = vadd.f32 %v4202_v28, %v4190_v63  ;;  %v11273_v63 = vld [vmem:[#allocation8 + $0x4b4] sm:$0xf0]  ;;  %v9900_v28 = vld [vmem:[#allocation8 + $0x5a8] sm:$0xf] }
 0x3d0   :  { %5991 = vmatpush.bf16.msra.mxu1 %v9389_v46  ;;  %v11189_v46 = vld [vmem:[#allocation8 + $0x214] sm:$0xf0]  ;;  %v9773_v40 = vor.u32 %v11273_v63, %v9772_v2 }
 0x3d1   :  { %v4213_v15 = vmax.f32 %v4203_v35, 0.0  ;;  %v9437_v10 = vor.u32 %v11189_v46, %v9436_v13  ;;  %v9901_v35 = vor.u32 %v11305_v30, %v9900_v28  ;;  %v9708_v30 = vld [vmem:[#allocation8 + $0x428] sm:$0xf] }
 0x3d2   :  { %6004 = vmatpush.bf16.msra.mxu2 %v9517_v49  ;;  %5979 = vmatpush.bf16.msra.mxu0 %v9245_v1  ;;  %v10185_v49 = vor.u32 %v11374_v19, %v10182_v9  ;;  %v11269_v19 = vld [vmem:[#allocation8 + $0x494] sm:$0xf0]  ;;  %v9884_v9 = vld [vmem:[#allocation8 + $0x588] sm:$0xf] }
 0x3d3   :  { %v12266_v54 = vpack.c.bf16 %v4213_v15, %v4213_v15  ;;  %v11301_v15 = vld [vmem:[#allocation8 + $0x594] sm:$0xf0] }
 0x3d4   :  { %5992 = vmatpush.bf16.msra.mxu1 %v9373_v3  ;;  %v4191_v41 = vpop.f32.mrf.mxu2  ;;  %v9181_v3 = vor.u32 %v11125_v7, %v9180_v29  ;;  %v11358_v7 = vld [vmem:[#allocation8 + $0x764] sm:$0xf]  ;;  %v9885_v46 = vor.u32 %v11301_v15, %v9884_v9  ;;  %v11249_v9 = vld [vmem:[#allocation8 + $0x3f4] sm:$0xf0] }
 0x3d5   :  { %5867 = vmatmul.bf16.vlgmr.msrb.gmra.mxu3 %v12266_v54  ;;  %v10121_v60 = vor.u32 %v11358_v7, %v10118_v43  ;;  %v9820_v7 = vld [vmem:[#allocation8 + $0x508] sm:$0xf] }
 0x3d6   :  { %6005 = vmatpush.bf16.msra.mxu2 %v9501_v45  ;;  %5980 = vmatpush.bf16.msra.mxu0 %v9229_v61  ;;  %v4204_v1 = vpop.f32.mrf.mxu3  ;;  %v10166_v45 = vld [vmem:[#allocation8 + $0x7d0] sm:$0xf0]  ;;  %v9916_v61 = vld [vmem:[#allocation8 + $0x5c8] sm:$0xf] }
 0x3d7   :  { %5963 = vmatpush.bf16.msrb.mxu3 %v10185_v49  ;;  %v9917_v26 = vor.u32 %v11309_v25, %v9916_v61  ;;  %v11329_v1 = vld [vmem:[#allocation8 + $0x674] sm:$0xf0] }
 0x3d8   :  { %5993 = vmatpush.bf16.msra.mxu1 %v9357_v6  ;;  %v10169_v6 = vor.u32 %v11370_v48, %v10166_v45  ;;  %v9741_v45 = vor.u32 %v11265_v38, %v9740_v57  ;;  %v11293_v61 = vld [vmem:[#allocation8 + $0x554] sm:$0xf0]  ;;  %v9294_v57 = vld [vmem:[#allocation8 + $0xf8] sm:$0xf0]  ;;  %v11183_v38 = vld [vmem:[#allocation8 + $0x1ec] sm:$0xf] }
 0x3d9   :  { %v11325_v25 = vld [vmem:[#allocation8 + $0x654] sm:$0xf0]  ;;  %v9853_v63 = vor.u32 %v11293_v61, %v9852_v18  ;;  %v9278_v18 = vld [vmem:[#allocation8 + $0xd8] sm:$0xf0] }
 0x3da   :  { %6006 = vmatpush.bf16.msra.mxu2 %v9485_v21  ;;  %5981 = vmatpush.bf16.msra.mxu0 %v9213_v31  ;;  %v10044_v21 = vld [vmem:[#allocation8 + $0x6c8] sm:$0xf]  ;;  %v10153_v31 = vor.u32 %v11366_v11, %v10150_v23 }
 0x3db   :  { %v10045_v27 = vor.u32 %v11341_v22, %v10044_v21  ;;  %5964 = vmatpush.bf16.msrb.mxu3 %v10169_v6  ;;  %v9980_v6 = vld [vmem:[#allocation8 + $0x648] sm:$0xf]  ;;  %v11350_v21 = vld [vmem:[#allocation8 + $0x724] sm:$0xf]  ;;  %v10086_v22 = vld [vmem:[#allocation8 + $0x730] sm:$0xf0] }
 0x3dc   :  { %5994 = vmatpush.bf16.msra.mxu1 %v9341_v37  ;;  %v10028_v37 = vld [vmem:[#allocation8 + $0x6a8] sm:$0xf]  ;;  %v9981_v28 = vor.u32 %v11325_v25, %v9980_v6  ;;  %v9406_v6 = vld [vmem:[#allocation8 + $0x1d8] sm:$0xf0]  ;;  %v11211_v25 = vld [vmem:[#allocation8 + $0x2cc] sm:$0xf] }
 0x3dd   :  { %v10029_v34 = vor.u32 %v11337_v32, %v10028_v37  ;;  %v9836_v37 = vld [vmem:[#allocation8 + $0x528] sm:$0xf]  ;;  %v10089_v32 = vor.u32 %v11350_v21, %v10086_v22  ;;  %v9534_v21 = vld [vmem:[#allocation8 + $0x2d8] sm:$0xf0] }
 0x3de   :  { %6007 = vmatpush.bf16.msra.mxu2 %v9469_v8  ;;  %5982 = vmatpush.bf16.msra.mxu0 %v9197_v39  ;;  %v11362_v8 = vld [vmem:[#allocation8 + $0x784] sm:$0xf]  ;;  %v10012_v39 = vld [vmem:[#allocation8 + $0x688] sm:$0xf] }
 0x3df   :  { %5965 = vmatpush.bf16.msrb.mxu3 %v10153_v31  ;;  %v10137_v29 = vor.u32 %v11362_v8, %v10134_v47  ;;  %v11257_v31 = vld [vmem:[#allocation8 + $0x434] sm:$0xf0]  ;;  %v9964_v47 = vld [vmem:[#allocation8 + $0x628] sm:$0xf] }
 0x3e0   :  { %5995 = vmatpush.bf16.msra.mxu1 %v9325_v42  ;;  %v11333_v42 = vld [vmem:[#allocation8 + $0x694] sm:$0xf0]  ;;  %v9644_v22 = vld [vmem:[#allocation8 + $0x3a8] sm:$0xf] }
 0x3e1   :  { %v10013_v49 = vor.u32 %v11333_v42, %v10012_v39  ;;  %v11289_v8 = vld [vmem:[#allocation8 + $0x534] sm:$0xf0]  ;;  %v9692_v39 = vld [vmem:[#allocation8 + $0x408] sm:$0xf] }
 0x3e2   :  { %6008 = vmatpush.bf16.msra.mxu2 %v9453_v56  ;;  %5983 = vmatpush.bf16.msra.mxu0 %v9181_v3  ;;  %v9757_v56 = vor.u32 %v11269_v19, %v9756_v5  ;;  %v5777_v55 = vpop.f32.mrf.mxu0  ;;  %v11354_v3 = vld [vmem:[#allocation8 + $0x744] sm:$0xf]  ;;  %v9676_v19 = vld [vmem:[#allocation8 + $0x3e8] sm:$0xf]  ;;  %v11253_v42 = vld [vmem:[#allocation8 + $0x414] sm:$0xf0] }
 0x3e3   :  { %5966 = vmatpush.bf16.msrb.mxu3 %v10137_v29  ;;  %v5778_v41 = vadd.f32 %v5777_v55, %v4480_v36  ;;  %v9709_v36 = vor.u32 %v11257_v31, %v9708_v30  ;;  %v9837_v29 = vor.u32 %v11289_v8, %v9836_v37  ;;  %v9948_v55 = vld [vmem:[#allocation8 + $0x608] sm:$0xf]  ;;  %v9390_v30 = vld [vmem:[#allocation8 + $0x1b8] sm:$0xf0]  ;;  %v11207_v31 = vld [vmem:[#allocation8 + $0x2ac] sm:$0xf] }
 0x3e4   :  { %5996 = vmatpush.bf16.msra.mxu1 %v9309_v33  ;;  %v5790_v13 = vpop.f32.mrf.mxu1  ;;  %v10102_v33 = vld [vmem:[#allocation8 + $0x750] sm:$0xf0]  ;;  %v9518_v37 = vld [vmem:[#allocation8 + $0x2b8] sm:$0xf0]  ;;  %v11237_v8 = vld [vmem:[#allocation8 + $0x394] sm:$0xf0] }
 0x3e5   :  { %5984 = vmatmul.bf16.vlgmr.msra.gmra.mxu0 %v12204_v12  ;;  %v5791_v48 = vadd.f32 %v5790_v13, %v5778_v41  ;;  %5919 = vmatmul.bf16.vlgmr.msra.gmra.mxu3 %v12210_v59  ;;  %v10105_v50 = vor.u32 %v11354_v3, %v10102_v33  ;;  %v11317_v13 = vld [vmem:[#allocation8 + $0x614] sm:$0xf0] }
 0x3e6   :  { %6009 = vmatpush.bf16.msra.mxu2 %v9437_v10  ;;  %6028 = vmatpush.bf16.msrb.mxu0 %v9805_v44  ;;  %v9869_v10 = vor.u32 %v11297_v62, %v9868_v58  ;;  %v9997_v44 = vor.u32 %v11329_v1, %v9996_v0  ;;  %v9422_v62 = vld [vmem:[#allocation8 + $0x1f8] sm:$0xf0]  ;;  %v11215_v0 = vld [vmem:[#allocation8 + $0x2ec] sm:$0xf]  ;;  %v9949_v33 = vor.u32 %v11317_v13, %v9948_v55 }
 0x3e7   :  { %5997 = vmatmul.bf16.vlgmr.msra.gmra.mxu1 %v12206_v14  ;;  %5967 = vmatpush.bf16.msrb.mxu3 %v10121_v60  ;;  %v9693_v60 = vor.u32 %v11253_v42, %v9692_v39  ;;  %v9550_v1 = vld [vmem:[#allocation8 + $0x2f8] sm:$0xf0]  ;;  %v9612_v42 = vld [vmem:[#allocation8 + $0x368] sm:$0xf] }
 0x3e8   :  { %6041 = vmatpush.bf16.msrb.mxu1 %v9933_v16  ;;  %v9724_v16 = vld [vmem:[#allocation8 + $0x448] sm:$0xf]  ;;  %v9502_v39 = vld [vmem:[#allocation8 + $0x298] sm:$0xf0] }
 0x3e9   :  { %6010 = vmatmul.bf16.vlgmr.msra.gmra.mxu2 %v12208_v52 }
 0x3ea   :  { %6054 = vmatpush.bf16.msrb.mxu2 %v10061_v17  ;;  %6029 = vmatpush.bf16.msrb.mxu0 %v9789_v24  ;;  %v11261_v17 = vld [vmem:[#allocation8 + $0x454] sm:$0xf0] }
 0x3eb   :  { %v9725_v24 = vor.u32 %v11261_v17, %v9724_v16  ;;  %5968 = vmatpush.bf16.msrb.mxu3 %v10105_v50  ;;  %v9553_v16 = vor.u32 %v11215_v0, %v9550_v1  ;;  %v11147_v17 = vld [vmem:[#allocation8 + $0xcc] sm:$0xf]  ;;  %v9486_v0 = vld [vmem:[#allocation8 + $0x278] sm:$0xf0] }
 0x3ec   :  { %6042 = vmatpush.bf16.msrb.mxu1 %v9917_v26  ;;  %v5803_v11 = vpop.f32.mrf.mxu2  ;;  %v5779_v26 = vpop.f32.mrf.mxu0  ;;  %v11179_v50 = vld [vmem:[#allocation8 + $0x1cc] sm:$0xf] }
 0x3ed   :  { %v5804_v2 = vadd.f32 %v5803_v11, %v5791_v48  ;;  %v9660_v48 = vld [vmem:[#allocation8 + $0x3c8] sm:$0xf]  ;;  %v11241_v11 = vld [vmem:[#allocation8 + $0x3b4] sm:$0xf0]  ;;  %v11143_v26 = vld [vmem:[#allocation8 + $0xac] sm:$0xf] }
 0x3ee   :  { %6055 = vmatpush.bf16.msrb.mxu2 %v10045_v27  ;;  %6030 = vmatpush.bf16.msrb.mxu0 %v9773_v40  ;;  %v5816_v23 = vpop.f32.mrf.mxu3  ;;  %v5792_v27 = vpop.f32.mrf.mxu1  ;;  %v11321_v40 = vld [vmem:[#allocation8 + $0x634] sm:$0xf0] }
 0x3ef   :  { %v12276_v5 = vadd.f32 %v5816_v23, %v5804_v2  ;;  %v9965_v15 = vor.u32 %v11321_v40, %v9964_v47  ;;  %5969 = vmatpush.bf16.msrb.mxu3 %v10089_v32  ;;  %v9281_v23 = vor.u32 %v11147_v17, %v9278_v18  ;;  %v9537_v2 = vor.u32 %v11211_v25, %v9534_v21  ;;  %v9262_v27 = vld [vmem:[#allocation8 + $0xb8] sm:$0xf0]  ;;  %v9628_v32 = vld [vmem:[#allocation8 + $0x388] sm:$0xf]  ;;  %v11225_v25 = vld [vmem:[#allocation8 + $0x334] sm:$0xf0] }
 0x3f0   :  { %6043 = vmatpush.bf16.msrb.mxu1 %v9901_v35  ;;  %v11346_v35 = vld [vmem:[#allocation8 + $0x704] sm:$0xf]  ;;  %v9265_v47 = vor.u32 %v11143_v26, %v9262_v27  ;;  %v9342_v18 = vld [vmem:[#allocation8 + $0x158] sm:$0xf0]  ;;  %v11159_v27 = vld [vmem:[#allocation8 + $0x12c] sm:$0xf] }
 0x3f1   :  { %v9198_v26 = vld [vmem:[#allocation8 + $0x38] sm:$0xf0] }
 0x3f2   :  { %6056 = vmatpush.bf16.msrb.mxu2 %v10029_v34  ;;  %6031 = vmatpush.bf16.msrb.mxu0 %v9757_v56  ;;  %v10070_v34 = vld [vmem:[#allocation8 + $0x710] sm:$0xf0]  ;;  %v11285_v56 = vld [vmem:[#allocation8 + $0x514] sm:$0xf0] }
 0x3f3   :  { %v10073_v43 = vor.u32 %v11346_v35, %v10070_v34  ;;  %v9821_v3 = vor.u32 %v11285_v56, %v9820_v7  ;;  %v9521_v35 = vor.u32 %v11207_v31, %v9518_v37  ;;  %v11139_v34 = vld [vmem:[#allocation8 + $0x8c] sm:$0xf]  ;;  %v11233_v7 = vld [vmem:[#allocation8 + $0x374] sm:$0xf0]  ;;  %v9454_v31 = vld [vmem:[#allocation8 + $0x238] sm:$0xf0] }
 0x3f4   :  { %6044 = vmatpush.bf16.msrb.mxu1 %v9885_v46  ;;  %v9677_v46 = vor.u32 %v11249_v9, %v9676_v19  ;;  %v5805_v58 = vpop.f32.mrf.mxu2  ;;  %v11171_v19 = vld [vmem:[#allocation8 + $0x18c] sm:$0xf]  ;;  %v9629_v9 = vor.u32 %v11237_v8, %v9628_v32  ;;  %v9564_v37 = vld [vmem:[#allocation8 + $0x308] sm:$0xf]  ;;  %v11221_v32 = vld [vmem:[#allocation8 + $0x314] sm:$0xf0] }
 0x3f5   :  { %5970 = vmatpush.bf16.msrb.mxu3 %v10073_v43  ;;  %v11167_v58 = vld [vmem:[#allocation8 + $0x16c] sm:$0xf] }
 0x3f6   :  { %6057 = vmatpush.bf16.msrb.mxu2 %v10013_v49  ;;  %6032 = vmatpush.bf16.msrb.mxu0 %v9741_v45  ;;  %v11151_v49 = vld [vmem:[#allocation8 + $0xec] sm:$0xf]  ;;  %v5818_v41 = vpop.f32.mrf.mxu3  ;;  %v11245_v45 = vld [vmem:[#allocation8 + $0x3d4] sm:$0xf0] }
 0x3f7   :  { %v9661_v61 = vor.u32 %v11245_v45, %v9660_v48  ;;  %v9613_v41 = vor.u32 %v11233_v7, %v9612_v42  ;;  %v9438_v42 = vld [vmem:[#allocation8 + $0x218] sm:$0xf0] }
 0x3f8   :  { %6045 = vmatpush.bf16.msrb.mxu1 %v9869_v10  ;;  %v9297_v10 = vor.u32 %v11151_v49, %v9294_v57  ;;  %5971 = vmatmul.bf16.vlgmr.msrb.gmra.mxu3 %v12266_v54  ;;  %v11135_v57 = vld [vmem:[#allocation8 + $0x6c] sm:$0xf] }
 0x3f9   :  { %6015 = vmatpush.bf16.msra.mxu3 %v9677_v46 }
 0x3fa   :  { %6058 = vmatpush.bf16.msrb.mxu2 %v9997_v44  ;;  %6033 = vmatpush.bf16.msrb.mxu0 %v9725_v24  ;;  %v9425_v44 = vor.u32 %v11183_v38, %v9422_v62  ;;  %v9409_v24 = vor.u32 %v11179_v50, %v9406_v6  ;;  %v9230_v38 = vld [vmem:[#allocation8 + $0x78] sm:$0xf0]  ;;  %v11199_v62 = vld [vmem:[#allocation8 + $0x26c] sm:$0xf]  ;;  %v9580_v6 = vld [vmem:[#allocation8 + $0x328] sm:$0xf] }
 0x3fb   :  { %v9233_v48 = vor.u32 %v11135_v57, %v9230_v38  ;;  %v9489_v45 = vor.u32 %v11199_v62, %v9486_v0  ;;  %v11195_v50 = vld [vmem:[#allocation8 + $0x24c] sm:$0xf]  ;;  %v10062_v57 = vld [vmem:[#allocation8 + $0x6f8] sm:$0xf0] }
 0x3fc   :  { %6046 = vmatpush.bf16.msrb.mxu1 %v9853_v63  ;;  %v11175_v63 = vld [vmem:[#allocation8 + $0x1ac] sm:$0xf] }
 0x3fd   :  { %6016 = vmatpush.bf16.msra.mxu3 %v9661_v61  ;;  %v9393_v40 = vor.u32 %v11175_v63, %v9390_v30  ;;  %v9470_v61 = vld [vmem:[#allocation8 + $0x258] sm:$0xf0]  ;;  %v9581_v63 = vor.u32 %v11225_v25, %v9580_v6  ;;  %v11191_v30 = vld [vmem:[#allocation8 + $0x22c] sm:$0xf] }
 0x3fe   :  { %6059 = vmatpush.bf16.msrb.mxu2 %v9981_v28  ;;  %6034 = vmatpush.bf16.msrb.mxu0 %v9709_v36  ;;  %v9645_v28 = vor.u32 %v11241_v11, %v9644_v22  ;;  %v9246_v36 = vld [vmem:[#allocation8 + $0x98] sm:$0xf0]  ;;  %v11271_v25 = vld [vmem:[#allocation8 + $0x4ac] sm:$0xf] }
 0x3ff   :  { %v9249_v56 = vor.u32 %v11139_v34, %v9246_v36  ;;  %v9457_v34 = vor.u32 %v11191_v30, %v9454_v31  ;;  %v11123_v36 = vld [vmem:[#allocation8 + $0xc] sm:$0xf] }
 0x400   :  { %6047 = vmatpush.bf16.msrb.mxu1 %v9837_v29  ;;  %v9374_v29 = vld [vmem:[#allocation8 + $0x198] sm:$0xf0] }
 0x401   :  { %6017 = vmatpush.bf16.msra.mxu3 %v9645_v28  ;;  %v9377_v46 = vor.u32 %v11171_v19, %v9374_v29  ;;  %v9326_v28 = vld [vmem:[#allocation8 + $0x138] sm:$0xf0]  ;;  %v9565_v29 = vor.u32 %v11221_v32, %v9564_v37 }
 0x402   :  { %6060 = vmatpush.bf16.msrb.mxu2 %v9965_v15  ;;  %6035 = vmatpush.bf16.msrb.mxu0 %v9693_v60  ;;  %v11203_v15 = vld [vmem:[#allocation8 + $0x28c] sm:$0xf]  ;;  %v5829_v43 = vpop.f32.mrf.mxu0  ;;  %v9358_v60 = vld [vmem:[#allocation8 + $0x178] sm:$0xf0] }
 0x403   :  { %v5830_v55 = vadd.f32 %v5829_v43, %v12276_v5  ;;  %v9505_v49 = vor.u32 %v11203_v15, %v9502_v39  ;;  %v9361_v5 = vor.u32 %v11167_v58, %v9358_v60  ;;  %v9182_v19 = vld [vmem:[#allocation8 + $0x18] sm:$0xf0]  ;;  %v11187_v39 = vld [vmem:[#allocation8 + $0x20c] sm:$0xf]  ;;  %v10172_v58 = vld [vmem:[#allocation8 + $0x7c8] sm:$0xf] }
 0x404   :  { %6048 = vmatpush.bf16.msrb.mxu1 %v9821_v3  ;;  %v5842_v13 = vpop.f32.mrf.mxu1  ;;  %v9596_v3 = vld [vmem:[#allocation8 + $0x348] sm:$0xf]  ;;  %v9310_v15 = vld [vmem:[#allocation8 + $0x118] sm:$0xf0]  ;;  %v11279_v43 = vld [vmem:[#allocation8 + $0x4ec] sm:$0xf]  ;;  %v9441_v60 = vor.u32 %v11187_v39, %v9438_v42 }
 0x405   :  { %6036 = vmatmul.bf16.vlgmr.msrb.gmra.mxu0 %v12236_v51  ;;  %6018 = vmatpush.bf16.msra.mxu3 %v9629_v9  ;;  %v12283_v1 = vadd.f32 %v5842_v13, %v5830_v55  ;;  %v11155_v9 = vld [vmem:[#allocation8 + $0x10c] sm:$0xf]  ;;  %v9185_v13 = vor.u32 %v11123_v36, %v9182_v19  ;;  %v9758_v32 = vld [vmem:[#allocation8 + $0x498] sm:$0xf0] }
 0x406   :  { %6061 = vmatpush.bf16.msrb.mxu2 %v9949_v33  ;;  %6080 = vmatpush.bf16.msra.mxu0 %v9297_v10  ;;  %v11229_v33 = vld [vmem:[#allocation8 + $0x354] sm:$0xf0]  ;;  %v11131_v10 = vld [vmem:[#allocation8 + $0x4c] sm:$0xf]  ;;  %v9313_v38 = vor.u32 %v11155_v9, %v9310_v15  ;;  %v9742_v42 = vld [vmem:[#allocation8 + $0x478] sm:$0xf0] }
 0x407   :  { %6049 = vmatmul.bf16.vlgmr.msrb.gmra.mxu1 %v12238_v53  ;;  %v9597_v17 = vor.u32 %v11229_v33, %v9596_v3  ;;  %v11311_v55 = vld [vmem:[#allocation8 + $0x5ec] sm:$0xf] }
 0x408   :  { %6093 = vmatpush.bf16.msra.mxu1 %v9425_v44  ;;  %v9214_v44 = vld [vmem:[#allocation8 + $0x58] sm:$0xf0]  ;;  %v11275_v33 = vld [vmem:[#allocation8 + $0x4cc] sm:$0xf] }
 0x409   :  { %6062 = vmatmul.bf16.vlgmr.msrb.gmra.mxu2 %v12244_v20  ;;  %6019 = vmatpush.bf16.msra.mxu3 %v9613_v41  ;;  %v9217_v22 = vor.u32 %v11131_v10, %v9214_v44  ;;  %v11373_v41 = vld [vmem:[#allocation8 + $0x7d4] sm:$0xf0]  ;;  %v9918_v10 = vld [vmem:[#allocation8 + $0x5d8] sm:$0xf0]  ;;  %v11339_v44 = vld [vmem:[#allocation8 + $0x6cc] sm:$0xf] }
 0x40a   :  { %6106 = vmatpush.bf16.msra.mxu2 %v9553_v16  ;;  %6081 = vmatpush.bf16.msra.mxu0 %v9281_v23  ;;  %v11163_v16 = vld [vmem:[#allocation8 + $0x14c] sm:$0xf]  ;;  %v5831_v21 = vpop.f32.mrf.mxu0 }
 0x40b   :  { %v9345_v23 = vor.u32 %v11163_v16, %v9342_v18  ;;  %v10046_v16 = vld [vmem:[#allocation8 + $0x6d8] sm:$0xf0]  ;;  %v11369_v18 = vld [vmem:[#allocation8 + $0x7b4] sm:$0xf0]  ;;  %v11263_v39 = vld [vmem:[#allocation8 + $0x46c] sm:$0xf] }
 0x40c   :  { %6094 = vmatpush.bf16.msra.mxu1 %v9409_v24  ;;  %v5844_v11 = vpop.f32.mrf.mxu1  ;;  %v9473_v24 = vor.u32 %v11195_v50, %v9470_v61  ;;  %v10049_v6 = vor.u32 %v11339_v44, %v10046_v16  ;;  %v9774_v21 = vld [vmem:[#allocation8 + $0x4b8] sm:$0xf0]  ;;  %v11353_v44 = vld [vmem:[#allocation8 + $0x734] sm:$0xf0] }
 0x40d   :  { %6020 = vmatpush.bf16.msra.mxu3 %v9597_v17  ;;  %v10156_v17 = vld [vmem:[#allocation8 + $0x7a8] sm:$0xf] }
 0x40e   :  { %6107 = vmatpush.bf16.msra.mxu2 %v9537_v2  ;;  %6082 = vmatpush.bf16.msra.mxu0 %v9265_v47  ;;  %v11127_v2 = vld [vmem:[#allocation8 + $0x2c] sm:$0xf]  ;;  %v10188_v47 = vld [vmem:[#allocation8 + $0x7e8] sm:$0xf]  ;;  %v10157_v11 = vor.u32 %v11369_v18, %v10156_v17 }
 0x40f   :  { %v9201_v8 = vor.u32 %v11127_v2, %v9198_v26  ;;  %v10030_v2 = vld [vmem:[#allocation8 + $0x6b8] sm:$0xf0]  ;;  %v10140_v26 = vld [vmem:[#allocation8 + $0x788] sm:$0xf] }
 0x410   :  { %6095 = vmatpush.bf16.msra.mxu1 %v9393_v40  ;;  %v11377_v40 = vld [vmem:[#allocation8 + $0x7f4] sm:$0xf0] }
 0x411   :  { %6021 = vmatpush.bf16.msra.mxu3 %v9581_v63  ;;  %v10189_v7 = vor.u32 %v11377_v40, %v10188_v47  ;;  %v9777_v63 = vor.u32 %v11271_v25, %v9774_v21  ;;  %v11331_v40 = vld [vmem:[#allocation8 + $0x68c] sm:$0xf]  ;;  %v9710_v25 = vld [vmem:[#allocation8 + $0x438] sm:$0xf0] }
 0x412   :  { %6108 = vmatpush.bf16.msra.mxu2 %v9521_v35  ;;  %6083 = vmatpush.bf16.msra.mxu0 %v9249_v56  ;;  %v9329_v35 = vor.u32 %v11159_v27, %v9326_v28  ;;  %v9806_v56 = vld [vmem:[#allocation8 + $0x4f8] sm:$0xf0]  ;;  %v11365_v27 = vld [vmem:[#allocation8 + $0x794] sm:$0xf0]  ;;  %v4481_v28 = vperm.slane %v12270_v4, 1 }
 0x413   :  { %v9809_v62 = vor.u32 %v11279_v43, %v9806_v56  ;;  %v12290_v37 = vpop.f32.mrf.mxu2  ;;  %v10141_v47 = vor.u32 %v11365_v27, %v10140_v26  ;;  %v9870_v56 = vld [vmem:[#allocation8 + $0x578] sm:$0xf0]  ;;  %v11287_v21 = vld [vmem:[#allocation8 + $0x52c] sm:$0xf]  ;;  %v11349_v26 = vld [vmem:[#allocation8 + $0x714] sm:$0xf0] }
 0x414   :  { %6096 = vmatpush.bf16.msra.mxu1 %v9377_v46  ;;  %v9934_v46 = vld [vmem:[#allocation8 + $0x5f8] sm:$0xf0] }
 0x415   :  { %6022 = vmatpush.bf16.msra.mxu3 %v9565_v29  ;;  %v9937_v0 = vor.u32 %v11311_v55, %v9934_v46  ;;  %v11327_v55 = vld [vmem:[#allocation8 + $0x66c] sm:$0xf] }
 0x416   :  { %6109 = vmatpush.bf16.msra.mxu2 %v9505_v49  ;;  %6084 = vmatpush.bf16.msra.mxu0 %v9233_v48  ;;  %v11343_v49 = vld [vmem:[#allocation8 + $0x6ec] sm:$0xf]  ;;  %v9790_v48 = vld [vmem:[#allocation8 + $0x4d8] sm:$0xf0] }
 0x417   :  { %v10065_v3 = vor.u32 %v11343_v49, %v10062_v57  ;;  %v9793_v50 = vor.u32 %v11275_v33, %v9790_v48  ;;  %v10108_v49 = vld [vmem:[#allocation8 + $0x748] sm:$0xf]  ;;  %v11357_v57 = vld [vmem:[#allocation8 + $0x754] sm:$0xf0]  ;;  %v9854_v48 = vld [vmem:[#allocation8 + $0x558] sm:$0xf0] }
 0x418   :  { %6097 = vmatpush.bf16.msra.mxu1 %v9361_v5  ;;  %v11307_v5 = vld [vmem:[#allocation8 + $0x5cc] sm:$0xf]  ;;  %6023 = vmatmul.bf16.vlgmr.msra.gmra.mxu3 %v12210_v59  ;;  %v10109_v33 = vor.u32 %v11357_v57, %v10108_v49 }
 0x419   :  { %6067 = vmatpush.bf16.msrb.mxu3 %v10189_v7  ;;  %v9921_v61 = vor.u32 %v11307_v5, %v9918_v10  ;;  %v11295_v7 = vld [vmem:[#allocation8 + $0x56c] sm:$0xf]  ;;  %v10092_v10 = vld [vmem:[#allocation8 + $0x728] sm:$0xf] }
 0x41a   :  { %6110 = vmatpush.bf16.msra.mxu2 %v9489_v45  ;;  %6085 = vmatpush.bf16.msra.mxu0 %v9217_v22  ;;  %v10173_v45 = vor.u32 %v11373_v41, %v10172_v58  ;;  %v11303_v22 = vld [vmem:[#allocation8 + $0x5ac] sm:$0xf]  ;;  %v9873_v58 = vor.u32 %v11295_v7, %v9870_v56  ;;  %v10244_v56 = vld [vmem:[#allocation11 + $0x60] sm:$0xf] }
 0x41b   :  { %v11323_v5 = vld [vmem:[#allocation8 + $0x64c] sm:$0xf] }
 0x41c   :  { %6098 = vmatpush.bf16.msra.mxu1 %v9345_v23  ;;  %v9902_v23 = vld [vmem:[#allocation8 + $0x5b8] sm:$0xf0] }
 0x41d   :  { %6068 = vmatpush.bf16.msrb.mxu3 %v10173_v45  ;;  %v9905_v30 = vor.u32 %v11303_v22, %v9902_v23  ;;  %v9982_v45 = vld [vmem:[#allocation8 + $0x658] sm:$0xf0]  ;;  %v10093_v22 = vor.u32 %v11353_v44, %v10092_v10  ;;  %v11319_v23 = vld [vmem:[#allocation8 + $0x62c] sm:$0xf]  ;;  %v10228_v10 = vld [vmem:[#allocation11 + $0x40] sm:$0xf] }
 0x41e   :  { %6111 = vmatpush.bf16.msra.mxu2 %v9473_v24  ;;  %6086 = vmatpush.bf16.msra.mxu0 %v9201_v8  ;;  %v11335_v24 = vld [vmem:[#allocation8 + $0x6ac] sm:$0xf] }
 0x41f   :  { %v10033_v31 = vor.u32 %v11335_v24, %v10030_v2  ;;  %v11299_v8 = vld [vmem:[#allocation8 + $0x58c] sm:$0xf]  ;;  %v9966_v24 = vld [vmem:[#allocation8 + $0x638] sm:$0xf0]  ;;  %v10076_v2 = vld [vmem:[#allocation8 + $0x708] sm:$0xf] }
 0x420   :  { %6099 = vmatpush.bf16.msra.mxu1 %v9329_v35  ;;  %v10124_v35 = vld [vmem:[#allocation8 + $0x768] sm:$0xf]  ;;  %v11387_v44 = vld [vmem:[#allocation11 + $0x44] sm:$0xf0] }
 0x421   :  { %6069 = vmatpush.bf16.msrb.mxu3 %v10157_v11  ;;  %v9838_v11 = vld [vmem:[#allocation8 + $0x538] sm:$0xf0] }
 0x422   :  { %6112 = vmatpush.bf16.msra.mxu2 %v9457_v34  ;;  %6087 = vmatpush.bf16.msra.mxu0 %v9185_v13  ;;  %v11361_v34 = vld [vmem:[#allocation8 + $0x774] sm:$0xf0]  ;;  %v5881_v36 = vpop.f32.mrf.mxu0  ;;  %v9998_v13 = vld [vmem:[#allocation8 + $0x678] sm:$0xf0] }
 0x423   :  { %v5882_v9 = vadd.f32 %v5881_v36, %v4481_v28  ;;  %v10125_v43 = vor.u32 %v11361_v34, %v10124_v35  ;;  %v10001_v41 = vor.u32 %v11327_v55, %v9998_v13  ;;  %v9678_v28 = vld [vmem:[#allocation8 + $0x3f8] sm:$0xf0]  ;;  %v11391_v55 = vld [vmem:[#allocation11 + $0x64] sm:$0xf0] }
 0x424   :  { %6100 = vmatpush.bf16.msra.mxu1 %v9313_v38  ;;  %v5894_v19 = vpop.f32.mrf.mxu1  ;;  %v9745_v38 = vor.u32 %v11263_v39, %v9742_v42  ;;  %v9950_v36 = vld [vmem:[#allocation8 + $0x618] sm:$0xf0]  ;;  %v11239_v13 = vld [vmem:[#allocation8 + $0x3ac] sm:$0xf]  ;;  %v10245_v57 = vor.u32 %v11391_v55, %v10244_v56  ;;  %v10196_v56 = vld [vmem:[#allocation11] sm:$0xf] }
 0x425   :  { %6088 = vmatmul.bf16.vlgmr.msra.gmra.mxu0 %v12204_v12  ;;  %v11267_v12 = vld [vmem:[#allocation8 + $0x48c] sm:$0xf]  ;;  %6070 = vmatpush.bf16.msrb.mxu3 %v10141_v47  ;;  %v5895_v46 = vadd.f32 %v5894_v19, %v5882_v9  ;;  %v10252_v19 = vld [vmem:[#allocation11 + $0x70] sm:$0xf] }
 0x426   :  { %6113 = vmatpush.bf16.msra.mxu2 %v9441_v60  ;;  %6132 = vmatpush.bf16.msrb.mxu0 %v9809_v62  ;;  %v9761_v4 = vor.u32 %v11267_v12, %v9758_v32  ;;  %v5857_v60 = vpop.f32.mrf.mxu2  ;;  %v11259_v62 = vld [vmem:[#allocation8 + $0x44c] sm:$0xf]  ;;  %v9694_v32 = vld [vmem:[#allocation8 + $0x418] sm:$0xf0] }
 0x427   :  { %6101 = vmatmul.bf16.vlgmr.msra.gmra.mxu1 %v12206_v14  ;;  %v9886_v14 = vld [vmem:[#allocation8 + $0x598] sm:$0xf0]  ;;  %v11251_v12 = vld [vmem:[#allocation8 + $0x40c] sm:$0xf] }
 0x428   :  { %6145 = vmatpush.bf16.msrb.mxu1 %v9937_v0  ;;  %v9889_v29 = vor.u32 %v11299_v8, %v9886_v14  ;;  %v9726_v0 = vld [vmem:[#allocation8 + $0x458] sm:$0xf0]  ;;  %v10077_v8 = vor.u32 %v11349_v26, %v10076_v2  ;;  %v11283_v14 = vld [vmem:[#allocation8 + $0x50c] sm:$0xf]  ;;  %v9697_v9 = vor.u32 %v11251_v12, %v9694_v32  ;;  %v10292_v12 = vld [vmem:[#allocation11 + $0xc0] sm:$0xf] }
 0x429   :  { %6114 = vmatmul.bf16.vlgmr.msra.gmra.mxu2 %v12208_v52  ;;  %v10014_v52 = vld [vmem:[#allocation8 + $0x698] sm:$0xf0]  ;;  %6071 = vmatpush.bf16.msrb.mxu3 %v10125_v43  ;;  %v9729_v18 = vor.u32 %v11259_v62, %v9726_v0  ;;  %v10316_v0 = vld [vmem:[#allocation11 + $0xf0] sm:$0xf]  ;;  %v11403_v32 = vld [vmem:[#allocation11 + $0xc4] sm:$0xf0] }
 0x42a   :  { %6158 = vmatpush.bf16.msrb.mxu2 %v10065_v3  ;;  %6133 = vmatpush.bf16.msrb.mxu0 %v9793_v50  ;;  %v10017_v15 = vor.u32 %v11331_v40, %v10014_v52  ;;  %v11291_v3 = vld [vmem:[#allocation8 + $0x54c] sm:$0xf]  ;;  %v5883_v16 = vpop.f32.mrf.mxu0  ;;  %v9822_v40 = vld [vmem:[#allocation8 + $0x518] sm:$0xf0] }
 0x42b   :  { %v9857_v50 = vor.u32 %v11291_v3, %v9854_v48  ;;  %v11315_v52 = vld [vmem:[#allocation8 + $0x60c] sm:$0xf]  ;;  %v9825_v39 = vor.u32 %v11283_v14, %v9822_v40  ;;  %v11389_v60 = vld [vmem:[#allocation11 + $0x54] sm:$0xf0]  ;;  %v10308_v16 = vld [vmem:[#allocation11 + $0xe0] sm:$0xf] }
 0x42c   :  { %6146 = vmatpush.bf16.msrb.mxu1 %v9921_v61  ;;  %v5896_v17 = vpop.f32.mrf.mxu1  ;;  %v9985_v61 = vor.u32 %v11323_v5, %v9982_v45  ;;  %v9953_v42 = vor.u32 %v11315_v52, %v9950_v36  ;;  %v9630_v62 = vld [vmem:[#allocation8 + $0x398] sm:$0xf0]  ;;  %v11231_v45 = vld [vmem:[#allocation8 + $0x36c] sm:$0xf]  ;;  %v10204_v36 = vld [vmem:[#allocation11 + $0x10] sm:$0xf] }
 0x42d   :  { %6072 = vmatpush.bf16.msrb.mxu3 %v10109_v33  ;;  %v11409_v3 = vld [vmem:[#allocation11 + $0xf4] sm:$0xf0]  ;;  %v11407_v17 = vld [vmem:[#allocation11 + $0xe4] sm:$0xf0] }
 0x42e   :  { %6159 = vmatpush.bf16.msrb.mxu2 %v10049_v6  ;;  %6134 = vmatpush.bf16.msrb.mxu0 %v9777_v63  ;;  %v11255_v6 = vld [vmem:[#allocation8 + $0x42c] sm:$0xf]  ;;  %v5907_v47 = vpop.f32.mrf.mxu2  ;;  %v10317_v33 = vor.u32 %v11409_v3, %v10316_v0 }
 0x42f   :  { %v9713_v27 = vor.u32 %v11255_v6, %v9710_v25  ;;  %v11247_v63 = vld [vmem:[#allocation8 + $0x3ec] sm:$0xf]  ;;  %v12292_v34 = vadd.f32 %v5907_v47, %v5895_v46  ;;  %v9646_v46 = vld [vmem:[#allocation8 + $0x3b8] sm:$0xf0]  ;;  %v10220_v25 = vld [vmem:[#allocation11 + $0x30] sm:$0xf]  ;;  %v10293_v47 = vor.u32 %v11403_v32, %v10292_v12 }
 0x430   :  { %6147 = vmatpush.bf16.msrb.mxu1 %v9905_v30  ;;  %v9841_v30 = vor.u32 %v11287_v21, %v9838_v11  ;;  %v9681_v35 = vor.u32 %v11247_v63, %v9678_v28  ;;  %v11227_v6 = vld [vmem:[#allocation8 + $0x34c] sm:$0xf]  ;;  %v11385_v21 = vld [vmem:[#allocation11 + $0x34] sm:$0xf0]  ;;  %v10300_v11 = vld [vmem:[#allocation11 + $0xd0] sm:$0xf] }
 0x431   :  { %6073 = vmatpush.bf16.msrb.mxu3 %v10093_v22  ;;  %v9598_v22 = vld [vmem:[#allocation8 + $0x358] sm:$0xf0]  ;;  %v10221_v2 = vor.u32 %v11385_v21, %v10220_v25  ;;  %v10212_v63 = vld [vmem:[#allocation11 + $0x20] sm:$0xf]  ;;  %v11383_v28 = vld [vmem:[#allocation11 + $0x24] sm:$0xf0] }
 0x432   :  { %6160 = vmatpush.bf16.msrb.mxu2 %v10033_v31  ;;  %6135 = vmatpush.bf16.msrb.mxu0 %v9761_v4  ;;  %v9969_v31 = vor.u32 %v11319_v23, %v9966_v24  ;;  %v11393_v4 = vld [vmem:[#allocation11 + $0x74] sm:$0xf0]  ;;  %v9601_v26 = vor.u32 %v11227_v6, %v9598_v22  ;;  %v10213_v40 = vor.u32 %v11383_v28, %v10212_v63  ;;  %v11379_v55 = vld [vmem:[#allocation11 + $0x4] sm:$0xf0]  ;;  %v11408_v6 = vld [vmem:[#allocation11 + $0xf4] sm:$0xf] }
 0x433   :  { %v10253_v7 = vor.u32 %v11393_v4, %v10252_v19  ;;  %v11405_v23 = vld [vmem:[#allocation11 + $0xd4] sm:$0xf0]  ;;  %v10197_v0 = vor.u32 %v11379_v55, %v10196_v56  ;;  %v10318_v25 = vld [vmem:[#allocation11 + $0xf8] sm:$0xf0]  ;;  %v11388_v22 = vld [vmem:[#allocation11 + $0x54] sm:$0xf] }
 0x434   :  { %6148 = vmatpush.bf16.msrb.mxu1 %v9889_v29  ;;  %v11243_v29 = vld [vmem:[#allocation8 + $0x3cc] sm:$0xf]  ;;  %v10301_v24 = vor.u32 %v11405_v23, %v10300_v11  ;;  %v11381_v19 = vld [vmem:[#allocation11 + $0x14] sm:$0xf0]  ;;  %v10238_v11 = vld [vmem:[#allocation11 + $0x58] sm:$0xf0]  ;;  %v10321_v23 = vor.u32 %v11408_v6, %v10318_v25 }
 0x435   :  { %6074 = vmatpush.bf16.msrb.mxu3 %v10077_v8  ;;  %v9566_v4 = vld [vmem:[#allocation8 + $0x318] sm:$0xf0]  ;;  %v11359_v28 = vld [vmem:[#allocation8 + $0x76c] sm:$0xf]  ;;  %v10230_v12 = vld [vmem:[#allocation11 + $0x48] sm:$0xf0] }
 0x436   :  { %6161 = vmatpush.bf16.msrb.mxu2 %v10017_v15  ;;  %6136 = vmatpush.bf16.msrb.mxu0 %v9745_v38  ;;  %v9662_v15 = vld [vmem:[#allocation8 + $0x3d8] sm:$0xf0]  ;;  %v5909_v49 = vpop.f32.mrf.mxu2  ;;  %v9649_v38 = vor.u32 %v11239_v13, %v9646_v46  ;;  %v11392_v13 = vld [vmem:[#allocation11 + $0x74] sm:$0xf]  ;;  %v10302_v56 = vld [vmem:[#allocation11 + $0xd8] sm:$0xf0] }
 0x437   :  { %v9665_v43 = vor.u32 %v11243_v29, %v9662_v15  ;;  %v11401_v29 = vld [vmem:[#allocation11 + $0xb4] sm:$0xf0]  ;;  %v11375_v15 = vld [vmem:[#allocation8 + $0x7ec] sm:$0xf] }
 0x438   :  { %6149 = vmatpush.bf16.msrb.mxu1 %v9873_v58  ;;  %6075 = vmatmul.bf16.vlgmr.msrb.gmra.mxu3 %v12266_v54  ;;  %v11235_v58 = vld [vmem:[#allocation8 + $0x38c] sm:$0xf]  ;;  %v10126_v32 = vld [vmem:[#allocation8 + $0x778] sm:$0xf0] }
 0x439   :  { %6119 = vmatpush.bf16.msra.mxu3 %v9681_v35  ;;  %v9633_v5 = vor.u32 %v11235_v58, %v9630_v62  ;;  %v11219_v35 = vld [vmem:[#allocation8 + $0x30c] sm:$0xf] }
 0x43a   :  { %6162 = vmatpush.bf16.msrb.mxu2 %v10001_v41  ;;  %6137 = vmatpush.bf16.msrb.mxu0 %v9729_v18  ;;  %v10236_v41 = vld [vmem:[#allocation11 + $0x50] sm:$0xf]  ;;  %v11399_v58 = vld [vmem:[#allocation11 + $0xa4] sm:$0xf0] }
 0x43b   :  { %v10237_v48 = vor.u32 %v11389_v60, %v10236_v41  ;;  %v11371_v41 = vld [vmem:[#allocation8 + $0x7cc] sm:$0xf]  ;;  %v10174_v60 = vld [vmem:[#allocation8 + $0x7d8] sm:$0xf0] }
 0x43c   :  { %6150 = vmatpush.bf16.msrb.mxu1 %v9857_v50 }
 0x43d   :  { %6120 = vmatpush.bf16.msra.mxu3 %v9665_v43  ;;  %v9569_v43 = vor.u32 %v11219_v35, %v9566_v4 }
 0x43e   :  { %6163 = vmatpush.bf16.msrb.mxu2 %v9985_v61  ;;  %6138 = vmatpush.bf16.msrb.mxu0 %v9713_v27  ;;  %v10229_v61 = vor.u32 %v11387_v44, %v10228_v10  ;;  %v11223_v27 = vld [vmem:[#allocation8 + $0x32c] sm:$0xf]  ;;  %v10246_v10 = vld [vmem:[#allocation11 + $0x68] sm:$0xf0] }
 0x440   :  { %6151 = vmatpush.bf16.msrb.mxu1 %v9841_v30 }
 0x441   :  { %6121 = vmatpush.bf16.msra.mxu3 %v9649_v38  ;;  %v10276_v38 = vld [vmem:[#allocation11 + $0xa0] sm:$0xf] }
 0x442   :  { %6164 = vmatpush.bf16.msrb.mxu2 %v9969_v31  ;;  %6139 = vmatpush.bf16.msrb.mxu0 %v9697_v9  ;;  %v12298_v18 = vpop.f32.mrf.mxu0  ;;  %v9582_v31 = vld [vmem:[#allocation8 + $0x338] sm:$0xf0]  ;;  %v10284_v9 = vld [vmem:[#allocation11 + $0xb0] sm:$0xf]  ;;  %v10277_v62 = vor.u32 %v11399_v58, %v10276_v38  ;;  %v11382_v38 = vld [vmem:[#allocation11 + $0x24] sm:$0xf] }
 0x443   :  { %v9585_v52 = vor.u32 %v11223_v27, %v9582_v31  ;;  %v11386_v31 = vld [vmem:[#allocation11 + $0x44] sm:$0xf]  ;;  %v10214_v58 = vld [vmem:[#allocation11 + $0x28] sm:$0xf0] }
 0x444   :  { %6152 = vmatpush.bf16.msrb.mxu1 %v9825_v39  ;;  %v12300_v50 = vpop.f32.mrf.mxu1  ;;  %v10190_v39 = vld [vmem:[#allocation8 + $0x7f8] sm:$0xf0] }
 0x445   :  { %6140 = vmatmul.bf16.vlgmr.msrb.gmra.mxu0 %v12236_v51  ;;  %v9614_v51 = vld [vmem:[#allocation8 + $0x378] sm:$0xf0]  ;;  %6122 = vmatpush.bf16.msra.mxu3 %v9633_v5  ;;  %v10193_v49 = vor.u32 %v11375_v15, %v10190_v39  ;;  %v11355_v15 = vld [vmem:[#allocation8 + $0x74c] sm:$0xf]  ;;  %v11384_v39 = vld [vmem:[#allocation11 + $0x34] sm:$0xf] }
 0x446   :  { %6165 = vmatpush.bf16.msrb.mxu2 %v9953_v42  ;;  %6582 = vmatpush.bf16.msra.mxu0 %v10253_v7  ;;  %v10285_v42 = vor.u32 %v11401_v29, %v10284_v9  ;;  %v10205_v7 = vor.u32 %v11381_v19, %v10204_v36  ;;  %v11397_v5 = vld [vmem:[#allocation11 + $0x94] sm:$0xf0]  ;;  %v10233_v36 = vor.u32 %v11386_v31, %v10230_v12 }
 0x447   :  { %6153 = vmatmul.bf16.vlgmr.msrb.gmra.mxu1 %v12238_v53  ;;  %v10309_v53 = vor.u32 %v11407_v17, %v10308_v16  ;;  %v11395_v16 = vld [vmem:[#allocation11 + $0x84] sm:$0xf0]  ;;  %v10129_v29 = vor.u32 %v11359_v28, %v10126_v32  ;;  %v11425_v28 = vld [vmem:[#allocation11 + $0x174] sm:$0xf0] }
 0x448   :  { %6595 = vmatpush.bf16.msra.mxu1 %v10317_v33  ;;  %v11390_v33 = vld [vmem:[#allocation11 + $0x64] sm:$0xf]  ;;  %v11367_v17 = vld [vmem:[#allocation8 + $0x7ac] sm:$0xf] }
 0x449   :  { %6166 = vmatmul.bf16.vlgmr.msrb.gmra.mxu2 %v12244_v20  ;;  %v9617_v20 = vor.u32 %v11231_v45, %v9614_v51  ;;  %v10177_v45 = vor.u32 %v11371_v41, %v10174_v60  ;;  %v10260_v51 = vld [vmem:[#allocation11 + $0x80] sm:$0xf]  ;;  %v10094_v41 = vld [vmem:[#allocation8 + $0x738] sm:$0xf0]  ;;  %v11402_v60 = vld [vmem:[#allocation11 + $0xc4] sm:$0xf] }
 0x44a   :  { %6583 = vmatpush.bf16.msra.mxu0 %v10245_v57  ;;  %v5935_v8 = vpop.f32.mrf.mxu0  ;;  %v10254_v57 = vld [vmem:[#allocation11 + $0x78] sm:$0xf0] }
 0x44b   :  { %6123 = vmatpush.bf16.msra.mxu3 %v9617_v20  ;;  %v10257_v3 = vor.u32 %v11392_v13, %v10254_v57  ;;  %v10261_v20 = vor.u32 %v11395_v16, %v10260_v51  ;;  %v11406_v8 = vld [vmem:[#allocation11 + $0xe4] sm:$0xf]  ;;  %v11351_v57 = vld [vmem:[#allocation8 + $0x72c] sm:$0xf]  ;;  %v11380_v16 = vld [vmem:[#allocation11 + $0x14] sm:$0xf] }
 0x44c   :  { %6596 = vmatpush.bf16.msra.mxu1 %v10309_v53  ;;  %v12302_v30 = vpop.f32.mrf.mxu2  ;;  %v5948_v14 = vpop.f32.mrf.mxu1  ;;  %v10158_v53 = vld [vmem:[#allocation8 + $0x7b8] sm:$0xf0]  ;;  %v11347_v51 = vld [vmem:[#allocation8 + $0x70c] sm:$0xf] }
 0x44d   :  { %v10161_v21 = vor.u32 %v11367_v17, %v10158_v53  ;;  %v5856_v14 = vadd.f32 %v12290_v37, %v12283_v1  ;;  %v10206_v17 = vld [vmem:[#allocation11 + $0x18] sm:$0xf0]  ;;  %v10078_v53 = vld [vmem:[#allocation8 + $0x718] sm:$0xf0] }
 0x44e   :  { %6584 = vmatpush.bf16.msra.mxu0 %v10237_v48  ;;  %v10268_v48 = vld [vmem:[#allocation11 + $0x90] sm:$0xf]  ;;  %v10209_v25 = vor.u32 %v11380_v16, %v10206_v17  ;;  %v10382_v16 = vld [vmem:[#allocation11 + $0x178] sm:$0xf0] }
 0x44f   :  { %6124 = vmatpush.bf16.msra.mxu3 %v9601_v26  ;;  %v10269_v44 = vor.u32 %v11397_v5, %v10268_v48  ;;  %v12305_v26 = vld [vmem:[#allocation10] sm:$0xf] }
 0x450   :  { %6597 = vmatpush.bf16.msra.mxu1 %v10301_v24  ;;  %v11363_v24 = vld [vmem:[#allocation8 + $0x78c] sm:$0xf]  ;;  %v4482_v27 = vperm.slane %v12305_v26, 2 }
 0x452   :  { %6585 = vmatpush.bf16.msra.mxu0 %v10229_v61  ;;  %v10249_v61 = vor.u32 %v11390_v33, %v10246_v10 }
 0x453   :  { %6125 = vmatpush.bf16.msra.mxu3 %v9585_v52 }
 0x454   :  { %6598 = vmatpush.bf16.msra.mxu1 %v10293_v47  ;;  %v5961_v46 = vpop.f32.mrf.mxu2  ;;  %v10310_v47 = vld [vmem:[#allocation11 + $0xe8] sm:$0xf0] }
 0x456   :  { %6586 = vmatpush.bf16.msra.mxu0 %v10221_v2  ;;  %v10142_v2 = vld [vmem:[#allocation8 + $0x798] sm:$0xf0] }
 0x457   :  { %6126 = vmatpush.bf16.msra.mxu3 %v9569_v43  ;;  %v10145_v63 = vor.u32 %v11363_v24, %v10142_v2  ;;  %v11404_v43 = vld [vmem:[#allocation11 + $0xd4] sm:$0xf]  ;;  %v10278_v24 = vld [vmem:[#allocation11 + $0xa8] sm:$0xf0] }
 0x458   :  { %6599 = vmatpush.bf16.msra.mxu1 %v10285_v42  ;;  %v5868_v35 = vpop.f32.mrf.mxu3  ;;  %v10222_v42 = vld [vmem:[#allocation11 + $0x38] sm:$0xf0]  ;;  %v10305_v1 = vor.u32 %v11404_v43, %v10302_v56  ;;  %v11396_v2 = vld [vmem:[#allocation11 + $0x94] sm:$0xf] }
 0x459   :  { %v5869_v9 = vadd.f32 %v5868_v35, %v5856_v14  ;;  %v10225_v37 = vor.u32 %v11384_v39, %v10222_v42  ;;  %v11394_v14 = vld [vmem:[#allocation11 + $0x84] sm:$0xf]  ;;  %v10364_v42 = vld [vmem:[#allocation11 + $0x150] sm:$0xf] }
 0x45a   :  { %6587 = vmatpush.bf16.msra.mxu0 %v10213_v40  ;;  %6127 = vmatmul.bf16.vlgmr.msra.gmra.mxu3 %v12210_v59  ;;  %v10241_v59 = vor.u32 %v11388_v22, %v10238_v11  ;;  %v10313_v40 = vor.u32 %v11406_v8, %v10310_v47  ;;  %v10198_v22 = vld [vmem:[#allocation11 + $0x8] sm:$0xf0]  ;;  %v10081_v11 = vor.u32 %v11347_v51, %v10078_v53  ;;  %v11424_v51 = vld [vmem:[#allocation11 + $0x174] sm:$0xf] }
 0x45b   :  { %6171 = vmatpush.bf16.msrb.mxu3 %v10193_v49  ;;  %v6184_v13 = vmax.f32 %v5869_v9, 0.0  ;;  %v11423_v9 = vld [vmem:[#allocation11 + $0x164] sm:$0xf0]  ;;  %v10385_v53 = vor.u32 %v11424_v51, %v10382_v16 }
 0x45c   :  { %6600 = vmatpush.bf16.msra.mxu1 %v10277_v62  ;;  %v10294_v62 = vld [vmem:[#allocation11 + $0xc8] sm:$0xf0] }
 0x45d   :  { %v6188_v46 = vpack.c.bf16 %v6184_v13, %v6184_v13 }
 0x45e   :  { %6588 = vmatpush.bf16.msra.mxu0 %v10205_v7  ;;  %v10110_v7 = vld [vmem:[#allocation8 + $0x758] sm:$0xf0] }
 0x45f   :  { %6172 = vmatpush.bf16.msrb.mxu3 %v10177_v45  ;;  %v10113_v49 = vor.u32 %v11355_v15, %v10110_v7  ;;  %v10217_v45 = vor.u32 %v11382_v38, %v10214_v58 }
 0x460   :  { %6601 = vmatpush.bf16.msra.mxu1 %v10269_v44  ;;  %v5870_v5 = vpop.f32.mrf.mxu3  ;;  %v10097_v44 = vor.u32 %v11351_v57, %v10094_v41  ;;  %v11417_v57 = vld [vmem:[#allocation11 + $0x134] sm:$0xf0] }
 0x462   :  { %6589 = vmatpush.bf16.msra.mxu0 %v10197_v0  ;;  %v5985_v52 = vpop.f32.mrf.mxu0 }
 0x463   :  { %6173 = vmatpush.bf16.msrb.mxu3 %v10161_v21  ;;  %v5986_v19 = vadd.f32 %v5985_v52, %v4482_v27  ;;  %v11378_v21 = vld [vmem:[#allocation11 + $0x4] sm:$0xf] }
 0x464   :  { %6602 = vmatpush.bf16.msra.mxu1 %v10261_v20  ;;  %v5998_v4 = vpop.f32.mrf.mxu1  ;;  %v10286_v20 = vld [vmem:[#allocation11 + $0xb8] sm:$0xf0]  ;;  %v10201_v8 = vor.u32 %v11378_v21, %v10198_v22  ;;  %v11420_v21 = vld [vmem:[#allocation11 + $0x154] sm:$0xf] }
 0x465   :  { %v5999_v55 = vadd.f32 %v5998_v4, %v5986_v19  ;;  %6590 = vmatmul.bf16.vlgmr.msra.gmra.mxu0 %v6188_v46  ;;  %v10372_v4 = vld [vmem:[#allocation11 + $0x160] sm:$0xf]  ;;  %v10366_v22 = vld [vmem:[#allocation11 + $0x158] sm:$0xf0] }
 0x466   :  { %6634 = vmatpush.bf16.msrb.mxu0 %v10257_v3  ;;  %v10297_v3 = vor.u32 %v11402_v60, %v10294_v62  ;;  %v11415_v62 = vld [vmem:[#allocation11 + $0x124] sm:$0xf0] }
 0x467   :  { %6174 = vmatpush.bf16.msrb.mxu3 %v10145_v63  ;;  %v10380_v63 = vld [vmem:[#allocation11 + $0x170] sm:$0xf] }
 0x468   :  { %6647 = vmatpush.bf16.msrb.mxu1 %v10321_v23  ;;  %v11398_v23 = vld [vmem:[#allocation11 + $0xa4] sm:$0xf]  ;;  %v10381_v12 = vor.u32 %v11425_v28, %v10380_v63  ;;  %v5920_v32 = vpop.f32.mrf.mxu3  ;;  %v10358_v28 = vld [vmem:[#allocation11 + $0x148] sm:$0xf0] }
 0x469   :  { %v10281_v27 = vor.u32 %v11398_v23, %v10278_v24  ;;  %v5921_v52 = vadd.f32 %v5920_v32, %v12292_v34  ;;  %v10369_v23 = vor.u32 %v11420_v21, %v10366_v22  ;;  %v11418_v63 = vld [vmem:[#allocation11 + $0x144] sm:$0xf]  ;;  %v11416_v32 = vld [vmem:[#allocation11 + $0x134] sm:$0xf]  ;;  %v10388_v21 = vld [vmem:[#allocation11 + $0x180] sm:$0xf] }
 0x46a   :  { %6635 = vmatpush.bf16.msrb.mxu0 %v10249_v61  ;;  %v5987_v48 = vpop.f32.mrf.mxu0  ;;  %v11400_v61 = vld [vmem:[#allocation11 + $0xb4] sm:$0xf]  ;;  %6608 = vmatpush.bf16.msra.mxu2 %v10381_v12  ;;  %v11427_v22 = vld [vmem:[#allocation11 + $0x184] sm:$0xf0] }
 0x46b   :  { %6175 = vmatpush.bf16.msrb.mxu3 %v10129_v29  ;;  %v10289_v6 = vor.u32 %v11400_v61, %v10286_v20  ;;  %v5934_v19 = vadd.f32 %v12298_v18, %v5921_v52  ;;  %v10373_v29 = vor.u32 %v11423_v9, %v10372_v4  ;;  %v11419_v18 = vld [vmem:[#allocation11 + $0x144] sm:$0xf0]  ;;  %v11413_v48 = vld [vmem:[#allocation11 + $0x114] sm:$0xf0]  ;;  %v11422_v61 = vld [vmem:[#allocation11 + $0x164] sm:$0xf] }
 0x46c   :  { %6648 = vmatpush.bf16.msrb.mxu1 %v10313_v40  ;;  %v6011_v0 = vpop.f32.mrf.mxu2  ;;  %v6000_v10 = vpop.f32.mrf.mxu1  ;;  %v10262_v40 = vld [vmem:[#allocation11 + $0x88] sm:$0xf0]  ;;  %v11412_v4 = vld [vmem:[#allocation11 + $0x114] sm:$0xf]  ;;  %v10334_v9 = vld [vmem:[#allocation11 + $0x118] sm:$0xf0] }
 0x46d   :  { %v12310_v33 = vadd.f32 %v6011_v0, %v5999_v55  ;;  %v10265_v35 = vor.u32 %v11394_v14, %v10262_v40  ;;  %v5947_v15 = vadd.f32 %v12300_v50, %v5934_v19  ;;  %v10356_v55 = vld [vmem:[#allocation11 + $0x140] sm:$0xf]  ;;  %v10374_v20 = vld [vmem:[#allocation11 + $0x168] sm:$0xf0] }
 0x46e   :  { %6636 = vmatpush.bf16.msrb.mxu0 %v10241_v59  ;;  %v10270_v59 = vld [vmem:[#allocation11 + $0x98] sm:$0xf0]  ;;  %6609 = vmatpush.bf16.msra.mxu2 %v10373_v29  ;;  %v10324_v10 = vld [vmem:[#allocation11 + $0x100] sm:$0xf]  ;;  %v10337_v29 = vor.u32 %v11412_v4, %v10334_v9  ;;  %v10406_v4 = vld [vmem:[#allocation11 + $0x1a8] sm:$0xf0] }
 0x46f   :  { %6176 = vmatpush.bf16.msrb.mxu3 %v10113_v49  ;;  %v10273_v47 = vor.u32 %v11396_v2, %v10270_v59  ;;  %v5960_v43 = vadd.f32 %v12302_v30, %v5947_v15  ;;  %v10348_v49 = vld [vmem:[#allocation11 + $0x130] sm:$0xf]  ;;  %v10340_v30 = vld [vmem:[#allocation11 + $0x120] sm:$0xf] }
 0x470   :  { %6649 = vmatpush.bf16.msrb.mxu1 %v10305_v1  ;;  %v10357_v1 = vor.u32 %v11419_v18, %v10356_v55  ;;  %v10349_v41 = vor.u32 %v11417_v57, %v10348_v49  ;;  %v10341_v0 = vor.u32 %v11415_v62, %v10340_v30  ;;  %v10444_v15 = vld [vmem:[#allocation11 + $0x1f0] sm:$0xf]  ;;  %v11435_v62 = vld [vmem:[#allocation11 + $0x1c4] sm:$0xf0] }
 0x471   :  { %v10428_v57 = vld [vmem:[#allocation11 + $0x1d0] sm:$0xf] }
 0x472   :  { %6637 = vmatpush.bf16.msrb.mxu0 %v10233_v36  ;;  %v5922_v36 = vpop.f32.mrf.mxu3 }
 0x473   :  { %6177 = vmatpush.bf16.msrb.mxu3 %v10097_v44  ;;  %v11411_v44 = vld [vmem:[#allocation11 + $0x104] sm:$0xf0]  ;;  %v10342_v36 = vld [vmem:[#allocation11 + $0x128] sm:$0xf0] }
 0x474   :  { %6650 = vmatpush.bf16.msrb.mxu1 %v10297_v3  ;;  %v6013_v31 = vpop.f32.mrf.mxu2  ;;  %v10332_v3 = vld [vmem:[#allocation11 + $0x110] sm:$0xf]  ;;  %v10325_v17 = vor.u32 %v11411_v44, %v10324_v10 }
 0x475   :  { %v10361_v31 = vor.u32 %v11418_v63, %v10358_v28  ;;  %v10438_v63 = vld [vmem:[#allocation11 + $0x1e8] sm:$0xf0] }
 0x476   :  { %6638 = vmatpush.bf16.msrb.mxu0 %v10225_v37 }
 0x477   :  { %6178 = vmatpush.bf16.msrb.mxu3 %v10081_v11 }
 0x478   :  { %6651 = vmatpush.bf16.msrb.mxu1 %v10289_v6  ;;  %v10377_v6 = vor.u32 %v11422_v61, %v10374_v20  ;;  %v10396_v20 = vld [vmem:[#allocation11 + $0x190] sm:$0xf] }
 0x47a   :  { %6639 = vmatpush.bf16.msrb.mxu0 %v10217_v45  ;;  %6179 = vmatmul.bf16.vlgmr.msrb.gmra.mxu3 %v12266_v54  ;;  %v11421_v54 = vld [vmem:[#allocation11 + $0x154] sm:$0xf0]  ;;  %v10333_v45 = vor.u32 %v11413_v48, %v10332_v3 }
 0x47b   :  { %v10365_v34 = vor.u32 %v11421_v54, %v10364_v42  ;;  %v5972_v56 = vpop.f32.mrf.mxu3  ;;  %v11441_v42 = vld [vmem:[#allocation11 + $0x1f4] sm:$0xf0] }
 0x47c   :  { %6652 = vmatpush.bf16.msrb.mxu1 %v10281_v27  ;;  %v5973_v13 = vadd.f32 %v5972_v56, %v5960_v43  ;;  %v10326_v43 = vld [vmem:[#allocation11 + $0x108] sm:$0xf0]  ;;  %v10445_v56 = vor.u32 %v11441_v42, %v10444_v15  ;;  %v10398_v15 = vld [vmem:[#allocation11 + $0x198] sm:$0xf0] }
 0x47d   :  { %6610 = vmatpush.bf16.msra.mxu2 %v10365_v34  ;;  %v11410_v34 = vld [vmem:[#allocation11 + $0x104] sm:$0xf] }
 0x47e   :  { %6640 = vmatpush.bf16.msrb.mxu0 %v10209_v25  ;;  %v6185_v37 = vmax.f32 %v5973_v13, 0.0  ;;  %v4483_v25 = vperm.slane %v12305_v26, 3  ;;  %6621 = vmatpush.bf16.msra.mxu3 %v10445_v56  ;;  %v10329_v55 = vor.u32 %v11410_v34, %v10326_v43  ;;  %v11426_v43 = vld [vmem:[#allocation11 + $0x184] sm:$0xf]  ;;  %v10390_v56 = vld [vmem:[#allocation11 + $0x188] sm:$0xf0] }
 0x480   :  { %6653 = vmatpush.bf16.msrb.mxu1 %v10273_v47  ;;  %v6189_v38 = vpack.c.bf16 %v6185_v37, %v6185_v37  ;;  %v11439_v37 = vld [vmem:[#allocation11 + $0x1e4] sm:$0xf0] }
 0x481   :  { %6611 = vmatpush.bf16.msra.mxu2 %v10357_v1  ;;  %v10436_v1 = vld [vmem:[#allocation11 + $0x1e0] sm:$0xf] }
 0x482   :  { %6641 = vmatpush.bf16.msrb.mxu0 %v10201_v8  ;;  %v12316_v39 = vpop.f32.mrf.mxu0  ;;  %6603 = vmatmul.bf16.vlgmr.msra.gmra.mxu1 %v6189_v38  ;;  %v10350_v8 = vld [vmem:[#allocation11 + $0x138] sm:$0xf0] }
 0x483   :  { %v5974_v60 = vpop.f32.mrf.mxu3  ;;  %v10353_v14 = vor.u32 %v11416_v32, %v10350_v8  ;;  %v11434_v8 = vld [vmem:[#allocation11 + $0x1c4] sm:$0xf] }
 0x484   :  { %6654 = vmatpush.bf16.msrb.mxu1 %v10265_v35  ;;  %v12318_v7 = vpop.f32.mrf.mxu1  ;;  %v11414_v35 = vld [vmem:[#allocation11 + $0x124] sm:$0xf] }
 0x485   :  { %6642 = vmatmul.bf16.vlgmr.msrb.gmra.mxu0 %v6188_v46  ;;  %6612 = vmatpush.bf16.msra.mxu2 %v10349_v41  ;;  %v10345_v19 = vor.u32 %v11414_v35, %v10342_v36  ;;  %v10414_v35 = vld [vmem:[#allocation11 + $0x1b8] sm:$0xf0] }
 0x489   :  { %6613 = vmatpush.bf16.msra.mxu2 %v10341_v0 }
 0x48a   :  { %v6039_v50 = vpop.f32.mrf.mxu0 }
 0x48b   :  { %v10437_v50 = vor.u32 %v11439_v37, %v10436_v1 }
 0x48c   :  { %v12321_v46 = vpop.f32.mrf.mxu2  ;;  %v6052_v58 = vpop.f32.mrf.mxu1 }
 0x48d   :  { %6614 = vmatpush.bf16.msra.mxu2 %v10333_v45  ;;  %6622 = vmatpush.bf16.msra.mxu3 %v10437_v50  ;;  %v11433_v45 = vld [vmem:[#allocation11 + $0x1b4] sm:$0xf0] }
 0x491   :  { %6615 = vmatpush.bf16.msra.mxu2 %v10325_v17  ;;  %v10404_v17 = vld [vmem:[#allocation11 + $0x1a0] sm:$0xf] }
 0x492   :  { %6655 = vmatmul.bf16.vlgmr.msrb.gmra.mxu1 %v6189_v38  ;;  %v11437_v38 = vld [vmem:[#allocation11 + $0x1d4] sm:$0xf0] }
 0x493   :  { %v10429_v41 = vor.u32 %v11437_v38, %v10428_v57 }
 0x494   :  { %v6065_v5 = vpop.f32.mrf.mxu2 }
 0x495   :  { %6660 = vmatpush.bf16.msrb.mxu2 %v10385_v53  ;;  %6623 = vmatpush.bf16.msra.mxu3 %v10429_v41  ;;  %v10412_v5 = vld [vmem:[#allocation11 + $0x1b0] sm:$0xf]  ;;  %v11431_v53 = vld [vmem:[#allocation11 + $0x1a4] sm:$0xf0] }
 0x496   :  { %v10413_v44 = vor.u32 %v11433_v45, %v10412_v5  ;;  %v10405_v61 = vor.u32 %v11431_v53, %v10404_v17  ;;  %v11456_v17 = vld [vmem:[#allocation14 + $0x70] sm:$0xff]  ;;  %v11447_v53 = vld [vmem:[#allocation14 + $0x28] sm:$0xff] }
 0x499   :  { %6661 = vmatpush.bf16.msrb.mxu2 %v10377_v6  ;;  %v11429_v6 = vld [vmem:[#allocation11 + $0x194] sm:$0xf0] }
 0x49b   :  { %v6024_v59 = vpop.f32.mrf.mxu3 }
 0x49c   :  { %v6025_v18 = vadd.f32 %v6024_v59, %v12310_v33  ;;  %v10420_v33 = vld [vmem:[#allocation11 + $0x1c0] sm:$0xf]  ;;  %v11438_v59 = vld [vmem:[#allocation11 + $0x1e4] sm:$0xf] }
 0x49d   :  { %6662 = vmatpush.bf16.msrb.mxu2 %v10369_v23  ;;  %v11440_v23 = vld [vmem:[#allocation11 + $0x1f4] sm:$0xf]  ;;  %v10441_v28 = vor.u32 %v11438_v59, %v10438_v63  ;;  %v11451_v63 = vld [vmem:[#allocation14 + $0x48] sm:$0xff] }
 0x49e   :  { %v6038_v13 = vadd.f32 %v12316_v39, %v6025_v18  ;;  %v10421_v39 = vor.u32 %v11435_v62, %v10420_v33  ;;  %v6256_v62 = vld [vmem:[#allocation13] sm:$0x3]  ;;  %v11452_v59 = vld [vmem:[#allocation14 + $0x50] sm:$0xff] }
 0x49f   :  { %v6259_v45 = vperm.slane %v6256_v62, 1 }
 0x4a0   :  { %v6051_v49 = vadd.f32 %v12318_v7, %v6038_v13  ;;  %6624 = vmatpush.bf16.msra.mxu3 %v10421_v39  ;;  %v6258_v39 = vperm.slane %v6256_v62, 0 }
 0x4a1   :  { %6663 = vmatpush.bf16.msrb.mxu2 %v10361_v31  ;;  %v11436_v31 = vld [vmem:[#allocation11 + $0x1d4] sm:$0xf] }
 0x4a2   :  { %v6089_v11 = vpop.f32.mrf.mxu0  ;;  %v6064_v30 = vadd.f32 %v12321_v46, %v6051_v49 }
 0x4a3   :  { %v6090_v24 = vadd.f32 %v6089_v11, %v4483_v25  ;;  %v6026_v52 = vpop.f32.mrf.mxu3  ;;  %v10397_v25 = vor.u32 %v11429_v6, %v10396_v20  ;;  %v11445_v20 = vld [vmem:[#allocation14 + $0x18] sm:$0xff] }
 0x4a4   :  { %v6102_v2 = vpop.f32.mrf.mxu1  ;;  %6625 = vmatpush.bf16.msra.mxu3 %v10413_v44  ;;  %v11432_v52 = vld [vmem:[#allocation11 + $0x1b4] sm:$0xf] }
 0x4a5   :  { %v6103_v27 = vadd.f32 %v6102_v2, %v6090_v24  ;;  %6664 = vmatpush.bf16.msrb.mxu2 %v10353_v14  ;;  %v10446_v24 = vld [vmem:[#allocation11 + $0x1f8] sm:$0xf0]  ;;  %v10389_v2 = vor.u32 %v11427_v22, %v10388_v21  ;;  %v10417_v36 = vor.u32 %v11432_v52, %v10414_v35 }
 0x4a8   :  { %6626 = vmatpush.bf16.msra.mxu3 %v10405_v61 }
 0x4a9   :  { %6665 = vmatpush.bf16.msrb.mxu2 %v10345_v19  ;;  %v11430_v19 = vld [vmem:[#allocation11 + $0x1a4] sm:$0xf] }
 0x4aa   :  { %v6091_v26 = vpop.f32.mrf.mxu0  ;;  %v10409_v9 = vor.u32 %v11430_v19, %v10406_v4 }
 0x4ab   :  { %v10422_v26 = vld [vmem:[#allocation11 + $0x1c8] sm:$0xf0] }
 0x4ac   :  { %v6115_v12 = vpop.f32.mrf.mxu2  ;;  %v6104_v40 = vpop.f32.mrf.mxu1  ;;  %6627 = vmatpush.bf16.msra.mxu3 %v10397_v25  ;;  %v11444_v25 = vld [vmem:[#allocation14 + $0x10] sm:$0xff] }
 0x4ad   :  { %v12324_v47 = vadd.f32 %v6115_v12, %v6103_v27  ;;  %6666 = vmatpush.bf16.msrb.mxu2 %v10337_v29  ;;  %v10449_v27 = vor.u32 %v11440_v23, %v10446_v24  ;;  %v10430_v12 = vld [vmem:[#allocation11 + $0x1d8] sm:$0xf0]  ;;  %v10425_v40 = vor.u32 %v11434_v8, %v10422_v26  ;;  %v11428_v29 = vld [vmem:[#allocation11 + $0x194] sm:$0xf]  ;;  %v11455_v23 = vld [vmem:[#allocation14 + $0x68] sm:$0xff] }
 0x4ae   :  { %v10433_v32 = vor.u32 %v11436_v31, %v10430_v12  ;;  %v10401_v34 = vor.u32 %v11428_v29, %v10398_v15  ;;  %v11442_v24 = vld [vmem:[#allocation14] sm:$0xff]  ;;  %v11464_v12 = vld [vmem:[#allocation17 + $0x30] sm:$0xff]  ;;  %v11463_v15 = vld [vmem:[#allocation17 + $0x28] sm:$0xff] }
 0x4af   :  { %v11465_v31 = vld [vmem:[#allocation17 + $0x38] sm:$0xff] }
 0x4b0   :  { %6628 = vmatpush.bf16.msra.mxu3 %v10389_v2  ;;  %v11454_v2 = vld [vmem:[#allocation14 + $0x60] sm:$0xff] }
 0x4b1   :  { %6667 = vmatpush.bf16.msrb.mxu2 %v10329_v55  ;;  %v10393_v55 = vor.u32 %v11426_v43, %v10390_v56  ;;  %v11459_v43 = vld [vmem:[#allocation17 + $0x8] sm:$0xff]  ;;  %v11458_v56 = vld [vmem:[#allocation17] sm:$0xff] }
 0x4b4   :  { %v6117_v54 = vpop.f32.mrf.mxu2  ;;  %6673 = vmatpush.bf16.msrb.mxu3 %v10449_v27  ;;  %v11453_v27 = vld [vmem:[#allocation14 + $0x58] sm:$0xff] }
 0x4b8   :  { %6674 = vmatpush.bf16.msrb.mxu3 %v10441_v28  ;;  %v11450_v28 = vld [vmem:[#allocation14 + $0x40] sm:$0xff] }
 0x4bb   :  { %v6076_v0 = vpop.f32.mrf.mxu3 }
 0x4bc   :  { %v6077_v3 = vadd.f32 %v6076_v0, %v6064_v30  ;;  %6675 = vmatpush.bf16.msrb.mxu3 %v10433_v32 }
 0x4be   :  { %v6186_v48 = vmax.f32 %v6077_v3, 0.0 }
 0x4c0   :  { %v6190_v51 = vpack.c.bf16 %v6186_v48, %v6186_v48  ;;  %6676 = vmatpush.bf16.msrb.mxu3 %v10425_v40 }
 0x4c2   :  { %v12329_v58 = vpop.f32.mrf.mxu0  ;;  %6616 = vmatmul.bf16.vlgmr.msra.gmra.mxu2 %v6190_v51 }
 0x4c3   :  { %v6078_v46 = vpop.f32.mrf.mxu3  ;;  %6918 = vmatpush.bf16.msra.mxu2 %v11465_v31 }
 0x4c4   :  { %v12331_v60 = vpop.f32.mrf.mxu1  ;;  %6677 = vmatpush.bf16.msrb.mxu3 %v10417_v36  ;;  %v11446_v46 = vld [vmem:[#allocation14 + $0x20] sm:$0xff] }
 0x4c7   :  { %6919 = vmatpush.bf16.msra.mxu2 %v11464_v12 }
 0x4c8   :  { %6678 = vmatpush.bf16.msrb.mxu3 %v10409_v9 }
 0x4ca   :  { %v6143_v10 = vpop.f32.mrf.mxu0 }
 0x4cb   :  { %6920 = vmatpush.bf16.msra.mxu2 %v11463_v15 }
 0x4cc   :  { %v6167_v7 = vpop.f32.mrf.mxu2  ;;  %v6156_v16 = vpop.f32.mrf.mxu1  ;;  %6679 = vmatpush.bf16.msrb.mxu3 %v10401_v34  ;;  %v11460_v34 = vld [vmem:[#allocation17 + $0x10] sm:$0xff] }
 0x4cd   :  { %v11448_v16 = vld [vmem:[#allocation14 + $0x30] sm:$0xff] }
 0x4d0   :  { %6680 = vmatpush.bf16.msrb.mxu3 %v10393_v55  ;;  %v11473_v55 = vld [vmem:[#allocation20 + $0x38] sm:$0xff] }
 0x4d2   :  { %6668 = vmatmul.bf16.vlgmr.msrb.gmra.mxu2 %v6190_v51  ;;  %v11457_v51 = vld [vmem:[#allocation14 + $0x78] sm:$0xff] }
 0x4d3   :  { %6835 = vmatpush.bf16.msra.mxu1 %v11457_v51 }
 0x4d4   :  { %v6169_v11 = vpop.f32.mrf.mxu2 }
 0x4d5   :  { %v11443_v11 = vld [vmem:[#allocation14 + $0x8] sm:$0xff] }
 0x4d7   :  { %6836 = vmatpush.bf16.msra.mxu1 %v11456_v17 }
 0x4db   :  { %6837 = vmatpush.bf16.msra.mxu1 %v11455_v23  ;;  %v11509_v23 = vld [vmem:[#allocation25] ss:$0 sm:$0xff] }
 0x4dd   :  { %v6128_v14 = vpop.f32.mrf.mxu3 }
 0x4de   :  { %v6129_v18 = vadd.f32 %v6128_v14, %v12324_v47 }
 0x4df   :  { %6838 = vmatpush.bf16.msra.mxu1 %v11454_v2 }
 0x4e0   :  { %v6142_v1 = vadd.f32 %v12329_v58, %v6129_v18  ;;  %v11472_v18 = vld [vmem:[#allocation20 + $0x30] sm:$0xff] }
 0x4e2   :  { %v6591_v54 = vpop.f32.mrf.mxu0  ;;  %v6155_v37 = vadd.f32 %v12331_v60, %v6142_v1 }
 0x4e3   :  { %v6592_v3 = vadd.f32 %v6591_v54, %v6258_v39  ;;  %6839 = vmatpush.bf16.msra.mxu1 %v11453_v27  ;;  %v11461_v54 = vld [vmem:[#allocation17 + $0x18] sm:$0xff] }
 0x4e4   :  { %v6168_v49 = vadd.f32 %v6167_v7, %v6155_v37  ;;  %v11449_v7 = vld [vmem:[#allocation14 + $0x38] sm:$0xff]  ;;  %v11470_v37 = vld [vmem:[#allocation20 + $0x20] sm:$0xff] }
 0x4e5   :  { %v6130_v42 = vpop.f32.mrf.mxu3  ;;  %6822 = vmatpush.bf16.msra.mxu0 %v11449_v7 }
 0x4e6   :  { %v11462_v42 = vld [vmem:[#allocation17 + $0x20] sm:$0xff] }
 0x4e7   :  { %6840 = vmatpush.bf16.msra.mxu1 %v11452_v59  ;;  %6921 = vmatpush.bf16.msra.mxu2 %v11462_v42 }
 0x4e9   :  { %6823 = vmatpush.bf16.msra.mxu0 %v11448_v16 }
 0x4ea   :  { %v6593_v13 = vpop.f32.mrf.mxu0 }
 0x4eb   :  { %6841 = vmatpush.bf16.msra.mxu1 %v11451_v63  ;;  %6922 = vmatpush.bf16.msra.mxu2 %v11461_v54  ;;  %v11471_v13 = vld [vmem:[#allocation20 + $0x28] sm:$0xff] }
 0x4ed   :  { %6824 = vmatpush.bf16.msra.mxu0 %v11447_v53 }
 0x4ef   :  { %6842 = vmatpush.bf16.msra.mxu1 %v11450_v28  ;;  %6923 = vmatpush.bf16.msra.mxu2 %v11460_v34 }
 0x4f1   :  { %6825 = vmatpush.bf16.msra.mxu0 %v11446_v46  ;;  %v11474_v46 = vld [vmem:[#allocation23] sm:$0xff] }
 0x4f3   :  { %6924 = vmatpush.bf16.msra.mxu2 %v11459_v43 }
 0x4f5   :  { %6826 = vmatpush.bf16.msra.mxu0 %v11445_v20  ;;  %v11508_v20 = vld [vmem:[#allocation22] ss:$0 sm:$0xff] }
 0x4f7   :  { %6925 = vmatpush.bf16.msra.mxu2 %v11458_v56 }
 0x4f9   :  { %6827 = vmatpush.bf16.msra.mxu0 %v11444_v25 }
 0x4fd   :  { %v6180_v57 = vpop.f32.mrf.mxu3  ;;  %6828 = vmatpush.bf16.msra.mxu0 %v11443_v11 }
 0x4fe   :  { %v6181_v38 = vadd.f32 %v6180_v57, %v6168_v49  ;;  %v11468_v57 = vld [vmem:[#allocation20 + $0x10] sm:$0xff] }
 0x4ff   :  { %v6604_v48 = vpop.f32.mrf.mxu1 }
 0x500   :  { %v6187_v41 = vmax.f32 %v6181_v38, 0.0  ;;  %v6605_v47 = vadd.f32 %v6604_v48, %v6592_v3  ;;  %v11506_v38 = vld [vmem:[#allocation16] ss:$0 sm:$0xff]  ;;  %v11467_v3 = vld [vmem:[#allocation20 + $0x8] sm:$0xff]  ;;  %v11466_v48 = vld [vmem:[#allocation20] sm:$0xff] }
 0x501   :  { %6829 = vmatpush.bf16.msra.mxu0 %v11442_v24 }
 0x502   :  { %v6643_v50 = vpop.f32.mrf.mxu0  ;;  %v6191_v30 = vpack.c.bf16 %v6187_v41, %v6187_v41 }
 0x503   :  { %v6644_v58 = vadd.f32 %v6643_v50, %v6259_v45  ;;  %v11469_v50 = vld [vmem:[#allocation20 + $0x18] sm:$0xff]  ;;  %v11479_v45 = vld [vmem:[#allocation23 + $0x28] sm:$0xff] }
 0x504   :  { %6629 = vmatmul.bf16.vlgmr.msra.gmra.mxu3 %v6191_v30 }
 0x505   :  { %v6182_v0 = vpop.f32.mrf.mxu3  ;;  %7001 = vmatpush.bf16.msra.mxu3 %v11473_v55 }
 0x507   :  { %v6606_v5 = vpop.f32.mrf.mxu1 }
 0x508   :  { %v11480_v5 = vld [vmem:[#allocation23 + $0x30] sm:$0xff] }
 0x509   :  { %7002 = vmatpush.bf16.msra.mxu3 %v11472_v18 }
 0x50a   :  { %v6645_v33 = vpop.f32.mrf.mxu0 }
 0x50d   :  { %7003 = vmatpush.bf16.msra.mxu3 %v11471_v13 }
 0x50f   :  { %v6656_v10 = vpop.f32.mrf.mxu1 }
 0x510   :  { %v6657_v60 = vadd.f32 %v6656_v10, %v6644_v58  ;;  %v11478_v58 = vld [vmem:[#allocation23 + $0x20] sm:$0xff]  ;;  %v11477_v10 = vld [vmem:[#allocation23 + $0x18] sm:$0xff] }
 0x511   :  { %7004 = vmatpush.bf16.msra.mxu3 %v11470_v37 }
 0x514   :  { %6681 = vmatmul.bf16.vlgmr.msrb.gmra.mxu3 %v6191_v30 }
 0x515   :  { %7005 = vmatpush.bf16.msra.mxu3 %v11469_v50 }
 0x517   :  { %v6658_v44 = vpop.f32.mrf.mxu1 }
 0x518   :  { %v11507_v44 = vld [vmem:[#allocation19] ss:$0 sm:$0xff] }
 0x519   :  { %7006 = vmatpush.bf16.msra.mxu3 %v11468_v57 }
 0x51d   :  { %7007 = vmatpush.bf16.msra.mxu3 %v11467_v3 }
 0x521   :  { %7008 = vmatpush.bf16.msra.mxu3 %v11466_v48 }
 0x545   :  { %v6617_v61 = vpop.f32.mrf.mxu2 }
 0x546   :  { %v6618_v32 = vadd.f32 %v6617_v61, %v6605_v47  ;;  %v11481_v47 = vld [vmem:[#allocation23 + $0x38] sm:$0xff]  ;;  %v11475_v61 = vld [vmem:[#allocation23 + $0x8] sm:$0xff] }
 0x547   :  { %7084 = vmatpush.bf16.msrb.mxu0 %v11481_v47 }
 0x54b   :  { %7085 = vmatpush.bf16.msrb.mxu0 %v11480_v5 }
 0x54d   :  { %v6619_v6 = vpop.f32.mrf.mxu2 }
 0x54f   :  { %7086 = vmatpush.bf16.msrb.mxu0 %v11479_v45 }
 0x553   :  { %7087 = vmatpush.bf16.msrb.mxu0 %v11478_v58 }
 0x555   :  { %v6669_v21 = vpop.f32.mrf.mxu2 }
 0x556   :  { %v6670_v35 = vadd.f32 %v6669_v21, %v6657_v60  ;;  %v11476_v60 = vld [vmem:[#allocation23 + $0x10] sm:$0xff] }
 0x557   :  { %7088 = vmatpush.bf16.msrb.mxu0 %v11477_v10 }
 0x55b   :  { %7089 = vmatpush.bf16.msrb.mxu0 %v11476_v60 }
 0x55d   :  { %v6671_v22 = vpop.f32.mrf.mxu2 }
 0x55f   :  { %7090 = vmatpush.bf16.msrb.mxu0 %v11475_v61 }
 0x563   :  { %7091 = vmatpush.bf16.msrb.mxu0 %v11474_v46 }
 0x587   :  { %v6630_v8 = vpop.f32.mrf.mxu3 }
 0x588   :  { %v6631_v26 = vadd.f32 %v6630_v8, %v6618_v32 }
 0x58a   :  { %v6686_v14 = vmax.f32 %v6631_v26, 0.0 }
 0x58c   :  { %v6688_v40 = vpack.c.bf16 %v6686_v14, %v6686_v14 }
 0x58e   :  { %6830 = vmatmul.bf16.vlgmr.msra.gmra.mxu0 %v6688_v40 }
 0x58f   :  { %v6632_v52 = vpop.f32.mrf.mxu3 }
 0x597   :  { %v6682_v36 = vpop.f32.mrf.mxu3 }
 0x598   :  { %v6683_v19 = vadd.f32 %v6682_v36, %v6670_v35 }
 0x59a   :  { %v6687_v4 = vmax.f32 %v6683_v19, 0.0 }
 0x59c   :  { %v6689_v9 = vpack.c.bf16 %v6687_v4, %v6687_v4 }
 0x59e   :  { %6843 = vmatmul.bf16.vlgmr.msra.gmra.mxu1 %v6689_v9 }
 0x59f   :  { %v6684_v29 = vpop.f32.mrf.mxu3 }
 0x60b   :  { %v6831_v1 = vpop.f32.mrf.mxu0 }
 0x60c   :  { %v6832_v41 = vadd.f32 %v11506_v38, %v6831_v1 }
 0x613   :  { %v6833_v49 = vpop.f32.mrf.mxu0 }
 0x61b   :  { %v6844_v30 = vpop.f32.mrf.mxu1 }
 0x61c   :  { %v6845_v33 = vadd.f32 %v6844_v30, %v6832_v41 }
 0x61e   :  { %v6848_v62 = vmax.f32 %v6845_v33, 0.0 }
 0x620   :  { %v6849_v0 = vpack.c.bf16 %v6848_v62, %v6848_v62 }
 0x622   :  { %6926 = vmatmul.bf16.vlgmr.msra.gmra.mxu2 %v6849_v0 }
 0x623   :  { %v6846_v39 = vpop.f32.mrf.mxu1 }
 0x6a5   :  { %v6927_v7 = vpop.f32.mrf.mxu2 }
 0x6a6   :  { %v6928_v51 = vadd.f32 %v11507_v44, %v6927_v7 }
 0x6a8   :  { %v6931_v16 = vmax.f32 %v6928_v51, 0.0 }
 0x6aa   :  { %v6932_v17 = vpack.c.bf16 %v6931_v16, %v6931_v16 }
 0x6ac   :  { %7009 = vmatmul.bf16.vlgmr.msra.gmra.mxu3 %v6932_v17 }
 0x6ad   :  { %v6929_v53 = vpop.f32.mrf.mxu2 }
 0x72f   :  { %v7010_v6 = vpop.f32.mrf.mxu3 }
 0x730   :  { %v7011_v25 = vadd.f32 %v11508_v20, %v7010_v6 }
 0x732   :  { %v7014_v21 = vmax.f32 %v7011_v25, 0.0 }
 0x734   :  { %v7015_v22 = vpack.c.bf16 %v7014_v21, %v7014_v21 }
 0x736   :  { %7092 = vmatmul.bf16.vlgmr.msrb.gmra.mxu0 %v7015_v22 }
 0x737   :  { %v7012_v11 = vpop.f32.mrf.mxu3 }
 0x7b3   :  { %v7093_v24 = vpop.f32.mrf.mxu0 }
 0x7b4   :  { %v7094_v2 = vadd.f32 %v11509_v23, %v7093_v24 }
 0x7b6   :  { %7097 = vst [vmem:[#allocation26] sm:$0xff] %v7094_v2 }
 0x7b7   :  { %7108 = dma.vmem_to_hbm [thread:$0]  %s7104_s14, 128, %s7106_s25, [#allocation4]  }
 0x7bb   :  { %v7095_v27 = vpop.f32.mrf.mxu0 }
 0x7bc   :  { %11914 = dma.done.wait [#allocation4], 128  }
 0x7bd   :  { %11915 = vsyncadd [#allocation4], 4294967168 }
 0x7be   :  { %7113 = vsyncpa [#allocation3], 1 }
 0x7bf   :  { %7114 = vsyncpa [#allocation6], 1 }
 0x7c0   :  { %7115 = vsyncpa [#allocation9], 1 }
 0x7c1   :  { %7116 = vsyncpa [#allocation12], 1 }
 0x7c2   :  { %7117 = vsyncpa [#allocation15], 1 }
 0x7c3   :  { %7118 = vsyncpa [#allocation18], 1 }
 0x7c4   :  { %7119 = vsyncpa [#allocation21], 1 }
 0x7c5   :  { %7120 = vsyncpa [#allocation24], 1 }
 0x7c6   :  { %7121 = vsyncpa [#allocation4], 1 }

</bundles_post_ra>
